<compile_context>
chip_gen: v5e
topology: v5e:2x2
jax: 0.10.0
libtpu: 0.0.40
codegen_flags: <defaults>
</compile_context>

<pallas_src>
import functools

import jax
import jax.numpy as jnp
from jax.experimental import pallas as pl
from jax.experimental.pallas import tpu as pltpu

_NEG_SLOPE = 0.01  # F.leaky_relu default
_H1 = 512
_H2 = 1024


def _round_up(v, m):
    return (v + m - 1) // m * m


def _leaky_relu(h):
    # For 0 < slope < 1, leaky_relu(h) == max(h, slope*h).
    return jnp.maximum(h, _NEG_SLOPE * h)


def _awa2conv_kernel(a_ref, x_ref, w1_ref, b1_ref, w2_ref, b2_ref,
                     w3_ref, b3_ref, o_ref, h_ref, *, pre_aggregate):
    """Fused 3-layer GCN.  The grid axis tiles the final layer's output features.

    Layers 1 & 2 run once (first grid step) and leave their activation in VMEM
    scratch that all later output tiles reuse; layer 3 runs per output tile.
    If `pre_aggregate`, the scratch holds a_hat @ h2 (so layer 3 is a single
    matmul per tile); otherwise it holds h2.
    """
    j = pl.program_id(0)

    @pl.when(j == 0)
    def _():
        # ---- layer 1: h1 = leaky_relu((a_hat @ x) @ W1 + b1) ----
        ax = jnp.dot(a_ref[...], x_ref[...], preferred_element_type=jnp.float32)
        h1 = jnp.dot(ax.astype(jnp.bfloat16), w1_ref[...],
                     preferred_element_type=jnp.float32) + b1_ref[...]
        h1 = _leaky_relu(h1).astype(jnp.bfloat16)
        # ---- layer 2: h2 = leaky_relu((a_hat @ h1) @ W2 + b2) ----
        ah1 = jnp.dot(a_ref[...], h1, preferred_element_type=jnp.float32)
        h2 = jnp.dot(ah1.astype(jnp.bfloat16), w2_ref[...],
                     preferred_element_type=jnp.float32) + b2_ref[...]
        h2 = _leaky_relu(h2).astype(jnp.bfloat16)
        if pre_aggregate:
            # Wide final layer: aggregate over the graph once (N^2 * H2) so
            # every output tile needs only one matmul.
            h2 = jnp.dot(a_ref[...], h2,
                         preferred_element_type=jnp.float32).astype(jnp.bfloat16)
        h_ref[...] = h2

    # ---- layer 3 (per output-feature tile) ----
    if pre_aggregate:
        o = jnp.dot(h_ref[...], w3_ref[...],
                    preferred_element_type=jnp.float32) + b3_ref[...]
    else:
        hw = jnp.dot(h_ref[...], w3_ref[...], preferred_element_type=jnp.float32)
        o = jnp.dot(a_ref[...], hw.astype(jnp.bfloat16),
                    preferred_element_type=jnp.float32) + b3_ref[...]
    o_ref[...] = o.astype(o_ref.dtype)


def awa2conv_forward(a_hat, x, params):
    """Forward of AwA2Conv: conv1 -> leaky_relu -> conv2 -> leaky_relu -> conv3."""
    n, f_in = x.shape
    f_out = params["w3"].shape[1]

    # Pad node / feature dims to multiples of 128 for lane-dense vregs.
    n_p = _round_up(n, 128)
    f_in_p = _round_up(f_in, 128)
    f_out_p = _round_up(f_out, 128)

    a_p = jnp.pad(a_hat, ((0, n_p - n), (0, n_p - n))).astype(jnp.bfloat16)
    x_p = jnp.pad(x, ((0, n_p - n), (0, f_in_p - f_in))).astype(jnp.bfloat16)
    w1 = jnp.pad(params["w1"], ((0, f_in_p - f_in), (0, 0))).astype(jnp.bfloat16)
    w2 = params["w2"].astype(jnp.bfloat16)
    w3 = jnp.pad(params["w3"], ((0, 0), (0, f_out_p - f_out))).astype(jnp.bfloat16)
    b1 = params["b1"].reshape(1, _H1).astype(jnp.float32)
    b2 = params["b2"].reshape(1, _H2).astype(jnp.float32)
    b3 = jnp.pad(params["b3"], (0, f_out_p - f_out)).reshape(1, f_out_p)
    b3 = b3.astype(jnp.float32)

    # Final-layer output-feature tile: 256 fills the v6e/v7x MXU result width,
    # 128 (one MXU pass) otherwise.
    tn = 256 if f_out_p % 256 == 0 else 128
    grid = (f_out_p // tn,)

    # Pick the cheaper layer-3 contraction order (static, trace-time choice).
    pre_aggregate = f_out_p > _H2
    kernel = functools.partial(_awa2conv_kernel, pre_aggregate=pre_aggregate)

    out_p = pl.pallas_call(
        kernel,
        out_shape=jax.ShapeDtypeStruct((n_p, f_out_p), jnp.float32),
        grid=grid,
        in_specs=[
            pl.BlockSpec((n_p, n_p), lambda j: (0, 0)),      # a_hat (resident)
            pl.BlockSpec((n_p, f_in_p), lambda j: (0, 0)),   # x     (resident)
            pl.BlockSpec((f_in_p, _H1), lambda j: (0, 0)),   # W1
            pl.BlockSpec((1, _H1), lambda j: (0, 0)),        # b1
            pl.BlockSpec((_H1, _H2), lambda j: (0, 0)),      # W2
            pl.BlockSpec((1, _H2), lambda j: (0, 0)),        # b2
            pl.BlockSpec((_H2, tn), lambda j: (0, j)),       # W3 tile
            pl.BlockSpec((1, tn), lambda j: (0, j)),         # b3 tile
        ],
        out_specs=pl.BlockSpec((n_p, tn), lambda j: (0, j)),
        # Scratch activation (h2 or a_hat @ h2), reused by every output tile.
        scratch_shapes=[pltpu.VMEM((n_p, _H2), jnp.bfloat16)],
        compiler_params=pltpu.CompilerParams(
            # Serial over output tiles: step j==0 materializes the scratch
            # activation that later tiles read.
            # TODO(synk): for very large N, tile a_hat with an extra
            # row/contraction grid axis (v7x has only 64 MiB VMEM) instead of
            # keeping it resident.
            dimension_semantics=("arbitrary",),
        ),
    )(a_p, x_p, w1, b1, w2, b2, w3, b3)

    return out_p[:n, :f_out]


def _xavier_uniform(key, fan_in, fan_out):
    limit = jnp.sqrt(6.0 / (fan_in + fan_out))
    return jax.random.uniform(key, (fan_in, fan_out), jnp.float32, -limit, limit)


def init_params(key, num_feature, num_output):
    k1, k2, k3 = jax.random.split(key, 3)
    return {
        "w1": _xavier_uniform(k1, num_feature, _H1),
        "b1": jnp.zeros((_H1,), jnp.float32),
        "w2": _xavier_uniform(k2, _H1, _H2),
        "b2": jnp.zeros((_H2,), jnp.float32),
        "w3": _xavier_uniform(k3, _H2, num_output),
        "b3": jnp.zeros((num_output,), jnp.float32),
    }


def normalized_adjacency(adj):
    """D^-1/2 A D^-1/2 (DGL GraphConv norm='both', degree clamped to >=1)."""
    deg = jnp.maximum(adj.sum(axis=1), 1.0)
    d_inv_sqrt = 1.0 / jnp.sqrt(deg)
    return adj * d_inv_sqrt[:, None] * d_inv_sqrt[None, :]


def _reference_forward(a_hat, x, params):
    def lrelu(v):
        return jnp.where(v >= 0, v, 0.01 * v)
    h = lrelu(a_hat @ (x @ params["w1"]) + params["b1"])
    h = lrelu(a_hat @ (h @ params["w2"]) + params["b2"])
    return a_hat @ (h @ params["w3"]) + params["b3"]


if __name__ == "__main__":
    key = jax.random.PRNGKey(0)
    k_adj, k_x, k_p = jax.random.split(key, 3)

    N = 32            # number of graph nodes
    NUM_FEATURE = 64  # input node-feature dim
    NUM_OUTPUT = 64   # output dim

    # Random symmetric graph with self-loops, then symmetric normalization.
    rand = jax.random.uniform(k_adj, (N, N))
    adj = (rand + rand.T > 1.2).astype(jnp.float32)
    adj = jnp.maximum(adj, jnp.eye(N, dtype=jnp.float32))
    a_hat = normalized_adjacency(adj)

    x = jax.random.normal(k_x, (N, NUM_FEATURE), jnp.float32)
    params = init_params(k_p, NUM_FEATURE, NUM_OUTPUT)

    out = awa2conv_forward(a_hat, x, params)
    out = jax.block_until_ready(out)

    ref = _reference_forward(a_hat, x, params)
    assert out.shape == (N, NUM_OUTPUT)
    # bf16 MXU operands with f32 accumulation -> compare against the pure-f32
    # reference at a bf16-appropriate tolerance.
    max_err = float(jnp.max(jnp.abs(out - ref)))
    assert jnp.allclose(out, ref, atol=2e-2, rtol=2e-2), f"max abs err {max_err}"

    print("KERNEL_OK")
</pallas_src>

<mosaic_0001>
module attributes {stable_mosaic.version = 11 : i64} {
  func.func @_awa2conv_kernel(%arg0: i32, %arg1: memref<128x128xbf16, #tpu.memory_space<vmem>>, %arg2: memref<128x128xbf16, #tpu.memory_space<vmem>>, %arg3: memref<128x512xbf16, #tpu.memory_space<vmem>>, %arg4: memref<1x512xf32, #tpu.memory_space<vmem>>, %arg5: memref<512x1024xbf16, #tpu.memory_space<vmem>>, %arg6: memref<1x1024xf32, #tpu.memory_space<vmem>>, %arg7: memref<1024x128xbf16, #tpu.memory_space<vmem>>, %arg8: memref<1x128xf32, #tpu.memory_space<vmem>>, %arg9: memref<128x128xf32, #tpu.memory_space<vmem>>, %arg10: memref<128x1024xbf16, #tpu.memory_space<vmem>>) attributes {dimension_semantics = [#tpu.dimension_semantics<arbitrary>], iteration_bounds = array<i64: 1>, scalar_prefetch = 0 : i64, scratch_operands = 1 : i64, tpu.core_type = #tpu.core_type<tc>, window_params = [{pipeline_mode = #tpu.pipeline_mode<synchronous>, transform_indices = @transform_0, window_bounds = array<i64: 128, 128>}, {pipeline_mode = #tpu.pipeline_mode<synchronous>, transform_indices = @transform_1, window_bounds = array<i64: 128, 128>}, {pipeline_mode = #tpu.pipeline_mode<synchronous>, transform_indices = @transform_2, window_bounds = array<i64: 128, 512>}, {pipeline_mode = #tpu.pipeline_mode<synchronous>, transform_indices = @transform_3, window_bounds = array<i64: 1, 512>}, {pipeline_mode = #tpu.pipeline_mode<synchronous>, transform_indices = @transform_4, window_bounds = array<i64: 512, 1024>}, {pipeline_mode = #tpu.pipeline_mode<synchronous>, transform_indices = @transform_5, window_bounds = array<i64: 1, 1024>}, {transform_indices = @transform_6, window_bounds = array<i64: 1024, 128>}, {transform_indices = @transform_7, window_bounds = array<i64: 1, 128>}, {transform_indices = @transform_8, window_bounds = array<i64: 128, 128>}]} {
    %c0_i32 = arith.constant 0 : i32
    %0 = arith.cmpi eq, %arg0, %c0_i32 : i32
    %1 = arith.extui %0 : i1 to i32
    %c0_i32_0 = arith.constant 0 : i32
    %2 = arith.cmpi ne, %1, %c0_i32_0 : i32
    scf.if %2 {
      %c0_11 = arith.constant 0 : index
      %c0_12 = arith.constant 0 : index
      %13 = vector.load %arg1[%c0_11, %c0_12] : memref<128x128xbf16, #tpu.memory_space<vmem>>, vector<128x128xbf16>
      %c0_13 = arith.constant 0 : index
      %c0_14 = arith.constant 0 : index
      %14 = vector.load %arg2[%c0_13, %c0_14] : memref<128x128xbf16, #tpu.memory_space<vmem>>, vector<128x128xbf16>
      %cst_15 = arith.constant dense<0.000000e+00> : vector<128x128xf32>
      %15 = tpu.matmul %13, %14, %cst_15 {dimension_numbers = #tpu.dot_dimension_numbers<[1], [0], [0], [1], [0, 0, 1, 1], [], []>} : vector<128x128xbf16>, vector<128x128xbf16>, vector<128x128xf32> -> vector<128x128xf32>
      %16 = arith.truncf %15 : vector<128x128xf32> to vector<128x128xbf16>
      %c0_16 = arith.constant 0 : index
      %c0_17 = arith.constant 0 : index
      %17 = vector.load %arg3[%c0_16, %c0_17] : memref<128x512xbf16, #tpu.memory_space<vmem>>, vector<128x512xbf16>
      %cst_18 = arith.constant dense<0.000000e+00> : vector<128x512xf32>
      %18 = tpu.matmul %16, %17, %cst_18 {dimension_numbers = #tpu.dot_dimension_numbers<[1], [0], [0], [1], [0, 0, 1, 1], [], []>} : vector<128x128xbf16>, vector<128x512xbf16>, vector<128x512xf32> -> vector<128x512xf32>
      %c0_19 = arith.constant 0 : index
      %c0_20 = arith.constant 0 : index
      %19 = vector.load %arg4[%c0_19, %c0_20] : memref<1x512xf32, #tpu.memory_space<vmem>>, vector<1x512xf32>
      %20 = vector.broadcast %19 : vector<1x512xf32> to vector<128x512xf32>
      %21 = arith.addf %18, %20 : vector<128x512xf32>
      %cst_21 = arith.constant 0.00999999977 : f32
      %22 = vector.broadcast %cst_21 : f32 to vector<128x512xf32>
      %23 = arith.mulf %22, %21 : vector<128x512xf32>
      %24 = arith.maximumf %21, %23 : vector<128x512xf32>
      %25 = arith.truncf %24 : vector<128x512xf32> to vector<128x512xbf16>
      %c0_22 = arith.constant 0 : index
      %c0_23 = arith.constant 0 : index
      %26 = vector.load %arg1[%c0_22, %c0_23] : memref<128x128xbf16, #tpu.memory_space<vmem>>, vector<128x128xbf16>
      %cst_24 = arith.constant dense<0.000000e+00> : vector<128x512xf32>
      %27 = tpu.matmul %26, %25, %cst_24 {dimension_numbers = #tpu.dot_dimension_numbers<[1], [0], [0], [1], [0, 0, 1, 1], [], []>} : vector<128x128xbf16>, vector<128x512xbf16>, vector<128x512xf32> -> vector<128x512xf32>
      %28 = arith.truncf %27 : vector<128x512xf32> to vector<128x512xbf16>
      %c0_25 = arith.constant 0 : index
      %c0_26 = arith.constant 0 : index
      %29 = vector.load %arg5[%c0_25, %c0_26] : memref<512x1024xbf16, #tpu.memory_space<vmem>>, vector<512x1024xbf16>
      %cst_27 = arith.constant dense<0.000000e+00> : vector<128x1024xf32>
      %30 = tpu.matmul %28, %29, %cst_27 {dimension_numbers = #tpu.dot_dimension_numbers<[1], [0], [0], [1], [0, 0, 1, 1], [], []>} : vector<128x512xbf16>, vector<512x1024xbf16>, vector<128x1024xf32> -> vector<128x1024xf32>
      %c0_28 = arith.constant 0 : index
      %c0_29 = arith.constant 0 : index
      %31 = vector.load %arg6[%c0_28, %c0_29] : memref<1x1024xf32, #tpu.memory_space<vmem>>, vector<1x1024xf32>
      %32 = vector.broadcast %31 : vector<1x1024xf32> to vector<128x1024xf32>
      %33 = arith.addf %30, %32 : vector<128x1024xf32>
      %cst_30 = arith.constant 0.00999999977 : f32
      %34 = vector.broadcast %cst_30 : f32 to vector<128x1024xf32>
      %35 = arith.mulf %34, %33 : vector<128x1024xf32>
      %36 = arith.maximumf %33, %35 : vector<128x1024xf32>
      %37 = arith.truncf %36 : vector<128x1024xf32> to vector<128x1024xbf16>
      %c0_31 = arith.constant 0 : index
      %c0_32 = arith.constant 0 : index
      %38 = vector.load %arg10[%c0_31, %c0_32] : memref<128x1024xbf16, #tpu.memory_space<vmem>>, vector<128x1024xbf16>
      tpu.vector_store %arg10[%c0_31, %c0_32], %37 {strides = array<i32>} : memref<128x1024xbf16, #tpu.memory_space<vmem>>, vector<128x1024xbf16>,
    } else {
    }
    %c0 = arith.constant 0 : index
    %c0_1 = arith.constant 0 : index
    %3 = vector.load %arg10[%c0, %c0_1] : memref<128x1024xbf16, #tpu.memory_space<vmem>>, vector<128x1024xbf16>
    %c0_2 = arith.constant 0 : index
    %c0_3 = arith.constant 0 : index
    %4 = vector.load %arg7[%c0_2, %c0_3] : memref<1024x128xbf16, #tpu.memory_space<vmem>>, vector<1024x128xbf16>
    %cst = arith.constant dense<0.000000e+00> : vector<128x128xf32>
    %5 = tpu.matmul %3, %4, %cst {dimension_numbers = #tpu.dot_dimension_numbers<[1], [0], [0], [1], [0, 0, 1, 1], [], []>} : vector<128x1024xbf16>, vector<1024x128xbf16>, vector<128x128xf32> -> vector<128x128xf32>
    %c0_4 = arith.constant 0 : index
    %c0_5 = arith.constant 0 : index
    %6 = vector.load %arg1[%c0_4, %c0_5] : memref<128x128xbf16, #tpu.memory_space<vmem>>, vector<128x128xbf16>
    %7 = arith.truncf %5 : vector<128x128xf32> to vector<128x128xbf16>
    %cst_6 = arith.constant dense<0.000000e+00> : vector<128x128xf32>
    %8 = tpu.matmul %6, %7, %cst_6 {dimension_numbers = #tpu.dot_dimension_numbers<[1], [0], [0], [1], [0, 0, 1, 1], [], []>} : vector<128x128xbf16>, vector<128x128xbf16>, vector<128x128xf32> -> vector<128x128xf32>
    %c0_7 = arith.constant 0 : index
    %c0_8 = arith.constant 0 : index
    %9 = vector.load %arg8[%c0_7, %c0_8] : memref<1x128xf32, #tpu.memory_space<vmem>>, vector<1x128xf32>
    %10 = vector.broadcast %9 : vector<1x128xf32> to vector<128x128xf32>
    %11 = arith.addf %8, %10 : vector<128x128xf32>
    %c0_9 = arith.constant 0 : index
    %c0_10 = arith.constant 0 : index
    %12 = vector.load %arg9[%c0_9, %c0_10] : memref<128x128xf32, #tpu.memory_space<vmem>>, vector<128x128xf32>
    tpu.vector_store %arg9[%c0_9, %c0_10], %11 {strides = array<i32>} : memref<128x128xf32, #tpu.memory_space<vmem>>, vector<128x128xf32>,
    return
  }
  func.func @transform_0(%arg0: i32) -> (i32, i32) {
    %c0_i32 = arith.constant 0 : i32
    %c0_i32_0 = arith.constant 0 : i32
    %c0_i32_1 = arith.constant 0 : i32
    return %c0_i32, %c0_i32_0 : i32, i32
  }
  func.func @transform_1(%arg0: i32) -> (i32, i32) {
    %c0_i32 = arith.constant 0 : i32
    %c0_i32_0 = arith.constant 0 : i32
    %c0_i32_1 = arith.constant 0 : i32
    return %c0_i32, %c0_i32_0 : i32, i32
  }
  func.func @transform_2(%arg0: i32) -> (i32, i32) {
    %c0_i32 = arith.constant 0 : i32
    %c0_i32_0 = arith.constant 0 : i32
    %c0_i32_1 = arith.constant 0 : i32
    return %c0_i32, %c0_i32_0 : i32, i32
  }
  func.func @transform_3(%arg0: i32) -> (i32, i32) {
    %c0_i32 = arith.constant 0 : i32
    %c0_i32_0 = arith.constant 0 : i32
    %c0_i32_1 = arith.constant 0 : i32
    return %c0_i32, %c0_i32_0 : i32, i32
  }
  func.func @transform_4(%arg0: i32) -> (i32, i32) {
    %c0_i32 = arith.constant 0 : i32
    %c0_i32_0 = arith.constant 0 : i32
    %c0_i32_1 = arith.constant 0 : i32
    return %c0_i32, %c0_i32_0 : i32, i32
  }
  func.func @transform_5(%arg0: i32) -> (i32, i32) {
    %c0_i32 = arith.constant 0 : i32
    %c0_i32_0 = arith.constant 0 : i32
    %c0_i32_1 = arith.constant 0 : i32
    return %c0_i32, %c0_i32_0 : i32, i32
  }
  func.func @transform_6(%arg0: i32) -> (i32, i32) {
    %c0_i32 = arith.constant 0 : i32
    %c0_i32_0 = arith.constant 0 : i32
    return %c0_i32, %arg0 : i32, i32
  }
  func.func @transform_7(%arg0: i32) -> (i32, i32) {
    %c0_i32 = arith.constant 0 : i32
    %c0_i32_0 = arith.constant 0 : i32
    return %c0_i32, %arg0 : i32, i32
  }
  func.func @transform_8(%arg0: i32) -> (i32, i32) {
    %c0_i32 = arith.constant 0 : i32
    %c0_i32_0 = arith.constant 0 : i32
    return %c0_i32, %arg0 : i32, i32
  }
}

</mosaic_0001>

<bundles_post_ra>
// kernel: tpu_custom_call.1
= control target key start
LH: loop header
LB: loop body
LE: loop exit
PB: predicated region body
PF: predicated region fallthrough
CT: control target
= control target key end

     0   :  { %13 = vsyncpa [#allocation4], 0  ;;  %s10913_s0 = inlined_call_operand.hbm [shape: bf16[128,128], index: 0, kind: input, shape index: {}]   ;;  %s10914_s1 = inlined_call_operand.hbm [shape: bf16[128,128], index: 1, kind: input, shape index: {}]   ;;  %s10915_s2 = inlined_call_operand.hbm [shape: bf16[128,512], index: 2, kind: input, shape index: {}]   ;;  %s10916_s3 = inlined_call_operand.hbm [shape: f32[1,512], index: 3, kind: input, shape index: {}]   ;;  %s10917_s4 = inlined_call_operand.hbm [shape: bf16[512,1024], index: 4, kind: input, shape index: {}]   ;;  %s10918_s5 = inlined_call_operand.hbm [shape: f32[1,1024], index: 5, kind: input, shape index: {}]   ;;  %s10919_s6 = inlined_call_operand.hbm [shape: bf16[1024,128], index: 6, kind: input, shape index: {}]   ;;  %s10920_s7 = inlined_call_operand.vmem [shape: f32[1,128], index: 7, kind: input, shape index: {}]   ;;  %s10921_s8 = inlined_call_operand.hbm [shape: f32[128,128], index: 8, kind: output, shape index: {}]  }
   0x1   :  { %14 = vsyncpa [#allocation7], 0 }
   0x2   :  { %15 = vsyncpa [#allocation10], 0 }
   0x3   :  { %16 = vsyncpa [#allocation13], 0 }
   0x4   :  { %17 = vsyncpa [#allocation5], 0  ;;  %s35_s29 = sshll.u32 %s10914_s1, 4  ;;  %s8513_s30 = smov [#allocation6]   ;;  %s36_s29 = int_to_ptr.hbm [resolvable:$true] %s35_s29 }
   0x5   :  { %s37_s9 = sshll.u32 %s8513_s30, 4  ;;  %s62_s12 = sshll.u32 %s10916_s3, 4  ;;  %s38_s9 = int_to_ptr.vmem [resolvable:$true] %s37_s9  ;;  %s63_s12 = int_to_ptr.hbm [resolvable:$true] %s62_s12 }
   0x6   :  { %s8514_s13 = smov 64   ;;  %s8515_s14 = smov 4  }
   0x7   :  { %43 = dma.hbm_to_vmem [thread:$0]  %s36_s29, 1024, %s38_s9, [#allocation7], %s8514_s13, %s8514_s13, %s8515_s14  }
   0x8   :  { %s8516_s15 = smov [#allocation9]   ;;  %s86_s1 = sshll.u32 %s10918_s5, 4  ;;  %s87_s1 = int_to_ptr.hbm [resolvable:$true] %s86_s1 }
   0x9   :  { %s64_s16 = sshll.u32 %s8516_s15, 4  ;;  %s22_s3 = sshll.u32 %s10913_s0, 4  ;;  %s65_s16 = int_to_ptr.vmem [resolvable:$true] %s64_s16  ;;  %s23_s3 = int_to_ptr.hbm [resolvable:$true] %s22_s3 }
   0xa   :  { %67 = dma.hbm_to_vmem [thread:$0]  %s63_s12, 64, %s65_s16, [#allocation10]  }
   0xb   :  { %s8517_s21 = smov [#allocation12]   ;;  %s8518_s23 = smov [#allocation3]  }
   0xc   :  { %s88_s22 = sshll.u32 %s8517_s21, 4  ;;  %s24_s24 = sshll.u32 %s8518_s23, 4  ;;  %s89_s22 = int_to_ptr.vmem [resolvable:$true] %s88_s22  ;;  %s25_s24 = int_to_ptr.vmem [resolvable:$true] %s24_s24 }
   0xd   :  { %91 = dma.hbm_to_vmem [thread:$0]  %s87_s1, 128, %s89_s22, [#allocation13]  }
   0xe   :  { %s48_s27 = sshll.u32 %s10915_s2, 4  ;;  %s8519_s5 = smov [#allocation8]   ;;  %s49_s27 = int_to_ptr.hbm [resolvable:$true] %s48_s27 }
   0xf   :  { %30 = dma.hbm_to_vmem [thread:$0]  %s23_s3, 1024, %s25_s24, [#allocation4], %s8514_s13, %s8514_s13, %s8515_s14  }
  0x10   :  { %s50_s28 = sshll.u32 %s8519_s5, 4  ;;  %s72_s30 = sshll.u32 %s10917_s4, 4  ;;  %s51_s28 = int_to_ptr.vmem [resolvable:$true] %s50_s28  ;;  %s73_s30 = int_to_ptr.hbm [resolvable:$true] %s72_s30 }
  0x11   :  { %s8520_s9 = smov 256   ;;  %s8521_s10 = smov 16  }
  0x12   :  { %56 = dma.hbm_to_vmem [thread:$0]  %s49_s27, 4096, %s51_s28, [#allocation7], %s8520_s9, %s8520_s9, %s8521_s10  }
  0x13   :  { %s8522_s11 = smov [#allocation11]   ;;  %s8523_s2 = smov 512  }
  0x14   :  { %s74_s12 = sshll.u32 %s8522_s11, 4  ;;  %s8524_s15 = smov 32   ;;  %s75_s12 = int_to_ptr.vmem [resolvable:$true] %s74_s12 }
  0x15   :  { %80 = dma.hbm_to_vmem [thread:$0]  %s73_s30, 32768, %s75_s12, [#allocation10], %s8523_s2, %s8523_s2, %s8524_s15  }
  0x16   :  { %s96_s18 = sshll.u32 %s10919_s6, 4  ;;  %s8525_s1 = smov [#allocation14]   ;;  %s97_s18 = int_to_ptr.hbm [resolvable:$true] %s96_s18 }
  0x17   :  { %s98_s19 = sshll.u32 %s8525_s1, 4  ;;  %s99_s19 = int_to_ptr.vmem [resolvable:$true] %s98_s19 }
  0x18   :  { %104 = dma.hbm_to_vmem [thread:$0]  %s97_s18, 8192, %s99_s19, [#allocation13], %s8514_s13, %s8514_s13, %s8515_s14  }
  0x19   :  { %8503 = dma.done.wait [#allocation4], 1024  }
  0x1a   :  { %8504 = vsyncadd [#allocation4], 4294966272 }
  0x1b   :  { %8505 = dma.done.wait [#allocation7], 5120  }
  0x1c   :  { %8506 = vsyncadd [#allocation7], 4294962176 }
  0x1d   :  { %8507 = dma.done.wait [#allocation10], 32832  }
  0x1e   :  { %8508 = vsyncadd [#allocation10], 4294934464 }
  0x1f   :  { %8509 = dma.done.wait [#allocation13], 8320  }
  0x20   :  { %8510 = vsyncadd [#allocation13], 4294958976  ;;  %v7842_v0 = vld [vmem:[#allocation6 + $0x38] sm:$0xff]  ;;  %v7841_v1 = vld [vmem:[#allocation6 + $0x30] sm:$0xff]  ;;  %s6051_s3 = sshll.u32 %s10921_s8, 4  ;;  %s8527_s21 = smov 128   ;;  %s6052_s3 = int_to_ptr.hbm [resolvable:$true] %s6051_s3 }
  0x21   :  { %267 = vmatpush.bf16.msra.mxu0 %v7842_v0  ;;  %8267 = vmatpush.bf16.msra.mxu2 %v7842_v0  ;;  %v7840_v2 = vld [vmem:[#allocation6 + $0x28] sm:$0xff]  ;;  %v7839_v3 = vld [vmem:[#allocation6 + $0x20] sm:$0xff]  ;;  %v7838_v4 = vld [vmem:[#allocation6 + $0x18] sm:$0xff]  ;;  %s8528_s22 = smov 8  }
  0x22   :  { %v7837_v5 = vld [vmem:[#allocation6 + $0x10] sm:$0xff]  ;;  %v7836_v6 = vld [vmem:[#allocation6 + $0x8] sm:$0xff]  ;;  %v7835_v7 = vld [vmem:[#allocation6] sm:$0xff] }
  0x23   :  { %v8604_v8 = vld [vmem:[#allocation3] sm:$0xff]  ;;  %v8610_v10 = vld [vmem:[#allocation3 + $0x8] sm:$0xff]  ;;  %v6247_v13 = vld [vmem:[#allocation8 + $0xf0] sm:$0xf0] }
  0x24   :  { %v8606_v9 = vld [vmem:[#allocation3 + $0x20] sm:$0xff]  ;;  %v8612_v11 = vld [vmem:[#allocation3 + $0x28] sm:$0xff]  ;;  %v6255_v16 = vld [vmem:[#allocation8 + $0xf8] sm:$0xf0] }
  0x25   :  { %268 = vmatpush.bf16.msra.mxu0 %v7841_v1  ;;  %8268 = vmatpush.bf16.msra.mxu2 %v7841_v1  ;;  %v7871_v12 = vld [vmem:[#allocation8 + $0xe4] sm:$0xf]  ;;  %v7872_v14 = vld [vmem:[#allocation8 + $0xec] sm:$0xf]  ;;  %v6231_v18 = vld [vmem:[#allocation8 + $0xd0] sm:$0xf0] }
  0x26   :  { %v6250_v15 = vor.u32 %v7871_v12, %v6247_v13  ;;  %v7867_v17 = vld [vmem:[#allocation8 + $0xc4] sm:$0xf]  ;;  %v6258_v19 = vor.u32 %v7872_v14, %v6255_v16  ;;  %v7868_v20 = vld [vmem:[#allocation8 + $0xcc] sm:$0xf]  ;;  %v6239_v21 = vld [vmem:[#allocation8 + $0xd8] sm:$0xf0] }
  0x27   :  { %v6245_v22 = vld [vmem:[#allocation8 + $0xe0] sm:$0xf]  ;;  %v6234_v23 = vor.u32 %v7867_v17, %v6231_v18  ;;  %v7873_v24 = vld [vmem:[#allocation8 + $0xec] sm:$0xf0]  ;;  %v6242_v25 = vor.u32 %v7868_v20, %v6239_v21  ;;  %v7863_v27 = vld [vmem:[#allocation8 + $0xa4] sm:$0xf] }
  0x28   :  { %v6246_v26 = vor.u32 %v7873_v24, %v6245_v22  ;;  %v6215_v28 = vld [vmem:[#allocation8 + $0xb0] sm:$0xf0]  ;;  %v6229_v29 = vld [vmem:[#allocation8 + $0xc0] sm:$0xf]  ;;  %v7864_v30 = vld [vmem:[#allocation8 + $0xac] sm:$0xf] }
  0x29   :  { %269 = vmatpush.bf16.msra.mxu0 %v7840_v2  ;;  %8269 = vmatpush.bf16.msra.mxu2 %v7840_v2  ;;  %v6223_v31 = vld [vmem:[#allocation8 + $0xb8] sm:$0xf0]  ;;  %v7869_v32 = vld [vmem:[#allocation8 + $0xcc] sm:$0xf0]  ;;  %v6218_v34 = vor.u32 %v7863_v27, %v6215_v28  ;;  %v6213_v35 = vld [vmem:[#allocation8 + $0xa0] sm:$0xf] }
  0x2a   :  { %8275 = vmatpush.bf16.msra.mxu3 %v6246_v26  ;;  %v6230_v33 = vor.u32 %v7869_v32, %v6229_v29  ;;  %526 = vmatpush.bf16.msra.mxu1 %v6246_v26  ;;  %v7865_v36 = vld [vmem:[#allocation8 + $0xac] sm:$0xf0]  ;;  %v6226_v37 = vor.u32 %v7864_v30, %v6223_v31  ;;  %v7859_v38 = vld [vmem:[#allocation8 + $0x84] sm:$0xf]  ;;  %v6199_v39 = vld [vmem:[#allocation8 + $0x90] sm:$0xf0] }
  0x2b   :  { %v7860_v40 = vld [vmem:[#allocation8 + $0x8c] sm:$0xf]  ;;  %v6207_v41 = vld [vmem:[#allocation8 + $0x98] sm:$0xf0]  ;;  %v6214_v42 = vor.u32 %v7865_v36, %v6213_v35  ;;  %v8616_v43 = vld [vmem:[#allocation3 + $0x10] sm:$0xff]  ;;  %v6202_v44 = vor.u32 %v7859_v38, %v6199_v39 }
  0x2c   :  { %v6197_v45 = vld [vmem:[#allocation8 + $0x80] sm:$0xf]  ;;  %v7861_v46 = vld [vmem:[#allocation8 + $0x8c] sm:$0xf0]  ;;  %v7855_v48 = vld [vmem:[#allocation8 + $0x64] sm:$0xf]  ;;  %v6210_v50 = vor.u32 %v7860_v40, %v6207_v41 }
  0x2d   :  { %270 = vmatpush.bf16.msra.mxu0 %v7839_v3  ;;  %8270 = vmatpush.bf16.msra.mxu2 %v7839_v3  ;;  %v8618_v47 = vld [vmem:[#allocation3 + $0x30] sm:$0xff]  ;;  %v7856_v51 = vld [vmem:[#allocation8 + $0x6c] sm:$0xf]  ;;  %v6191_v52 = vld [vmem:[#allocation8 + $0x78] sm:$0xf0]  ;;  %v6198_v53 = vor.u32 %v7861_v46, %v6197_v45 }
  0x2e   :  { %8276 = vmatpush.bf16.msra.mxu3 %v6230_v33  ;;  %527 = vmatpush.bf16.msra.mxu1 %v6230_v33  ;;  %v6183_v49 = vld [vmem:[#allocation8 + $0x70] sm:$0xf0]  ;;  %v6194_v55 = vor.u32 %v7856_v51, %v6191_v52  ;;  %v8622_v56 = vld [vmem:[#allocation3 + $0x18] sm:$0xff]  ;;  %v7851_v58 = vld [vmem:[#allocation8 + $0x44] sm:$0xf] }
  0x2f   :  { %v6186_v54 = vor.u32 %v7855_v48, %v6183_v49  ;;  %v8624_v57 = vld [vmem:[#allocation3 + $0x38] sm:$0xff]  ;;  %v6167_v59 = vld [vmem:[#allocation8 + $0x50] sm:$0xf0]  ;;  %v7852_v60 = vld [vmem:[#allocation8 + $0x4c] sm:$0xf] }
  0x30   :  { %10992 = vst [vmem:[#allocation21_spill] sm:$0xff] %v8624_v57  ;;  %v6170_v61 = vor.u32 %v7851_v58, %v6167_v59  ;;  %v6175_v62 = vld [vmem:[#allocation8 + $0x58] sm:$0xf0]  ;;  %v6181_v0 = vld [vmem:[#allocation8 + $0x60] sm:$0xf] }
  0x31   :  { %271 = vmatpush.bf16.msra.mxu0 %v7838_v4  ;;  %8271 = vmatpush.bf16.msra.mxu2 %v7838_v4  ;;  %v6178_v63 = vor.u32 %v7852_v60, %v6175_v62  ;;  %v7857_v1 = vld [vmem:[#allocation8 + $0x6c] sm:$0xf0]  ;;  %v7847_v3 = vld [vmem:[#allocation8 + $0x24] sm:$0xf]  ;;  %v6151_v4 = vld [vmem:[#allocation8 + $0x30] sm:$0xf0] }
  0x32   :  { %8277 = vmatpush.bf16.msra.mxu3 %v6214_v42  ;;  %528 = vmatpush.bf16.msra.mxu1 %v6214_v42  ;;  %v6182_v2 = vor.u32 %v7857_v1, %v6181_v0  ;;  %v6165_v13 = vld [vmem:[#allocation8 + $0x40] sm:$0xf]  ;;  %v7853_v14 = vld [vmem:[#allocation8 + $0x4c] sm:$0xf0]  ;;  %v7843_v16 = vld [vmem:[#allocation8 + $0x4] sm:$0xf] }
  0x33   :  { %v6135_v17 = vld [vmem:[#allocation8 + $0x10] sm:$0xf0]  ;;  %v7844_v18 = vld [vmem:[#allocation8 + $0xc] sm:$0xf]  ;;  %v6143_v20 = vld [vmem:[#allocation8 + $0x18] sm:$0xf0] }
  0x34   :  { %v6146_v21 = vor.u32 %v7844_v18, %v6143_v20  ;;  %v6149_v22 = vld [vmem:[#allocation8 + $0x20] sm:$0xf]  ;;  %v7845_v26 = vld [vmem:[#allocation8 + $0xc] sm:$0xf0]  ;;  %v7874_v35 = vld [vmem:[#allocation8 + $0xf4] sm:$0xf0] }
  0x35   :  { %272 = vmatpush.bf16.msra.mxu0 %v7837_v5  ;;  %8272 = vmatpush.bf16.msra.mxu2 %v7837_v5  ;;  %v7848_v5 = vld [vmem:[#allocation8 + $0x2c] sm:$0xf]  ;;  %v6237_v38 = vld [vmem:[#allocation8 + $0xc8] sm:$0xf]  ;;  %v7870_v39 = vld [vmem:[#allocation8 + $0xd4] sm:$0xf0] }
  0x36   :  { %8278 = vmatpush.bf16.msra.mxu3 %v6198_v53  ;;  %529 = vmatpush.bf16.msra.mxu1 %v6198_v53  ;;  %v6238_v40 = vor.u32 %v7870_v39, %v6237_v38  ;;  %v6221_v42 = vld [vmem:[#allocation8 + $0xa8] sm:$0xf]  ;;  %v7850_v0 = vld [vmem:[#allocation8 + $0x34] sm:$0xf0] }
  0x37   :  { %v6205_v49 = vld [vmem:[#allocation8 + $0x88] sm:$0xf] }
  0x38   :  { %v6173_v60 = vld [vmem:[#allocation8 + $0x48] sm:$0xf] }
  0x39   :  { %273 = vmatpush.bf16.msra.mxu0 %v7836_v6  ;;  %8273 = vmatpush.bf16.msra.mxu2 %v7836_v6  ;;  %v6154_v6 = vor.u32 %v7847_v3, %v6151_v4 }
  0x3a   :  { %8279 = vmatpush.bf16.msra.mxu3 %v6182_v2  ;;  %530 = vmatpush.bf16.msra.mxu1 %v6182_v2 }
  0x3d   :  { %274 = vmatpush.bf16.msra.mxu0 %v7835_v7  ;;  %8274 = vmatpush.bf16.msra.mxu2 %v7835_v7  ;;  %v6159_v7 = vld [vmem:[#allocation8 + $0x38] sm:$0xf0] }
  0x3e   :  { %v6162_v12 = vor.u32 %v7848_v5, %v6159_v7  ;;  %v6141_v5 = vld [vmem:[#allocation8 + $0x8] sm:$0xf] }
  0x40   :  { %275 = vmatmul.bf16.vlgmr.msra.gmra.mxu0 %v8604_v8  ;;  %295 = vmatmul.bf16.vlgmr.msra.gmra.mxu2 %v8606_v9 }
  0x41   :  { %575 = vmatpush.bf16.msrb.mxu2 %v6250_v15  ;;  %673 = vmatpush.bf16.msrb.mxu0 %v6258_v19  ;;  %v6166_v15 = vor.u32 %v7853_v14, %v6165_v13  ;;  %v6138_v19 = vor.u32 %v7843_v16, %v6135_v17 }
  0x43   :  { %8280 = vmatpush.bf16.msra.mxu3 %v6166_v15  ;;  %531 = vmatpush.bf16.msra.mxu1 %v6166_v15 }
  0x45   :  { %576 = vmatpush.bf16.msrb.mxu2 %v6234_v23  ;;  %674 = vmatpush.bf16.msrb.mxu0 %v6242_v25  ;;  %v7849_v23 = vld [vmem:[#allocation8 + $0x2c] sm:$0xf0]  ;;  %v6133_v25 = vld [vmem:[#allocation8] sm:$0xf] }
  0x46   :  { %v6150_v24 = vor.u32 %v7849_v23, %v6149_v22  ;;  %v6134_v27 = vor.u32 %v7845_v26, %v6133_v25 }
  0x48   :  { %8281 = vmatpush.bf16.msra.mxu3 %v6150_v24  ;;  %532 = vmatpush.bf16.msra.mxu1 %v6150_v24 }
  0x49   :  { %577 = vmatpush.bf16.msrb.mxu2 %v6218_v34  ;;  %675 = vmatpush.bf16.msrb.mxu0 %v6226_v37  ;;  %v6253_v34 = vld [vmem:[#allocation8 + $0xe8] sm:$0xf] }
  0x4a   :  { %v6254_v37 = vor.u32 %v7874_v35, %v6253_v34 }
  0x4c   :  { %8282 = vmatpush.bf16.msra.mxu3 %v6134_v27  ;;  %533 = vmatpush.bf16.msra.mxu1 %v6134_v27 }
  0x4d   :  { %578 = vmatpush.bf16.msrb.mxu2 %v6202_v44  ;;  %676 = vmatpush.bf16.msrb.mxu0 %v6210_v50  ;;  %v7866_v44 = vld [vmem:[#allocation8 + $0xb4] sm:$0xf0] }
  0x4e   :  { %v6222_v46 = vor.u32 %v7866_v44, %v6221_v42  ;;  %v7862_v50 = vld [vmem:[#allocation8 + $0x94] sm:$0xf0] }
  0x4f   :  { %v6206_v51 = vor.u32 %v7862_v50, %v6205_v49  ;;  %v8678_v49 = vld [vmem:[#allocation9] sm:$0xf] }
  0x50   :  { %280 = vmatmul.bf16.gmra.mxu0 %v8610_v10  ;;  %300 = vmatmul.bf16.gmra.mxu2 %v8612_v11 }
  0x51   :  { %579 = vmatpush.bf16.msrb.mxu2 %v6186_v54  ;;  %677 = vmatpush.bf16.msrb.mxu0 %v6194_v55  ;;  %v6189_v54 = vld [vmem:[#allocation8 + $0x68] sm:$0xf]  ;;  %v7858_v55 = vld [vmem:[#allocation8 + $0x74] sm:$0xf0] }
  0x52   :  { %624 = vmatpush.bf16.msrb.mxu3 %v6254_v37  ;;  %v6190_v59 = vor.u32 %v7858_v55, %v6189_v54 }
  0x55   :  { %580 = vmatpush.bf16.msrb.mxu2 %v6170_v61  ;;  %678 = vmatpush.bf16.msrb.mxu0 %v6178_v63  ;;  %v7854_v61 = vld [vmem:[#allocation8 + $0x54] sm:$0xf0]  ;;  %v6157_v63 = vld [vmem:[#allocation8 + $0x28] sm:$0xf] }
  0x56   :  { %625 = vmatpush.bf16.msrb.mxu3 %v6238_v40  ;;  %v6174_v62 = vor.u32 %v7854_v61, %v6173_v60  ;;  %v6158_v2 = vor.u32 %v7850_v0, %v6157_v63 }
  0x59   :  { %581 = vmatpush.bf16.msrb.mxu2 %v6154_v6  ;;  %679 = vmatpush.bf16.msrb.mxu0 %v6162_v12  ;;  %v7846_v6 = vld [vmem:[#allocation8 + $0x14] sm:$0xf0] }
  0x5a   :  { %626 = vmatpush.bf16.msrb.mxu3 %v6222_v46  ;;  %v6142_v7 = vor.u32 %v7846_v6, %v6141_v5 }
  0x5d   :  { %582 = vmatpush.bf16.msrb.mxu2 %v6138_v19  ;;  %680 = vmatpush.bf16.msrb.mxu0 %v6146_v21 }
  0x5e   :  { %627 = vmatpush.bf16.msrb.mxu3 %v6206_v51 }
  0x60   :  { %285 = vmatmul.bf16.gmra.mxu0 %v8616_v43  ;;  %305 = vmatmul.bf16.gmra.mxu2 %v8618_v47 }
  0x62   :  { %628 = vmatpush.bf16.msrb.mxu3 %v6190_v59 }
  0x66   :  { %629 = vmatpush.bf16.msrb.mxu3 %v6174_v62 }
  0x6a   :  { %630 = vmatpush.bf16.msrb.mxu3 %v6158_v2 }
  0x6e   :  { %631 = vmatpush.bf16.msrb.mxu3 %v6142_v7 }
  0x70   :  { %290 = vmatmul.bf16.gmra.mxu0 %v8622_v56  ;;  %310 = vmatmul.bf16.gmra.mxu2 %v8624_v57 }
  0xbd   :  { %v276_v28 = vpop.f32.mrf.mxu0 }
  0xc3   :  { %v296_v29 = vpop.f32.mrf.mxu2 }
  0xc5   :  { %v278_v30 = vpop.f32.mrf.mxu0 }
  0xc6   :  { %v8628_v31 = vpack.c.bf16 %v278_v30, %v276_v28 }
  0xc8   :  { %583 = vmatmul.bf16.vlgmr.msrb.gmra.mxu2 %v8628_v31  ;;  %681 = vmatmul.bf16.vlgmr.msrb.gmra.mxu0 %v8628_v31 }
  0xc9   :  { %534 = vmatmul.bf16.vlgmr.msra.gmra.mxu1 %v8628_v31 }
  0xcb   :  { %v298_v32 = vpop.f32.mrf.mxu2 }
  0xcc   :  { %v8633_v33 = vpack.c.bf16 %v298_v32, %v296_v29 }
  0xcd   :  { %v281_v36 = vpop.f32.mrf.mxu0 }
  0xce   :  { %554 = vmatmul.bf16.vlgmr.msra.gmra.mxu3 %v8633_v33 }
  0xd3   :  { %v301_v41 = vpop.f32.mrf.mxu2 }
  0xd5   :  { %v283_v45 = vpop.f32.mrf.mxu0 }
  0xd6   :  { %v317_v48 = vpack.c.bf16 %v283_v45, %v281_v36 }
  0xd8   :  { %588 = vmatmul.bf16.gmra.mxu2 %v317_v48  ;;  %686 = vmatmul.bf16.gmra.mxu0 %v317_v48 }
  0xd9   :  { %539 = vmatmul.bf16.gmra.mxu1 %v317_v48 }
  0xdb   :  { %v303_v52 = vpop.f32.mrf.mxu2 }
  0xdc   :  { %v321_v53 = vpack.c.bf16 %v303_v52, %v301_v41  ;;  %v358_v52 = vperm.slane %v8678_v49, 0 }
  0xdd   :  { %v286_v58 = vpop.f32.mrf.mxu0 }
  0xde   :  { %559 = vmatmul.bf16.gmra.mxu3 %v321_v53 }
  0xe3   :  { %v306_v1 = vpop.f32.mrf.mxu2 }
  0xe5   :  { %v288_v3 = vpop.f32.mrf.mxu0 }
  0xe6   :  { %v318_v4 = vpack.c.bf16 %v288_v3, %v286_v58 }
  0xe8   :  { %593 = vmatmul.bf16.gmra.mxu2 %v318_v4  ;;  %691 = vmatmul.bf16.gmra.mxu0 %v318_v4 }
  0xe9   :  { %544 = vmatmul.bf16.gmra.mxu1 %v318_v4 }
  0xeb   :  { %v308_v12 = vpop.f32.mrf.mxu2 }
  0xec   :  { %v322_v13 = vpack.c.bf16 %v308_v12, %v306_v1 }
  0xed   :  { %v291_v14 = vpop.f32.mrf.mxu0 }
  0xee   :  { %564 = vmatmul.bf16.gmra.mxu3 %v322_v13 }
  0xf3   :  { %v311_v15 = vpop.f32.mrf.mxu2 }
  0xf5   :  { %v293_v16 = vpop.f32.mrf.mxu0 }
  0xf6   :  { %v319_v17 = vpack.c.bf16 %v293_v16, %v291_v14 }
  0xf8   :  { %598 = vmatmul.bf16.gmra.mxu2 %v319_v17  ;;  %696 = vmatmul.bf16.gmra.mxu0 %v319_v17 }
  0xf9   :  { %549 = vmatmul.bf16.gmra.mxu1 %v319_v17 }
  0xfb   :  { %v313_v18 = vpop.f32.mrf.mxu2 }
  0xfc   :  { %v323_v19 = vpack.c.bf16 %v313_v18, %v311_v15 }
  0xfe   :  { %569 = vmatmul.bf16.gmra.mxu3 %v323_v19 }
 0x108   :  { %603 = vmatmul.bf16.gmra.mxu2 %v8633_v33  ;;  %701 = vmatmul.bf16.gmra.mxu0 %v8633_v33 }
 0x10e   :  { %632 = vmatmul.bf16.vlgmr.msrb.gmra.mxu3 %v8628_v31 }
 0x118   :  { %608 = vmatmul.bf16.gmra.mxu2 %v321_v53  ;;  %706 = vmatmul.bf16.gmra.mxu0 %v321_v53 }
 0x11e   :  { %637 = vmatmul.bf16.gmra.mxu3 %v317_v48 }
 0x128   :  { %613 = vmatmul.bf16.gmra.mxu2 %v322_v13  ;;  %711 = vmatmul.bf16.gmra.mxu0 %v322_v13 }
 0x12e   :  { %642 = vmatmul.bf16.gmra.mxu3 %v318_v4 }
 0x138   :  { %618 = vmatmul.bf16.gmra.mxu2 %v323_v19  ;;  %716 = vmatmul.bf16.gmra.mxu0 %v323_v19 }
 0x13e   :  { %647 = vmatmul.bf16.gmra.mxu3 %v319_v17 }
 0x145   :  { %v8639_v20 = vpop.f32.mrf.mxu0 }
 0x146   :  { %v8641_v21 = vpop.f32.mrf.mxu1 }
 0x14b   :  { %v8643_v22 = vpop.f32.mrf.mxu2 }
 0x14d   :  { %v8645_v23 = vpop.f32.mrf.mxu0 }
 0x14e   :  { %652 = vmatmul.bf16.gmra.mxu3 %v8633_v33  ;;  %v8650_v26 = vpop.f32.mrf.mxu1 }
 0x151   :  { %v555_v24 = vpop.f32.mrf.mxu3 }
 0x152   :  { %v556_v17 = vadd.f32 %v555_v24, %v358_v52 }
 0x153   :  { %v8648_v25 = vpop.f32.mrf.mxu2 }
 0x155   :  { %v8652_v27 = vpop.f32.mrf.mxu0 }
 0x156   :  { %v8658_v31 = vpop.f32.mrf.mxu1 }
 0x159   :  { %v557_v28 = vpop.f32.mrf.mxu3 }
 0x15b   :  { %v8654_v29 = vpop.f32.mrf.mxu2 }
 0x15d   :  { %v8656_v30 = vpop.f32.mrf.mxu0 }
 0x15e   :  { %657 = vmatmul.bf16.gmra.mxu3 %v321_v53  ;;  %v8664_v33 = vpop.f32.mrf.mxu1 }
 0x161   :  { %v560_v32 = vpop.f32.mrf.mxu3 }
 0x162   :  { %v561_v3 = vadd.f32 %v560_v32, %v358_v52 }
 0x163   :  { %v8660_v34 = vpop.f32.mrf.mxu2 }
 0x164   :  { %v762_v18 = vmul.f32 0.01, %v561_v3 }
 0x165   :  { %v8662_v35 = vpop.f32.mrf.mxu0 }
 0x166   :  { %v545_v40 = vpop.f32.mrf.mxu1 }
 0x169   :  { %v562_v36 = vpop.f32.mrf.mxu3 }
 0x16a   :  { %v563_v0 = vadd.f32 %v562_v36, %v358_v52 }
 0x16b   :  { %v8666_v37 = vpop.f32.mrf.mxu2 }
 0x16c   :  { %v766_v14 = vmul.f32 0.01, %v563_v0 }
 0x16d   :  { %v8668_v38 = vpop.f32.mrf.mxu0 }
 0x16e   :  { %662 = vmatmul.bf16.gmra.mxu3 %v322_v13  ;;  %v547_v46 = vpop.f32.mrf.mxu1  ;;  %v558_v13 = vadd.f32 %v557_v28, %v358_v52  ;;  %v830_v57 = vmax.f32 %v563_v0, %v766_v14  ;;  %v546_v28 = vadd.f32 %v545_v40, %v358_v52  ;;  %v543_v40 = vadd.f32 %v8664_v33, %v358_v52 }
 0x170   :  { %v758_v32 = vmul.f32 0.01, %v558_v13 }
 0x171   :  { %v565_v39 = vpop.f32.mrf.mxu3 }
 0x172   :  { %v566_v60 = vadd.f32 %v565_v39, %v358_v52 }
 0x173   :  { %v8670_v41 = vpop.f32.mrf.mxu2 }
 0x174   :  { %v770_v5 = vmul.f32 0.01, %v566_v60 }
 0x175   :  { %v8672_v42 = vpop.f32.mrf.mxu0 }
 0x176   :  { %v550_v54 = vpop.f32.mrf.mxu1  ;;  %v834_v39 = vmax.f32 %v566_v60, %v770_v5  ;;  %v738_v5 = vmul.f32 0.01, %v546_v28 }
 0x179   :  { %v567_v44 = vpop.f32.mrf.mxu3 }
 0x17a   :  { %v568_v58 = vadd.f32 %v567_v44, %v358_v52  ;;  %v551_v44 = vadd.f32 %v550_v54, %v358_v52 }
 0x17b   :  { %v8674_v45 = vpop.f32.mrf.mxu2 }
 0x17c   :  { %v774_v1 = vmul.f32 0.01, %v568_v58 }
 0x17d   :  { %v8676_v48 = vpop.f32.mrf.mxu0 }
 0x17e   :  { %667 = vmatmul.bf16.gmra.mxu3 %v323_v19  ;;  %v552_v12 = vpop.f32.mrf.mxu1  ;;  %v838_v16 = vmax.f32 %v568_v58, %v774_v1  ;;  %v746_v58 = vmul.f32 0.01, %v551_v44 }
 0x17f   :  { %v553_v36 = vadd.f32 %v552_v12, %v358_v52 }
 0x180   :  { %v810_v12 = vmax.f32 %v551_v44, %v746_v58  ;;  %v734_v44 = vmul.f32 0.01, %v543_v40 }
 0x181   :  { %v570_v50 = vpop.f32.mrf.mxu3  ;;  %v750_v24 = vmul.f32 0.01, %v553_v36 }
 0x182   :  { %v571_v55 = vadd.f32 %v570_v50, %v358_v52 }
 0x183   :  { %v8680_v51 = vpop.f32.mrf.mxu2 }
 0x184   :  { %v778_v61 = vmul.f32 0.01, %v571_v55 }
 0x185   :  { %v8683_v53 = vpop.f32.mrf.mxu0 }
 0x186   :  { %v842_v6 = vmax.f32 %v571_v55, %v778_v61  ;;  %v754_v55 = vmul.f32 0.01, %v556_v17  ;;  %v826_v61 = vmax.f32 %v561_v3, %v762_v18  ;;  %v541_v3 = vadd.f32 %v8658_v31, %v358_v52 }
 0x187   :  { %v538_v18 = vadd.f32 %v8650_v26, %v358_v52 }
 0x188   :  { %v870_v1 = vpack.c.bf16 %v830_v57, %v826_v61  ;;  %v818_v60 = vmax.f32 %v556_v17, %v754_v55  ;;  %v536_v17 = vadd.f32 %v8641_v21, %v358_v52  ;;  %v798_v61 = vmax.f32 %v543_v40, %v734_v44 }
 0x189   :  { %v572_v59 = vpop.f32.mrf.mxu3  ;;  %v726_v55 = vmul.f32 0.01, %v538_v18 }
 0x18a   :  { %v573_v62 = vadd.f32 %v572_v59, %v358_v52  ;;  %v874_v59 = vpack.c.bf16 %v838_v16, %v834_v39  ;;  %v802_v16 = vmax.f32 %v546_v28, %v738_v5  ;;  %v730_v39 = vmul.f32 0.01, %v541_v3 }
 0x18b   :  { %v8685_v63 = vpop.f32.mrf.mxu2  ;;  %v722_v31 = vmul.f32 0.01, %v536_v17 }
 0x18c   :  { %v782_v2 = vmul.f32 0.01, %v573_v62  ;;  %v794_v33 = vmax.f32 %v541_v3, %v730_v39 }
 0x18d   :  { %v8687_v4 = vpop.f32.mrf.mxu0  ;;  %v786_v28 = vmax.f32 %v536_v17, %v722_v31 }
 0x18e   :  { %v846_v7 = vmax.f32 %v573_v62, %v782_v2  ;;  %v548_v2 = vadd.f32 %v547_v46, %v358_v52 }
 0x190   :  { %v878_v15 = vpack.c.bf16 %v846_v7, %v842_v6  ;;  %v822_v6 = vmax.f32 %v558_v13, %v758_v32  ;;  %v742_v7 = vmul.f32 0.01, %v548_v2 }
 0x191   :  { %v8689_v19 = vpop.f32.mrf.mxu3 }
 0x192   :  { %10993 = vst [vmem:[#allocation22_spill] sm:$0xff] %v8689_v19  ;;  %882 = vmatpush.bf16.msrb.mxu1 %v878_v15  ;;  %v814_v15 = vmax.f32 %v553_v36, %v750_v24  ;;  %v866_v46 = vpack.c.bf16 %v822_v6, %v818_v60  ;;  %v806_v13 = vmax.f32 %v548_v2, %v742_v7  ;;  %v8711_v7 = vperm.slane %v8678_v49, 3 }
 0x193   :  { %v8691_v50 = vpop.f32.mrf.mxu2  ;;  %v854_v24 = vpack.c.bf16 %v798_v61, %v794_v33  ;;  %v790_v2 = vmax.f32 %v538_v18, %v726_v55 }
 0x194   :  { %v862_v57 = vpack.c.bf16 %v814_v15, %v810_v12  ;;  %v858_v36 = vpack.c.bf16 %v806_v13, %v802_v16  ;;  %v8718_v16 = vperm.slane %v8678_v49, 1 }
 0x195   :  { %v8693_v62 = vpop.f32.mrf.mxu0  ;;  %v850_v26 = vpack.c.bf16 %v790_v2, %v786_v28 }
 0x196   :  { %883 = vmatpush.bf16.msrb.mxu1 %v874_v59  ;;  %v708_v31 = vadd.f32 %v8693_v62, %v8711_v7 }
 0x199   :  { %v8695_v54 = vpop.f32.mrf.mxu3 }
 0x19a   :  { %10994 = vst [vmem:[#allocation23_spill] sm:$0xff] %v8695_v54  ;;  %884 = vmatpush.bf16.msrb.mxu1 %v870_v1 }
 0x19b   :  { %v8697_v0 = vpop.f32.mrf.mxu2 }
 0x19d   :  { %v709_v14 = vpop.f32.mrf.mxu0 }
 0x19e   :  { %885 = vmatpush.bf16.msrb.mxu1 %v866_v46  ;;  %v710_v18 = vadd.f32 %v709_v14, %v8711_v7 }
 0x1a0   :  { %v769_v14 = vmul.f32 0.01, %v710_v18 }
 0x1a1   :  { %v8703_v32 = vpop.f32.mrf.mxu3 }
 0x1a2   :  { %10995 = vst [vmem:[#allocation24_spill] sm:$0xff] %v8703_v32  ;;  %886 = vmatpush.bf16.msrb.mxu1 %v862_v57 }
 0x1a3   :  { %v611_v59 = vpop.f32.mrf.mxu2 }
 0x1a5   :  { %v712_v58 = vpop.f32.mrf.mxu0 }
 0x1a6   :  { %887 = vmatpush.bf16.msrb.mxu1 %v858_v36  ;;  %v713_v57 = vadd.f32 %v712_v58, %v8711_v7 }
 0x1a8   :  { %v773_v33 = vmul.f32 0.01, %v713_v57 }
 0x1a9   :  { %v8705_v1 = vpop.f32.mrf.mxu3 }
 0x1aa   :  { %888 = vmatpush.bf16.msrb.mxu1 %v854_v24  ;;  %v705_v24 = vadd.f32 %v8687_v4, %v8711_v7  ;;  %v837_v4 = vmax.f32 %v713_v57, %v773_v33  ;;  %v607_v57 = vadd.f32 %v8691_v50, %v8718_v16 }
 0x1ab   :  { %v614_v21 = vpop.f32.mrf.mxu2 }
 0x1ac   :  { %v615_v2 = vadd.f32 %v614_v21, %v8718_v16  ;;  %v700_v21 = vadd.f32 %v8676_v48, %v8711_v7 }
 0x1ad   :  { %v714_v52 = vpop.f32.mrf.mxu0 }
 0x1ae   :  { %889 = vmatpush.bf16.msrb.mxu1 %v850_v26  ;;  %v715_v40 = vadd.f32 %v714_v52, %v8711_v7 }
 0x1b0   :  { %v777_v39 = vmul.f32 0.01, %v715_v40 }
 0x1b1   :  { %v8707_v6 = vpop.f32.mrf.mxu3  ;;  %890 = vmatmul.bf16.vlgmr.msrb.gmra.mxu1 %v8604_v8 }
 0x1b2   :  { %v841_v52 = vmax.f32 %v715_v40, %v777_v39  ;;  %v761_v40 = vmul.f32 0.01, %v705_v24  ;;  %v610_v39 = vadd.f32 %v8697_v0, %v8718_v16  ;;  %v695_v0 = vadd.f32 %v8668_v38, %v8711_v7 }
 0x1b3   :  { %v616_v60 = vpop.f32.mrf.mxu2  ;;  %v602_v38 = vadd.f32 %v8680_v51, %v8718_v16  ;;  %v595_v51 = vadd.f32 %v8666_v37, %v8718_v16 }
 0x1b4   :  { %v617_v61 = vadd.f32 %v616_v60, %v8718_v16  ;;  %v703_v60 = vadd.f32 %v8683_v53, %v8711_v7  ;;  %v877_v19 = vpack.c.bf16 %v841_v52, %v837_v4  ;;  %v8747_v53 = vadd.f32 %v8662_v35, %v8711_v7 }
 0x1b5   :  { %v717_v5 = vpop.f32.mrf.mxu0  ;;  %v605_v35 = vadd.f32 %v8685_v63, %v8718_v16  ;;  %v763_v52 = vmul.f32 0.01, %v610_v39  ;;  %v690_v63 = vadd.f32 %v8656_v30, %v8711_v7 }
 0x1b6   :  { %v718_v15 = vadd.f32 %v717_v5, %v8711_v7 }
 0x1b7   :  { %v737_v37 = vmul.f32 0.01, %v690_v63 }
 0x1b8   :  { %v781_v13 = vmul.f32 0.01, %v718_v15 }
 0x1b9   :  { %v8713_v12 = vpop.f32.mrf.mxu3 }
 0x1ba   :  { %v845_v58 = vmax.f32 %v718_v15, %v781_v13  ;;  %v765_v15 = vmul.f32 0.01, %v708_v31  ;;  %v612_v13 = vadd.f32 %v611_v59, %v8718_v16  ;;  %v757_v59 = vmul.f32 0.01, %v703_v60 }
 0x1bb   :  { %v619_v3 = vpop.f32.mrf.mxu2 }
 0x1bc   :  { %v620_v44 = vadd.f32 %v619_v3, %v8718_v16  ;;  %v829_v48 = vmax.f32 %v708_v31, %v765_v15  ;;  %v688_v31 = vadd.f32 %v8652_v27, %v8711_v7 }
 0x1bd   :  { %v719_v46 = vpop.f32.mrf.mxu0 }
 0x1be   :  { %v720_v17 = vadd.f32 %v719_v46, %v8711_v7  ;;  %v779_v5 = vmul.f32 0.01, %v620_v44  ;;  %v8736_v46 = vadd.f32 %v8672_v42, %v8711_v7  ;;  %v771_v42 = vmul.f32 0.01, %v615_v2 }
 0x1c0   :  { %v785_v36 = vmul.f32 0.01, %v720_v17 }
 0x1c1   :  { %v8726_v55 = vpop.f32.mrf.mxu3  ;;  %895 = vmatmul.bf16.gmra.mxu1 %v8610_v10 }
 0x1c2   :  { %v849_v28 = vmax.f32 %v720_v17, %v785_v36  ;;  %v775_v17 = vmul.f32 0.01, %v617_v61 }
 0x1c3   :  { %v621_v26 = vpop.f32.mrf.mxu2 }
 0x1c4   :  { %v881_v3 = vpack.c.bf16 %v849_v28, %v845_v58  ;;  %v622_v62 = vadd.f32 %v621_v26, %v8718_v16  ;;  %v833_v58 = vmax.f32 %v710_v18, %v769_v14  ;;  %v843_v28 = vmax.f32 %v620_v44, %v779_v5 }
 0x1c5   :  { %v839_v54 = vmax.f32 %v617_v61, %v775_v17  ;;  %v749_v18 = vmul.f32 0.01, %v8736_v46  ;;  %v753_v44 = vmul.f32 0.01, %v700_v21  ;;  %v825_v14 = vmax.f32 %v705_v24, %v761_v40 }
 0x1c6   :  { %v783_v36 = vmul.f32 0.01, %v622_v62  ;;  %1029 = vmatpush.bf16.msra.mxu0 %v881_v3  ;;  %v767_v3 = vmul.f32 0.01, %v612_v13  ;;  %v835_v5 = vmax.f32 %v615_v2, %v771_v42  ;;  %v873_v50 = vpack.c.bf16 %v833_v58, %v829_v48 }
 0x1c7   :  { %v821_v61 = vmax.f32 %v703_v60, %v757_v59  ;;  %v745_v24 = vmul.f32 0.01, %v695_v0  ;;  %v813_v2 = vmax.f32 %v8736_v46, %v749_v18  ;;  %v817_v27 = vmax.f32 %v700_v21, %v753_v44 }
 0x1c8   :  { %v847_v26 = vmax.f32 %v622_v62, %v783_v36  ;;  %v759_v62 = vmul.f32 0.01, %v607_v57  ;;  %v831_v15 = vmax.f32 %v612_v13, %v767_v3  ;;  %v875_v4 = vpack.c.bf16 %v839_v54, %v835_v5 }
 0x1c9   :  { %v8751_v33 = vpop.f32.mrf.mxu3  ;;  %v755_v17 = vmul.f32 0.01, %v605_v35  ;;  %v827_v36 = vmax.f32 %v610_v39, %v763_v52  ;;  %v597_v60 = vadd.f32 %v8670_v41, %v8718_v16  ;;  %v751_v13 = vmul.f32 0.01, %v602_v38 }
 0x1ca   :  { %v879_v32 = vpack.c.bf16 %v847_v26, %v843_v28  ;;  %1030 = vmatpush.bf16.msra.mxu0 %v877_v19  ;;  %v600_v19 = vadd.f32 %v8674_v45, %v8718_v16  ;;  %v869_v45 = vpack.c.bf16 %v825_v14, %v821_v61  ;;  %v823_v40 = vmax.f32 %v607_v57, %v759_v62 }
 0x1cb   :  { %v871_v46 = vpack.c.bf16 %v831_v15, %v827_v36  ;;  %v683_v21 = vadd.f32 %v8639_v20, %v8711_v7  ;;  %v685_v39 = vadd.f32 %v8645_v23, %v8711_v7  ;;  %v733_v58 = vmul.f32 0.01, %v688_v31 }
 0x1cc   :  { %931 = vmatpush.bf16.msra.mxu2 %v879_v32  ;;  %v741_v32 = vmul.f32 0.01, %v8747_v53  ;;  %v747_v30 = vmul.f32 0.01, %v600_v19  ;;  %v809_v41 = vmax.f32 %v695_v0, %v745_v24  ;;  %v819_v28 = vmax.f32 %v605_v35, %v755_v17 }
 0x1cd   :  { %v865_v26 = vpack.c.bf16 %v817_v27, %v813_v2  ;;  %v590_v59 = vadd.f32 %v8654_v29, %v8718_v16  ;;  %v592_v57 = vadd.f32 %v8660_v34, %v8718_v16  ;;  %v739_v48 = vmul.f32 0.01, %v595_v51 }
 0x1ce   :  { %1031 = vmatpush.bf16.msra.mxu0 %v873_v50  ;;  %v805_v42 = vmax.f32 %v8747_v53, %v741_v32  ;;  %v743_v3 = vmul.f32 0.01, %v597_v60  ;;  %v811_v20 = vmax.f32 %v600_v19, %v747_v30  ;;  %v815_v18 = vmax.f32 %v602_v38, %v751_v13 }
 0x1cf   :  { %v867_v23 = vpack.c.bf16 %v823_v40, %v819_v28  ;;  %v725_v7 = vmul.f32 0.01, %v683_v21  ;;  %v729_v44 = vmul.f32 0.01, %v685_v39  ;;  %v797_v14 = vmax.f32 %v688_v31, %v733_v58  ;;  %v6453_v40 = vld [vmem:[#allocation11 + $0x180] sm:$0xf] }
 0x1d0   :  { %932 = vmatpush.bf16.msra.mxu2 %v875_v4  ;;  %v801_v53 = vmax.f32 %v690_v63, %v737_v37  ;;  %v861_v0 = vpack.c.bf16 %v809_v41, %v805_v42  ;;  %v585_v35 = vadd.f32 %v8643_v22, %v8718_v16  ;;  %v587_v29 = vadd.f32 %v8648_v25, %v8718_v16  ;;  %v7919_v58 = vld [vmem:[#allocation11 + $0x15c] sm:$0xf0] }
 0x1d1   :  { %v8772_v54 = vpop.f32.mrf.mxu3  ;;  %900 = vmatmul.bf16.gmra.mxu1 %v8616_v43  ;;  %v731_v52 = vmul.f32 0.01, %v590_v59  ;;  %v735_v5 = vmul.f32 0.01, %v592_v57  ;;  %v803_v50 = vmax.f32 %v595_v51, %v739_v48  ;;  %v807_v19 = vmax.f32 %v597_v60, %v743_v3  ;;  %v6485_v51 = vld [vmem:[#allocation11 + $0x1c0] sm:$0xf] }
 0x1d2   :  { %1032 = vmatpush.bf16.msra.mxu0 %v869_v45  ;;  %v863_v38 = vpack.c.bf16 %v815_v18, %v811_v20  ;;  %v789_v61 = vmax.f32 %v683_v21, %v725_v7  ;;  %v793_v62 = vmax.f32 %v685_v39, %v729_v44  ;;  %v857_v31 = vpack.c.bf16 %v801_v53, %v797_v14  ;;  %v7935_v60 = vld [vmem:[#allocation11 + $0x1dc] sm:$0xf0] }
 0x1d3   :  { %v723_v15 = vmul.f32 0.01, %v585_v35  ;;  %v727_v4 = vmul.f32 0.01, %v587_v29  ;;  %v795_v63 = vmax.f32 %v590_v59, %v731_v52  ;;  %v799_v32 = vmax.f32 %v592_v57, %v735_v5  ;;  %v6421_v39 = vld [vmem:[#allocation11 + $0x140] sm:$0xf] }
 0x1d4   :  { %933 = vmatpush.bf16.msra.mxu2 %v871_v46  ;;  %v859_v22 = vpack.c.bf16 %v807_v19, %v803_v50  ;;  %v853_v25 = vpack.c.bf16 %v793_v62, %v789_v61  ;;  %v6486_v30 = vor.u32 %v7935_v60, %v6485_v51  ;;  %v7927_v46 = vld [vmem:[#allocation11 + $0x19c] sm:$0xf0]  ;;  %v6422_v37 = vor.u32 %v7919_v58, %v6421_v39  ;;  %v10997_v58 = vld [vmem:[#allocation23_spill] sm:$0xff] }
 0x1d5   :  { %v787_v24 = vmax.f32 %v585_v35, %v723_v15  ;;  %v791_v2 = vmax.f32 %v587_v29, %v727_v4  ;;  %v855_v27 = vpack.c.bf16 %v799_v32, %v795_v63  ;;  %v6454_v21 = vor.u32 %v7927_v46, %v6453_v40  ;;  %v7911_v42 = vld [vmem:[#allocation11 + $0x11c] sm:$0xf0] }
 0x1d6   :  { %1033 = vmatpush.bf16.msra.mxu0 %v865_v26  ;;  %2664 = vmatpush.bf16.msra.mxu1 %v6486_v30  ;;  %v8798_v41 = vperm.slane %v8678_v49, 2  ;;  %v6357_v26 = vld [vmem:[#allocation11 + $0xc0] sm:$0xf] }
 0x1d7   :  { %v851_v17 = vpack.c.bf16 %v791_v2, %v787_v24  ;;  %v7903_v59 = vld [vmem:[#allocation11 + $0xdc] sm:$0xf0] }
 0x1d8   :  { %934 = vmatpush.bf16.msra.mxu2 %v867_v23  ;;  %v6358_v48 = vor.u32 %v7903_v59, %v6357_v26  ;;  %v6325_v49 = vld [vmem:[#allocation11 + $0x80] sm:$0xf]  ;;  %v651_v63 = vadd.f32 %v8751_v33, %v8798_v41 }
 0x1d9   :  { %v8788_v34 = vpop.f32.mrf.mxu3  ;;  %v7895_v23 = vld [vmem:[#allocation11 + $0x9c] sm:$0xf0] }
 0x1da   :  { %1034 = vmatpush.bf16.msra.mxu0 %v861_v0  ;;  %2665 = vmatpush.bf16.msra.mxu1 %v6454_v21  ;;  %v6326_v53 = vor.u32 %v7895_v23, %v6325_v49  ;;  %v656_v5 = vadd.f32 %v8788_v34, %v8798_v41  ;;  %v6293_v50 = vld [vmem:[#allocation11 + $0x40] sm:$0xf] }
 0x1db   :  { %v7887_v19 = vld [vmem:[#allocation11 + $0x5c] sm:$0xf0] }
 0x1dc   :  { %935 = vmatpush.bf16.msra.mxu2 %v863_v38  ;;  %v6294_v62 = vor.u32 %v7887_v19, %v6293_v50  ;;  %v6261_v32 = vld [vmem:[#allocation11] sm:$0xf]  ;;  %v8836_v19 = vld [vmem:[#allocation3 + $0x28] sm:$0xff] }
 0x1dd   :  { %v7879_v34 = vld [vmem:[#allocation11 + $0x1c] sm:$0xf0] }
 0x1de   :  { %1035 = vmatpush.bf16.msra.mxu0 %v857_v31  ;;  %2666 = vmatpush.bf16.msra.mxu1 %v6422_v37  ;;  %v654_v31 = vadd.f32 %v8772_v54, %v8798_v41  ;;  %v6262_v24 = vor.u32 %v7879_v34, %v6261_v32  ;;  %v10996_v46 = vld [vmem:[#allocation24_spill] sm:$0xff] }
 0x1df   :  { %v8127_v23 = vld [vmem:[#allocation11 + $0x7dc] sm:$0xf0] }
 0x1e0   :  { %936 = vmatpush.bf16.msra.mxu2 %v859_v22  ;;  %v760_v22 = vmul.f32 0.01, %v656_v5  ;;  %v756_v2 = vmul.f32 0.01, %v654_v31  ;;  %v6709_v32 = vld [vmem:[#allocation11 + $0x380] sm:$0xf] }
 0x1e1   :  { %v658_v16 = vpop.f32.mrf.mxu3  ;;  %905 = vmatmul.bf16.gmra.mxu1 %v8622_v56  ;;  %v7991_v34 = vld [vmem:[#allocation11 + $0x39c] sm:$0xf0] }
 0x1e2   :  { %1036 = vmatpush.bf16.msra.mxu0 %v853_v25  ;;  %v659_v0 = vadd.f32 %v658_v16, %v8798_v41  ;;  %v824_v33 = vmax.f32 %v656_v5, %v760_v22  ;;  %v820_v60 = vmax.f32 %v654_v31, %v756_v2  ;;  %v8111_v5 = vld [vmem:[#allocation11 + $0x75c] sm:$0xf0] }
 0x1e3   :  { %v7157_v31 = vld [vmem:[#allocation11 + $0x700] sm:$0xf] }
 0x1e4   :  { %937 = vmatpush.bf16.msra.mxu2 %v855_v27  ;;  %v764_v15 = vmul.f32 0.01, %v659_v0  ;;  %v646_v27 = vadd.f32 %v8713_v12, %v8798_v41  ;;  %v868_v40 = vpack.c.bf16 %v824_v33, %v820_v60  ;;  %v639_v12 = vadd.f32 %v10996_v46, %v8798_v41  ;;  %v7125_v22 = vld [vmem:[#allocation11 + $0x6c0] sm:$0xf] }
 0x1e5   :  { %1037 = vmatmul.bf16.vlgmr.msra.gmra.mxu0 %v8604_v8  ;;  %v6677_v2 = vld [vmem:[#allocation11 + $0x340] sm:$0xf] }
 0x1e6   :  { %v828_v54 = vmax.f32 %v659_v0, %v764_v15  ;;  %v744_v30 = vmul.f32 0.01, %v646_v27  ;;  %v8119_v0 = vld [vmem:[#allocation11 + $0x79c] sm:$0xf0] }
 0x1e7   :  { %v8087_v33 = vld [vmem:[#allocation11 + $0x69c] sm:$0xf0] }
 0x1e8   :  { %938 = vmatpush.bf16.msra.mxu2 %v851_v17  ;;  %v752_v17 = vmul.f32 0.01, %v651_v63  ;;  %v7975_v60 = vld [vmem:[#allocation11 + $0x31c] sm:$0xf0] }
 0x1e9   :  { %v660_v36 = vpop.f32.mrf.mxu3 }
 0x1ea   :  { %v661_v7 = vadd.f32 %v660_v36, %v8798_v41 }
 0x1eb   :  { %939 = vmatmul.bf16.vlgmr.msra.gmra.mxu2 %v8604_v8 }
 0x1ec   :  { %v768_v38 = vmul.f32 0.01, %v661_v7 }
 0x1ee   :  { %v832_v25 = vmax.f32 %v661_v7, %v768_v38 }
 0x1f0   :  { %v872_v36 = vpack.c.bf16 %v832_v25, %v828_v54  ;;  %v6710_v25 = vor.u32 %v7991_v34, %v6709_v32  ;;  %v7983_v54 = vld [vmem:[#allocation11 + $0x35c] sm:$0xf0]  ;;  %v7923_v34 = vld [vmem:[#allocation11 + $0x184] sm:$0xf] }
 0x1f1   :  { %v663_v45 = vpop.f32.mrf.mxu3  ;;  %910 = vmatmul.bf16.gmra.mxu1 %v8606_v9  ;;  %v6389_v9 = vld [vmem:[#allocation11 + $0x100] sm:$0xf] }
 0x1f2   :  { %v6390_v28 = vor.u32 %v7911_v42, %v6389_v9  ;;  %v10998_v42 = vld [vmem:[#allocation21_spill] sm:$0xff] }
 0x1f4   :  { %2667 = vmatpush.bf16.msra.mxu1 %v6390_v28  ;;  %v732_v28 = vmul.f32 0.01, %v639_v12 }
 0x1f5   :  { %1042 = vmatmul.bf16.gmra.mxu0 %v8610_v10 }
 0x1f8   :  { %2668 = vmatpush.bf16.msra.mxu1 %v6358_v48  ;;  %v8832_v48 = vld [vmem:[#allocation3 + $0x20] sm:$0xff] }
 0x1f9   :  { %v665_v13 = vpop.f32.mrf.mxu3 }
 0x1fa   :  { %v666_v57 = vadd.f32 %v665_v13, %v8798_v41  ;;  %v816_v13 = vmax.f32 %v651_v63, %v752_v17  ;;  %v6678_v17 = vor.u32 %v7983_v54, %v6677_v2  ;;  %v7915_v54 = vld [vmem:[#allocation11 + $0x144] sm:$0xf] }
 0x1fb   :  { %944 = vmatmul.bf16.gmra.mxu2 %v8610_v10 }
 0x1fc   :  { %v776_v44 = vmul.f32 0.01, %v666_v57  ;;  %2669 = vmatpush.bf16.msra.mxu1 %v6326_v53  ;;  %v7221_v53 = vld [vmem:[#allocation11 + $0x780] sm:$0xf] }
 0x200   :  { %2670 = vmatpush.bf16.msra.mxu1 %v6294_v62  ;;  %v7999_v62 = vld [vmem:[#allocation11 + $0x3dc] sm:$0xf0] }
 0x201   :  { %v668_v8 = vpop.f32.mrf.mxu3  ;;  %915 = vmatmul.bf16.gmra.mxu1 %v8612_v11  ;;  %v664_v11 = vadd.f32 %v663_v45, %v8798_v41  ;;  %v644_v45 = vadd.f32 %v8707_v6, %v8798_v41  ;;  %v636_v6 = vadd.f32 %v10997_v58, %v8798_v41  ;;  %v7967_v58 = vld [vmem:[#allocation11 + $0x2dc] sm:$0xf0] }
 0x202   :  { %v669_v10 = vadd.f32 %v668_v8, %v8798_v41  ;;  %v808_v8 = vmax.f32 %v646_v27, %v744_v30  ;;  %v7093_v27 = vld [vmem:[#allocation11 + $0x680] sm:$0xf] }
 0x203   :  { %v772_v35 = vmul.f32 0.01, %v664_v11  ;;  %v740_v21 = vmul.f32 0.01, %v644_v45  ;;  %v728_v26 = vmul.f32 0.01, %v636_v6 }
 0x204   :  { %v780_v20 = vmul.f32 0.01, %v669_v10  ;;  %2671 = vmatpush.bf16.msra.mxu1 %v6262_v24 }
 0x205   :  { %1047 = vmatmul.bf16.gmra.mxu0 %v8616_v43  ;;  %v836_v4 = vmax.f32 %v664_v11, %v772_v35  ;;  %v796_v11 = vmax.f32 %v639_v12, %v732_v28  ;;  %v7222_v35 = vor.u32 %v8119_v0, %v7221_v53 }
 0x206   :  { %v844_v29 = vmax.f32 %v669_v10, %v780_v20  ;;  %v804_v10 = vmax.f32 %v644_v45, %v740_v21  ;;  %v792_v20 = vmax.f32 %v636_v6, %v728_v26  ;;  %v7094_v45 = vor.u32 %v8087_v33, %v7093_v27  ;;  %v7029_v6 = vld [vmem:[#allocation11 + $0x600] sm:$0xf]  ;;  %v6423_v27 = vld [vmem:[#allocation11 + $0x160] sm:$0xf0] }
 0x207   :  { %v7951_v26 = vld [vmem:[#allocation11 + $0x25c] sm:$0xf0] }
 0x208   :  { %v6965_v33 = vld [vmem:[#allocation11 + $0x580] sm:$0xf] }
 0x209   :  { %v670_v3 = vpop.f32.mrf.mxu3 }
 0x20a   :  { %v671_v18 = vadd.f32 %v670_v3, %v8798_v41 }
 0x20b   :  { %949 = vmatmul.bf16.gmra.mxu2 %v8616_v43  ;;  %v840_v43 = vmax.f32 %v666_v57, %v776_v44  ;;  %v860_v57 = vpack.c.bf16 %v808_v8, %v804_v10  ;;  %v8071_v8 = vld [vmem:[#allocation11 + $0x61c] sm:$0xf0] }
 0x20c   :  { %v784_v14 = vmul.f32 0.01, %v671_v18  ;;  %v6549_v10 = vld [vmem:[#allocation11 + $0x240] sm:$0xf] }
 0x20d   :  { %v876_v16 = vpack.c.bf16 %v840_v43, %v836_v4  ;;  %v8103_v4 = vld [vmem:[#allocation11 + $0x71c] sm:$0xf0] }
 0x20e   :  { %v848_v52 = vmax.f32 %v671_v18, %v784_v14  ;;  %v7158_v63 = vor.u32 %v8103_v4, %v7157_v31  ;;  %v7931_v31 = vld [vmem:[#allocation11 + $0x1c4] sm:$0xf] }
 0x210   :  { %v880_v61 = vpack.c.bf16 %v848_v52, %v844_v29  ;;  %v8301_v29 = vld [vmem:[#allocation3] sm:$0xff] }
 0x211   :  { %920 = vmatmul.bf16.gmra.mxu1 %v8618_v47  ;;  %v649_v47 = vadd.f32 %v8726_v55, %v8798_v41  ;;  %v641_v55 = vadd.f32 %v8705_v1, %v8798_v41  ;;  %v7189_v52 = vld [vmem:[#allocation11 + $0x740] sm:$0xf] }
 0x212   :  { %980 = vmatpush.bf16.msra.mxu3 %v880_v61  ;;  %v7190_v50 = vor.u32 %v8111_v5, %v7189_v52  ;;  %v6741_v61 = vld [vmem:[#allocation11 + $0x3c0] sm:$0xf] }
 0x213   :  { %v748_v51 = vmul.f32 0.01, %v649_v47  ;;  %v736_v37 = vmul.f32 0.01, %v641_v55  ;;  %v6742_v15 = vor.u32 %v7999_v62, %v6741_v61 }
 0x215   :  { %1052 = vmatmul.bf16.gmra.mxu0 %v8622_v56  ;;  %v812_v39 = vmax.f32 %v649_v47, %v748_v51  ;;  %v800_v59 = vmax.f32 %v641_v55, %v736_v37  ;;  %2713 = vmatpush.bf16.msrb.mxu2 %v6742_v15  ;;  %v6645_v51 = vld [vmem:[#allocation11 + $0x300] sm:$0xf]  ;;  %v6487_v15 = vld [vmem:[#allocation11 + $0x1e0] sm:$0xf0] }
 0x216   :  { %981 = vmatpush.bf16.msra.mxu3 %v876_v16  ;;  %v8095_v16 = vld [vmem:[#allocation11 + $0x6dc] sm:$0xf0]  ;;  %v6646_v30 = vor.u32 %v7975_v60, %v6645_v51  ;;  %v6490_v4 = vor.u32 %v7931_v31, %v6487_v15  ;;  %v7907_v60 = vld [vmem:[#allocation11 + $0x104] sm:$0xf] }
 0x217   :  { %v864_v9 = vpack.c.bf16 %v816_v13, %v812_v39  ;;  %v856_v18 = vpack.c.bf16 %v800_v59, %v796_v11  ;;  %v7126_v24 = vor.u32 %v8095_v16, %v7125_v22  ;;  %v7061_v55 = vld [vmem:[#allocation11 + $0x640] sm:$0xf]  ;;  %v6550_v59 = vor.u32 %v7951_v26, %v6549_v10  ;;  %v7891_v26 = vld [vmem:[#allocation11 + $0x84] sm:$0xf] }
 0x218   :  { %v8079_v13 = vld [vmem:[#allocation11 + $0x65c] sm:$0xf0]  ;;  %2860 = vmatpush.bf16.msrb.mxu1 %v6490_v4 }
 0x219   :  { %2714 = vmatpush.bf16.msrb.mxu2 %v6710_v25  ;;  %v7062_v46 = vor.u32 %v8079_v13, %v7061_v55  ;;  %v6613_v39 = vld [vmem:[#allocation11 + $0x2c0] sm:$0xf]  ;;  %v6391_v55 = vld [vmem:[#allocation11 + $0x120] sm:$0xf0] }
 0x21a   :  { %982 = vmatpush.bf16.msra.mxu3 %v872_v36  ;;  %v8303_v36 = vld [vmem:[#allocation3 + $0x8] sm:$0xff]  ;;  %v6614_v37 = vor.u32 %v7967_v58, %v6613_v39  ;;  %v7943_v11 = vld [vmem:[#allocation11 + $0x21c] sm:$0xf0] }
 0x21b   :  { %954 = vmatmul.bf16.gmra.mxu2 %v8622_v56  ;;  %v10999_v56 = vld [vmem:[#allocation22_spill] sm:$0xff]  ;;  %v6997_v25 = vld [vmem:[#allocation11 + $0x5c0] sm:$0xf] }
 0x21c   :  { %v634_v1 = vadd.f32 %v10999_v56, %v8798_v41  ;;  %v7253_v41 = vld [vmem:[#allocation11 + $0x7c0] sm:$0xf] }
 0x21d   :  { %v7254_v44 = vor.u32 %v8127_v23, %v7253_v41  ;;  %2715 = vmatpush.bf16.msrb.mxu2 %v6678_v17  ;;  %v7959_v56 = vld [vmem:[#allocation11 + $0x29c] sm:$0xf0]  ;;  %v6426_v17 = vor.u32 %v7915_v54, %v6423_v27 }
 0x21e   :  { %983 = vmatpush.bf16.msra.mxu3 %v868_v40  ;;  %v724_v3 = vmul.f32 0.01, %v634_v1  ;;  %v8843_v40 = vld [vmem:[#allocation3 + $0x30] sm:$0xff]  ;;  %v8063_v16 = vld [vmem:[#allocation11 + $0x5dc] sm:$0xf0] }
 0x21f   :  { %2811 = vmatpush.bf16.msrb.mxu0 %v7254_v44  ;;  %v6998_v2 = vor.u32 %v8063_v16, %v6997_v25  ;;  %v6933_v13 = vld [vmem:[#allocation11 + $0x540] sm:$0xf] }
 0x220   :  { %v788_v49 = vmax.f32 %v634_v1, %v724_v3  ;;  %v6517_v3 = vld [vmem:[#allocation11 + $0x200] sm:$0xf] }
 0x221   :  { %925 = vmatmul.bf16.gmra.mxu1 %v10998_v42  ;;  %2716 = vmatpush.bf16.msrb.mxu2 %v6646_v30  ;;  %v6581_v42 = vld [vmem:[#allocation11 + $0x280] sm:$0xf]  ;;  %v6394_v30 = vor.u32 %v7907_v60, %v6391_v55 }
 0x222   :  { %984 = vmatpush.bf16.msra.mxu3 %v864_v9  ;;  %v852_v7 = vpack.c.bf16 %v792_v20, %v788_v49  ;;  %v7030_v9 = vor.u32 %v8071_v8, %v7029_v6  ;;  %v6582_v1 = vor.u32 %v7959_v56, %v6581_v42  ;;  %v6518_v20 = vor.u32 %v7943_v11, %v6517_v3  ;;  %v6359_v8 = vld [vmem:[#allocation11 + $0xe0] sm:$0xf0]  ;;  %v6901_v42 = vld [vmem:[#allocation11 + $0x500] sm:$0xf] }
 0x223   :  { %2812 = vmatpush.bf16.msrb.mxu0 %v7222_v35  ;;  %v8039_v56 = vld [vmem:[#allocation11 + $0x51c] sm:$0xf0] }
 0x224   :  { %v6869_v3 = vld [vmem:[#allocation11 + $0x4c0] sm:$0xf] }
 0x225   :  { %1057 = vmatmul.bf16.gmra.mxu0 %v8832_v48  ;;  %2717 = vmatpush.bf16.msrb.mxu2 %v6614_v37  ;;  %v8031_v11 = vld [vmem:[#allocation11 + $0x4dc] sm:$0xf0] }
 0x226   :  { %985 = vmatpush.bf16.msra.mxu3 %v860_v57  ;;  %v8305_v57 = vld [vmem:[#allocation3 + $0x10] sm:$0xff]  ;;  %v6805_v15 = vld [vmem:[#allocation11 + $0x440] sm:$0xf] }
 0x227   :  { %2813 = vmatpush.bf16.msrb.mxu0 %v7190_v50  ;;  %v8015_v4 = vld [vmem:[#allocation11 + $0x45c] sm:$0xf0] }
 0x228   :  { %v8007_v16 = vld [vmem:[#allocation11 + $0x41c] sm:$0xf0] }
 0x229   :  { %2718 = vmatpush.bf16.msrb.mxu2 %v6582_v1 }
 0x22a   :  { %986 = vmatpush.bf16.msra.mxu3 %v856_v18  ;;  %v8850_v18 = vld [vmem:[#allocation3 + $0x38] sm:$0xff] }
 0x22b   :  { %959 = vmatmul.bf16.gmra.mxu2 %v8832_v48  ;;  %2814 = vmatpush.bf16.msrb.mxu0 %v7158_v63 }
 0x22d   :  { %2719 = vmatpush.bf16.msrb.mxu2 %v6550_v59  ;;  %v6327_v59 = vld [vmem:[#allocation11 + $0xa0] sm:$0xf0] }
 0x22e   :  { %v891_v14 = vpop.f32.mrf.mxu1  ;;  %987 = vmatpush.bf16.msra.mxu3 %v852_v7  ;;  %v8307_v7 = vld [vmem:[#allocation3 + $0x18] sm:$0xff] }
 0x22f   :  { %2815 = vmatpush.bf16.msrb.mxu0 %v7126_v24 }
 0x231   :  { %988 = vmatmul.bf16.vlgmr.msra.gmra.mxu3 %v8301_v29  ;;  %2720 = vmatpush.bf16.msrb.mxu2 %v6518_v20 }
 0x232   :  { %2762 = vmatpush.bf16.msrb.mxu3 %v6998_v2 }
 0x233   :  { %2816 = vmatpush.bf16.msrb.mxu0 %v7094_v45 }
 0x235   :  { %1062 = vmatmul.bf16.gmra.mxu0 %v8836_v19 }
 0x236   :  { %v893_v38 = vpop.f32.mrf.mxu1 }
 0x237   :  { %v8839_v43 = vpack.c.bf16 %v893_v38, %v891_v14  ;;  %2817 = vmatpush.bf16.msrb.mxu0 %v7062_v46  ;;  %v8047_v46 = vld [vmem:[#allocation11 + $0x55c] sm:$0xf0] }
 0x238   :  { %v6934_v58 = vor.u32 %v8047_v46, %v6933_v13  ;;  %v7255_v13 = vld [vmem:[#allocation11 + $0x7e0] sm:$0xf0] }
 0x239   :  { %11000 = vst [vmem:[#allocation24_spill] sm:$0xff] %v8839_v43  ;;  %2672 = vmatmul.bf16.vlgmr.msra.gmra.mxu1 %v8839_v43 }
 0x23b   :  { %964 = vmatmul.bf16.gmra.mxu2 %v8836_v19  ;;  %2818 = vmatpush.bf16.msrb.mxu0 %v7030_v9 }
 0x23e   :  { %v896_v47 = vpop.f32.mrf.mxu1 }
 0x241   :  { %993 = vmatmul.bf16.gmra.mxu3 %v8303_v36  ;;  %v8055_v36 = vld [vmem:[#allocation11 + $0x59c] sm:$0xf0] }
 0x242   :  { %v6966_v51 = vor.u32 %v8055_v36, %v6965_v33 }
 0x244   :  { %2763 = vmatpush.bf16.msrb.mxu3 %v6966_v51 }
 0x245   :  { %1067 = vmatmul.bf16.gmra.mxu0 %v8843_v40 }
 0x246   :  { %v898_v12 = vpop.f32.mrf.mxu1 }
 0x247   :  { %v8846_v21 = vpack.c.bf16 %v898_v12, %v896_v47 }
 0x248   :  { %2764 = vmatpush.bf16.msrb.mxu3 %v6934_v58 }
 0x249   :  { %2677 = vmatmul.bf16.gmra.mxu1 %v8846_v21 }
 0x24b   :  { %969 = vmatmul.bf16.gmra.mxu2 %v8843_v40 }
 0x24e   :  { %v901_v28 = vpop.f32.mrf.mxu1 }
 0x251   :  { %998 = vmatmul.bf16.gmra.mxu3 %v8305_v57  ;;  %v6330_v57 = vor.u32 %v7891_v26, %v6327_v59  ;;  %v7995_v59 = vld [vmem:[#allocation11 + $0x3c4] sm:$0xf] }
 0x255   :  { %1072 = vmatmul.bf16.gmra.mxu0 %v8850_v18 }
 0x256   :  { %v903_v49 = vpop.f32.mrf.mxu1 }
 0x257   :  { %v8853_v41 = vpack.c.bf16 %v903_v49, %v901_v28  ;;  %v6902_v28 = vor.u32 %v8039_v56, %v6901_v42 }
 0x259   :  { %2682 = vmatmul.bf16.gmra.mxu1 %v8853_v41  ;;  %2765 = vmatpush.bf16.msrb.mxu3 %v6902_v28 }
 0x25b   :  { %974 = vmatmul.bf16.gmra.mxu2 %v8850_v18 }
 0x25e   :  { %v906_v23 = vpop.f32.mrf.mxu1 }
 0x261   :  { %1003 = vmatmul.bf16.gmra.mxu3 %v8307_v7  ;;  %v7883_v7 = vld [vmem:[#allocation11 + $0x44] sm:$0xf] }
 0x262   :  { %v1038_v44 = vpop.f32.mrf.mxu0 }
 0x266   :  { %v908_v14 = vpop.f32.mrf.mxu1 }
 0x267   :  { %v8857_v53 = vpack.c.bf16 %v908_v14, %v906_v23  ;;  %v6870_v23 = vor.u32 %v8031_v11, %v6869_v3  ;;  %v8099_v3 = vld [vmem:[#allocation11 + $0x704] sm:$0xf] }
 0x269   :  { %2687 = vmatmul.bf16.gmra.mxu1 %v8857_v53  ;;  %2766 = vmatpush.bf16.msrb.mxu3 %v6870_v23 }
 0x26a   :  { %v1040_v0 = vpop.f32.mrf.mxu0 }
 0x26b   :  { %v8860_v35 = vpack.c.bf16 %v1040_v0, %v1038_v44  ;;  %v6295_v44 = vld [vmem:[#allocation11 + $0x60] sm:$0xf0]  ;;  %v6837_v0 = vld [vmem:[#allocation11 + $0x480] sm:$0xf] }
 0x26c   :  { %v6298_v14 = vor.u32 %v7883_v7, %v6295_v44  ;;  %v7987_v44 = vld [vmem:[#allocation11 + $0x384] sm:$0xf] }
 0x26d   :  { %2819 = vmatmul.bf16.vlgmr.msrb.gmra.mxu0 %v8860_v35 }
 0x26e   :  { %v911_v29 = vpop.f32.mrf.mxu1  ;;  %v940_v52 = vpop.f32.mrf.mxu2 }
 0x271   :  { %1008 = vmatmul.bf16.gmra.mxu3 %v8832_v48  ;;  %v6455_v48 = vld [vmem:[#allocation11 + $0x1a0] sm:$0xf0] }
 0x272   :  { %v1043_v5 = vpop.f32.mrf.mxu0  ;;  %v6458_v22 = vor.u32 %v7923_v34, %v6455_v48  ;;  %v6806_v48 = vor.u32 %v8015_v4, %v6805_v15  ;;  %v7979_v4 = vld [vmem:[#allocation11 + $0x344] sm:$0xf] }
 0x274   :  { %2861 = vmatpush.bf16.msrb.mxu1 %v6458_v22 }
 0x276   :  { %v913_v50 = vpop.f32.mrf.mxu1  ;;  %v942_v38 = vpop.f32.mrf.mxu2 }
 0x277   :  { %v8864_v61 = vpack.c.bf16 %v913_v50, %v911_v29  ;;  %v8866_v62 = vpack.c.bf16 %v942_v38, %v940_v52  ;;  %v8023_v29 = vld [vmem:[#allocation11 + $0x49c] sm:$0xf0]  ;;  %v7875_v50 = vld [vmem:[#allocation11 + $0x4] sm:$0xf] }
 0x278   :  { %2862 = vmatpush.bf16.msrb.mxu1 %v6426_v17  ;;  %v6263_v38 = vld [vmem:[#allocation11 + $0x20] sm:$0xf0] }
 0x279   :  { %11001 = vst [vmem:[#allocation23_spill] sm:$0xff] %v8864_v61  ;;  %2692 = vmatmul.bf16.gmra.mxu1 %v8864_v61  ;;  %2721 = vmatmul.bf16.vlgmr.msrb.gmra.mxu2 %v8866_v62  ;;  %v6266_v31 = vor.u32 %v7875_v50, %v6263_v38 }
 0x27a   :  { %11002 = vst [vmem:[#allocation21_spill] sm:$0xff] %v8866_v62  ;;  %v1045_v63 = vpop.f32.mrf.mxu0 }
 0x27b   :  { %v8870_v32 = vpack.c.bf16 %v1045_v63, %v1043_v5  ;;  %v6838_v5 = vor.u32 %v8023_v29, %v6837_v0  ;;  %v8091_v0 = vld [vmem:[#allocation11 + $0x6c4] sm:$0xf] }
 0x27c   :  { %2863 = vmatpush.bf16.msrb.mxu1 %v6394_v30  ;;  %v8123_v30 = vld [vmem:[#allocation11 + $0x7c4] sm:$0xf] }
 0x27d   :  { %11003 = vst [vmem:[#allocation22_spill] sm:$0xff] %v8870_v32  ;;  %2824 = vmatmul.bf16.gmra.mxu0 %v8870_v32  ;;  %2767 = vmatpush.bf16.msrb.mxu3 %v6838_v5  ;;  %v7258_v46 = vor.u32 %v8123_v30, %v7255_v13  ;;  %v7127_v5 = vld [vmem:[#allocation11 + $0x6e0] sm:$0xf0] }
 0x27e   :  { %v916_v24 = vpop.f32.mrf.mxu1  ;;  %v945_v47 = vpop.f32.mrf.mxu2  ;;  %v7130_v38 = vor.u32 %v8091_v0, %v7127_v5  ;;  %v7939_v0 = vld [vmem:[#allocation11 + $0x204] sm:$0xf] }
 0x27f   :  { %3007 = vmatpush.bf16.msra.mxu0 %v7258_v46 }
 0x281   :  { %1013 = vmatmul.bf16.gmra.mxu3 %v8836_v19  ;;  %v7899_v19 = vld [vmem:[#allocation11 + $0xc4] sm:$0xf] }
 0x282   :  { %v1048_v45 = vpop.f32.mrf.mxu0  ;;  %v6362_v9 = vor.u32 %v7899_v19, %v6359_v8  ;;  %2768 = vmatpush.bf16.msrb.mxu3 %v6806_v48  ;;  %v8107_v8 = vld [vmem:[#allocation11 + $0x744] sm:$0xf] }
 0x284   :  { %2864 = vmatpush.bf16.msrb.mxu1 %v6362_v9  ;;  %v7191_v9 = vld [vmem:[#allocation11 + $0x760] sm:$0xf0] }
 0x285   :  { %v7194_v56 = vor.u32 %v8107_v8, %v7191_v9 }
 0x286   :  { %v918_v12 = vpop.f32.mrf.mxu1  ;;  %v947_v39 = vpop.f32.mrf.mxu2 }
 0x287   :  { %v8874_v6 = vpack.c.bf16 %v918_v12, %v916_v24  ;;  %v8876_v37 = vpack.c.bf16 %v947_v39, %v945_v47  ;;  %v8115_v12 = vld [vmem:[#allocation11 + $0x784] sm:$0xf] }
 0x288   :  { %2865 = vmatpush.bf16.msrb.mxu1 %v6330_v57  ;;  %v7223_v39 = vld [vmem:[#allocation11 + $0x7a0] sm:$0xf0] }
 0x289   :  { %11004 = vst [vmem:[#allocation25_spill] sm:$0xff] %v8874_v6  ;;  %2697 = vmatmul.bf16.gmra.mxu1 %v8874_v6  ;;  %2726 = vmatmul.bf16.gmra.mxu2 %v8876_v37  ;;  %v7226_v58 = vor.u32 %v8115_v12, %v7223_v39  ;;  %v6743_v57 = vld [vmem:[#allocation11 + $0x3e0] sm:$0xf0] }
 0x28a   :  { %11005 = vst [vmem:[#allocation26_spill] sm:$0xff] %v8876_v37  ;;  %v1050_v1 = vpop.f32.mrf.mxu0  ;;  %v6746_v11 = vor.u32 %v7995_v59, %v6743_v57  ;;  %v6615_v12 = vld [vmem:[#allocation11 + $0x2e0] sm:$0xf0] }
 0x28b   :  { %v8880_v10 = vpack.c.bf16 %v1050_v1, %v1048_v45  ;;  %3008 = vmatpush.bf16.msra.mxu0 %v7226_v58  ;;  %v8067_v39 = vld [vmem:[#allocation11 + $0x604] sm:$0xf] }
 0x28c   :  { %2866 = vmatpush.bf16.msrb.mxu1 %v6298_v14  ;;  %2909 = vmatpush.bf16.msra.mxu2 %v6746_v11  ;;  %v6711_v14 = vld [vmem:[#allocation11 + $0x3a0] sm:$0xf0] }
 0x28d   :  { %11006 = vst [vmem:[#allocation27_spill] sm:$0xff] %v8880_v10  ;;  %2829 = vmatmul.bf16.gmra.mxu0 %v8880_v10 }
 0x28e   :  { %v921_v20 = vpop.f32.mrf.mxu1  ;;  %v950_v49 = vpop.f32.mrf.mxu2 }
 0x28f   :  { %3009 = vmatpush.bf16.msra.mxu0 %v7194_v56  ;;  %v7955_v56 = vld [vmem:[#allocation11 + $0x284] sm:$0xf] }
 0x290   :  { %2867 = vmatpush.bf16.msrb.mxu1 %v6266_v31 }
 0x291   :  { %1018 = vmatmul.bf16.gmra.mxu3 %v8843_v40  ;;  %v6773_v40 = vld [vmem:[#allocation11 + $0x400] sm:$0xf] }
 0x292   :  { %v1053_v52 = vpop.f32.mrf.mxu0  ;;  %v6774_v47 = vor.u32 %v8007_v16, %v6773_v40  ;;  %v7095_v40 = vld [vmem:[#allocation11 + $0x6a0] sm:$0xf0] }
 0x294   :  { %2769 = vmatpush.bf16.msrb.mxu3 %v6774_v47  ;;  %v7971_v47 = vld [vmem:[#allocation11 + $0x304] sm:$0xf] }
 0x296   :  { %v923_v63 = vpop.f32.mrf.mxu1  ;;  %v952_v34 = vpop.f32.mrf.mxu2 }
 0x297   :  { %v8884_v22 = vpack.c.bf16 %v923_v63, %v921_v20  ;;  %v8886_v25 = vpack.c.bf16 %v952_v34, %v950_v49  ;;  %v7159_v20 = vld [vmem:[#allocation11 + $0x720] sm:$0xf0] }
 0x298   :  { %v7162_v49 = vor.u32 %v8099_v3, %v7159_v20  ;;  %v6679_v63 = vld [vmem:[#allocation11 + $0x360] sm:$0xf0] }
 0x299   :  { %11007 = vst [vmem:[#allocation28_spill] sm:$0xff] %v8884_v22  ;;  %2702 = vmatmul.bf16.gmra.mxu1 %v8884_v22  ;;  %2731 = vmatmul.bf16.gmra.mxu2 %v8886_v25  ;;  %v8083_v34 = vld [vmem:[#allocation11 + $0x684] sm:$0xf]  ;;  %v6682_v48 = vor.u32 %v7979_v4, %v6679_v63 }
 0x29a   :  { %11008 = vst [vmem:[#allocation29_spill] sm:$0xff] %v8886_v25  ;;  %v1055_v24 = vpop.f32.mrf.mxu0  ;;  %3010 = vmatpush.bf16.msra.mxu0 %v7162_v49  ;;  %v7098_v16 = vor.u32 %v8083_v34, %v7095_v40  ;;  %v7947_v49 = vld [vmem:[#allocation11 + $0x244] sm:$0xf] }
 0x29b   :  { %v8890_v2 = vpack.c.bf16 %v1055_v24, %v1053_v52  ;;  %v6714_v52 = vor.u32 %v7987_v44, %v6711_v14 }
 0x29d   :  { %11009 = vst [vmem:[#allocation30_spill] sm:$0xff] %v8890_v2  ;;  %2834 = vmatmul.bf16.gmra.mxu0 %v8890_v2  ;;  %2910 = vmatpush.bf16.msra.mxu2 %v6714_v52 }
 0x29e   :  { %v926_v54 = vpop.f32.mrf.mxu1  ;;  %v955_v27 = vpop.f32.mrf.mxu2  ;;  %3011 = vmatpush.bf16.msra.mxu0 %v7130_v38 }
 0x2a1   :  { %1023 = vmatmul.bf16.gmra.mxu3 %v8850_v18  ;;  %2911 = vmatpush.bf16.msra.mxu2 %v6682_v48 }
 0x2a2   :  { %v1058_v17 = vpop.f32.mrf.mxu0  ;;  %3012 = vmatpush.bf16.msra.mxu0 %v7098_v16 }
 0x2a6   :  { %v928_v33 = vpop.f32.mrf.mxu1  ;;  %v957_v36 = vpop.f32.mrf.mxu2 }
 0x2a7   :  { %v8894_v45 = vpack.c.bf16 %v928_v33, %v926_v54  ;;  %v8896_v51 = vpack.c.bf16 %v957_v36, %v955_v27  ;;  %v6647_v54 = vld [vmem:[#allocation11 + $0x320] sm:$0xf0] }
 0x2a8   :  { %v8075_v27 = vld [vmem:[#allocation11 + $0x644] sm:$0xf]  ;;  %v6650_v33 = vor.u32 %v7971_v47, %v6647_v54 }
 0x2a9   :  { %11010 = vst [vmem:[#allocation31_spill] sm:$0xff] %v8894_v45  ;;  %2707 = vmatmul.bf16.gmra.mxu1 %v8894_v45  ;;  %2736 = vmatmul.bf16.gmra.mxu2 %v8896_v51  ;;  %v7063_v36 = vld [vmem:[#allocation11 + $0x660] sm:$0xf0] }
 0x2aa   :  { %11011 = vst [vmem:[#allocation32_spill] sm:$0xff] %v8896_v51  ;;  %v1060_v60 = vpop.f32.mrf.mxu0  ;;  %2912 = vmatpush.bf16.msra.mxu2 %v6650_v33 }
 0x2ab   :  { %v8900_v55 = vpack.c.bf16 %v1060_v60, %v1058_v17  ;;  %v7066_v60 = vor.u32 %v8075_v27, %v7063_v36 }
 0x2ad   :  { %11012 = vst [vmem:[#allocation33_spill] sm:$0xff] %v8900_v55  ;;  %2839 = vmatmul.bf16.gmra.mxu0 %v8900_v55 }
 0x2ae   :  { %v960_v18 = vpop.f32.mrf.mxu2  ;;  %3013 = vmatpush.bf16.msra.mxu0 %v7066_v60 }
 0x2b2   :  { %v1063_v19 = vpop.f32.mrf.mxu0 }
 0x2b4   :  { %v989_v42 = vpop.f32.mrf.mxu3 }
 0x2b6   :  { %v962_v1 = vpop.f32.mrf.mxu2  ;;  %v8903_v28 = vpop.f32.mrf.mxu1 }
 0x2b7   :  { %v8905_v26 = vpack.c.bf16 %v962_v1, %v960_v18  ;;  %v7963_v18 = vld [vmem:[#allocation11 + $0x2c4] sm:$0xf] }
 0x2b8   :  { %v6618_v58 = vor.u32 %v7963_v18, %v6615_v12  ;;  %v6583_v1 = vld [vmem:[#allocation11 + $0x2a0] sm:$0xf0] }
 0x2b9   :  { %11013 = vst [vmem:[#allocation34_spill] sm:$0xff] %v8905_v26  ;;  %2741 = vmatmul.bf16.gmra.mxu2 %v8905_v26  ;;  %2868 = vmatmul.bf16.vlgmr.msrb.gmra.mxu1 %v8839_v43  ;;  %v6586_v57 = vor.u32 %v7955_v56, %v6583_v1  ;;  %v8959_v18 = vld [vmem:[#allocation12] sm:$0xff] }
 0x2ba   :  { %v1065_v23 = vpop.f32.mrf.mxu0  ;;  %2913 = vmatpush.bf16.msra.mxu2 %v6618_v58  ;;  %11019 = vst [vmem:[#allocation40_spill] sm:$0xff] %v8959_v18  ;;  %v8964_v58 = vperm.slane %v8959_v18, 0 }
 0x2bb   :  { %v8909_v7 = vpack.c.bf16 %v1065_v23, %v1063_v19  ;;  %v7031_v19 = vld [vmem:[#allocation11 + $0x620] sm:$0xf0] }
 0x2bc   :  { %v991_v29 = vpop.f32.mrf.mxu3  ;;  %v7034_v8 = vor.u32 %v8067_v39, %v7031_v19  ;;  %v6551_v23 = vld [vmem:[#allocation11 + $0x260] sm:$0xf0]  ;;  %v2674_v1 = vadd.f32 %v8903_v28, %v8964_v58 }
 0x2bd   :  { %11014 = vst [vmem:[#allocation35_spill] sm:$0xff] %v8909_v7  ;;  %v8911_v50 = vpack.c.bf16 %v991_v29, %v989_v42  ;;  %2844 = vmatmul.bf16.gmra.mxu0 %v8909_v7  ;;  %v6554_v44 = vor.u32 %v7947_v49, %v6551_v23  ;;  %v6519_v29 = vld [vmem:[#allocation11 + $0x220] sm:$0xf0] }
 0x2be   :  { %v965_v31 = vpop.f32.mrf.mxu2  ;;  %v8914_v15 = vpop.f32.mrf.mxu1  ;;  %3014 = vmatpush.bf16.msra.mxu0 %v7034_v8  ;;  %2914 = vmatpush.bf16.msra.mxu2 %v6586_v57  ;;  %v6522_v5 = vor.u32 %v7939_v0, %v6519_v29  ;;  %v6493_v8 = vld [vmem:[#allocation11 + $0x1c8] sm:$0xf]  ;;  %v8059_v29 = vld [vmem:[#allocation11 + $0x5c4] sm:$0xf] }
 0x2bf   :  { %11015 = vst [vmem:[#allocation36_spill] sm:$0xff] %v8911_v50  ;;  %2770 = vmatmul.bf16.vlgmr.msrb.gmra.mxu3 %v8911_v50  ;;  %v6461_v57 = vld [vmem:[#allocation11 + $0x188] sm:$0xf]  ;;  %v6999_v28 = vld [vmem:[#allocation11 + $0x5e0] sm:$0xf0] }
 0x2c2   :  { %v1068_v24 = vpop.f32.mrf.mxu0  ;;  %2915 = vmatpush.bf16.msra.mxu2 %v6554_v44 }
 0x2c4   :  { %v994_v17 = vpop.f32.mrf.mxu3 }
 0x2c6   :  { %v967_v30 = vpop.f32.mrf.mxu2  ;;  %v8917_v13 = vpop.f32.mrf.mxu1  ;;  %2916 = vmatpush.bf16.msra.mxu2 %v6522_v5  ;;  %v7002_v5 = vor.u32 %v8059_v29, %v6999_v28  ;;  %v6365_v29 = vld [vmem:[#allocation11 + $0xc8] sm:$0xf] }
 0x2c7   :  { %v8919_v46 = vpack.c.bf16 %v967_v30, %v965_v31  ;;  %v7904_v28 = vld [vmem:[#allocation11 + $0xe4] sm:$0xf0] }
 0x2c8   :  { %2958 = vmatpush.bf16.msra.mxu3 %v7002_v5  ;;  %v6366_v5 = vor.u32 %v7904_v28, %v6365_v29  ;;  %v6301_v28 = vld [vmem:[#allocation11 + $0x48] sm:$0xf] }
 0x2c9   :  { %2746 = vmatmul.bf16.gmra.mxu2 %v8919_v46  ;;  %2873 = vmatmul.bf16.gmra.mxu1 %v8846_v21 }
 0x2ca   :  { %v1070_v9 = vpop.f32.mrf.mxu0 }
 0x2cb   :  { %v8923_v42 = vpack.c.bf16 %v1070_v9, %v1068_v24  ;;  %v7936_v9 = vld [vmem:[#allocation11 + $0x1e4] sm:$0xf0] }
 0x2cc   :  { %v996_v59 = vpop.f32.mrf.mxu3  ;;  %v6494_v56 = vor.u32 %v7936_v9, %v6493_v8  ;;  %v6397_v8 = vld [vmem:[#allocation11 + $0x108] sm:$0xf] }
 0x2cd   :  { %v8925_v3 = vpack.c.bf16 %v996_v59, %v994_v17  ;;  %2849 = vmatmul.bf16.gmra.mxu0 %v8923_v42  ;;  %v7912_v9 = vld [vmem:[#allocation11 + $0x124] sm:$0xf0] }
 0x2ce   :  { %v970_v11 = vpop.f32.mrf.mxu2  ;;  %v8928_v20 = vpop.f32.mrf.mxu1  ;;  %3056 = vmatpush.bf16.msra.mxu1 %v6494_v56 }
 0x2cf   :  { %11016 = vst [vmem:[#allocation37_spill] sm:$0xff] %v8925_v3  ;;  %2775 = vmatmul.bf16.gmra.mxu3 %v8925_v3 }
 0x2d2   :  { %v1073_v14 = vpop.f32.mrf.mxu0 }
 0x2d4   :  { %v999_v52 = vpop.f32.mrf.mxu3 }
 0x2d6   :  { %v972_v38 = vpop.f32.mrf.mxu2  ;;  %v8931_v31 = vpop.f32.mrf.mxu1 }
 0x2d7   :  { %v8933_v4 = vpack.c.bf16 %v972_v38, %v970_v11  ;;  %v7928_v11 = vld [vmem:[#allocation11 + $0x1a4] sm:$0xf0] }
 0x2d8   :  { %v6462_v44 = vor.u32 %v7928_v11, %v6461_v57  ;;  %v6429_v38 = vld [vmem:[#allocation11 + $0x148] sm:$0xf]  ;;  %v6398_v57 = vor.u32 %v7912_v9, %v6397_v8 }
 0x2d9   :  { %2751 = vmatmul.bf16.gmra.mxu2 %v8933_v4  ;;  %2878 = vmatmul.bf16.gmra.mxu1 %v8853_v41 }
 0x2da   :  { %v1075_v63 = vpop.f32.mrf.mxu0  ;;  %3057 = vmatpush.bf16.msra.mxu1 %v6462_v44 }
 0x2db   :  { %v8937_v34 = vpack.c.bf16 %v1075_v63, %v1073_v14  ;;  %v7920_v63 = vld [vmem:[#allocation11 + $0x164] sm:$0xf0] }
 0x2dc   :  { %v1001_v48 = vpop.f32.mrf.mxu3 }
 0x2dd   :  { %v8939_v40 = vpack.c.bf16 %v1001_v48, %v999_v52  ;;  %2854 = vmatmul.bf16.gmra.mxu0 %v8937_v34  ;;  %v6430_v48 = vor.u32 %v7920_v63, %v6429_v38  ;;  %v2679_v38 = vadd.f32 %v8917_v13, %v8964_v58  ;;  %v8035_v63 = vld [vmem:[#allocation11 + $0x504] sm:$0xf] }
 0x2de   :  { %v975_v16 = vpop.f32.mrf.mxu2  ;;  %v8942_v24 = vpop.f32.mrf.mxu1  ;;  %v8027_v13 = vld [vmem:[#allocation11 + $0x4c4] sm:$0xf] }
 0x2df   :  { %2780 = vmatmul.bf16.gmra.mxu3 %v8939_v40  ;;  %3058 = vmatpush.bf16.msra.mxu1 %v6430_v48  ;;  %v6903_v48 = vld [vmem:[#allocation11 + $0x520] sm:$0xf0] }
 0x2e3   :  { %3059 = vmatpush.bf16.msra.mxu1 %v6398_v57 }
 0x2e4   :  { %v1004_v47 = vpop.f32.mrf.mxu3 }
 0x2e6   :  { %v977_v54 = vpop.f32.mrf.mxu2  ;;  %v8945_v27 = vpop.f32.mrf.mxu1 }
 0x2e7   :  { %v8947_v17 = vpack.c.bf16 %v977_v54, %v975_v16  ;;  %v2676_v16 = vadd.f32 %v8914_v15, %v8964_v58  ;;  %v6967_v54 = vld [vmem:[#allocation11 + $0x5a0] sm:$0xf0]  ;;  %3060 = vmatpush.bf16.msra.mxu1 %v6366_v5  ;;  %v7888_v5 = vld [vmem:[#allocation11 + $0x64] sm:$0xf0] }
 0x2e9   :  { %2756 = vmatmul.bf16.gmra.mxu2 %v8947_v17  ;;  %2883 = vmatmul.bf16.gmra.mxu1 %v8857_v53 }
 0x2ea   :  { %v8951_v33 = vpop.f32.mrf.mxu0 }
 0x2eb   :  { %11017 = vst [vmem:[#allocation38_spill] sm:$0xff] %v8951_v33  ;;  %v7165_v33 = vld [vmem:[#allocation11 + $0x708] sm:$0xf] }
 0x2ec   :  { %v1006_v36 = vpop.f32.mrf.mxu3 }
 0x2ed   :  { %v8953_v60 = vpack.c.bf16 %v1006_v36, %v1004_v47  ;;  %3015 = vmatmul.bf16.vlgmr.msra.gmra.mxu0 %v8860_v35  ;;  %v8051_v47 = vld [vmem:[#allocation11 + $0x584] sm:$0xf] }
 0x2ee   :  { %v8956_v30 = vpop.f32.mrf.mxu1 }
 0x2ef   :  { %11018 = vst [vmem:[#allocation39_spill] sm:$0xff] %v8953_v60  ;;  %2785 = vmatmul.bf16.gmra.mxu3 %v8953_v60 }
 0x2f2   :  { %v8961_v12 = vpop.f32.mrf.mxu0 }
 0x2f3   :  { %11020 = vst [vmem:[#allocation41_spill] sm:$0xff] %v8961_v12  ;;  %v8000_v12 = vld [vmem:[#allocation11 + $0x3e4] sm:$0xf0] }
 0x2f4   :  { %v1009_v39 = vpop.f32.mrf.mxu3 }
 0x2f6   :  { %v8966_v19 = vpop.f32.mrf.mxu1 }
 0x2f9   :  { %2888 = vmatmul.bf16.gmra.mxu1 %v8864_v61  ;;  %2917 = vmatmul.bf16.vlgmr.msra.gmra.mxu2 %v8866_v62 }
 0x2fa   :  { %v8972_v59 = vpop.f32.mrf.mxu0 }
 0x2fb   :  { %11021 = vst [vmem:[#allocation42_spill] sm:$0xff] %v8972_v59 }
 0x2fc   :  { %v1011_v49 = vpop.f32.mrf.mxu3  ;;  %v2722_v23 = vpop.f32.mrf.mxu2 }
 0x2fd   :  { %v8974_v14 = vpack.c.bf16 %v1011_v49, %v1009_v39  ;;  %v8976_v0 = vadd.f32 %v2722_v23, %v2674_v1  ;;  %3020 = vmatmul.bf16.gmra.mxu0 %v8870_v32  ;;  %v6970_v39 = vor.u32 %v8051_v47, %v6967_v54  ;;  %v8043_v49 = vld [vmem:[#allocation11 + $0x544] sm:$0xf]  ;;  %v6906_v47 = vor.u32 %v8035_v63, %v6903_v48  ;;  %v6333_v54 = vld [vmem:[#allocation11 + $0x88] sm:$0xf] }
 0x2fe   :  { %v8979_v52 = vpop.f32.mrf.mxu1  ;;  %v6935_v23 = vld [vmem:[#allocation11 + $0x560] sm:$0xf0]  ;;  %v6302_v63 = vor.u32 %v7888_v5, %v6301_v28  ;;  %v2684_v5 = vadd.f32 %v8931_v31, %v8964_v58  ;;  %v2686_v31 = vadd.f32 %v8942_v24, %v8964_v58 }
 0x2ff   :  { %11022 = vst [vmem:[#allocation43_spill] sm:$0xff] %v8974_v14  ;;  %2790 = vmatmul.bf16.gmra.mxu3 %v8974_v14  ;;  %v6938_v15 = vor.u32 %v8043_v49, %v6935_v23  ;;  %v6871_v23 = vld [vmem:[#allocation11 + $0x4e0] sm:$0xf0] }
 0x300   :  { %2959 = vmatpush.bf16.msra.mxu3 %v6970_v39  ;;  %v7896_v39 = vld [vmem:[#allocation11 + $0xa4] sm:$0xf0]  ;;  %v6874_v29 = vor.u32 %v8027_v13, %v6871_v23  ;;  %v8019_v48 = vld [vmem:[#allocation11 + $0x484] sm:$0xf] }
 0x302   :  { %v8984_v36 = vpop.f32.mrf.mxu0 }
 0x303   :  { %11023 = vst [vmem:[#allocation44_spill] sm:$0xff] %v8984_v36 }
 0x304   :  { %v1014_v56 = vpop.f32.mrf.mxu3  ;;  %v2724_v1 = vpop.f32.mrf.mxu2  ;;  %2960 = vmatpush.bf16.msra.mxu3 %v6938_v15 }
 0x305   :  { %v8986_v11 = vadd.f32 %v2724_v1, %v2676_v16  ;;  %v6334_v1 = vor.u32 %v7896_v39, %v6333_v54  ;;  %v6269_v39 = vld [vmem:[#allocation11 + $0x8] sm:$0xf] }
 0x306   :  { %v8988_v44 = vpop.f32.mrf.mxu1 }
 0x307   :  { %3061 = vmatpush.bf16.msra.mxu1 %v6334_v1 }
 0x308   :  { %2961 = vmatpush.bf16.msra.mxu3 %v6906_v47 }
 0x309   :  { %2893 = vmatmul.bf16.gmra.mxu1 %v8874_v6  ;;  %2922 = vmatmul.bf16.gmra.mxu2 %v8876_v37 }
 0x30a   :  { %v8994_v16 = vpop.f32.mrf.mxu0 }
 0x30b   :  { %11024 = vst [vmem:[#allocation45_spill] sm:$0xff] %v8994_v16  ;;  %3062 = vmatpush.bf16.msra.mxu1 %v6302_v63  ;;  %v8011_v16 = vld [vmem:[#allocation11 + $0x444] sm:$0xf] }
 0x30c   :  { %v1016_v8 = vpop.f32.mrf.mxu3  ;;  %v2727_v9 = vpop.f32.mrf.mxu2  ;;  %2962 = vmatpush.bf16.msra.mxu3 %v6874_v29  ;;  %v6807_v29 = vld [vmem:[#allocation11 + $0x460] sm:$0xf0] }
 0x30d   :  { %v8996_v57 = vpack.c.bf16 %v1016_v8, %v1014_v56  ;;  %v8998_v49 = vadd.f32 %v2727_v9, %v2679_v38  ;;  %3025 = vmatmul.bf16.gmra.mxu0 %v8880_v10  ;;  %v2681_v56 = vadd.f32 %v8928_v20, %v8964_v58  ;;  %v6839_v38 = vld [vmem:[#allocation11 + $0x4a0] sm:$0xf0]  ;;  %v7880_v8 = vld [vmem:[#allocation11 + $0x24] sm:$0xf0]  ;;  %v6810_v20 = vor.u32 %v8011_v16, %v6807_v29 }
 0x30e   :  { %v9001_v15 = vpop.f32.mrf.mxu1  ;;  %v6842_v54 = vor.u32 %v8019_v48, %v6839_v38  ;;  %v6270_v13 = vor.u32 %v7880_v8, %v6269_v39  ;;  %v8003_v63 = vld [vmem:[#allocation11 + $0x404] sm:$0xf] }
 0x30f   :  { %11025 = vst [vmem:[#allocation46_spill] sm:$0xff] %v8996_v57  ;;  %2795 = vmatmul.bf16.gmra.mxu3 %v8996_v57  ;;  %v6775_v48 = vld [vmem:[#allocation11 + $0x420] sm:$0xf0] }
 0x310   :  { %2963 = vmatpush.bf16.msra.mxu3 %v6842_v54  ;;  %3063 = vmatpush.bf16.msra.mxu1 %v6270_v13 }
 0x312   :  { %v9006_v47 = vpop.f32.mrf.mxu0 }
 0x313   :  { %11026 = vst [vmem:[#allocation47_spill] sm:$0xff] %v9006_v47  ;;  %v8120_v47 = vld [vmem:[#allocation11 + $0x7a4] sm:$0xf0] }
 0x314   :  { %v1019_v9 = vpop.f32.mrf.mxu3  ;;  %v2729_v1 = vpop.f32.mrf.mxu2  ;;  %2964 = vmatpush.bf16.msra.mxu3 %v6810_v20 }
 0x315   :  { %v9008_v23 = vadd.f32 %v2729_v1, %v2681_v56  ;;  %v6778_v56 = vor.u32 %v8003_v63, %v6775_v48 }
 0x316   :  { %v9010_v28 = vpop.f32.mrf.mxu1 }
 0x318   :  { %2965 = vmatpush.bf16.msra.mxu3 %v6778_v56  ;;  %v7261_v56 = vld [vmem:[#allocation11 + $0x7c8] sm:$0xf] }
 0x319   :  { %2898 = vmatmul.bf16.gmra.mxu1 %v8884_v22  ;;  %2927 = vmatmul.bf16.gmra.mxu2 %v8886_v25 }
 0x31a   :  { %v9016_v38 = vpop.f32.mrf.mxu0 }
 0x31b   :  { %11027 = vst [vmem:[#allocation48_spill] sm:$0xff] %v9016_v38 }
 0x31c   :  { %v1021_v54 = vpop.f32.mrf.mxu3  ;;  %v2732_v39 = vpop.f32.mrf.mxu2 }
 0x31d   :  { %v9018_v8 = vpack.c.bf16 %v1021_v54, %v1019_v9  ;;  %v9020_v1 = vadd.f32 %v2732_v39, %v2684_v5  ;;  %3030 = vmatmul.bf16.gmra.mxu0 %v8890_v2  ;;  %v2689_v9 = vadd.f32 %v8945_v27, %v8964_v58  ;;  %v8128_v54 = vld [vmem:[#allocation11 + $0x7e4] sm:$0xf0] }
 0x31e   :  { %v9023_v16 = vpop.f32.mrf.mxu1  ;;  %v7229_v27 = vld [vmem:[#allocation11 + $0x788] sm:$0xf] }
 0x31f   :  { %11028 = vst [vmem:[#allocation49_spill] sm:$0xff] %v9018_v8  ;;  %2800 = vmatmul.bf16.gmra.mxu3 %v9018_v8  ;;  %v7230_v36 = vor.u32 %v8120_v47, %v7229_v27  ;;  %v8104_v47 = vld [vmem:[#allocation11 + $0x724] sm:$0xf0] }
 0x322   :  { %v9028_v13 = vpop.f32.mrf.mxu0 }
 0x323   :  { %11029 = vst [vmem:[#allocation50_spill] sm:$0xff] %v9028_v13  ;;  %v7262_v13 = vor.u32 %v8128_v54, %v7261_v56  ;;  %v8112_v56 = vld [vmem:[#allocation11 + $0x764] sm:$0xf0] }
 0x324   :  { %v1024_v29 = vpop.f32.mrf.mxu3  ;;  %v2734_v20 = vpop.f32.mrf.mxu2 }
 0x325   :  { %v9030_v63 = vadd.f32 %v2734_v20, %v2686_v31  ;;  %3203 = vmatpush.bf16.msrb.mxu0 %v7262_v13  ;;  %v6749_v13 = vld [vmem:[#allocation11 + $0x3c8] sm:$0xf] }
 0x326   :  { %v9032_v48 = vpop.f32.mrf.mxu1  ;;  %v6750_v18 = vor.u32 %v8000_v12, %v6749_v13 }
 0x328   :  { %3105 = vmatpush.bf16.msrb.mxu2 %v6750_v18  ;;  %v7984_v18 = vld [vmem:[#allocation11 + $0x364] sm:$0xf0] }
 0x329   :  { %2903 = vmatmul.bf16.gmra.mxu1 %v8894_v45  ;;  %2932 = vmatmul.bf16.gmra.mxu2 %v8896_v51 }
 0x32a   :  { %v9038_v5 = vpop.f32.mrf.mxu0  ;;  %3204 = vmatpush.bf16.msrb.mxu0 %v7230_v36  ;;  %v7166_v36 = vor.u32 %v8104_v47, %v7165_v33  ;;  %v6685_v33 = vld [vmem:[#allocation11 + $0x348] sm:$0xf] }
 0x32b   :  { %11030 = vst [vmem:[#allocation51_spill] sm:$0xff] %v9038_v5  ;;  %v2691_v5 = vadd.f32 %v8956_v30, %v8964_v58  ;;  %v2694_v30 = vadd.f32 %v8966_v19, %v8964_v58  ;;  %v7101_v47 = vld [vmem:[#allocation11 + $0x688] sm:$0xf] }
 0x32c   :  { %v1026_v24 = vpop.f32.mrf.mxu3  ;;  %v2737_v39 = vpop.f32.mrf.mxu2 }
 0x32d   :  { %v9040_v38 = vpack.c.bf16 %v1026_v24, %v1024_v29  ;;  %v9042_v31 = vadd.f32 %v2737_v39, %v2689_v9  ;;  %3035 = vmatmul.bf16.gmra.mxu0 %v8900_v55  ;;  %v7197_v29 = vld [vmem:[#allocation11 + $0x748] sm:$0xf] }
 0x32e   :  { %v9045_v20 = vpop.f32.mrf.mxu1  ;;  %v7198_v54 = vor.u32 %v8112_v56, %v7197_v29  ;;  %v7992_v29 = vld [vmem:[#allocation11 + $0x3a4] sm:$0xf0] }
 0x32f   :  { %11031 = vst [vmem:[#allocation52_spill] sm:$0xff] %v9040_v38  ;;  %2805 = vmatmul.bf16.gmra.mxu3 %v9040_v38  ;;  %v7133_v56 = vld [vmem:[#allocation11 + $0x6c8] sm:$0xf] }
 0x330   :  { %3205 = vmatpush.bf16.msrb.mxu0 %v7198_v54 }
 0x332   :  { %v9050_v59 = vpop.f32.mrf.mxu0 }
 0x333   :  { %11032 = vst [vmem:[#allocation53_spill] sm:$0xff] %v9050_v59  ;;  %v8096_v59 = vld [vmem:[#allocation11 + $0x6e4] sm:$0xf0] }
 0x334   :  { %v2739_v9 = vpop.f32.mrf.mxu2  ;;  %3206 = vmatpush.bf16.msrb.mxu0 %v7166_v36  ;;  %v7134_v19 = vor.u32 %v8096_v59, %v7133_v56  ;;  %v6686_v36 = vor.u32 %v7984_v18, %v6685_v33  ;;  %v6653_v56 = vld [vmem:[#allocation11 + $0x308] sm:$0xf] }
 0x335   :  { %v9052_v24 = vadd.f32 %v2739_v9, %v2691_v5  ;;  %v6717_v5 = vld [vmem:[#allocation11 + $0x388] sm:$0xf] }
 0x336   :  { %v9054_v39 = vpop.f32.mrf.mxu1  ;;  %v6718_v54 = vor.u32 %v7992_v29, %v6717_v5  ;;  %v2696_v5 = vadd.f32 %v8979_v52, %v8964_v58  ;;  %v6621_v52 = vld [vmem:[#allocation11 + $0x2c8] sm:$0xf] }
 0x337   :  { %11033 = vst [vmem:[#allocation54_spill] sm:$0xff] %v9054_v39  ;;  %v8080_v39 = vld [vmem:[#allocation11 + $0x664] sm:$0xf0] }
 0x338   :  { %3106 = vmatpush.bf16.msrb.mxu2 %v6718_v54  ;;  %3207 = vmatpush.bf16.msrb.mxu0 %v7134_v19  ;;  %v7976_v54 = vld [vmem:[#allocation11 + $0x324] sm:$0xf0] }
 0x339   :  { %2937 = vmatmul.bf16.gmra.mxu2 %v8905_v26  ;;  %3064 = vmatmul.bf16.vlgmr.msra.gmra.mxu1 %v8839_v43  ;;  %v7069_v19 = vld [vmem:[#allocation11 + $0x648] sm:$0xf] }
 0x33a   :  { %v9060_v27 = vpop.f32.mrf.mxu0  ;;  %v7070_v18 = vor.u32 %v8080_v39, %v7069_v19  ;;  %v6589_v39 = vld [vmem:[#allocation11 + $0x288] sm:$0xf] }
 0x33b   :  { %11034 = vst [vmem:[#allocation55_spill] sm:$0xff] %v9060_v27  ;;  %v8088_v27 = vld [vmem:[#allocation11 + $0x6a4] sm:$0xf0] }
 0x33c   :  { %v2742_v9 = vpop.f32.mrf.mxu2  ;;  %v7102_v29 = vor.u32 %v8088_v27, %v7101_v47  ;;  %3107 = vmatpush.bf16.msrb.mxu2 %v6686_v36  ;;  %v7968_v27 = vld [vmem:[#allocation11 + $0x2e4] sm:$0xf0] }
 0x33d   :  { %v9062_v12 = vadd.f32 %v2742_v9, %v2694_v30  ;;  %3040 = vmatmul.bf16.gmra.mxu0 %v8909_v7  ;;  %v6622_v47 = vor.u32 %v7968_v27, %v6621_v52  ;;  %v7037_v36 = vld [vmem:[#allocation11 + $0x608] sm:$0xf] }
 0x33e   :  { %v9065_v13 = vpop.f32.mrf.mxu1  ;;  %3208 = vmatpush.bf16.msrb.mxu0 %v7102_v29  ;;  %v2699_v29 = vadd.f32 %v8988_v44, %v8964_v58  ;;  %v6557_v52 = vld [vmem:[#allocation11 + $0x248] sm:$0xf] }
 0x33f   :  { %11035 = vst [vmem:[#allocation56_spill] sm:$0xff] %v9065_v13  ;;  %2966 = vmatmul.bf16.vlgmr.msra.gmra.mxu3 %v8911_v50  ;;  %v6654_v50 = vor.u32 %v7976_v54, %v6653_v56  ;;  %v7960_v56 = vld [vmem:[#allocation11 + $0x2a4] sm:$0xf0] }
 0x340   :  { %v6590_v19 = vor.u32 %v7960_v56, %v6589_v39  ;;  %v7952_v27 = vld [vmem:[#allocation11 + $0x264] sm:$0xf0] }
 0x341   :  { %3108 = vmatpush.bf16.msrb.mxu2 %v6654_v50 }
 0x342   :  { %v2771_v30 = vpop.f32.mrf.mxu3  ;;  %v9070_v9 = vpop.f32.mrf.mxu0  ;;  %3209 = vmatpush.bf16.msrb.mxu0 %v7070_v18 }
 0x343   :  { %11036 = vst [vmem:[#allocation57_spill] sm:$0xff] %v9070_v9  ;;  %v9073_v59 = vadd.f32 %v2771_v30, %v8976_v0  ;;  %v8072_v0 = vld [vmem:[#allocation11 + $0x624] sm:$0xf0] }
 0x344   :  { %v2744_v13 = vpop.f32.mrf.mxu2  ;;  %v7038_v30 = vor.u32 %v8072_v0, %v7037_v36 }
 0x345   :  { %v9075_v33 = vadd.f32 %v2744_v13, %v2696_v5  ;;  %3109 = vmatpush.bf16.msrb.mxu2 %v6622_v47  ;;  %v6558_v47 = vor.u32 %v7952_v27, %v6557_v52  ;;  %v2704_v52 = vadd.f32 %v9010_v28, %v8964_v58  ;;  %v2706_v28 = vadd.f32 %v9023_v16, %v8964_v58 }
 0x346   :  { %v9077_v7 = vpop.f32.mrf.mxu1  ;;  %3210 = vmatpush.bf16.msrb.mxu0 %v7038_v30  ;;  %v6525_v30 = vld [vmem:[#allocation11 + $0x208] sm:$0xf] }
 0x349   :  { %2942 = vmatmul.bf16.gmra.mxu2 %v8919_v46  ;;  %3069 = vmatmul.bf16.gmra.mxu1 %v8846_v21 }
 0x34a   :  { %v2773_v13 = vpop.f32.mrf.mxu3  ;;  %v9083_v5 = vpop.f32.mrf.mxu0  ;;  %3110 = vmatpush.bf16.msrb.mxu2 %v6590_v19 }
 0x34b   :  { %11037 = vst [vmem:[#allocation58_spill] sm:$0xff] %v9083_v5  ;;  %v9086_v50 = vadd.f32 %v2773_v13, %v8986_v11  ;;  %v2701_v11 = vadd.f32 %v9001_v15, %v8964_v58  ;;  %v7944_v13 = vld [vmem:[#allocation11 + $0x224] sm:$0xf0]  ;;  %v6495_v5 = vld [vmem:[#allocation11 + $0x1e8] sm:$0xf0] }
 0x34c   :  { %v2747_v54 = vpop.f32.mrf.mxu2  ;;  %v6526_v56 = vor.u32 %v7944_v13, %v6525_v30 }
 0x34d   :  { %v9088_v18 = vadd.f32 %v2747_v54, %v2699_v29  ;;  %3045 = vmatmul.bf16.gmra.mxu0 %v8923_v42 }
 0x34e   :  { %v9091_v44 = vpop.f32.mrf.mxu1  ;;  %3111 = vmatpush.bf16.msrb.mxu2 %v6558_v47 }
 0x34f   :  { %2971 = vmatmul.bf16.gmra.mxu3 %v8925_v3 }
 0x352   :  { %v2776_v36 = vpop.f32.mrf.mxu3  ;;  %v9096_v0 = vpop.f32.mrf.mxu0  ;;  %3112 = vmatpush.bf16.msrb.mxu2 %v6526_v56 }
 0x353   :  { %11038 = vst [vmem:[#allocation59_spill] sm:$0xff] %v9096_v0  ;;  %v9099_v29 = vadd.f32 %v2776_v36, %v8998_v49 }
 0x354   :  { %v2749_v39 = vpop.f32.mrf.mxu2 }
 0x355   :  { %v9101_v54 = vadd.f32 %v2749_v39, %v2701_v11 }
 0x356   :  { %v9103_v19 = vpop.f32.mrf.mxu1 }
 0x359   :  { %2947 = vmatmul.bf16.gmra.mxu2 %v8933_v4  ;;  %3074 = vmatmul.bf16.gmra.mxu1 %v8853_v41 }
 0x35a   :  { %v2778_v15 = vpop.f32.mrf.mxu3  ;;  %v9109_v27 = vpop.f32.mrf.mxu0 }
 0x35b   :  { %11039 = vst [vmem:[#allocation60_spill] sm:$0xff] %v9109_v27  ;;  %v9112_v49 = vadd.f32 %v2778_v15, %v9008_v23  ;;  %v2709_v15 = vadd.f32 %v9032_v48, %v8964_v58  ;;  %v2711_v48 = vadd.f32 %v9045_v20, %v8964_v58 }
 0x35c   :  { %v2752_v47 = vpop.f32.mrf.mxu2 }
 0x35d   :  { %v9114_v36 = vadd.f32 %v2752_v47, %v2704_v52  ;;  %3050 = vmatmul.bf16.gmra.mxu0 %v8937_v34 }
 0x35e   :  { %v9117_v11 = vpop.f32.mrf.mxu1 }
 0x35f   :  { %2976 = vmatmul.bf16.gmra.mxu3 %v8939_v40 }
 0x362   :  { %v2781_v30 = vpop.f32.mrf.mxu3  ;;  %v9122_v13 = vpop.f32.mrf.mxu0 }
 0x363   :  { %11040 = vst [vmem:[#allocation61_spill] sm:$0xff] %v9122_v13  ;;  %v9125_v39 = vadd.f32 %v2781_v30, %v9020_v1 }
 0x364   :  { %v2754_v23 = vpop.f32.mrf.mxu2 }
 0x365   :  { %v9127_v56 = vadd.f32 %v2754_v23, %v2706_v28 }
 0x366   :  { %v9129_v52 = vpop.f32.mrf.mxu1 }
 0x367   :  { %11041 = vst [vmem:[#allocation62_spill] sm:$0xff] %v9129_v52  ;;  %v6367_v52 = vld [vmem:[#allocation11 + $0xe8] sm:$0xf0] }
 0x369   :  { %2952 = vmatmul.bf16.gmra.mxu2 %v8947_v17  ;;  %3079 = vmatmul.bf16.gmra.mxu1 %v8857_v53 }
 0x36a   :  { %v2783_v47 = vpop.f32.mrf.mxu3  ;;  %v9135_v16 = vpop.f32.mrf.mxu0 }
 0x36b   :  { %v9138_v13 = vadd.f32 %v2783_v47, %v9030_v63 }
 0x36c   :  { %v2757_v1 = vpop.f32.mrf.mxu2 }
 0x36d   :  { %v9140_v30 = vadd.f32 %v2757_v1, %v2709_v15  ;;  %3211 = vmatmul.bf16.vlgmr.msrb.gmra.mxu0 %v8860_v35  ;;  %v7932_v1 = vld [vmem:[#allocation11 + $0x1cc] sm:$0xf] }
 0x36e   :  { %v9143_v28 = vpop.f32.mrf.mxu1  ;;  %v6498_v9 = vor.u32 %v7932_v1, %v6495_v5  ;;  %v8064_v5 = vld [vmem:[#allocation11 + $0x5e4] sm:$0xf0] }
 0x36f   :  { %11042 = vst [vmem:[#allocation63_spill] sm:$0xff] %v9143_v28  ;;  %2981 = vmatmul.bf16.gmra.mxu3 %v8953_v60 }
 0x370   :  { %3252 = vmatpush.bf16.msrb.mxu1 %v6498_v9  ;;  %v6431_v9 = vld [vmem:[#allocation11 + $0x168] sm:$0xf0] }
 0x372   :  { %v2786_v23 = vpop.f32.mrf.mxu3  ;;  %v9148_v27 = vpop.f32.mrf.mxu0 }
 0x373   :  { %v9151_v0 = vadd.f32 %v2786_v23, %v9042_v31  ;;  %v7924_v31 = vld [vmem:[#allocation11 + $0x18c] sm:$0xf] }
 0x374   :  { %v2759_v63 = vpop.f32.mrf.mxu2  ;;  %v6463_v23 = vld [vmem:[#allocation11 + $0x1a8] sm:$0xf0] }
 0x375   :  { %11043 = vst [vmem:[#allocation64_spill] sm:$0xff] %v9151_v0  ;;  %v9153_v47 = vadd.f32 %v2759_v63, %v2711_v48  ;;  %v6466_v63 = vor.u32 %v7924_v31, %v6463_v23 }
 0x376   :  { %v9155_v15 = vpop.f32.mrf.mxu1 }
 0x377   :  { %11044 = vst [vmem:[#allocation65_spill] sm:$0xff] %v9155_v15  ;;  %v7005_v15 = vld [vmem:[#allocation11 + $0x5c8] sm:$0xf]  ;;  %3253 = vmatpush.bf16.msrb.mxu1 %v6466_v63 }
 0x379   :  { %3084 = vmatmul.bf16.gmra.mxu1 %v8864_v61  ;;  %3113 = vmatmul.bf16.vlgmr.msrb.gmra.mxu2 %v8866_v62  ;;  %v7006_v62 = vor.u32 %v8064_v5, %v7005_v15  ;;  %v7916_v61 = vld [vmem:[#allocation11 + $0x14c] sm:$0xf]  ;;  %v6941_v5 = vld [vmem:[#allocation11 + $0x548] sm:$0xf] }
 0x37a   :  { %v2788_v28 = vpop.f32.mrf.mxu3  ;;  %v9159_v58 = vpop.f32.mrf.mxu0 }
 0x37b   :  { %v9162_v20 = vadd.f32 %v2788_v28, %v9052_v24  ;;  %3154 = vmatpush.bf16.msrb.mxu3 %v7006_v62  ;;  %v6434_v24 = vor.u32 %v7916_v61, %v6431_v9  ;;  %v6973_v28 = vld [vmem:[#allocation11 + $0x588] sm:$0xf]  ;;  %v7900_v9 = vld [vmem:[#allocation11 + $0xcc] sm:$0xf] }
 0x37c   :  { %v9164_v48 = vpop.f32.mrf.mxu2 }
 0x37d   :  { %11045 = vst [vmem:[#allocation66_spill] sm:$0xff] %v9162_v20  ;;  %3216 = vmatmul.bf16.gmra.mxu0 %v8870_v32  ;;  %v8056_v20 = vld [vmem:[#allocation11 + $0x5a4] sm:$0xf0]  ;;  %3254 = vmatpush.bf16.msrb.mxu1 %v6434_v24  ;;  %v7908_v32 = vld [vmem:[#allocation11 + $0x10c] sm:$0xf]  ;;  %v6370_v24 = vor.u32 %v7900_v9, %v6367_v52 }
 0x37e   :  { %v9167_v1 = vpop.f32.mrf.mxu1  ;;  %v6974_v31 = vor.u32 %v8056_v20, %v6973_v28 }
 0x37f   :  { %11046 = vst [vmem:[#allocation67_spill] sm:$0xff] %v9167_v1  ;;  %2986 = vmatmul.bf16.gmra.mxu3 %v8974_v14  ;;  %v6399_v1 = vld [vmem:[#allocation11 + $0x128] sm:$0xf0]  ;;  %v8048_v14 = vld [vmem:[#allocation11 + $0x564] sm:$0xf0] }
 0x380   :  { %3155 = vmatpush.bf16.msrb.mxu3 %v6974_v31  ;;  %v6402_v15 = vor.u32 %v7908_v32, %v6399_v1  ;;  %v6942_v61 = vor.u32 %v8048_v14, %v6941_v5  ;;  %v7892_v31 = vld [vmem:[#allocation11 + $0x8c] sm:$0xf]  ;;  %v6877_v5 = vld [vmem:[#allocation11 + $0x4c8] sm:$0xf] }
 0x381   :  { %v6335_v14 = vld [vmem:[#allocation11 + $0xa8] sm:$0xf0] }
 0x382   :  { %v2791_v0 = vpop.f32.mrf.mxu3  ;;  %v9170_v60 = vpop.f32.mrf.mxu0  ;;  %3255 = vmatpush.bf16.msrb.mxu1 %v6402_v15  ;;  %v6338_v52 = vor.u32 %v7892_v31, %v6335_v14  ;;  %v7876_v14 = vld [vmem:[#allocation11 + $0xc] sm:$0xf] }
 0x383   :  { %v9173_v23 = vadd.f32 %v2791_v0, %v9062_v12  ;;  %v6909_v12 = vld [vmem:[#allocation11 + $0x508] sm:$0xf] }
 0x384   :  { %v9175_v63 = vpop.f32.mrf.mxu2  ;;  %3156 = vmatpush.bf16.msrb.mxu3 %v6942_v61  ;;  %v8040_v0 = vld [vmem:[#allocation11 + $0x524] sm:$0xf0] }
 0x385   :  { %v6910_v32 = vor.u32 %v8040_v0, %v6909_v12  ;;  %v8032_v61 = vld [vmem:[#allocation11 + $0x4e4] sm:$0xf0]  ;;  %v6303_v12 = vld [vmem:[#allocation11 + $0x68] sm:$0xf0] }
 0x386   :  { %v9177_v62 = vpop.f32.mrf.mxu1  ;;  %3256 = vmatpush.bf16.msrb.mxu1 %v6370_v24  ;;  %v7884_v24 = vld [vmem:[#allocation11 + $0x4c] sm:$0xf]  ;;  %v6845_v0 = vld [vmem:[#allocation11 + $0x488] sm:$0xf] }
 0x387   :  { %11047 = vst [vmem:[#allocation68_spill] sm:$0xff] %v9177_v62  ;;  %v6878_v62 = vor.u32 %v8032_v61, %v6877_v5  ;;  %v6813_v61 = vld [vmem:[#allocation11 + $0x448] sm:$0xf] }
 0x388   :  { %3157 = vmatpush.bf16.msrb.mxu3 %v6910_v32 }
 0x389   :  { %3089 = vmatmul.bf16.gmra.mxu1 %v8874_v6  ;;  %3118 = vmatmul.bf16.gmra.mxu2 %v8876_v37 }
 0x38a   :  { %v2793_v20 = vpop.f32.mrf.mxu3  ;;  %v9181_v28 = vpop.f32.mrf.mxu0  ;;  %3257 = vmatpush.bf16.msrb.mxu1 %v6338_v52 }
 0x38b   :  { %v9184_v1 = vadd.f32 %v2793_v20, %v9075_v33  ;;  %v6306_v33 = vor.u32 %v7884_v24, %v6303_v12  ;;  %v8024_v20 = vld [vmem:[#allocation11 + $0x4a4] sm:$0xf0] }
 0x38c   :  { %v9186_v15 = vpop.f32.mrf.mxu2  ;;  %3158 = vmatpush.bf16.msrb.mxu3 %v6878_v62  ;;  %v6846_v32 = vor.u32 %v8024_v20, %v6845_v0  ;;  %v6781_v12 = vld [vmem:[#allocation11 + $0x408] sm:$0xf] }
 0x38d   :  { %3221 = vmatmul.bf16.gmra.mxu0 %v8880_v10 }
 0x38e   :  { %v9189_v9 = vpop.f32.mrf.mxu1  ;;  %3258 = vmatpush.bf16.msrb.mxu1 %v6306_v33 }
 0x38f   :  { %11048 = vst [vmem:[#allocation69_spill] sm:$0xff] %v9189_v9  ;;  %2991 = vmatmul.bf16.gmra.mxu3 %v8996_v57  ;;  %v6271_v9 = vld [vmem:[#allocation11 + $0x28] sm:$0xf0]  ;;  %v8016_v57 = vld [vmem:[#allocation11 + $0x464] sm:$0xf0] }
 0x390   :  { %3159 = vmatpush.bf16.msrb.mxu3 %v6846_v32  ;;  %v6274_v5 = vor.u32 %v7876_v14, %v6271_v9  ;;  %v6814_v24 = vor.u32 %v8016_v57, %v6813_v61 }
 0x392   :  { %v2796_v37 = vpop.f32.mrf.mxu3  ;;  %v9192_v6 = vpop.f32.mrf.mxu0  ;;  %3259 = vmatpush.bf16.msrb.mxu1 %v6274_v5 }
 0x393   :  { %v9195_v31 = vadd.f32 %v2796_v37, %v9088_v18  ;;  %v8008_v37 = vld [vmem:[#allocation11 + $0x424] sm:$0xf0] }
 0x394   :  { %v9197_v52 = vpop.f32.mrf.mxu2  ;;  %3160 = vmatpush.bf16.msrb.mxu3 %v6814_v24  ;;  %v6782_v0 = vor.u32 %v8008_v37, %v6781_v12 }
 0x395   :  { %11049 = vst [vmem:[#allocation70_spill] sm:$0xff] %v9195_v31 }
 0x396   :  { %v9199_v62 = vpop.f32.mrf.mxu1 }
 0x397   :  { %11050 = vst [vmem:[#allocation71_spill] sm:$0xff] %v9199_v62  ;;  %v8100_v62 = vld [vmem:[#allocation11 + $0x70c] sm:$0xf] }
 0x398   :  { %3161 = vmatpush.bf16.msrb.mxu3 %v6782_v0  ;;  %v7263_v0 = vld [vmem:[#allocation11 + $0x7e8] sm:$0xf0] }
 0x399   :  { %3094 = vmatmul.bf16.gmra.mxu1 %v8884_v22  ;;  %3123 = vmatmul.bf16.gmra.mxu2 %v8886_v25  ;;  %v11063_v25 = vld [vmem:[#allocation36_spill] sm:$0xff] }
 0x39a   :  { %v2798_v18 = vpop.f32.mrf.mxu3  ;;  %v9203_v33 = vpop.f32.mrf.mxu0 }
 0x39b   :  { %v9206_v20 = vadd.f32 %v2798_v18, %v9101_v54  ;;  %v8124_v18 = vld [vmem:[#allocation11 + $0x7cc] sm:$0xf] }
 0x39c   :  { %v9208_v9 = vpop.f32.mrf.mxu2 }
 0x39d   :  { %11051 = vst [vmem:[#allocation72_spill] sm:$0xff] %v9206_v20  ;;  %3226 = vmatmul.bf16.gmra.mxu0 %v8890_v2  ;;  %v7135_v2 = vld [vmem:[#allocation11 + $0x6e8] sm:$0xf0] }
 0x39e   :  { %v9211_v57 = vpop.f32.mrf.mxu1 }
 0x39f   :  { %11052 = vst [vmem:[#allocation73_spill] sm:$0xff] %v9211_v57  ;;  %2996 = vmatmul.bf16.gmra.mxu3 %v9018_v8 }
 0x3a2   :  { %v2801_v32 = vpop.f32.mrf.mxu3  ;;  %v9214_v14 = vpop.f32.mrf.mxu0 }
 0x3a3   :  { %v9217_v5 = vadd.f32 %v2801_v32, %v9114_v36  ;;  %v7266_v36 = vor.u32 %v8124_v18, %v7263_v0 }
 0x3a4   :  { %v9219_v61 = vpop.f32.mrf.mxu2 }
 0x3a5   :  { %11053 = vst [vmem:[#allocation74_spill] sm:$0xff] %v9217_v5  ;;  %3399 = vmatpush.bf16.msra.mxu0 %v7266_v36  ;;  %v7996_v36 = vld [vmem:[#allocation11 + $0x3cc] sm:$0xf] }
 0x3a6   :  { %v9221_v24 = vpop.f32.mrf.mxu1 }
 0x3a7   :  { %11054 = vst [vmem:[#allocation75_spill] sm:$0xff] %v9221_v24  ;;  %v8116_v24 = vld [vmem:[#allocation11 + $0x78c] sm:$0xf] }
 0x3a9   :  { %3099 = vmatmul.bf16.gmra.mxu1 %v8894_v45  ;;  %3128 = vmatmul.bf16.gmra.mxu2 %v8896_v51  ;;  %v7231_v51 = vld [vmem:[#allocation11 + $0x7a8] sm:$0xf0] }
 0x3aa   :  { %v2803_v54 = vpop.f32.mrf.mxu3  ;;  %v9225_v12 = vpop.f32.mrf.mxu0  ;;  %v7234_v45 = vor.u32 %v8116_v24, %v7231_v51  ;;  %v7167_v51 = vld [vmem:[#allocation11 + $0x728] sm:$0xf0] }
 0x3ab   :  { %v9228_v37 = vadd.f32 %v2803_v54, %v9127_v56  ;;  %v8108_v54 = vld [vmem:[#allocation11 + $0x74c] sm:$0xf] }
 0x3ac   :  { %v9230_v57 = vpop.f32.mrf.mxu2  ;;  %3400 = vmatpush.bf16.msra.mxu0 %v7234_v45  ;;  %v7170_v45 = vor.u32 %v8100_v62, %v7167_v51 }
 0x3ad   :  { %11055 = vst [vmem:[#allocation76_spill] sm:$0xff] %v9228_v37  ;;  %3231 = vmatmul.bf16.gmra.mxu0 %v8900_v55  ;;  %v7199_v37 = vld [vmem:[#allocation11 + $0x768] sm:$0xf0] }
 0x3ae   :  { %v9233_v32 = vpop.f32.mrf.mxu1  ;;  %v7202_v0 = vor.u32 %v8108_v54, %v7199_v37  ;;  %v7988_v54 = vld [vmem:[#allocation11 + $0x38c] sm:$0xf] }
 0x3af   :  { %11056 = vst [vmem:[#allocation77_spill] sm:$0xff] %v9233_v32  ;;  %3001 = vmatmul.bf16.gmra.mxu3 %v9040_v38  ;;  %v6751_v32 = vld [vmem:[#allocation11 + $0x3e8] sm:$0xf0] }
 0x3b0   :  { %3401 = vmatpush.bf16.msra.mxu0 %v7202_v0  ;;  %v6754_v38 = vor.u32 %v7996_v36, %v6751_v32  ;;  %v6719_v32 = vld [vmem:[#allocation11 + $0x3a8] sm:$0xf0] }
 0x3b1   :  { %v8092_v0 = vld [vmem:[#allocation11 + $0x6cc] sm:$0xf] }
 0x3b2   :  { %v2806_v5 = vpop.f32.mrf.mxu3  ;;  %v9236_v8 = vpop.f32.mrf.mxu0  ;;  %3301 = vmatpush.bf16.msra.mxu2 %v6754_v38  ;;  %v7138_v62 = vor.u32 %v8092_v0, %v7135_v2 }
 0x3b3   :  { %v9239_v56 = vadd.f32 %v2806_v5, %v9140_v30  ;;  %v11058_v30 = vld [vmem:[#allocation40_spill] sm:$0xff] }
 0x3b4   :  { %v9241_v18 = vpop.f32.mrf.mxu2  ;;  %v9248_v5 = vperm.slane %v11058_v30, 1  ;;  %3402 = vmatpush.bf16.msra.mxu0 %v7170_v45  ;;  %v11062_v30 = vld [vmem:[#allocation54_spill] sm:$0xff]  ;;  %v6687_v45 = vld [vmem:[#allocation11 + $0x368] sm:$0xf0] }
 0x3b5   :  { %11057 = vst [vmem:[#allocation78_spill] sm:$0xff] %v9239_v56 }
 0x3b6   :  { %v9243_v55 = vpop.f32.mrf.mxu1  ;;  %v2870_v38 = vadd.f32 %v11062_v30, %v9248_v5  ;;  %v7972_v30 = vld [vmem:[#allocation11 + $0x30c] sm:$0xf] }
 0x3b8   :  { %3403 = vmatpush.bf16.msra.mxu0 %v7138_v62  ;;  %v8076_v62 = vld [vmem:[#allocation11 + $0x64c] sm:$0xf] }
 0x3b9   :  { %3133 = vmatmul.bf16.gmra.mxu2 %v8905_v26  ;;  %3260 = vmatmul.bf16.vlgmr.msrb.gmra.mxu1 %v8839_v43  ;;  %v6722_v26 = vor.u32 %v7988_v54, %v6719_v32  ;;  %v11061_v43 = vld [vmem:[#allocation35_spill] sm:$0xff]  ;;  %v8084_v54 = vld [vmem:[#allocation11 + $0x68c] sm:$0xf] }
 0x3ba   :  { %v2808_v24 = vpop.f32.mrf.mxu3  ;;  %v9250_v56 = vpop.f32.mrf.mxu0  ;;  %v7103_v32 = vld [vmem:[#allocation11 + $0x6a8] sm:$0xf0] }
 0x3bb   :  { %11059 = vst [vmem:[#allocation40_spill] sm:$0xff] %v9250_v56  ;;  %v9253_v37 = vadd.f32 %v2808_v24, %v9153_v47  ;;  %3302 = vmatpush.bf16.msra.mxu2 %v6722_v26  ;;  %v7980_v47 = vld [vmem:[#allocation11 + $0x34c] sm:$0xf]  ;;  %v11064_v24 = vld [vmem:[#allocation38_spill] sm:$0xff]  ;;  %v7106_v2 = vor.u32 %v8084_v54, %v7103_v32 }
 0x3bc   :  { %v9255_v36 = vpop.f32.mrf.mxu2  ;;  %v6690_v22 = vor.u32 %v7980_v47, %v6687_v45  ;;  %v6623_v54 = vld [vmem:[#allocation11 + $0x2e8] sm:$0xf0] }
 0x3bd   :  { %11060 = vst [vmem:[#allocation79_spill] sm:$0xff] %v9253_v37  ;;  %3236 = vmatmul.bf16.gmra.mxu0 %v11061_v43  ;;  %v2821_v37 = vadd.f32 %v11064_v24, %v9073_v59  ;;  %v2919_v43 = vadd.f32 %v9164_v48, %v2870_v38  ;;  %v7071_v59 = vld [vmem:[#allocation11 + $0x668] sm:$0xf0]  ;;  %v11066_v48 = vld [vmem:[#allocation56_spill] sm:$0xff] }
 0x3be   :  { %v9258_v51 = vpop.f32.mrf.mxu1  ;;  %3404 = vmatpush.bf16.msra.mxu0 %v7106_v2  ;;  %v7074_v45 = vor.u32 %v8076_v62, %v7071_v59  ;;  %v2872_v38 = vadd.f32 %v11066_v48, %v9248_v5  ;;  %v11067_v2 = vld [vmem:[#allocation41_spill] sm:$0xff] }
 0x3bf   :  { %3162 = vmatmul.bf16.vlgmr.msrb.gmra.mxu3 %v11063_v25  ;;  %3303 = vmatpush.bf16.msra.mxu2 %v6690_v22  ;;  %v6655_v25 = vld [vmem:[#allocation11 + $0x328] sm:$0xf0]  ;;  %v4232_v56 = vmul.f32 0.01, %v2821_v37 }
 0x3c0   :  { %v6658_v10 = vor.u32 %v7972_v30, %v6655_v25  ;;  %v8068_v25 = vld [vmem:[#allocation11 + $0x60c] sm:$0xf] }
 0x3c1   :  { %v4360_v32 = vmax.f32 %v2821_v37, %v4232_v56  ;;  %v7039_v30 = vld [vmem:[#allocation11 + $0x628] sm:$0xf0] }
 0x3c2   :  { %v2967_v0 = vpop.f32.mrf.mxu3  ;;  %v9266_v20 = vpop.f32.mrf.mxu0  ;;  %3405 = vmatpush.bf16.msra.mxu0 %v7074_v45  ;;  %v7956_v37 = vld [vmem:[#allocation11 + $0x28c] sm:$0xf] }
 0x3c3   :  { %11065 = vst [vmem:[#allocation54_spill] sm:$0xff] %v9266_v20  ;;  %v2968_v26 = vadd.f32 %v2967_v0, %v2919_v43  ;;  %3304 = vmatpush.bf16.msra.mxu2 %v6658_v10  ;;  %v7964_v43 = vld [vmem:[#allocation11 + $0x2cc] sm:$0xf]  ;;  %v2823_v0 = vadd.f32 %v11067_v2, %v9086_v50  ;;  %v7042_v10 = vor.u32 %v8068_v25, %v7039_v30  ;;  %v11068_v2 = vld [vmem:[#allocation42_spill] sm:$0xff] }
 0x3c4   :  { %v9268_v31 = vpop.f32.mrf.mxu2  ;;  %v6626_v20 = vor.u32 %v7964_v43, %v6623_v54  ;;  %v6591_v50 = vld [vmem:[#allocation11 + $0x2a8] sm:$0xf0]  ;;  %v2826_v25 = vadd.f32 %v11068_v2, %v9099_v29 }
 0x3c5   :  { %v3017_v47 = vadd.f32 %v9135_v16, %v2968_v26  ;;  %v2921_v16 = vadd.f32 %v9175_v63, %v2872_v38  ;;  %v6594_v43 = vor.u32 %v7956_v37, %v6591_v50  ;;  %v4240_v54 = vmul.f32 0.01, %v2823_v0  ;;  %v6527_v37 = vld [vmem:[#allocation11 + $0x228] sm:$0xf0] }
 0x3c6   :  { %v9271_v24 = vpop.f32.mrf.mxu1  ;;  %3406 = vmatpush.bf16.msra.mxu0 %v7042_v10  ;;  %v4248_v50 = vmul.f32 0.01, %v2826_v25 }
 0x3c7   :  { %v4233_v22 = vmul.f32 0.01, %v3017_v47  ;;  %3305 = vmatpush.bf16.msra.mxu2 %v6626_v20  ;;  %v2875_v20 = vadd.f32 %v9077_v7, %v9248_v5  ;;  %v7940_v7 = vld [vmem:[#allocation11 + $0x20c] sm:$0xf] }
 0x3c9   :  { %v4361_v26 = vmax.f32 %v3017_v47, %v4233_v22  ;;  %3138 = vmatmul.bf16.gmra.mxu2 %v8919_v46  ;;  %3265 = vmatmul.bf16.gmra.mxu1 %v8846_v21  ;;  %v7948_v22 = vld [vmem:[#allocation11 + $0x24c] sm:$0xf] }
 0x3ca   :  { %v2969_v62 = vpop.f32.mrf.mxu3  ;;  %v9280_v59 = vpop.f32.mrf.mxu0 }
 0x3cb   :  { %v4488_v45 = vpack.c.bf16 %v4361_v26, %v4360_v32  ;;  %v2970_v56 = vadd.f32 %v2969_v62, %v2921_v16  ;;  %3306 = vmatpush.bf16.msra.mxu2 %v6594_v43  ;;  %v6559_v32 = vld [vmem:[#allocation11 + $0x268] sm:$0xf0]  ;;  %v4368_v16 = vmax.f32 %v2823_v0, %v4240_v54  ;;  %v4376_v54 = vmax.f32 %v2826_v25, %v4248_v50 }
 0x3cc   :  { %v9282_v48 = vpop.f32.mrf.mxu2  ;;  %v6562_v30 = vor.u32 %v7948_v22, %v6559_v32 }
 0x3cd   :  { %4552 = vst [vmem:[#allocation2] sm:$0xff] %v4488_v45  ;;  %v3019_v63 = vadd.f32 %v9148_v27, %v2970_v56  ;;  %3241 = vmatmul.bf16.gmra.mxu0 %v8923_v42  ;;  %v2924_v27 = vadd.f32 %v9186_v15, %v2875_v20  ;;  %v2877_v15 = vadd.f32 %v9091_v44, %v9248_v5 }
 0x3ce   :  { %v9286_v47 = vpop.f32.mrf.mxu1 }
 0x3cf   :  { %v4241_v38 = vmul.f32 0.01, %v3019_v63  ;;  %3167 = vmatmul.bf16.gmra.mxu3 %v8925_v3  ;;  %3307 = vmatpush.bf16.msra.mxu2 %v6562_v30  ;;  %v6530_v3 = vor.u32 %v7940_v7, %v6527_v37 }
 0x3d1   :  { %v4369_v26 = vmax.f32 %v3019_v63, %v4241_v38  ;;  %v11069_v63 = vld [vmem:[#allocation44_spill] sm:$0xff]  ;;  %v2926_v38 = vadd.f32 %v9197_v52, %v2877_v15  ;;  %v2880_v52 = vadd.f32 %v9103_v19, %v9248_v5 }
 0x3d2   :  { %v2972_v10 = vpop.f32.mrf.mxu3  ;;  %v9294_v62 = vpop.f32.mrf.mxu0  ;;  %v2828_v20 = vadd.f32 %v11069_v63, %v9112_v49 }
 0x3d3   :  { %v4492_v45 = vpack.c.bf16 %v4369_v26, %v4368_v16  ;;  %v2973_v56 = vadd.f32 %v2972_v10, %v2924_v27  ;;  %3308 = vmatpush.bf16.msra.mxu2 %v6530_v3  ;;  %v11070_v26 = vld [vmem:[#allocation45_spill] sm:$0xff] }
 0x3d4   :  { %v9296_v43 = vpop.f32.mrf.mxu2  ;;  %v4256_v44 = vmul.f32 0.01, %v2828_v20  ;;  %v2831_v10 = vadd.f32 %v11070_v26, %v9125_v39  ;;  %v2882_v39 = vadd.f32 %v9117_v11, %v9248_v5 }
 0x3d5   :  { %4556 = vst [vmem:[#allocation2 + $0x20] sm:$0xff] %v4492_v45  ;;  %v3022_v29 = vadd.f32 %v9159_v58, %v2973_v56  ;;  %v2929_v56 = vadd.f32 %v9208_v9, %v2880_v52  ;;  %v11071_v9 = vld [vmem:[#allocation47_spill] sm:$0xff] }
 0x3d6   :  { %v9299_v22 = vpop.f32.mrf.mxu1  ;;  %v4384_v45 = vmax.f32 %v2828_v20, %v4256_v44  ;;  %v4264_v15 = vmul.f32 0.01, %v2831_v10 }
 0x3d7   :  { %v4249_v0 = vmul.f32 0.01, %v3022_v29 }
 0x3d8   :  { %v4392_v20 = vmax.f32 %v2831_v10, %v4264_v15  ;;  %v11074_v10 = vld [vmem:[#allocation39_spill] sm:$0xff] }
 0x3d9   :  { %v4377_v32 = vmax.f32 %v3022_v29, %v4249_v0  ;;  %3143 = vmatmul.bf16.gmra.mxu2 %v8933_v4  ;;  %3270 = vmatmul.bf16.gmra.mxu1 %v8853_v41 }
 0x3da   :  { %v2974_v2 = vpop.f32.mrf.mxu3  ;;  %v9308_v58 = vpop.f32.mrf.mxu0 }
 0x3db   :  { %v4496_v30 = vpack.c.bf16 %v4377_v32, %v4376_v54  ;;  %v2975_v3 = vadd.f32 %v2974_v2, %v2926_v38  ;;  %v2833_v38 = vadd.f32 %v11071_v9, %v9138_v13  ;;  %v2931_v32 = vadd.f32 %v9219_v61, %v2882_v39  ;;  %v11073_v61 = vld [vmem:[#allocation62_spill] sm:$0xff] }
 0x3dc   :  { %v9310_v16 = vpop.f32.mrf.mxu2 }
 0x3dd   :  { %4560 = vst [vmem:[#allocation2 + $0x40] sm:$0xff] %v4496_v30  ;;  %v3024_v25 = vadd.f32 %v9170_v60, %v2975_v3  ;;  %3246 = vmatmul.bf16.gmra.mxu0 %v8937_v34  ;;  %v4272_v11 = vmul.f32 0.01, %v2833_v38 }
 0x3de   :  { %v9314_v49 = vpop.f32.mrf.mxu1 }
 0x3df   :  { %v4257_v27 = vmul.f32 0.01, %v3024_v25  ;;  %3172 = vmatmul.bf16.gmra.mxu3 %v8939_v40 }
 0x3e1   :  { %v4385_v7 = vmax.f32 %v3024_v25, %v4257_v27  ;;  %v2885_v27 = vadd.f32 %v11073_v61, %v9248_v5  ;;  %v11081_v61 = vld [vmem:[#allocation50_spill] sm:$0xff] }
 0x3e2   :  { %v2977_v37 = vpop.f32.mrf.mxu3  ;;  %v9322_v50 = vpop.f32.mrf.mxu0 }
 0x3e3   :  { %v4500_v60 = vpack.c.bf16 %v4385_v7, %v4384_v45  ;;  %v2978_v29 = vadd.f32 %v2977_v37, %v2929_v56  ;;  %v4400_v45 = vmax.f32 %v2833_v38, %v4272_v11  ;;  %v11075_v56 = vld [vmem:[#allocation64_spill] sm:$0xff]  ;;  %v7937_v11 = vld [vmem:[#allocation11 + $0x1ec] sm:$0xf0] }
 0x3e4   :  { %v9324_v0 = vpop.f32.mrf.mxu2  ;;  %v11076_v7 = vld [vmem:[#allocation48_spill] sm:$0xff] }
 0x3e5   :  { %4564 = vst [vmem:[#allocation2 + $0x60] sm:$0xff] %v4500_v60  ;;  %v3027_v19 = vadd.f32 %v9181_v28, %v2978_v29  ;;  %v2836_v37 = vadd.f32 %v11076_v7, %v11075_v56  ;;  %v2934_v60 = vadd.f32 %v9230_v57, %v2885_v27  ;;  %v11079_v57 = vld [vmem:[#allocation63_spill] sm:$0xff] }
 0x3e6   :  { %v9327_v54 = vpop.f32.mrf.mxu1  ;;  %v11082_v7 = vld [vmem:[#allocation23_spill] sm:$0xff] }
 0x3e7   :  { %v4265_v63 = vmul.f32 0.01, %v3027_v19 }
 0x3e9   :  { %v4393_v2 = vmax.f32 %v3027_v19, %v4265_v63  ;;  %3148 = vmatmul.bf16.gmra.mxu2 %v8947_v17  ;;  %3275 = vmatmul.bf16.gmra.mxu1 %v8857_v53 }
 0x3ea   :  { %v2979_v30 = vpop.f32.mrf.mxu3  ;;  %v9336_v3 = vpop.f32.mrf.mxu0 }
 0x3eb   :  { %11072 = vst [vmem:[#allocation38_spill] sm:$0xff] %v9336_v3  ;;  %v4504_v28 = vpack.c.bf16 %v4393_v2, %v4392_v20  ;;  %v2980_v44 = vadd.f32 %v2979_v30, %v2931_v32  ;;  %v4280_v20 = vmul.f32 0.01, %v2836_v37  ;;  %v9355_v32 = vld [vmem:[#allocation12] sm:$0xff]  ;;  %v2887_v30 = vadd.f32 %v11079_v57, %v9248_v5 }
 0x3ec   :  { %v9338_v25 = vpop.f32.mrf.mxu2  ;;  %11078 = vst [vmem:[#allocation41_spill] sm:$0xff] %v9355_v32  ;;  %v9358_v38 = vperm.slane %v9355_v32, 2 }
 0x3ed   :  { %4568 = vst [vmem:[#allocation2 + $0x80] sm:$0xff] %v4504_v28  ;;  %v3029_v52 = vadd.f32 %v9192_v6, %v2980_v44  ;;  %3407 = vmatmul.bf16.vlgmr.msra.gmra.mxu0 %v8860_v35  ;;  %v6501_v44 = vld [vmem:[#allocation11 + $0x1d0] sm:$0xf] }
 0x3ee   :  { %v9342_v13 = vpop.f32.mrf.mxu1  ;;  %v3068_v3 = vadd.f32 %v9258_v51, %v9358_v38  ;;  %v11090_v51 = vld [vmem:[#allocation67_spill] sm:$0xff] }
 0x3ef   :  { %v4273_v26 = vmul.f32 0.01, %v3029_v52  ;;  %3177 = vmatmul.bf16.gmra.mxu3 %v11074_v10 }
 0x3f1   :  { %v4401_v29 = vmax.f32 %v3029_v52, %v4273_v26  ;;  %v11080_v52 = vld [vmem:[#allocation66_spill] sm:$0xff]  ;;  %v6502_v26 = vor.u32 %v7937_v11, %v6501_v44  ;;  %v7007_v11 = vld [vmem:[#allocation11 + $0x5e8] sm:$0xf0] }
 0x3f2   :  { %v2982_v15 = vpop.f32.mrf.mxu3  ;;  %v9350_v19 = vpop.f32.mrf.mxu0  ;;  %v2838_v27 = vadd.f32 %v11081_v61, %v11080_v52  ;;  %v7929_v52 = vld [vmem:[#allocation11 + $0x1ac] sm:$0xf0] }
 0x3f3   :  { %11077 = vst [vmem:[#allocation56_spill] sm:$0xff] %v9350_v19  ;;  %v4508_v6 = vpack.c.bf16 %v4401_v29, %v4400_v45  ;;  %v2983_v39 = vadd.f32 %v2982_v15, %v2934_v60  ;;  %v4408_v45 = vmax.f32 %v2836_v37, %v4280_v20  ;;  %v11083_v60 = vld [vmem:[#allocation21_spill] sm:$0xff]  ;;  %3448 = vmatpush.bf16.msra.mxu1 %v6502_v26  ;;  %v6469_v19 = vld [vmem:[#allocation11 + $0x190] sm:$0xf] }
 0x3f4   :  { %v9352_v63 = vpop.f32.mrf.mxu2  ;;  %v4288_v44 = vmul.f32 0.01, %v2838_v27  ;;  %v6470_v20 = vor.u32 %v7929_v52, %v6469_v19  ;;  %v11086_v26 = vld [vmem:[#allocation65_spill] sm:$0xff]  ;;  %v6437_v19 = vld [vmem:[#allocation11 + $0x150] sm:$0xf] }
 0x3f5   :  { %4572 = vst [vmem:[#allocation2 + $0xa0] sm:$0xff] %v4508_v6  ;;  %v3032_v9 = vadd.f32 %v9203_v33, %v2983_v39  ;;  %v2936_v33 = vadd.f32 %v9241_v18, %v2887_v30  ;;  %v3066_v6 = vadd.f32 %v9243_v55, %v9358_v38  ;;  %v11085_v30 = vld [vmem:[#allocation22_spill] sm:$0xff] }
 0x3f6   :  { %v9360_v2 = vpop.f32.mrf.mxu1 }
 0x3f7   :  { %v4281_v28 = vmul.f32 0.01, %v3032_v9  ;;  %3449 = vmatpush.bf16.msra.mxu1 %v6470_v20  ;;  %v6975_v20 = vld [vmem:[#allocation11 + $0x5a8] sm:$0xf0] }
 0x3f9   :  { %v4409_v56 = vmax.f32 %v3032_v9, %v4281_v28  ;;  %3280 = vmatmul.bf16.gmra.mxu1 %v11082_v7  ;;  %3309 = vmatmul.bf16.vlgmr.msra.gmra.mxu2 %v11083_v60  ;;  %v8060_v28 = vld [vmem:[#allocation11 + $0x5cc] sm:$0xf] }
 0x3fa   :  { %v2984_v29 = vpop.f32.mrf.mxu3  ;;  %v9369_v15 = vpop.f32.mrf.mxu0  ;;  %v7010_v55 = vor.u32 %v8060_v28, %v7007_v11 }
 0x3fb   :  { %11084 = vst [vmem:[#allocation42_spill] sm:$0xff] %v9369_v15  ;;  %v4512_v39 = vpack.c.bf16 %v4409_v56, %v4408_v45  ;;  %v2985_v57 = vadd.f32 %v2984_v29, %v2936_v33  ;;  %v2890_v45 = vadd.f32 %v11086_v26, %v9248_v5  ;;  %v11087_v56 = vld [vmem:[#allocation43_spill] sm:$0xff]  ;;  %v7921_v29 = vld [vmem:[#allocation11 + $0x16c] sm:$0xf0]  ;;  %v8052_v15 = vld [vmem:[#allocation11 + $0x58c] sm:$0xf] }
 0x3fc   :  { %v3114_v37 = vpop.f32.mrf.mxu2  ;;  %3350 = vmatpush.bf16.msra.mxu3 %v7010_v55  ;;  %v6978_v26 = vor.u32 %v8052_v15, %v6975_v20  ;;  %v11093_v20 = vld [vmem:[#allocation26_spill] sm:$0xff] }
 0x3fd   :  { %4576 = vst [vmem:[#allocation2 + $0xc0] sm:$0xff] %v4512_v39  ;;  %v3034_v18 = vadd.f32 %v9214_v14, %v2985_v57  ;;  %v9374_v9 = vadd.f32 %v3114_v37, %v3066_v6  ;;  %3412 = vmatmul.bf16.gmra.mxu0 %v11085_v30  ;;  %v11088_v14 = vld [vmem:[#allocation51_spill] sm:$0xff]  ;;  %v6438_v39 = vor.u32 %v7921_v29, %v6437_v19  ;;  %v6405_v30 = vld [vmem:[#allocation11 + $0x110] sm:$0xf] }
 0x3fe   :  { %v9377_v61 = vpop.f32.mrf.mxu1  ;;  %v2841_v6 = vadd.f32 %v11088_v14, %v9173_v23  ;;  %v4416_v57 = vmax.f32 %v2838_v27, %v4288_v44  ;;  %v2939_v52 = vadd.f32 %v9255_v36, %v2890_v45  ;;  %v7913_v23 = vld [vmem:[#allocation11 + $0x12c] sm:$0xf0]  ;;  %v6943_v45 = vld [vmem:[#allocation11 + $0x568] sm:$0xf0]  ;;  %v2892_v29 = vadd.f32 %v11090_v51, %v9248_v5 }
 0x3ff   :  { %v4289_v33 = vmul.f32 0.01, %v3034_v18  ;;  %3182 = vmatmul.bf16.gmra.mxu3 %v11087_v56  ;;  %3450 = vmatpush.bf16.msra.mxu1 %v6438_v39  ;;  %v6406_v27 = vor.u32 %v7913_v23, %v6405_v30  ;;  %v6373_v39 = vld [vmem:[#allocation11 + $0xd0] sm:$0xf] }
 0x400   :  { %v4296_v55 = vmul.f32 0.01, %v2841_v6  ;;  %3351 = vmatpush.bf16.msra.mxu3 %v6978_v26  ;;  %v6911_v26 = vld [vmem:[#allocation11 + $0x528] sm:$0xf0] }
 0x401   :  { %v4417_v37 = vmax.f32 %v3034_v18, %v4289_v33  ;;  %v8044_v18 = vld [vmem:[#allocation11 + $0x54c] sm:$0xf] }
 0x402   :  { %v2987_v28 = vpop.f32.mrf.mxu3  ;;  %v9385_v11 = vpop.f32.mrf.mxu0  ;;  %v6946_v15 = vor.u32 %v8044_v18, %v6943_v45 }
 0x403   :  { %11089 = vst [vmem:[#allocation44_spill] sm:$0xff] %v9385_v11  ;;  %v4516_v32 = vpack.c.bf16 %v4417_v37, %v4416_v57  ;;  %v2988_v56 = vadd.f32 %v2987_v28, %v2939_v52  ;;  %3451 = vmatpush.bf16.msra.mxu1 %v6406_v27  ;;  %v7905_v57 = vld [vmem:[#allocation11 + $0xec] sm:$0xf0]  ;;  %v11091_v52 = vld [vmem:[#allocation53_spill] sm:$0xff] }
 0x404   :  { %v3116_v19 = vpop.f32.mrf.mxu2  ;;  %v2843_v30 = vadd.f32 %v11091_v52, %v9184_v1  ;;  %3352 = vmatpush.bf16.msra.mxu3 %v6946_v15  ;;  %v11092_v37 = vld [vmem:[#allocation25_spill] sm:$0xff]  ;;  %v3071_v1 = vadd.f32 %v9271_v24, %v9358_v38 }
 0x405   :  { %4580 = vst [vmem:[#allocation2 + $0xe0] sm:$0xff] %v4516_v32  ;;  %v3037_v36 = vadd.f32 %v9225_v12, %v2988_v56  ;;  %v9390_v44 = vadd.f32 %v3116_v19, %v3068_v3  ;;  %v6374_v32 = vor.u32 %v7905_v57, %v6373_v39  ;;  %v4424_v12 = vmax.f32 %v2841_v6, %v4296_v55  ;;  %v8036_v28 = vld [vmem:[#allocation11 + $0x50c] sm:$0xf]  ;;  %v6341_v6 = vld [vmem:[#allocation11 + $0x90] sm:$0xf] }
 0x406   :  { %v9392_v33 = vpop.f32.mrf.mxu1  ;;  %v2941_v3 = vadd.f32 %v9268_v31, %v2892_v29  ;;  %v6914_v27 = vor.u32 %v8036_v28, %v6911_v26  ;;  %v7897_v55 = vld [vmem:[#allocation11 + $0xac] sm:$0xf0]  ;;  %v4304_v31 = vmul.f32 0.01, %v2843_v30  ;;  %v8028_v39 = vld [vmem:[#allocation11 + $0x4cc] sm:$0xf] }
 0x407   :  { %v4297_v14 = vmul.f32 0.01, %v3037_v36  ;;  %3452 = vmatpush.bf16.msra.mxu1 %v6374_v32  ;;  %v6342_v15 = vor.u32 %v7897_v55, %v6341_v6  ;;  %v6879_v57 = vld [vmem:[#allocation11 + $0x4e8] sm:$0xf0]  ;;  %v11096_v32 = vld [vmem:[#allocation68_spill] sm:$0xff] }
 0x408   :  { %3353 = vmatpush.bf16.msra.mxu3 %v6914_v27  ;;  %v6882_v24 = vor.u32 %v8028_v39, %v6879_v57  ;;  %v6309_v28 = vld [vmem:[#allocation11 + $0x50] sm:$0xf]  ;;  %v8020_v55 = vld [vmem:[#allocation11 + $0x48c] sm:$0xf] }
 0x409   :  { %v4425_v56 = vmax.f32 %v3037_v36, %v4297_v14  ;;  %3285 = vmatmul.bf16.gmra.mxu1 %v11092_v37  ;;  %3314 = vmatmul.bf16.gmra.mxu2 %v11093_v20  ;;  %v11095_v14 = vld [vmem:[#allocation27_spill] sm:$0xff]  ;;  %v7889_v26 = vld [vmem:[#allocation11 + $0x6c] sm:$0xf0] }
 0x40a   :  { %v2989_v23 = vpop.f32.mrf.mxu3  ;;  %v9401_v19 = vpop.f32.mrf.mxu0 }
 0x40b   :  { %11094 = vst [vmem:[#allocation45_spill] sm:$0xff] %v9401_v19  ;;  %v4520_v18 = vpack.c.bf16 %v4425_v56, %v4424_v12  ;;  %v2990_v45 = vadd.f32 %v2989_v23, %v2941_v3  ;;  %3453 = vmatpush.bf16.msra.mxu1 %v6342_v15  ;;  %v2895_v12 = vadd.f32 %v11096_v32, %v9248_v5  ;;  %v11097_v56 = vld [vmem:[#allocation46_spill] sm:$0xff] }
 0x40c   :  { %v3119_v36 = vpop.f32.mrf.mxu2  ;;  %v11098_v23 = vld [vmem:[#allocation70_spill] sm:$0xff]  ;;  %3354 = vmatpush.bf16.msra.mxu3 %v6882_v24  ;;  %v3073_v32 = vadd.f32 %v9286_v47, %v9358_v38  ;;  %v11102_v47 = vld [vmem:[#allocation69_spill] sm:$0xff] }
 0x40d   :  { %4584 = vst [vmem:[#allocation2 + $0x100] sm:$0xff] %v4520_v18  ;;  %v3039_v51 = vadd.f32 %v9236_v8, %v2990_v45  ;;  %v9406_v29 = vadd.f32 %v3119_v36, %v3071_v1  ;;  %3417 = vmatmul.bf16.gmra.mxu0 %v11095_v14  ;;  %v11099_v8 = vld [vmem:[#allocation55_spill] sm:$0xff]  ;;  %v6310_v1 = vor.u32 %v7889_v26, %v6309_v28  ;;  %v6847_v36 = vld [vmem:[#allocation11 + $0x4a8] sm:$0xf0] }
 0x40e   :  { %v9409_v52 = vpop.f32.mrf.mxu1  ;;  %v2846_v27 = vadd.f32 %v11099_v8, %v11098_v23  ;;  %v4432_v18 = vmax.f32 %v2843_v30, %v4304_v31  ;;  %v2944_v45 = vadd.f32 %v9282_v48, %v2895_v12  ;;  %v6850_v57 = vor.u32 %v8020_v55, %v6847_v36  ;;  %v7881_v23 = vld [vmem:[#allocation11 + $0x2c] sm:$0xf0]  ;;  %v11101_v48 = vld [vmem:[#allocation40_spill] sm:$0xff]  ;;  %v8012_v12 = vld [vmem:[#allocation11 + $0x44c] sm:$0xf] }
 0x40f   :  { %v4305_v3 = vmul.f32 0.01, %v3039_v51  ;;  %3187 = vmatmul.bf16.gmra.mxu3 %v11097_v56  ;;  %3454 = vmatpush.bf16.msra.mxu1 %v6310_v1  ;;  %v6277_v56 = vld [vmem:[#allocation11 + $0x10] sm:$0xf]  ;;  %v2897_v1 = vadd.f32 %v11102_v47, %v9248_v5  ;;  %v11104_v55 = vld [vmem:[#allocation57_spill] sm:$0xff]  ;;  %v11105_v36 = vld [vmem:[#allocation28_spill] sm:$0xff] }
 0x410   :  { %v4312_v24 = vmul.f32 0.01, %v2846_v27  ;;  %3355 = vmatpush.bf16.msra.mxu3 %v6850_v57  ;;  %v6278_v30 = vor.u32 %v7881_v23, %v6277_v56  ;;  %v8004_v57 = vld [vmem:[#allocation11 + $0x40c] sm:$0xf]  ;;  %v11109_v47 = vld [vmem:[#allocation30_spill] sm:$0xff] }
 0x411   :  { %v4433_v6 = vmax.f32 %v3039_v51, %v4305_v3  ;;  %v6815_v3 = vld [vmem:[#allocation11 + $0x468] sm:$0xf0] }
 0x412   :  { %v2992_v15 = vpop.f32.mrf.mxu3  ;;  %v9417_v39 = vpop.f32.mrf.mxu0  ;;  %v6818_v8 = vor.u32 %v8012_v12, %v6815_v3 }
 0x413   :  { %11100 = vst [vmem:[#allocation47_spill] sm:$0xff] %v9417_v39  ;;  %v4524_v19 = vpack.c.bf16 %v4433_v6, %v4432_v18  ;;  %v2993_v11 = vadd.f32 %v2992_v15, %v2944_v45  ;;  %3455 = vmatpush.bf16.msra.mxu1 %v6278_v30  ;;  %v4440_v45 = vmax.f32 %v2846_v27, %v4312_v24  ;;  %v11103_v6 = vld [vmem:[#allocation72_spill] sm:$0xff]  ;;  %v11106_v15 = vld [vmem:[#allocation29_spill] sm:$0xff] }
 0x414   :  { %v3121_v28 = vpop.f32.mrf.mxu2  ;;  %3356 = vmatpush.bf16.msra.mxu3 %v6818_v8  ;;  %v2848_v56 = vadd.f32 %v11104_v55, %v11103_v6  ;;  %v3076_v27 = vadd.f32 %v9299_v22, %v9358_v38  ;;  %v11112_v22 = vld [vmem:[#allocation74_spill] sm:$0xff] }
 0x415   :  { %4588 = vst [vmem:[#allocation2 + $0x120] sm:$0xff] %v4524_v19  ;;  %v3042_v31 = vadd.f32 %v11101_v48, %v2993_v11  ;;  %v9422_v51 = vadd.f32 %v3121_v28, %v3073_v32  ;;  %v2946_v19 = vadd.f32 %v9296_v43, %v2897_v1  ;;  %v6783_v32 = vld [vmem:[#allocation11 + $0x428] sm:$0xf0]  ;;  %v11108_v43 = vld [vmem:[#allocation54_spill] sm:$0xff] }
 0x416   :  { %v9424_v26 = vpop.f32.mrf.mxu1  ;;  %v6786_v30 = vor.u32 %v8004_v57, %v6783_v32  ;;  %v4320_v3 = vmul.f32 0.01, %v2848_v56  ;;  %v11111_v57 = vld [vmem:[#allocation49_spill] sm:$0xff] }
 0x417   :  { %v4313_v18 = vmul.f32 0.01, %v3042_v31 }
 0x418   :  { %3357 = vmatpush.bf16.msra.mxu3 %v6786_v30 }
 0x419   :  { %v4441_v11 = vmax.f32 %v3042_v31, %v4313_v18  ;;  %3290 = vmatmul.bf16.gmra.mxu1 %v11105_v36  ;;  %3319 = vmatmul.bf16.gmra.mxu2 %v11106_v15  ;;  %v11110_v18 = vld [vmem:[#allocation71_spill] sm:$0xff] }
 0x41a   :  { %v2994_v23 = vpop.f32.mrf.mxu3  ;;  %v9433_v28 = vpop.f32.mrf.mxu0  ;;  %v2900_v6 = vadd.f32 %v11110_v18, %v9248_v5 }
 0x41b   :  { %11107 = vst [vmem:[#allocation62_spill] sm:$0xff] %v9433_v28  ;;  %v4528_v24 = vpack.c.bf16 %v4441_v11, %v4440_v45  ;;  %v2995_v48 = vadd.f32 %v2994_v23, %v2946_v19  ;;  %v11113_v45 = vld [vmem:[#allocation58_spill] sm:$0xff]  ;;  %v4448_v11 = vmax.f32 %v2848_v56, %v4320_v3 }
 0x41c   :  { %v3124_v12 = vpop.f32.mrf.mxu2  ;;  %v2851_v19 = vadd.f32 %v11113_v45, %v11112_v22  ;;  %v2949_v32 = vadd.f32 %v9310_v16, %v2900_v6  ;;  %v11115_v16 = vld [vmem:[#allocation73_spill] sm:$0xff]  ;;  %v11116_v6 = vld [vmem:[#allocation76_spill] sm:$0xff] }
 0x41d   :  { %4592 = vst [vmem:[#allocation2 + $0x140] sm:$0xff] %v4528_v24  ;;  %v3044_v31 = vadd.f32 %v11108_v43, %v2995_v48  ;;  %v9438_v8 = vadd.f32 %v3124_v12, %v3076_v27  ;;  %3422 = vmatmul.bf16.gmra.mxu0 %v11109_v47  ;;  %v3078_v24 = vadd.f32 %v9314_v49, %v9358_v38 }
 0x41e   :  { %v9441_v1 = vpop.f32.mrf.mxu1  ;;  %v4328_v43 = vmul.f32 0.01, %v2851_v19  ;;  %v2902_v56 = vadd.f32 %v11115_v16, %v9248_v5 }
 0x41f   :  { %v4321_v55 = vmul.f32 0.01, %v3044_v31  ;;  %3192 = vmatmul.bf16.gmra.mxu3 %v11111_v57 }
 0x420   :  { %v2951_v49 = vadd.f32 %v9324_v0, %v2902_v56  ;;  %v11121_v56 = vld [vmem:[#allocation33_spill] sm:$0xff] }
 0x421   :  { %v4449_v23 = vmax.f32 %v3044_v31, %v4321_v55  ;;  %v4456_v31 = vmax.f32 %v2851_v19, %v4328_v43  ;;  %v11117_v55 = vld [vmem:[#allocation59_spill] sm:$0xff]  ;;  %v8129_v19 = vld [vmem:[#allocation11 + $0x7ec] sm:$0xf0] }
 0x422   :  { %v2997_v30 = vpop.f32.mrf.mxu3  ;;  %v9449_v27 = vpop.f32.mrf.mxu0  ;;  %v2853_v45 = vadd.f32 %v11117_v55, %v11116_v6  ;;  %v11122_v55 = vld [vmem:[#allocation75_spill] sm:$0xff] }
 0x423   :  { %11114 = vst [vmem:[#allocation39_spill] sm:$0xff] %v9449_v27  ;;  %v4532_v48 = vpack.c.bf16 %v4449_v23, %v4448_v11  ;;  %v2998_v12 = vadd.f32 %v2997_v30, %v2949_v32  ;;  %v11118_v32 = vld [vmem:[#allocation31_spill] sm:$0xff]  ;;  %v11119_v23 = vld [vmem:[#allocation32_spill] sm:$0xff] }
 0x424   :  { %v3126_v18 = vpop.f32.mrf.mxu2  ;;  %v4336_v6 = vmul.f32 0.01, %v2853_v45 }
 0x425   :  { %4596 = vst [vmem:[#allocation2 + $0x160] sm:$0xff] %v4532_v48  ;;  %v3047_v28 = vadd.f32 %v9280_v59, %v2998_v12  ;;  %v9454_v39 = vadd.f32 %v3126_v18, %v3078_v24  ;;  %v3081_v24 = vadd.f32 %v9327_v54, %v9358_v38  ;;  %v7269_v18 = vld [vmem:[#allocation11 + $0x7d0] sm:$0xf]  ;;  %v2905_v54 = vadd.f32 %v11122_v55, %v9248_v5 }
 0x426   :  { %v9456_v22 = vpop.f32.mrf.mxu1  ;;  %v7270_v16 = vor.u32 %v8129_v19, %v7269_v18  ;;  %v11124_v18 = vld [vmem:[#allocation78_spill] sm:$0xff]  ;;  %v11125_v19 = vld [vmem:[#allocation60_spill] sm:$0xff] }
 0x427   :  { %v4329_v3 = vmul.f32 0.01, %v3047_v28 }
 0x428   :  { %3595 = vmatpush.bf16.msrb.mxu0 %v7270_v16  ;;  %v3083_v16 = vadd.f32 %v9342_v13, %v9358_v38  ;;  %v6757_v13 = vld [vmem:[#allocation11 + $0x3d0] sm:$0xf] }
 0x429   :  { %v4457_v11 = vmax.f32 %v3047_v28, %v4329_v3  ;;  %3295 = vmatmul.bf16.gmra.mxu1 %v11118_v32  ;;  %3324 = vmatmul.bf16.gmra.mxu2 %v11119_v23  ;;  %v8113_v23 = vld [vmem:[#allocation11 + $0x76c] sm:$0xf0] }
 0x42a   :  { %v2999_v59 = vpop.f32.mrf.mxu3  ;;  %v9465_v30 = vpop.f32.mrf.mxu0 }
 0x42b   :  { %11120 = vst [vmem:[#allocation64_spill] sm:$0xff] %v9465_v30  ;;  %v4536_v48 = vpack.c.bf16 %v4457_v11, %v4456_v31  ;;  %v3000_v12 = vadd.f32 %v2999_v59, %v2951_v49  ;;  %v11123_v49 = vld [vmem:[#allocation52_spill] sm:$0xff]  ;;  %v7237_v11 = vld [vmem:[#allocation11 + $0x790] sm:$0xf] }
 0x42c   :  { %v3129_v43 = vpop.f32.mrf.mxu2  ;;  %v8121_v59 = vld [vmem:[#allocation11 + $0x7ac] sm:$0xf0] }
 0x42d   :  { %4600 = vst [vmem:[#allocation2 + $0x180] sm:$0xff] %v4536_v48  ;;  %v3049_v0 = vadd.f32 %v9294_v62, %v3000_v12  ;;  %v9470_v28 = vadd.f32 %v3129_v43, %v3081_v24  ;;  %3427 = vmatmul.bf16.gmra.mxu0 %v11121_v56  ;;  %v2856_v48 = vadd.f32 %v11125_v19, %v11124_v18  ;;  %v11129_v18 = vld [vmem:[#allocation61_spill] sm:$0xff] }
 0x42e   :  { %v9473_v3 = vpop.f32.mrf.mxu1  ;;  %v7238_v30 = vor.u32 %v8121_v59, %v7237_v11  ;;  %v4464_v62 = vmax.f32 %v2853_v45, %v4336_v6  ;;  %v2954_v24 = vadd.f32 %v9338_v25, %v2905_v54  ;;  %v11128_v59 = vld [vmem:[#allocation79_spill] sm:$0xff] }
 0x42f   :  { %v4337_v31 = vmul.f32 0.01, %v3049_v0  ;;  %3197 = vmatmul.bf16.gmra.mxu3 %v11123_v49  ;;  %v7205_v49 = vld [vmem:[#allocation11 + $0x750] sm:$0xf]  ;;  %v4344_v32 = vmul.f32 0.01, %v2856_v48  ;;  %v2858_v19 = vadd.f32 %v11129_v18, %v11128_v59 }
 0x430   :  { %3596 = vmatpush.bf16.msrb.mxu0 %v7238_v30  ;;  %v7206_v47 = vor.u32 %v8113_v23, %v7205_v49  ;;  %v11127_v30 = vld [vmem:[#allocation77_spill] sm:$0xff]  ;;  %v7173_v23 = vld [vmem:[#allocation11 + $0x710] sm:$0xf]  ;;  %v11133_v59 = vld [vmem:[#allocation35_spill] sm:$0xff] }
 0x431   :  { %v4465_v12 = vmax.f32 %v3049_v0, %v4337_v31  ;;  %v2907_v0 = vadd.f32 %v11127_v30, %v9248_v5  ;;  %v8001_v31 = vld [vmem:[#allocation11 + $0x3ec] sm:$0xf0]  ;;  %v4472_v11 = vmax.f32 %v2856_v48, %v4344_v32  ;;  %v3086_v32 = vadd.f32 %v9360_v2, %v9358_v38 }
 0x432   :  { %v3002_v43 = vpop.f32.mrf.mxu3  ;;  %v9481_v27 = vpop.f32.mrf.mxu0  ;;  %v8105_v49 = vld [vmem:[#allocation11 + $0x72c] sm:$0xf0] }
 0x433   :  { %11126 = vst [vmem:[#allocation48_spill] sm:$0xff] %v9481_v27  ;;  %v4540_v55 = vpack.c.bf16 %v4465_v12, %v4464_v62  ;;  %v3003_v56 = vadd.f32 %v3002_v43, %v2954_v24  ;;  %v6758_v62 = vor.u32 %v8001_v31, %v6757_v13  ;;  %v11131_v24 = vld [vmem:[#allocation24_spill] sm:$0xff]  ;;  %v7141_v30 = vld [vmem:[#allocation11 + $0x6d0] sm:$0xf]  ;;  %v11146_v27 = vld [vmem:[#allocation43_spill] sm:$0xff] }
 0x434   :  { %v3131_v57 = vpop.f32.mrf.mxu2  ;;  %3597 = vmatpush.bf16.msrb.mxu0 %v7206_v47  ;;  %v7174_v47 = vor.u32 %v8105_v49, %v7173_v23  ;;  %v6693_v23 = vld [vmem:[#allocation11 + $0x350] sm:$0xf] }
 0x435   :  { %4604 = vst [vmem:[#allocation2 + $0x1a0] sm:$0xff] %v4540_v55  ;;  %v3052_v45 = vadd.f32 %v9308_v58, %v3003_v56  ;;  %v9486_v6 = vadd.f32 %v3131_v57, %v3083_v16  ;;  %v2956_v58 = vadd.f32 %v9352_v63, %v2907_v0  ;;  %v11130_v56 = vld [vmem:[#allocation34_spill] sm:$0xff]  ;;  %3497 = vmatpush.bf16.msrb.mxu2 %v6758_v62 }
 0x436   :  { %v9488_v25 = vpop.f32.mrf.mxu1  ;;  %v6725_v16 = vld [vmem:[#allocation11 + $0x390] sm:$0xf] }
 0x437   :  { %v4345_v54 = vmul.f32 0.01, %v3052_v45  ;;  %v7993_v55 = vld [vmem:[#allocation11 + $0x3ac] sm:$0xf0] }
 0x438   :  { %3598 = vmatpush.bf16.msrb.mxu0 %v7174_v47  ;;  %v8097_v0 = vld [vmem:[#allocation11 + $0x6ec] sm:$0xf0] }
 0x439   :  { %v4473_v57 = vmax.f32 %v3052_v45, %v4345_v54  ;;  %3329 = vmatmul.bf16.gmra.mxu2 %v11130_v56  ;;  %3456 = vmatmul.bf16.vlgmr.msra.gmra.mxu1 %v11131_v24  ;;  %v6726_v45 = vor.u32 %v7993_v55, %v6725_v16  ;;  %v4352_v54 = vmul.f32 0.01, %v2858_v19  ;;  %v7142_v18 = vor.u32 %v8097_v0, %v7141_v30  ;;  %v7985_v49 = vld [vmem:[#allocation11 + $0x36c] sm:$0xf0] }
 0x43a   :  { %v3004_v12 = vpop.f32.mrf.mxu3  ;;  %v9497_v5 = vpop.f32.mrf.mxu0  ;;  %v8089_v47 = vld [vmem:[#allocation11 + $0x6ac] sm:$0xf0]  ;;  %v3088_v16 = vadd.f32 %v9377_v61, %v9358_v38 }
 0x43b   :  { %11132 = vst [vmem:[#allocation63_spill] sm:$0xff] %v9497_v5  ;;  %v4544_v48 = vpack.c.bf16 %v4473_v57, %v4472_v11  ;;  %v3005_v43 = vadd.f32 %v3004_v12, %v2956_v58  ;;  %3498 = vmatpush.bf16.msrb.mxu2 %v6726_v45  ;;  %v11134_v11 = vld [vmem:[#allocation36_spill] sm:$0xff]  ;;  %v6694_v58 = vor.u32 %v7985_v49, %v6693_v23  ;;  %v7109_v57 = vld [vmem:[#allocation11 + $0x690] sm:$0xf] }
 0x43c   :  { %v3134_v63 = vpop.f32.mrf.mxu2  ;;  %3599 = vmatpush.bf16.msrb.mxu0 %v7142_v18  ;;  %v4480_v12 = vmax.f32 %v2858_v19, %v4352_v54  ;;  %v7977_v45 = vld [vmem:[#allocation11 + $0x32c] sm:$0xf0] }
 0x43d   :  { %4608 = vst [vmem:[#allocation2 + $0x1c0] sm:$0xff] %v4544_v48  ;;  %v3054_v13 = vadd.f32 %v9322_v50, %v3005_v43  ;;  %v9502_v31 = vadd.f32 %v3134_v63, %v3086_v32  ;;  %3432 = vmatmul.bf16.gmra.mxu0 %v11133_v59  ;;  %v7110_v50 = vor.u32 %v8089_v47, %v7109_v57  ;;  %v6661_v63 = vld [vmem:[#allocation11 + $0x310] sm:$0xf] }
 0x43e   :  { %v9505_v62 = vpop.f32.mrf.mxu1  ;;  %v7077_v0 = vld [vmem:[#allocation11 + $0x650] sm:$0xf]  ;;  %v6662_v23 = vor.u32 %v7977_v45, %v6661_v63 }
 0x43f   :  { %v4353_v2 = vmul.f32 0.01, %v3054_v13  ;;  %3358 = vmatmul.bf16.vlgmr.msra.gmra.mxu3 %v11134_v11  ;;  %3499 = vmatpush.bf16.msrb.mxu2 %v6694_v58  ;;  %v8081_v19 = vld [vmem:[#allocation11 + $0x66c] sm:$0xf0] }
 0x440   :  { %3600 = vmatpush.bf16.msrb.mxu0 %v7110_v50  ;;  %v6629_v61 = vld [vmem:[#allocation11 + $0x2d0] sm:$0xf]  ;;  %v3091_v50 = vadd.f32 %v9392_v33, %v9358_v38 }
 0x441   :  { %v4481_v48 = vmax.f32 %v3054_v13, %v4353_v2  ;;  %v7078_v13 = vor.u32 %v8081_v19, %v7077_v0  ;;  %v7969_v49 = vld [vmem:[#allocation11 + $0x2ec] sm:$0xf0] }
 0x442   :  { %v3163_v32 = vpop.f32.mrf.mxu3  ;;  %v9508_v43 = vpop.f32.mrf.mxu0  ;;  %v6630_v58 = vor.u32 %v7969_v49, %v6629_v61  ;;  %v8073_v57 = vld [vmem:[#allocation11 + $0x62c] sm:$0xf0]  ;;  %v3093_v49 = vadd.f32 %v9409_v52, %v9358_v38 }
 0x443   :  { %11135 = vst [vmem:[#allocation66_spill] sm:$0xff] %v9508_v43  ;;  %v4548_v55 = vpack.c.bf16 %v4481_v48, %v4480_v12  ;;  %v9513_v30 = vadd.f32 %v3163_v32, %v9374_v9  ;;  %3500 = vmatpush.bf16.msrb.mxu2 %v6662_v23  ;;  %v7045_v9 = vld [vmem:[#allocation11 + $0x610] sm:$0xf]  ;;  %v11137_v23 = vld [vmem:[#allocation37_spill] sm:$0xff] }
 0x444   :  { %v3136_v18 = vpop.f32.mrf.mxu2  ;;  %3601 = vmatpush.bf16.msrb.mxu0 %v7078_v13  ;;  %v7046_v47 = vor.u32 %v8073_v57, %v7045_v9  ;;  %v6565_v19 = vld [vmem:[#allocation11 + $0x250] sm:$0xf] }
 0x445   :  { %4612 = vst [vmem:[#allocation2 + $0x1e0] sm:$0xff] %v4548_v55  ;;  %v9515_v54 = vadd.f32 %v3136_v18, %v3088_v16  ;;  %v6597_v16 = vld [vmem:[#allocation11 + $0x290] sm:$0xf] }
 0x446   :  { %v9517_v2 = vpop.f32.mrf.mxu1  ;;  %v7961_v55 = vld [vmem:[#allocation11 + $0x2ac] sm:$0xf0] }
 0x447   :  { %3501 = vmatpush.bf16.msrb.mxu2 %v6630_v58  ;;  %v6598_v45 = vor.u32 %v7961_v55, %v6597_v16  ;;  %v7953_v13 = vld [vmem:[#allocation11 + $0x26c] sm:$0xf0] }
 0x448   :  { %3602 = vmatpush.bf16.msrb.mxu0 %v7046_v47  ;;  %v6566_v33 = vor.u32 %v7953_v13, %v6565_v19  ;;  %v6533_v9 = vld [vmem:[#allocation11 + $0x210] sm:$0xf] }
 0x449   :  { %3334 = vmatmul.bf16.gmra.mxu2 %v8919_v46  ;;  %3461 = vmatmul.bf16.gmra.mxu1 %v8846_v21  ;;  %v7945_v57 = vld [vmem:[#allocation11 + $0x22c] sm:$0xf0] }
 0x44a   :  { %v3165_v12 = vpop.f32.mrf.mxu3  ;;  %v9521_v48 = vpop.f32.mrf.mxu0  ;;  %v7013_v43 = vld [vmem:[#allocation11 + $0x5d0] sm:$0xf] }
 0x44b   :  { %11136 = vst [vmem:[#allocation50_spill] sm:$0xff] %v9521_v48  ;;  %v9526_v32 = vadd.f32 %v3165_v12, %v9390_v44  ;;  %3502 = vmatpush.bf16.msrb.mxu2 %v6598_v45  ;;  %v6534_v12 = vor.u32 %v7945_v57, %v6533_v9 }
 0x44c   :  { %v3139_v63 = vpop.f32.mrf.mxu2 }
 0x44d   :  { %v9528_v0 = vadd.f32 %v3139_v63, %v3091_v50  ;;  %3437 = vmatmul.bf16.gmra.mxu0 %v8923_v42 }
 0x44e   :  { %v9531_v18 = vpop.f32.mrf.mxu1 }
 0x44f   :  { %3363 = vmatmul.bf16.gmra.mxu3 %v11137_v23  ;;  %3503 = vmatpush.bf16.msrb.mxu2 %v6566_v33 }
 0x452   :  { %v3168_v61 = vpop.f32.mrf.mxu3  ;;  %v9534_v44 = vpop.f32.mrf.mxu0 }
 0x453   :  { %11138 = vst [vmem:[#allocation65_spill] sm:$0xff] %v9534_v44  ;;  %v9539_v58 = vadd.f32 %v3168_v61, %v9406_v29  ;;  %3504 = vmatpush.bf16.msrb.mxu2 %v6534_v12  ;;  %v3096_v29 = vadd.f32 %v9424_v26, %v9358_v38 }
 0x454   :  { %v3141_v47 = vpop.f32.mrf.mxu2 }
 0x455   :  { %v9541_v50 = vadd.f32 %v3141_v47, %v3093_v49  ;;  %v3098_v49 = vadd.f32 %v9441_v1, %v9358_v38 }
 0x456   :  { %v9543_v16 = vpop.f32.mrf.mxu1 }
 0x459   :  { %3339 = vmatmul.bf16.gmra.mxu2 %v8933_v4  ;;  %3466 = vmatmul.bf16.gmra.mxu1 %v8853_v41 }
 0x45a   :  { %v3170_v55 = vpop.f32.mrf.mxu3  ;;  %v9547_v63 = vpop.f32.mrf.mxu0 }
 0x45b   :  { %11139 = vst [vmem:[#allocation51_spill] sm:$0xff] %v9547_v63  ;;  %v9552_v52 = vadd.f32 %v3170_v55, %v9422_v51  ;;  %v3101_v55 = vadd.f32 %v9456_v22, %v9358_v38 }
 0x45c   :  { %v3144_v45 = vpop.f32.mrf.mxu2 }
 0x45d   :  { %v9554_v19 = vadd.f32 %v3144_v45, %v3096_v29  ;;  %3442 = vmatmul.bf16.gmra.mxu0 %v8937_v34 }
 0x45e   :  { %v9557_v13 = vpop.f32.mrf.mxu1 }
 0x45f   :  { %3368 = vmatmul.bf16.gmra.mxu3 %v8939_v40 }
 0x462   :  { %v3173_v33 = vpop.f32.mrf.mxu3  ;;  %v9560_v61 = vpop.f32.mrf.mxu0 }
 0x463   :  { %11140 = vst [vmem:[#allocation67_spill] sm:$0xff] %v9560_v61  ;;  %v9565_v26 = vadd.f32 %v3173_v33, %v9438_v8  ;;  %v6503_v61 = vld [vmem:[#allocation11 + $0x1f0] sm:$0xf0] }
 0x464   :  { %v3146_v51 = vpop.f32.mrf.mxu2 }
 0x465   :  { %v9567_v9 = vadd.f32 %v3146_v51, %v3098_v49  ;;  %v3103_v51 = vadd.f32 %v9473_v3, %v9358_v38  ;;  %v6471_v3 = vld [vmem:[#allocation11 + $0x1b0] sm:$0xf0] }
 0x466   :  { %v9569_v57 = vpop.f32.mrf.mxu1 }
 0x469   :  { %3344 = vmatmul.bf16.gmra.mxu2 %v8947_v17  ;;  %3471 = vmatmul.bf16.gmra.mxu1 %v8857_v53 }
 0x46a   :  { %v3175_v47 = vpop.f32.mrf.mxu3  ;;  %v9573_v12 = vpop.f32.mrf.mxu0 }
 0x46b   :  { %v9578_v1 = vadd.f32 %v3175_v47, %v9454_v39 }
 0x46c   :  { %v3149_v8 = vpop.f32.mrf.mxu2 }
 0x46d   :  { %v9580_v29 = vadd.f32 %v3149_v8, %v3101_v55  ;;  %3603 = vmatmul.bf16.vlgmr.msrb.gmra.mxu0 %v8860_v35  ;;  %v7933_v8 = vld [vmem:[#allocation11 + $0x1d4] sm:$0xf] }
 0x46e   :  { %v9583_v45 = vpop.f32.mrf.mxu1  ;;  %v6506_v63 = vor.u32 %v7933_v8, %v6503_v61  ;;  %v8065_v61 = vld [vmem:[#allocation11 + $0x5ec] sm:$0xf0] }
 0x46f   :  { %11141 = vst [vmem:[#allocation53_spill] sm:$0xff] %v9583_v45  ;;  %3373 = vmatmul.bf16.gmra.mxu3 %v11074_v10  ;;  %v7014_v5 = vor.u32 %v8065_v61, %v7013_v43  ;;  %v6949_v61 = vld [vmem:[#allocation11 + $0x550] sm:$0xf]  ;;  %v6375_v45 = vld [vmem:[#allocation11 + $0xf0] sm:$0xf0] }
 0x470   :  { %3644 = vmatpush.bf16.msrb.mxu1 %v6506_v63  ;;  %v6439_v63 = vld [vmem:[#allocation11 + $0x170] sm:$0xf0] }
 0x471   :  { %3546 = vmatpush.bf16.msrb.mxu3 %v7014_v5 }
 0x472   :  { %v3178_v33 = vpop.f32.mrf.mxu3  ;;  %v9586_v49 = vpop.f32.mrf.mxu0 }
 0x473   :  { %v9591_v22 = vadd.f32 %v3178_v33, %v9470_v28  ;;  %v7925_v28 = vld [vmem:[#allocation11 + $0x194] sm:$0xf] }
 0x474   :  { %v3151_v39 = vpop.f32.mrf.mxu2 }
 0x475   :  { %v9593_v47 = vadd.f32 %v3151_v39, %v3103_v51  ;;  %v6474_v51 = vor.u32 %v7925_v28, %v6471_v3  ;;  %v11144_v39 = vld [vmem:[#allocation22_spill] sm:$0xff] }
 0x476   :  { %v9595_v55 = vpop.f32.mrf.mxu1 }
 0x477   :  { %11142 = vst [vmem:[#allocation68_spill] sm:$0xff] %v9595_v55  ;;  %3645 = vmatpush.bf16.msrb.mxu1 %v6474_v51  ;;  %v7917_v55 = vld [vmem:[#allocation11 + $0x154] sm:$0xf] }
 0x479   :  { %3476 = vmatmul.bf16.gmra.mxu1 %v11082_v7  ;;  %3505 = vmatmul.bf16.vlgmr.msrb.gmra.mxu2 %v11083_v60  ;;  %v8057_v60 = vld [vmem:[#allocation11 + $0x5ac] sm:$0xf0] }
 0x47a   :  { %v3180_v44 = vpop.f32.mrf.mxu3  ;;  %v9599_v48 = vpop.f32.mrf.mxu0 }
 0x47b   :  { %v9602_v38 = vadd.f32 %v3180_v44, %v9486_v6  ;;  %v6442_v6 = vor.u32 %v7917_v55, %v6439_v63  ;;  %v6981_v44 = vld [vmem:[#allocation11 + $0x590] sm:$0xf]  ;;  %v7901_v63 = vld [vmem:[#allocation11 + $0xd4] sm:$0xf] }
 0x47c   :  { %v9604_v33 = vpop.f32.mrf.mxu2  ;;  %v6982_v28 = vor.u32 %v8057_v60, %v6981_v44  ;;  %v8041_v60 = vld [vmem:[#allocation11 + $0x52c] sm:$0xf0] }
 0x47d   :  { %11143 = vst [vmem:[#allocation70_spill] sm:$0xff] %v9602_v38  ;;  %3608 = vmatmul.bf16.gmra.mxu0 %v11144_v39  ;;  %3646 = vmatpush.bf16.msrb.mxu1 %v6442_v6  ;;  %v7909_v39 = vld [vmem:[#allocation11 + $0x114] sm:$0xf]  ;;  %v6378_v6 = vor.u32 %v7901_v63, %v6375_v45 }
 0x47e   :  { %v9607_v8 = vpop.f32.mrf.mxu1  ;;  %3547 = vmatpush.bf16.msrb.mxu3 %v6982_v28  ;;  %v7893_v28 = vld [vmem:[#allocation11 + $0x94] sm:$0xf] }
 0x47f   :  { %11145 = vst [vmem:[#allocation55_spill] sm:$0xff] %v9607_v8  ;;  %3378 = vmatmul.bf16.gmra.mxu3 %v11146_v27  ;;  %v6407_v8 = vld [vmem:[#allocation11 + $0x130] sm:$0xf0]  ;;  %v8049_v27 = vld [vmem:[#allocation11 + $0x56c] sm:$0xf0] }
 0x480   :  { %v6410_v43 = vor.u32 %v7909_v39, %v6407_v8  ;;  %v6950_v55 = vor.u32 %v8049_v27, %v6949_v61  ;;  %v6343_v27 = vld [vmem:[#allocation11 + $0xb0] sm:$0xf0]  ;;  %v6885_v61 = vld [vmem:[#allocation11 + $0x4d0] sm:$0xf] }
 0x481   :  { %v6346_v45 = vor.u32 %v7893_v28, %v6343_v27  ;;  %v7877_v27 = vld [vmem:[#allocation11 + $0x14] sm:$0xf] }
 0x482   :  { %v3183_v7 = vpop.f32.mrf.mxu3  ;;  %v9610_v38 = vpop.f32.mrf.mxu0  ;;  %3647 = vmatpush.bf16.msrb.mxu1 %v6410_v43  ;;  %3548 = vmatpush.bf16.msrb.mxu3 %v6950_v55  ;;  %v8033_v55 = vld [vmem:[#allocation11 + $0x4ec] sm:$0xf0] }
 0x483   :  { %v9613_v3 = vadd.f32 %v3183_v7, %v9502_v31  ;;  %v6917_v7 = vld [vmem:[#allocation11 + $0x510] sm:$0xf] }
 0x484   :  { %v9615_v51 = vpop.f32.mrf.mxu2  ;;  %v6918_v39 = vor.u32 %v8041_v60, %v6917_v7  ;;  %v6311_v7 = vld [vmem:[#allocation11 + $0x70] sm:$0xf0]  ;;  %v6853_v60 = vld [vmem:[#allocation11 + $0x490] sm:$0xf] }
 0x486   :  { %v9617_v5 = vpop.f32.mrf.mxu1  ;;  %3648 = vmatpush.bf16.msrb.mxu1 %v6378_v6  ;;  %3549 = vmatpush.bf16.msrb.mxu3 %v6918_v39  ;;  %v7885_v6 = vld [vmem:[#allocation11 + $0x54] sm:$0xf] }
 0x487   :  { %11147 = vst [vmem:[#allocation40_spill] sm:$0xff] %v9617_v5  ;;  %v6886_v5 = vor.u32 %v8033_v55, %v6885_v61  ;;  %v6821_v55 = vld [vmem:[#allocation11 + $0x450] sm:$0xf] }
 0x489   :  { %3481 = vmatmul.bf16.gmra.mxu1 %v11092_v37  ;;  %3510 = vmatmul.bf16.gmra.mxu2 %v11093_v20  ;;  %v11150_v20 = vld [vmem:[#allocation46_spill] sm:$0xff] }
 0x48a   :  { %v3185_v31 = vpop.f32.mrf.mxu3  ;;  %v9621_v44 = vpop.f32.mrf.mxu0  ;;  %3649 = vmatpush.bf16.msrb.mxu1 %v6346_v45  ;;  %3550 = vmatpush.bf16.msrb.mxu3 %v6886_v5 }
 0x48b   :  { %v9624_v8 = vadd.f32 %v3185_v31, %v9515_v54  ;;  %v6314_v54 = vor.u32 %v7885_v6, %v6311_v7  ;;  %v8025_v31 = vld [vmem:[#allocation11 + $0x4ac] sm:$0xf0] }
 0x48c   :  { %v9626_v43 = vpop.f32.mrf.mxu2  ;;  %v6854_v39 = vor.u32 %v8025_v31, %v6853_v60  ;;  %v6789_v7 = vld [vmem:[#allocation11 + $0x410] sm:$0xf] }
 0x48d   :  { %11148 = vst [vmem:[#allocation69_spill] sm:$0xff] %v9624_v8  ;;  %3613 = vmatmul.bf16.gmra.mxu0 %v11095_v14  ;;  %v8101_v14 = vld [vmem:[#allocation11 + $0x714] sm:$0xf] }
 0x48e   :  { %v9629_v63 = vpop.f32.mrf.mxu1  ;;  %3650 = vmatpush.bf16.msrb.mxu1 %v6314_v54  ;;  %3551 = vmatpush.bf16.msrb.mxu3 %v6854_v39  ;;  %v11154_v39 = vld [vmem:[#allocation30_spill] sm:$0xff] }
 0x48f   :  { %11149 = vst [vmem:[#allocation72_spill] sm:$0xff] %v9629_v63  ;;  %3383 = vmatmul.bf16.gmra.mxu3 %v11150_v20  ;;  %v6279_v63 = vld [vmem:[#allocation11 + $0x30] sm:$0xf0]  ;;  %v8017_v20 = vld [vmem:[#allocation11 + $0x46c] sm:$0xf0] }
 0x490   :  { %v6282_v61 = vor.u32 %v7877_v27, %v6279_v63  ;;  %v6822_v6 = vor.u32 %v8017_v20, %v6821_v55  ;;  %v11156_v27 = vld [vmem:[#allocation49_spill] sm:$0xff] }
 0x492   :  { %v3188_v37 = vpop.f32.mrf.mxu3  ;;  %v9632_v8 = vpop.f32.mrf.mxu0  ;;  %3651 = vmatpush.bf16.msrb.mxu1 %v6282_v61  ;;  %3552 = vmatpush.bf16.msrb.mxu3 %v6822_v6 }
 0x493   :  { %v9635_v28 = vadd.f32 %v3188_v37, %v9528_v0  ;;  %v8009_v37 = vld [vmem:[#allocation11 + $0x42c] sm:$0xf0] }
 0x494   :  { %v9637_v45 = vpop.f32.mrf.mxu2  ;;  %v6790_v60 = vor.u32 %v8009_v37, %v6789_v7  ;;  %v11160_v37 = vld [vmem:[#allocation32_spill] sm:$0xff] }
 0x495   :  { %11151 = vst [vmem:[#allocation57_spill] sm:$0xff] %v9635_v28 }
 0x496   :  { %v9639_v5 = vpop.f32.mrf.mxu1  ;;  %3553 = vmatpush.bf16.msrb.mxu3 %v6790_v60 }
 0x497   :  { %11152 = vst [vmem:[#allocation54_spill] sm:$0xff] %v9639_v5 }
 0x499   :  { %3486 = vmatmul.bf16.gmra.mxu1 %v11105_v36  ;;  %3515 = vmatmul.bf16.gmra.mxu2 %v11106_v15 }
 0x49a   :  { %v3190_v0 = vpop.f32.mrf.mxu3  ;;  %v9643_v54 = vpop.f32.mrf.mxu0 }
 0x49b   :  { %v9646_v31 = vadd.f32 %v3190_v0, %v9541_v50  ;;  %v11159_v50 = vld [vmem:[#allocation31_spill] sm:$0xff] }
 0x49c   :  { %v9648_v63 = vpop.f32.mrf.mxu2 }
 0x49d   :  { %11153 = vst [vmem:[#allocation71_spill] sm:$0xff] %v9646_v31  ;;  %3618 = vmatmul.bf16.gmra.mxu0 %v11154_v39  ;;  %v7271_v39 = vld [vmem:[#allocation11 + $0x7f0] sm:$0xf0] }
 0x49e   :  { %v9651_v20 = vpop.f32.mrf.mxu1 }
 0x49f   :  { %11155 = vst [vmem:[#allocation74_spill] sm:$0xff] %v9651_v20  ;;  %3388 = vmatmul.bf16.gmra.mxu3 %v11156_v27  ;;  %v8125_v27 = vld [vmem:[#allocation11 + $0x7d4] sm:$0xf] }
 0x4a2   :  { %v3193_v61 = vpop.f32.mrf.mxu3  ;;  %v9654_v55 = vpop.f32.mrf.mxu0 }
 0x4a3   :  { %v9657_v6 = vadd.f32 %v3193_v61, %v9554_v19  ;;  %v7274_v19 = vor.u32 %v8125_v27, %v7271_v39  ;;  %v11163_v61 = vld [vmem:[#allocation33_spill] sm:$0xff] }
 0x4a4   :  { %v9659_v5 = vpop.f32.mrf.mxu2 }
 0x4a5   :  { %11157 = vst [vmem:[#allocation58_spill] sm:$0xff] %v9657_v6  ;;  %3791 = vmatpush.bf16.msra.mxu0 %v7274_v19  ;;  %v7997_v19 = vld [vmem:[#allocation11 + $0x3d4] sm:$0xf] }
 0x4a6   :  { %v9661_v7 = vpop.f32.mrf.mxu1 }
 0x4a7   :  { %11158 = vst [vmem:[#allocation73_spill] sm:$0xff] %v9661_v7  ;;  %v11165_v7 = vld [vmem:[#allocation52_spill] sm:$0xff] }
 0x4a9   :  { %3491 = vmatmul.bf16.gmra.mxu1 %v11159_v50  ;;  %3520 = vmatmul.bf16.gmra.mxu2 %v11160_v37  ;;  %v8117_v50 = vld [vmem:[#allocation11 + $0x794] sm:$0xf] }
 0x4aa   :  { %v3195_v0 = vpop.f32.mrf.mxu3  ;;  %v9665_v60 = vpop.f32.mrf.mxu0  ;;  %v7239_v37 = vld [vmem:[#allocation11 + $0x7b0] sm:$0xf0] }
 0x4ab   :  { %11161 = vst [vmem:[#allocation76_spill] sm:$0xff] %v9665_v60  ;;  %v9668_v20 = vadd.f32 %v3195_v0, %v9567_v9  ;;  %v7242_v36 = vor.u32 %v8117_v50, %v7239_v37  ;;  %v8109_v0 = vld [vmem:[#allocation11 + $0x754] sm:$0xf] }
 0x4ac   :  { %v9670_v15 = vpop.f32.mrf.mxu2  ;;  %v7175_v50 = vld [vmem:[#allocation11 + $0x730] sm:$0xf0] }
 0x4ad   :  { %11162 = vst [vmem:[#allocation59_spill] sm:$0xff] %v9668_v20  ;;  %3623 = vmatmul.bf16.gmra.mxu0 %v11163_v61  ;;  %v7207_v20 = vld [vmem:[#allocation11 + $0x770] sm:$0xf0] }
 0x4ae   :  { %v9673_v6 = vpop.f32.mrf.mxu1  ;;  %3792 = vmatpush.bf16.msra.mxu0 %v7242_v36  ;;  %v7210_v27 = vor.u32 %v8109_v0, %v7207_v20  ;;  %v7178_v36 = vor.u32 %v8101_v14, %v7175_v50  ;;  %v7989_v0 = vld [vmem:[#allocation11 + $0x394] sm:$0xf] }
 0x4af   :  { %11164 = vst [vmem:[#allocation75_spill] sm:$0xff] %v9673_v6  ;;  %3393 = vmatmul.bf16.gmra.mxu3 %v11165_v7  ;;  %v6759_v6 = vld [vmem:[#allocation11 + $0x3f0] sm:$0xf0] }
 0x4b0   :  { %v6762_v7 = vor.u32 %v7997_v19, %v6759_v6  ;;  %v6727_v6 = vld [vmem:[#allocation11 + $0x3b0] sm:$0xf0] }
 0x4b2   :  { %v3198_v31 = vpop.f32.mrf.mxu3  ;;  %v9676_v28 = vpop.f32.mrf.mxu0  ;;  %3793 = vmatpush.bf16.msra.mxu0 %v7210_v27  ;;  %3693 = vmatpush.bf16.msra.mxu2 %v6762_v7  ;;  %v8093_v27 = vld [vmem:[#allocation11 + $0x6d4] sm:$0xf] }
 0x4b3   :  { %11166 = vst [vmem:[#allocation78_spill] sm:$0xff] %v9676_v28  ;;  %v9679_v9 = vadd.f32 %v3198_v31, %v9580_v29  ;;  %v11168_v29 = vld [vmem:[#allocation41_spill] sm:$0xff]  ;;  %v7143_v28 = vld [vmem:[#allocation11 + $0x6f0] sm:$0xf0] }
 0x4b4   :  { %v9681_v39 = vpop.f32.mrf.mxu2  ;;  %v9688_v31 = vperm.slane %v11168_v29, 3  ;;  %v7146_v14 = vor.u32 %v8093_v27, %v7143_v28  ;;  %v11172_v29 = vld [vmem:[#allocation38_spill] sm:$0xff] }
 0x4b5   :  { %11167 = vst [vmem:[#allocation60_spill] sm:$0xff] %v9679_v9 }
 0x4b6   :  { %v9683_v61 = vpop.f32.mrf.mxu1  ;;  %3794 = vmatpush.bf16.msra.mxu0 %v7178_v36  ;;  %v3262_v7 = vadd.f32 %v9488_v25, %v9688_v31  ;;  %v6695_v36 = vld [vmem:[#allocation11 + $0x370] sm:$0xf0] }
 0x4b7   :  { %v7973_v25 = vld [vmem:[#allocation11 + $0x314] sm:$0xf] }
 0x4b9   :  { %3525 = vmatmul.bf16.gmra.mxu2 %v11130_v56  ;;  %3652 = vmatmul.bf16.vlgmr.msrb.gmra.mxu1 %v11131_v24  ;;  %v6730_v56 = vor.u32 %v7989_v0, %v6727_v6  ;;  %v8085_v0 = vld [vmem:[#allocation11 + $0x694] sm:$0xf] }
 0x4ba   :  { %v3200_v37 = vpop.f32.mrf.mxu3  ;;  %v9690_v9 = vpop.f32.mrf.mxu0  ;;  %3795 = vmatpush.bf16.msra.mxu0 %v7146_v14  ;;  %v7111_v6 = vld [vmem:[#allocation11 + $0x6b0] sm:$0xf0] }
 0x4bb   :  { %11169 = vst [vmem:[#allocation77_spill] sm:$0xff] %v9690_v9  ;;  %v9693_v20 = vadd.f32 %v3200_v37, %v9593_v47  ;;  %3694 = vmatpush.bf16.msra.mxu2 %v6730_v56  ;;  %v7981_v47 = vld [vmem:[#allocation11 + $0x354] sm:$0xf]  ;;  %v3213_v37 = vadd.f32 %v11172_v29, %v9513_v30  ;;  %v7114_v28 = vor.u32 %v8085_v0, %v7111_v6  ;;  %v11173_v6 = vld [vmem:[#allocation56_spill] sm:$0xff] }
 0x4bc   :  { %v9695_v19 = vpop.f32.mrf.mxu2  ;;  %v6698_v24 = vor.u32 %v7981_v47, %v6695_v36  ;;  %v8077_v14 = vld [vmem:[#allocation11 + $0x654] sm:$0xf] }
 0x4bd   :  { %11170 = vst [vmem:[#allocation79_spill] sm:$0xff] %v9693_v20  ;;  %3628 = vmatmul.bf16.gmra.mxu0 %v11133_v59  ;;  %v3311_v59 = vadd.f32 %v9604_v33, %v3262_v7  ;;  %v4234_v9 = vmul.f32 0.01, %v3213_v37  ;;  %v7079_v30 = vld [vmem:[#allocation11 + $0x670] sm:$0xf0]  ;;  %v3264_v33 = vadd.f32 %v9505_v62, %v9688_v31 }
 0x4be   :  { %v9698_v50 = vpop.f32.mrf.mxu1  ;;  %3796 = vmatpush.bf16.msra.mxu0 %v7114_v28  ;;  %v7082_v36 = vor.u32 %v8077_v14, %v7079_v30  ;;  %v6631_v7 = vld [vmem:[#allocation11 + $0x2f0] sm:$0xf0]  ;;  %v3215_v28 = vadd.f32 %v11173_v6, %v9526_v32 }
 0x4bf   :  { %11171 = vst [vmem:[#allocation61_spill] sm:$0xff] %v9698_v50  ;;  %3554 = vmatmul.bf16.vlgmr.msrb.gmra.mxu3 %v11134_v11  ;;  %3695 = vmatpush.bf16.msra.mxu2 %v6698_v24  ;;  %v6663_v11 = vld [vmem:[#allocation11 + $0x330] sm:$0xf0]  ;;  %v4362_v0 = vmax.f32 %v3213_v37, %v4234_v9 }
 0x4c0   :  { %v6666_v50 = vor.u32 %v7973_v25, %v6663_v11  ;;  %v8069_v11 = vld [vmem:[#allocation11 + $0x614] sm:$0xf] }
 0x4c1   :  { %v7047_v25 = vld [vmem:[#allocation11 + $0x630] sm:$0xf0] }
 0x4c2   :  { %v3359_v27 = vpop.f32.mrf.mxu3  ;;  %v9706_v20 = vpop.f32.mrf.mxu0  ;;  %3797 = vmatpush.bf16.msra.mxu0 %v7082_v36  ;;  %v7957_v37 = vld [vmem:[#allocation11 + $0x294] sm:$0xf] }
 0x4c3   :  { %v3360_v56 = vadd.f32 %v3359_v27, %v3311_v59  ;;  %3696 = vmatpush.bf16.msra.mxu2 %v6666_v50  ;;  %v7965_v59 = vld [vmem:[#allocation11 + $0x2d4] sm:$0xf]  ;;  %v7050_v50 = vor.u32 %v8069_v11, %v7047_v25 }
 0x4c4   :  { %v9708_v60 = vpop.f32.mrf.mxu2  ;;  %v6634_v27 = vor.u32 %v7965_v59, %v6631_v7  ;;  %v6599_v32 = vld [vmem:[#allocation11 + $0x2b0] sm:$0xf0]  ;;  %v4242_v7 = vmul.f32 0.01, %v3215_v28 }
 0x4c5   :  { %v3409_v47 = vadd.f32 %v9573_v12, %v3360_v56  ;;  %v3313_v12 = vadd.f32 %v9615_v51, %v3264_v33  ;;  %v6602_v59 = vor.u32 %v7957_v37, %v6599_v32  ;;  %v3267_v33 = vadd.f32 %v9517_v2, %v9688_v31  ;;  %v6567_v6 = vld [vmem:[#allocation11 + $0x270] sm:$0xf0] }
 0x4c6   :  { %v9711_v29 = vpop.f32.mrf.mxu1  ;;  %3798 = vmatpush.bf16.msra.mxu0 %v7050_v50  ;;  %v7941_v2 = vld [vmem:[#allocation11 + $0x214] sm:$0xf] }
 0x4c7   :  { %v4235_v24 = vmul.f32 0.01, %v3409_v47  ;;  %3697 = vmatpush.bf16.msra.mxu2 %v6634_v27  ;;  %v11174_v27 = vld [vmem:[#allocation42_spill] sm:$0xff] }
 0x4c8   :  { %v3218_v11 = vadd.f32 %v11174_v27, %v9539_v58  ;;  %v6535_v37 = vld [vmem:[#allocation11 + $0x230] sm:$0xf0] }
 0x4c9   :  { %v4363_v56 = vmax.f32 %v3409_v47, %v4235_v24  ;;  %3530 = vmatmul.bf16.gmra.mxu2 %v8919_v46  ;;  %3657 = vmatmul.bf16.gmra.mxu1 %v8846_v21 }
 0x4ca   :  { %v3361_v62 = vpop.f32.mrf.mxu3  ;;  %v9720_v14 = vpop.f32.mrf.mxu0  ;;  %v4250_v32 = vmul.f32 0.01, %v3218_v11 }
 0x4cb   :  { %v4489_v30 = vpack.c.bf16 %v4363_v56, %v4362_v0  ;;  %v3362_v9 = vadd.f32 %v3361_v62, %v3313_v12  ;;  %3698 = vmatpush.bf16.msra.mxu2 %v6602_v59  ;;  %v7949_v0 = vld [vmem:[#allocation11 + $0x254] sm:$0xf]  ;;  %v4370_v12 = vmax.f32 %v3215_v28, %v4242_v7 }
 0x4cc   :  { %v9722_v36 = vpop.f32.mrf.mxu2  ;;  %v6570_v25 = vor.u32 %v7949_v0, %v6567_v6  ;;  %v4378_v7 = vmax.f32 %v3218_v11, %v4250_v32 }
 0x4cd   :  { %4553 = vst [vmem:[#allocation2 + $0x8] sm:$0xff] %v4489_v30  ;;  %v3411_v51 = vadd.f32 %v9586_v49, %v3362_v9  ;;  %3633 = vmatmul.bf16.gmra.mxu0 %v8923_v42  ;;  %v3316_v49 = vadd.f32 %v9626_v43, %v3267_v33  ;;  %v3269_v43 = vadd.f32 %v9531_v18, %v9688_v31 }
 0x4ce   :  { %v9726_v47 = vpop.f32.mrf.mxu1 }
 0x4cf   :  { %v4243_v24 = vmul.f32 0.01, %v3411_v51  ;;  %3559 = vmatmul.bf16.gmra.mxu3 %v11137_v23  ;;  %3699 = vmatpush.bf16.msra.mxu2 %v6570_v25  ;;  %v6538_v23 = vor.u32 %v7941_v2, %v6535_v37 }
 0x4d1   :  { %v4371_v56 = vmax.f32 %v3411_v51, %v4243_v24  ;;  %v11175_v51 = vld [vmem:[#allocation44_spill] sm:$0xff]  ;;  %v3318_v24 = vadd.f32 %v9637_v45, %v3269_v43  ;;  %v3272_v45 = vadd.f32 %v9543_v16, %v9688_v31 }
 0x4d2   :  { %v3364_v50 = vpop.f32.mrf.mxu3  ;;  %v9734_v62 = vpop.f32.mrf.mxu0  ;;  %v3220_v33 = vadd.f32 %v11175_v51, %v9552_v52 }
 0x4d3   :  { %v4493_v30 = vpack.c.bf16 %v4371_v56, %v4370_v12  ;;  %v3365_v9 = vadd.f32 %v3364_v50, %v3316_v49  ;;  %3700 = vmatpush.bf16.msra.mxu2 %v6538_v23  ;;  %v11176_v56 = vld [vmem:[#allocation45_spill] sm:$0xff] }
 0x4d4   :  { %v9736_v59 = vpop.f32.mrf.mxu2  ;;  %v4258_v18 = vmul.f32 0.01, %v3220_v33  ;;  %v3223_v50 = vadd.f32 %v11176_v56, %v9565_v26  ;;  %v3274_v26 = vadd.f32 %v9557_v13, %v9688_v31 }
 0x4d5   :  { %4557 = vst [vmem:[#allocation2 + $0x28] sm:$0xff] %v4493_v30  ;;  %v3414_v58 = vadd.f32 %v9599_v48, %v3365_v9  ;;  %v3321_v9 = vadd.f32 %v9648_v63, %v3272_v45  ;;  %v11177_v63 = vld [vmem:[#allocation47_spill] sm:$0xff] }
 0x4d6   :  { %v9739_v0 = vpop.f32.mrf.mxu1  ;;  %v4386_v30 = vmax.f32 %v3220_v33, %v4258_v18  ;;  %v4266_v43 = vmul.f32 0.01, %v3223_v50 }
 0x4d7   :  { %v4251_v28 = vmul.f32 0.01, %v3414_v58 }
 0x4d8   :  { %v4394_v33 = vmax.f32 %v3223_v50, %v4266_v43  ;;  %v11179_v50 = vld [vmem:[#allocation62_spill] sm:$0xff] }
 0x4d9   :  { %v4379_v6 = vmax.f32 %v3414_v58, %v4251_v28  ;;  %3535 = vmatmul.bf16.gmra.mxu2 %v8933_v4  ;;  %3662 = vmatmul.bf16.gmra.mxu1 %v8853_v41 }
 0x4da   :  { %v3366_v27 = vpop.f32.mrf.mxu3  ;;  %v9748_v48 = vpop.f32.mrf.mxu0 }
 0x4db   :  { %v4497_v25 = vpack.c.bf16 %v4379_v6, %v4378_v7  ;;  %v3367_v23 = vadd.f32 %v3366_v27, %v3318_v24  ;;  %v3225_v24 = vadd.f32 %v11177_v63, %v9578_v1  ;;  %v3323_v6 = vadd.f32 %v9659_v5, %v3274_v26  ;;  %v9795_v26 = vld [vmem:[#allocation12] sm:$0xff] }
 0x4dc   :  { %v9750_v12 = vpop.f32.mrf.mxu2  ;;  %v3277_v5 = vadd.f32 %v9569_v57, %v9688_v31  ;;  %11181 = vst [vmem:[#allocation56_spill] sm:$0xff] %v9795_v26 }
 0x4dd   :  { %4561 = vst [vmem:[#allocation2 + $0x48] sm:$0xff] %v4497_v25  ;;  %v3416_v11 = vadd.f32 %v9610_v38, %v3367_v23  ;;  %3638 = vmatmul.bf16.gmra.mxu0 %v8937_v34  ;;  %v4274_v13 = vmul.f32 0.01, %v3225_v24 }
 0x4de   :  { %v9754_v52 = vpop.f32.mrf.mxu1 }
 0x4df   :  { %v4259_v49 = vmul.f32 0.01, %v3416_v11  ;;  %3564 = vmatmul.bf16.gmra.mxu3 %v8939_v40  ;;  %v4402_v56 = vmax.f32 %v3225_v24, %v4274_v13  ;;  %v6509_v24 = vld [vmem:[#allocation11 + $0x1d8] sm:$0xf] }
 0x4e1   :  { %v4387_v2 = vmax.f32 %v3416_v11, %v4259_v49 }
 0x4e2   :  { %v3369_v37 = vpop.f32.mrf.mxu3  ;;  %v9762_v32 = vpop.f32.mrf.mxu0 }
 0x4e3   :  { %v4501_v38 = vpack.c.bf16 %v4387_v2, %v4386_v30  ;;  %v3370_v58 = vadd.f32 %v3369_v37, %v3321_v9  ;;  %v3228_v30 = vadd.f32 %v11179_v50, %v9591_v22  ;;  %v3326_v9 = vadd.f32 %v9670_v15, %v3277_v5  ;;  %v11182_v15 = vld [vmem:[#allocation53_spill] sm:$0xff]  ;;  %v11185_v5 = vld [vmem:[#allocation23_spill] sm:$0xff] }
 0x4e4   :  { %v9764_v28 = vpop.f32.mrf.mxu2 }
 0x4e5   :  { %4565 = vst [vmem:[#allocation2 + $0x68] sm:$0xff] %v4501_v38  ;;  %v3419_v16 = vadd.f32 %v9621_v44, %v3370_v58 }
 0x4e6   :  { %v9767_v7 = vpop.f32.mrf.mxu1 }
 0x4e7   :  { %v4267_v51 = vmul.f32 0.01, %v3419_v16 }
 0x4e9   :  { %v4395_v27 = vmax.f32 %v3419_v16, %v4267_v51  ;;  %3540 = vmatmul.bf16.gmra.mxu2 %v8947_v17  ;;  %3667 = vmatmul.bf16.gmra.mxu1 %v8857_v53  ;;  %v4282_v16 = vmul.f32 0.01, %v3228_v30  ;;  %v9798_v51 = vperm.slane %v9795_v26, 4  ;;  %v6413_v26 = vld [vmem:[#allocation11 + $0x118] sm:$0xf] }
 0x4ea   :  { %v3371_v25 = vpop.f32.mrf.mxu3  ;;  %v9776_v23 = vpop.f32.mrf.mxu0 }
 0x4eb   :  { %11178 = vst [vmem:[#allocation41_spill] sm:$0xff] %v9776_v23  ;;  %v4505_v44 = vpack.c.bf16 %v4395_v27, %v4394_v33  ;;  %v3372_v18 = vadd.f32 %v3371_v25, %v3323_v6  ;;  %v3279_v33 = vadd.f32 %v11182_v15, %v9688_v31  ;;  %v7938_v6 = vld [vmem:[#allocation11 + $0x1f4] sm:$0xf0]  ;;  %v11183_v27 = vld [vmem:[#allocation70_spill] sm:$0xff]  ;;  %v4410_v13 = vmax.f32 %v3228_v30, %v4282_v16 }
 0x4ec   :  { %v9778_v11 = vpop.f32.mrf.mxu2  ;;  %v11184_v25 = vld [vmem:[#allocation39_spill] sm:$0xff] }
 0x4ed   :  { %4569 = vst [vmem:[#allocation2 + $0x88] sm:$0xff] %v4505_v44  ;;  %v3421_v45 = vadd.f32 %v9632_v8, %v3372_v18  ;;  %3799 = vmatmul.bf16.vlgmr.msra.gmra.mxu0 %v8860_v35  ;;  %v3230_v44 = vadd.f32 %v11184_v25, %v11183_v27  ;;  %v6510_v18 = vor.u32 %v7938_v6, %v6509_v24  ;;  %v7015_v24 = vld [vmem:[#allocation11 + $0x5f0] sm:$0xf0]  ;;  %v11189_v27 = vld [vmem:[#allocation68_spill] sm:$0xff] }
 0x4ee   :  { %v9782_v1 = vpop.f32.mrf.mxu1  ;;  %v3282_v25 = vadd.f32 %v11189_v27, %v9688_v31  ;;  %v11193_v27 = vld [vmem:[#allocation61_spill] sm:$0xff] }
 0x4ef   :  { %v4275_v49 = vmul.f32 0.01, %v3421_v45  ;;  %3569 = vmatmul.bf16.gmra.mxu3 %v11074_v10  ;;  %3840 = vmatpush.bf16.msra.mxu1 %v6510_v18  ;;  %v4290_v15 = vmul.f32 0.01, %v3230_v44 }
 0x4f1   :  { %v4403_v2 = vmax.f32 %v3421_v45, %v4275_v49  ;;  %v11186_v49 = vld [vmem:[#allocation21_spill] sm:$0xff] }
 0x4f2   :  { %v3374_v37 = vpop.f32.mrf.mxu3  ;;  %v9790_v38 = vpop.f32.mrf.mxu0 }
 0x4f3   :  { %11180 = vst [vmem:[#allocation38_spill] sm:$0xff] %v9790_v38  ;;  %v4509_v8 = vpack.c.bf16 %v4403_v2, %v4402_v56  ;;  %v3375_v58 = vadd.f32 %v3374_v37, %v3326_v9  ;;  %v3458_v9 = vadd.f32 %v9683_v61, %v9798_v51 }
 0x4f4   :  { %v9792_v43 = vpop.f32.mrf.mxu2 }
 0x4f5   :  { %4573 = vst [vmem:[#allocation2 + $0xa8] sm:$0xff] %v4509_v8  ;;  %v3424_v57 = vadd.f32 %v9643_v54, %v3375_v58  ;;  %v3328_v54 = vadd.f32 %v9681_v39, %v3279_v33  ;;  %v6477_v8 = vld [vmem:[#allocation11 + $0x198] sm:$0xf]  ;;  %v11188_v33 = vld [vmem:[#allocation22_spill] sm:$0xff] }
 0x4f6   :  { %v9800_v22 = vpop.f32.mrf.mxu1  ;;  %v7930_v58 = vld [vmem:[#allocation11 + $0x1b4] sm:$0xf0] }
 0x4f7   :  { %v4283_v63 = vmul.f32 0.01, %v3424_v57  ;;  %v6478_v16 = vor.u32 %v7930_v58, %v6477_v8  ;;  %v8053_v58 = vld [vmem:[#allocation11 + $0x594] sm:$0xf] }
 0x4f9   :  { %v4411_v45 = vmax.f32 %v3424_v57, %v4283_v63  ;;  %3672 = vmatmul.bf16.gmra.mxu1 %v11185_v5  ;;  %3701 = vmatmul.bf16.vlgmr.msra.gmra.mxu2 %v11186_v49  ;;  %v8061_v63 = vld [vmem:[#allocation11 + $0x5d4] sm:$0xf] }
 0x4fa   :  { %v3376_v56 = vpop.f32.mrf.mxu3  ;;  %v9809_v50 = vpop.f32.mrf.mxu0  ;;  %3841 = vmatpush.bf16.msra.mxu1 %v6478_v16  ;;  %v7018_v61 = vor.u32 %v8061_v63, %v7015_v24 }
 0x4fb   :  { %11187 = vst [vmem:[#allocation42_spill] sm:$0xff] %v9809_v50  ;;  %v4513_v2 = vpack.c.bf16 %v4411_v45, %v4410_v13  ;;  %v3377_v37 = vadd.f32 %v3376_v56, %v3328_v54  ;;  %v11190_v13 = vld [vmem:[#allocation43_spill] sm:$0xff]  ;;  %v3460_v50 = vadd.f32 %v11193_v27, %v9798_v51  ;;  %v11198_v27 = vld [vmem:[#allocation25_spill] sm:$0xff] }
 0x4fc   :  { %v3506_v30 = vpop.f32.mrf.mxu2  ;;  %v6445_v54 = vld [vmem:[#allocation11 + $0x158] sm:$0xf]  ;;  %3742 = vmatpush.bf16.msra.mxu3 %v7018_v61 }
 0x4fd   :  { %4577 = vst [vmem:[#allocation2 + $0xc8] sm:$0xff] %v4513_v2  ;;  %v3426_v39 = vadd.f32 %v9654_v55, %v3377_v37  ;;  %v9814_v57 = vadd.f32 %v3506_v30, %v3458_v9  ;;  %3804 = vmatmul.bf16.gmra.mxu0 %v11188_v33  ;;  %v7922_v45 = vld [vmem:[#allocation11 + $0x174] sm:$0xf0]  ;;  %v11191_v55 = vld [vmem:[#allocation64_spill] sm:$0xff]  ;;  %v4418_v2 = vmax.f32 %v3230_v44, %v4290_v15  ;;  %v6983_v30 = vld [vmem:[#allocation11 + $0x5b0] sm:$0xf0] }
 0x4fe   :  { %v9817_v6 = vpop.f32.mrf.mxu1  ;;  %v3233_v56 = vadd.f32 %v11191_v55, %v9613_v3  ;;  %v6446_v9 = vor.u32 %v7922_v45, %v6445_v54  ;;  %v3331_v37 = vadd.f32 %v9695_v19, %v3282_v25  ;;  %v6986_v24 = vor.u32 %v8053_v58, %v6983_v30  ;;  %v7914_v3 = vld [vmem:[#allocation11 + $0x134] sm:$0xf0]  ;;  %v11194_v19 = vld [vmem:[#allocation76_spill] sm:$0xff]  ;;  %v8045_v25 = vld [vmem:[#allocation11 + $0x554] sm:$0xf] }
 0x4ff   :  { %v4291_v18 = vmul.f32 0.01, %v3426_v39  ;;  %3574 = vmatmul.bf16.gmra.mxu3 %v11190_v13  ;;  %v6414_v44 = vor.u32 %v7914_v3, %v6413_v26  ;;  %v7906_v58 = vld [vmem:[#allocation11 + $0xf4] sm:$0xf0]  ;;  %v11196_v30 = vld [vmem:[#allocation69_spill] sm:$0xff]  ;;  %v11199_v3 = vld [vmem:[#allocation26_spill] sm:$0xff] }
 0x500   :  { %3842 = vmatpush.bf16.msra.mxu1 %v6446_v9  ;;  %v4298_v61 = vmul.f32 0.01, %v3233_v56  ;;  %3743 = vmatpush.bf16.msra.mxu3 %v6986_v24  ;;  %v11195_v9 = vld [vmem:[#allocation55_spill] sm:$0xff] }
 0x501   :  { %v4419_v8 = vmax.f32 %v3426_v39, %v4291_v18  ;;  %v6951_v18 = vld [vmem:[#allocation11 + $0x570] sm:$0xf0] }
 0x502   :  { %v3379_v16 = vpop.f32.mrf.mxu3  ;;  %v9825_v63 = vpop.f32.mrf.mxu0  ;;  %v6954_v55 = vor.u32 %v8045_v25, %v6951_v18 }
 0x503   :  { %11192 = vst [vmem:[#allocation44_spill] sm:$0xff] %v9825_v63  ;;  %v4517_v38 = vpack.c.bf16 %v4419_v8, %v4418_v2  ;;  %v3380_v23 = vadd.f32 %v3379_v16, %v3331_v37  ;;  %v3284_v2 = vadd.f32 %v11195_v9, %v9688_v31  ;;  %v6381_v8 = vld [vmem:[#allocation11 + $0xd8] sm:$0xf]  ;;  %v11197_v16 = vld [vmem:[#allocation48_spill] sm:$0xff]  ;;  %v3463_v9 = vadd.f32 %v9711_v29, %v9798_v51  ;;  %v8021_v63 = vld [vmem:[#allocation11 + $0x494] sm:$0xf] }
 0x504   :  { %v3508_v54 = vpop.f32.mrf.mxu2  ;;  %3843 = vmatpush.bf16.msra.mxu1 %v6414_v44  ;;  %v3235_v26 = vadd.f32 %v11197_v16, %v11196_v30  ;;  %3744 = vmatpush.bf16.msra.mxu3 %v6954_v55  ;;  %v6919_v44 = vld [vmem:[#allocation11 + $0x530] sm:$0xf0]  ;;  %v11202_v16 = vld [vmem:[#allocation27_spill] sm:$0xff] }
 0x505   :  { %4581 = vst [vmem:[#allocation2 + $0xe8] sm:$0xff] %v4517_v38  ;;  %v3429_v15 = vadd.f32 %v11194_v19, %v3380_v23  ;;  %v9830_v39 = vadd.f32 %v3508_v54, %v3460_v50  ;;  %v6382_v38 = vor.u32 %v7906_v58, %v6381_v8  ;;  %v4426_v23 = vmax.f32 %v3233_v56, %v4298_v61  ;;  %v8037_v54 = vld [vmem:[#allocation11 + $0x514] sm:$0xf]  ;;  %v6349_v56 = vld [vmem:[#allocation11 + $0x98] sm:$0xf] }
 0x506   :  { %v9832_v45 = vpop.f32.mrf.mxu1  ;;  %v3333_v50 = vadd.f32 %v9708_v60, %v3284_v2  ;;  %v6922_v18 = vor.u32 %v8037_v54, %v6919_v44  ;;  %v7898_v61 = vld [vmem:[#allocation11 + $0xb4] sm:$0xf0]  ;;  %v4306_v60 = vmul.f32 0.01, %v3235_v26  ;;  %v6887_v54 = vld [vmem:[#allocation11 + $0x4f0] sm:$0xf0] }
 0x507   :  { %v4299_v37 = vmul.f32 0.01, %v3429_v15  ;;  %v6350_v2 = vor.u32 %v7898_v61, %v6349_v56  ;;  %v11205_v56 = vld [vmem:[#allocation57_spill] sm:$0xff] }
 0x508   :  { %3844 = vmatpush.bf16.msra.mxu1 %v6382_v38  ;;  %3745 = vmatpush.bf16.msra.mxu3 %v6922_v18  ;;  %v8029_v38 = vld [vmem:[#allocation11 + $0x4d4] sm:$0xf]  ;;  %v6317_v18 = vld [vmem:[#allocation11 + $0x58] sm:$0xf] }
 0x509   :  { %v4427_v24 = vmax.f32 %v3429_v15, %v4299_v37  ;;  %3677 = vmatmul.bf16.gmra.mxu1 %v11198_v27  ;;  %3706 = vmatmul.bf16.gmra.mxu2 %v11199_v3  ;;  %v11201_v37 = vld [vmem:[#allocation78_spill] sm:$0xff]  ;;  %v6890_v29 = vor.u32 %v8029_v38, %v6887_v54  ;;  %v6285_v27 = vld [vmem:[#allocation11 + $0x18] sm:$0xf] }
 0x50a   :  { %v3381_v19 = vpop.f32.mrf.mxu3  ;;  %v9841_v25 = vpop.f32.mrf.mxu0 }
 0x50b   :  { %11200 = vst [vmem:[#allocation45_spill] sm:$0xff] %v9841_v25  ;;  %v4521_v55 = vpack.c.bf16 %v4427_v24, %v4426_v23  ;;  %v3382_v8 = vadd.f32 %v3381_v19, %v3333_v50  ;;  %v11203_v23 = vld [vmem:[#allocation40_spill] sm:$0xff]  ;;  %v11204_v19 = vld [vmem:[#allocation46_spill] sm:$0xff] }
 0x50c   :  { %v3511_v15 = vpop.f32.mrf.mxu2  ;;  %3845 = vmatpush.bf16.msra.mxu1 %v6350_v2  ;;  %v3287_v50 = vadd.f32 %v11203_v23, %v9688_v31  ;;  %3746 = vmatpush.bf16.msra.mxu3 %v6890_v29  ;;  %v6855_v2 = vld [vmem:[#allocation11 + $0x4b0] sm:$0xf0] }
 0x50d   :  { %4585 = vst [vmem:[#allocation2 + $0x108] sm:$0xff] %v4521_v55  ;;  %v3431_v58 = vadd.f32 %v11201_v37, %v3382_v8  ;;  %v9846_v30 = vadd.f32 %v3511_v15, %v3463_v9  ;;  %3809 = vmatmul.bf16.gmra.mxu0 %v11202_v16  ;;  %v7890_v55 = vld [vmem:[#allocation11 + $0x74] sm:$0xf0]  ;;  %v4434_v15 = vmax.f32 %v3235_v26, %v4306_v60 }
 0x50e   :  { %v9849_v44 = vpop.f32.mrf.mxu1  ;;  %v11206_v8 = vld [vmem:[#allocation63_spill] sm:$0xff]  ;;  %v6318_v61 = vor.u32 %v7890_v55, %v6317_v18  ;;  %v3336_v37 = vadd.f32 %v9722_v36, %v3287_v50  ;;  %v6858_v23 = vor.u32 %v8021_v63, %v6855_v2  ;;  %v11208_v36 = vld [vmem:[#allocation77_spill] sm:$0xff]  ;;  %v8013_v50 = vld [vmem:[#allocation11 + $0x454] sm:$0xf] }
 0x50f   :  { %v4307_v24 = vmul.f32 0.01, %v3431_v58  ;;  %3579 = vmatmul.bf16.gmra.mxu3 %v11204_v19  ;;  %v3238_v9 = vadd.f32 %v11206_v8, %v11205_v56  ;;  %v3465_v19 = vadd.f32 %v9726_v47, %v9798_v51  ;;  %v7882_v56 = vld [vmem:[#allocation11 + $0x34] sm:$0xf0]  ;;  %v11209_v47 = vld [vmem:[#allocation72_spill] sm:$0xff]  ;;  %v11213_v2 = vld [vmem:[#allocation29_spill] sm:$0xff] }
 0x510   :  { %3846 = vmatpush.bf16.msra.mxu1 %v6318_v61  ;;  %3747 = vmatpush.bf16.msra.mxu3 %v6858_v23  ;;  %v6286_v26 = vor.u32 %v7882_v56, %v6285_v27  ;;  %v6791_v23 = vld [vmem:[#allocation11 + $0x430] sm:$0xf0] }
 0x511   :  { %v4435_v25 = vmax.f32 %v3431_v58, %v4307_v24  ;;  %v4314_v29 = vmul.f32 0.01, %v3238_v9  ;;  %v6823_v24 = vld [vmem:[#allocation11 + $0x470] sm:$0xf0] }
 0x512   :  { %v3384_v38 = vpop.f32.mrf.mxu3  ;;  %v9857_v54 = vpop.f32.mrf.mxu0  ;;  %v6826_v63 = vor.u32 %v8013_v50, %v6823_v24 }
 0x513   :  { %11207 = vst [vmem:[#allocation47_spill] sm:$0xff] %v9857_v54  ;;  %v4525_v16 = vpack.c.bf16 %v4435_v25, %v4434_v15  ;;  %v3385_v3 = vadd.f32 %v3384_v38, %v3336_v37  ;;  %v3289_v25 = vadd.f32 %v11209_v47, %v9688_v31  ;;  %v4442_v61 = vmax.f32 %v3238_v9, %v4314_v29  ;;  %v11210_v15 = vld [vmem:[#allocation71_spill] sm:$0xff]  ;;  %v11211_v37 = vld [vmem:[#allocation66_spill] sm:$0xff] }
 0x514   :  { %v3513_v18 = vpop.f32.mrf.mxu2  ;;  %3847 = vmatpush.bf16.msra.mxu1 %v6286_v26  ;;  %3748 = vmatpush.bf16.msra.mxu3 %v6826_v63  ;;  %v3240_v27 = vadd.f32 %v11211_v37, %v11210_v15  ;;  %v8005_v38 = vld [vmem:[#allocation11 + $0x414] sm:$0xf]  ;;  %v3468_v9 = vadd.f32 %v9739_v0, %v9798_v51  ;;  %v11217_v37 = vld [vmem:[#allocation49_spill] sm:$0xff] }
 0x515   :  { %4589 = vst [vmem:[#allocation2 + $0x128] sm:$0xff] %v4525_v16  ;;  %v3434_v60 = vadd.f32 %v11208_v36, %v3385_v3  ;;  %v9862_v58 = vadd.f32 %v3513_v18, %v3465_v19  ;;  %v3338_v16 = vadd.f32 %v9736_v59, %v3289_v25  ;;  %v11212_v19 = vld [vmem:[#allocation28_spill] sm:$0xff]  ;;  %v6794_v26 = vor.u32 %v8005_v38, %v6791_v23  ;;  %v11215_v63 = vld [vmem:[#allocation30_spill] sm:$0xff] }
 0x516   :  { %v9864_v55 = vpop.f32.mrf.mxu1  ;;  %v4322_v24 = vmul.f32 0.01, %v3240_v27  ;;  %v11216_v25 = vld [vmem:[#allocation54_spill] sm:$0xff] }
 0x517   :  { %v4315_v8 = vmul.f32 0.01, %v3434_v60  ;;  %v11218_v0 = vld [vmem:[#allocation58_spill] sm:$0xff] }
 0x518   :  { %3749 = vmatpush.bf16.msra.mxu3 %v6794_v26  ;;  %v3470_v26 = vadd.f32 %v9754_v52, %v9798_v51 }
 0x519   :  { %v4443_v3 = vmax.f32 %v3434_v60, %v4315_v8  ;;  %3682 = vmatmul.bf16.gmra.mxu1 %v11212_v19  ;;  %3711 = vmatmul.bf16.gmra.mxu2 %v11213_v2  ;;  %v3292_v8 = vadd.f32 %v11216_v25, %v9688_v31 }
 0x51a   :  { %v3386_v56 = vpop.f32.mrf.mxu3  ;;  %v9873_v18 = vpop.f32.mrf.mxu0 }
 0x51b   :  { %11214 = vst [vmem:[#allocation62_spill] sm:$0xff] %v9873_v18  ;;  %v4529_v29 = vpack.c.bf16 %v4443_v3, %v4442_v61  ;;  %v3387_v36 = vadd.f32 %v3386_v56, %v3338_v16  ;;  %v11219_v61 = vld [vmem:[#allocation50_spill] sm:$0xff]  ;;  %v4450_v3 = vmax.f32 %v3240_v27, %v4322_v24  ;;  %v3341_v38 = vadd.f32 %v9750_v12, %v3292_v8  ;;  %v11222_v8 = vld [vmem:[#allocation59_spill] sm:$0xff] }
 0x51c   :  { %v3516_v50 = vpop.f32.mrf.mxu2  ;;  %v3243_v16 = vadd.f32 %v11219_v61, %v11218_v0  ;;  %v11221_v12 = vld [vmem:[#allocation74_spill] sm:$0xff] }
 0x51d   :  { %4593 = vst [vmem:[#allocation2 + $0x148] sm:$0xff] %v4529_v29  ;;  %v3436_v59 = vadd.f32 %v9706_v20, %v3387_v36  ;;  %v9878_v60 = vadd.f32 %v3516_v50, %v3468_v9  ;;  %3814 = vmatmul.bf16.gmra.mxu0 %v11215_v63  ;;  %v3294_v27 = vadd.f32 %v11221_v12, %v9688_v31 }
 0x51e   :  { %v9881_v47 = vpop.f32.mrf.mxu1  ;;  %v4330_v36 = vmul.f32 0.01, %v3243_v16 }
 0x51f   :  { %v4323_v15 = vmul.f32 0.01, %v3436_v59  ;;  %3584 = vmatmul.bf16.gmra.mxu3 %v11217_v37  ;;  %v3343_v52 = vadd.f32 %v9764_v28, %v3294_v27  ;;  %v11227_v27 = vld [vmem:[#allocation33_spill] sm:$0xff] }
 0x521   :  { %v4451_v23 = vmax.f32 %v3436_v59, %v4323_v15  ;;  %v4458_v59 = vmax.f32 %v3243_v16, %v4330_v36  ;;  %v11223_v15 = vld [vmem:[#allocation65_spill] sm:$0xff]  ;;  %v8130_v16 = vld [vmem:[#allocation11 + $0x7f4] sm:$0xf0] }
 0x522   :  { %v3389_v20 = vpop.f32.mrf.mxu3  ;;  %v9889_v56 = vpop.f32.mrf.mxu0  ;;  %v3245_v61 = vadd.f32 %v11223_v15, %v11222_v8  ;;  %v11228_v15 = vld [vmem:[#allocation73_spill] sm:$0xff] }
 0x523   :  { %11220 = vst [vmem:[#allocation53_spill] sm:$0xff] %v9889_v56  ;;  %v4533_v9 = vpack.c.bf16 %v4451_v23, %v4450_v3  ;;  %v3390_v29 = vadd.f32 %v3389_v20, %v3341_v38  ;;  %v11224_v38 = vld [vmem:[#allocation31_spill] sm:$0xff]  ;;  %v11225_v23 = vld [vmem:[#allocation32_spill] sm:$0xff] }
 0x524   :  { %v3518_v50 = vpop.f32.mrf.mxu2  ;;  %v4338_v8 = vmul.f32 0.01, %v3245_v61 }
 0x525   :  { %4597 = vst [vmem:[#allocation2 + $0x168] sm:$0xff] %v4533_v9  ;;  %v3439_v25 = vadd.f32 %v9720_v14, %v3390_v29  ;;  %v9894_v18 = vadd.f32 %v3518_v50, %v3470_v26  ;;  %v3473_v26 = vadd.f32 %v9767_v7, %v9798_v51  ;;  %v7277_v50 = vld [vmem:[#allocation11 + $0x7d8] sm:$0xf]  ;;  %v3297_v7 = vadd.f32 %v11228_v15, %v9688_v31 }
 0x526   :  { %v9896_v0 = vpop.f32.mrf.mxu1  ;;  %v7278_v12 = vor.u32 %v8130_v16, %v7277_v50  ;;  %v11230_v50 = vld [vmem:[#allocation60_spill] sm:$0xff]  ;;  %v11231_v16 = vld [vmem:[#allocation51_spill] sm:$0xff] }
 0x527   :  { %v4331_v24 = vmul.f32 0.01, %v3439_v25 }
 0x528   :  { %3987 = vmatpush.bf16.msrb.mxu0 %v7278_v12  ;;  %v3475_v12 = vadd.f32 %v9782_v1, %v9798_v51  ;;  %v6765_v1 = vld [vmem:[#allocation11 + $0x3d8] sm:$0xf] }
 0x529   :  { %v4459_v3 = vmax.f32 %v3439_v25, %v4331_v24  ;;  %3687 = vmatmul.bf16.gmra.mxu1 %v11224_v38  ;;  %3716 = vmatmul.bf16.gmra.mxu2 %v11225_v23 }
 0x52a   :  { %v3391_v14 = vpop.f32.mrf.mxu3  ;;  %v9905_v20 = vpop.f32.mrf.mxu0 }
 0x52b   :  { %11226 = vst [vmem:[#allocation70_spill] sm:$0xff] %v9905_v20  ;;  %v4537_v9 = vpack.c.bf16 %v4459_v3, %v4458_v59  ;;  %v3392_v29 = vadd.f32 %v3391_v14, %v3343_v52  ;;  %v11229_v52 = vld [vmem:[#allocation52_spill] sm:$0xff]  ;;  %v7245_v3 = vld [vmem:[#allocation11 + $0x798] sm:$0xf] }
 0x52c   :  { %v3521_v36 = vpop.f32.mrf.mxu2  ;;  %v8122_v14 = vld [vmem:[#allocation11 + $0x7b4] sm:$0xf0] }
 0x52d   :  { %4601 = vst [vmem:[#allocation2 + $0x188] sm:$0xff] %v4537_v9  ;;  %v3441_v28 = vadd.f32 %v9734_v62, %v3392_v29  ;;  %v9910_v25 = vadd.f32 %v3521_v36, %v3473_v26  ;;  %3819 = vmatmul.bf16.gmra.mxu0 %v11227_v27  ;;  %v3248_v9 = vadd.f32 %v11231_v16, %v11230_v50  ;;  %v8114_v27 = vld [vmem:[#allocation11 + $0x774] sm:$0xf0] }
 0x52e   :  { %v9913_v24 = vpop.f32.mrf.mxu1  ;;  %v7246_v20 = vor.u32 %v8122_v14, %v7245_v3  ;;  %v4466_v62 = vmax.f32 %v3245_v61, %v4338_v8  ;;  %v3346_v26 = vadd.f32 %v9778_v11, %v3297_v7  ;;  %v11234_v14 = vld [vmem:[#allocation79_spill] sm:$0xff] }
 0x52f   :  { %v4339_v59 = vmul.f32 0.01, %v3441_v28  ;;  %3589 = vmatmul.bf16.gmra.mxu3 %v11229_v52  ;;  %v7213_v52 = vld [vmem:[#allocation11 + $0x758] sm:$0xf]  ;;  %v4346_v23 = vmul.f32 0.01, %v3248_v9 }
 0x530   :  { %3988 = vmatpush.bf16.msrb.mxu0 %v7246_v20  ;;  %v7214_v37 = vor.u32 %v8114_v27, %v7213_v52  ;;  %v11233_v20 = vld [vmem:[#allocation75_spill] sm:$0xff] }
 0x531   :  { %v4467_v29 = vmax.f32 %v3441_v28, %v4339_v59  ;;  %v3299_v28 = vadd.f32 %v11233_v20, %v9688_v31  ;;  %v8002_v59 = vld [vmem:[#allocation11 + $0x3f4] sm:$0xf0]  ;;  %v4474_v3 = vmax.f32 %v3248_v9, %v4346_v23  ;;  %v3478_v23 = vadd.f32 %v9800_v22, %v9798_v51 }
 0x532   :  { %v3394_v36 = vpop.f32.mrf.mxu3  ;;  %v9921_v56 = vpop.f32.mrf.mxu0  ;;  %v11235_v50 = vld [vmem:[#allocation67_spill] sm:$0xff] }
 0x533   :  { %11232 = vst [vmem:[#allocation39_spill] sm:$0xff] %v9921_v56  ;;  %v4541_v15 = vpack.c.bf16 %v4467_v29, %v4466_v62  ;;  %v3395_v54 = vadd.f32 %v3394_v36, %v3346_v26  ;;  %v3250_v16 = vadd.f32 %v11235_v50, %v11234_v14  ;;  %v6766_v62 = vor.u32 %v8002_v59, %v6765_v1  ;;  %v7181_v27 = vld [vmem:[#allocation11 + $0x718] sm:$0xf]  ;;  %v11237_v26 = vld [vmem:[#allocation24_spill] sm:$0xff] }
 0x534   :  { %v3523_v38 = vpop.f32.mrf.mxu2  ;;  %3989 = vmatpush.bf16.msrb.mxu0 %v7214_v37  ;;  %v8106_v52 = vld [vmem:[#allocation11 + $0x734] sm:$0xf0] }
 0x535   :  { %4605 = vst [vmem:[#allocation2 + $0x1a8] sm:$0xff] %v4541_v15  ;;  %v3444_v61 = vadd.f32 %v9748_v48, %v3395_v54  ;;  %v9926_v8 = vadd.f32 %v3523_v38, %v3475_v12  ;;  %v3348_v48 = vadd.f32 %v9792_v43, %v3299_v28  ;;  %v11236_v38 = vld [vmem:[#allocation34_spill] sm:$0xff]  ;;  %v7182_v37 = vor.u32 %v8106_v52, %v7181_v27  ;;  %v6733_v12 = vld [vmem:[#allocation11 + $0x398] sm:$0xf] }
 0x536   :  { %v9928_v11 = vpop.f32.mrf.mxu1  ;;  %3889 = vmatpush.bf16.msrb.mxu2 %v6766_v62  ;;  %v7994_v15 = vld [vmem:[#allocation11 + $0x3b4] sm:$0xf0] }
 0x537   :  { %v4347_v7 = vmul.f32 0.01, %v3444_v61  ;;  %v7149_v20 = vld [vmem:[#allocation11 + $0x6d8] sm:$0xf] }
 0x538   :  { %3990 = vmatpush.bf16.msrb.mxu0 %v7182_v37  ;;  %v8098_v28 = vld [vmem:[#allocation11 + $0x6f4] sm:$0xf0] }
 0x539   :  { %v4475_v54 = vmax.f32 %v3444_v61, %v4347_v7  ;;  %3721 = vmatmul.bf16.gmra.mxu2 %v11236_v38  ;;  %3848 = vmatmul.bf16.vlgmr.msra.gmra.mxu1 %v11237_v26  ;;  %v6734_v61 = vor.u32 %v7994_v15, %v6733_v12  ;;  %v4354_v7 = vmul.f32 0.01, %v3250_v16  ;;  %v11239_v14 = vld [vmem:[#allocation35_spill] sm:$0xff]  ;;  %v7150_v50 = vor.u32 %v8098_v28, %v7149_v20 }
 0x53a   :  { %v3396_v29 = vpop.f32.mrf.mxu3  ;;  %v9937_v31 = vpop.f32.mrf.mxu0  ;;  %v6701_v27 = vld [vmem:[#allocation11 + $0x358] sm:$0xf]  ;;  %v3480_v12 = vadd.f32 %v9817_v6, %v9798_v51 }
 0x53b   :  { %11238 = vst [vmem:[#allocation68_spill] sm:$0xff] %v9937_v31  ;;  %v4545_v9 = vpack.c.bf16 %v4475_v54, %v4474_v3  ;;  %v3397_v36 = vadd.f32 %v3396_v29, %v3348_v48  ;;  %3890 = vmatpush.bf16.msrb.mxu2 %v6734_v61  ;;  %v11240_v3 = vld [vmem:[#allocation36_spill] sm:$0xff]  ;;  %v7986_v52 = vld [vmem:[#allocation11 + $0x374] sm:$0xf0]  ;;  %v4482_v29 = vmax.f32 %v3250_v16, %v4354_v7  ;;  %v7918_v31 = vld [vmem:[#allocation11 + $0x15c] sm:$0xf] }
 0x53c   :  { %v3526_v43 = vpop.f32.mrf.mxu2  ;;  %3991 = vmatpush.bf16.msrb.mxu0 %v7150_v50  ;;  %v6702_v48 = vor.u32 %v7986_v52, %v6701_v27  ;;  %v7117_v54 = vld [vmem:[#allocation11 + $0x698] sm:$0xf] }
 0x53d   :  { %4609 = vst [vmem:[#allocation2 + $0x1c8] sm:$0xff] %v4545_v9  ;;  %v3446_v1 = vadd.f32 %v9762_v32, %v3397_v36  ;;  %v9942_v59 = vadd.f32 %v3526_v43, %v3478_v23  ;;  %3824 = vmatmul.bf16.gmra.mxu0 %v11239_v14  ;;  %v8090_v37 = vld [vmem:[#allocation11 + $0x6b4] sm:$0xf0] }
 0x53e   :  { %v9945_v62 = vpop.f32.mrf.mxu1  ;;  %v7118_v32 = vor.u32 %v8090_v37, %v7117_v54  ;;  %v6669_v43 = vld [vmem:[#allocation11 + $0x318] sm:$0xf] }
 0x53f   :  { %v4355_v22 = vmul.f32 0.01, %v3446_v1  ;;  %3750 = vmatmul.bf16.vlgmr.msra.gmra.mxu3 %v11240_v3  ;;  %3891 = vmatpush.bf16.msrb.mxu2 %v6702_v48  ;;  %v7978_v61 = vld [vmem:[#allocation11 + $0x334] sm:$0xf0] }
 0x540   :  { %3992 = vmatpush.bf16.msrb.mxu0 %v7118_v32  ;;  %v7085_v28 = vld [vmem:[#allocation11 + $0x658] sm:$0xf]  ;;  %v6670_v27 = vor.u32 %v7978_v61, %v6669_v43  ;;  %v3483_v32 = vadd.f32 %v9832_v45, %v9798_v51 }
 0x541   :  { %v4483_v9 = vmax.f32 %v3446_v1, %v4355_v22  ;;  %v8082_v16 = vld [vmem:[#allocation11 + $0x674] sm:$0xf0] }
 0x542   :  { %v3555_v23 = vpop.f32.mrf.mxu3  ;;  %v9948_v36 = vpop.f32.mrf.mxu0  ;;  %v7086_v1 = vor.u32 %v8082_v16, %v7085_v28  ;;  %v6637_v6 = vld [vmem:[#allocation11 + $0x2d8] sm:$0xf] }
 0x543   :  { %11241 = vst [vmem:[#allocation64_spill] sm:$0xff] %v9948_v36  ;;  %v4549_v15 = vpack.c.bf16 %v4483_v9, %v4482_v29  ;;  %v9953_v20 = vadd.f32 %v3555_v23, %v9814_v57  ;;  %3892 = vmatpush.bf16.msrb.mxu2 %v6670_v27  ;;  %v7970_v52 = vld [vmem:[#allocation11 + $0x2f4] sm:$0xf0]  ;;  %v11243_v27 = vld [vmem:[#allocation37_spill] sm:$0xff] }
 0x544   :  { %v3528_v50 = vpop.f32.mrf.mxu2  ;;  %3993 = vmatpush.bf16.msrb.mxu0 %v7086_v1  ;;  %v6638_v48 = vor.u32 %v7970_v52, %v6637_v6  ;;  %v7053_v57 = vld [vmem:[#allocation11 + $0x618] sm:$0xf]  ;;  %v3485_v52 = vadd.f32 %v9849_v44, %v9798_v51 }
 0x545   :  { %4613 = vst [vmem:[#allocation2 + $0x1e8] sm:$0xff] %v4549_v15  ;;  %v9955_v7 = vadd.f32 %v3528_v50, %v3480_v12  ;;  %v8074_v54 = vld [vmem:[#allocation11 + $0x634] sm:$0xf0] }
 0x546   :  { %v9957_v22 = vpop.f32.mrf.mxu1  ;;  %v7054_v37 = vor.u32 %v8074_v54, %v7053_v57  ;;  %v6605_v12 = vld [vmem:[#allocation11 + $0x298] sm:$0xf] }
 0x547   :  { %3893 = vmatpush.bf16.msrb.mxu2 %v6638_v48  ;;  %v7962_v15 = vld [vmem:[#allocation11 + $0x2b4] sm:$0xf0] }
 0x548   :  { %3994 = vmatpush.bf16.msrb.mxu0 %v7054_v37  ;;  %v6606_v61 = vor.u32 %v7962_v15, %v6605_v12  ;;  %v6573_v16 = vld [vmem:[#allocation11 + $0x258] sm:$0xf] }
 0x549   :  { %3726 = vmatmul.bf16.gmra.mxu2 %v8919_v46  ;;  %3853 = vmatmul.bf16.gmra.mxu1 %v8846_v21  ;;  %v7954_v1 = vld [vmem:[#allocation11 + $0x274] sm:$0xf0] }
 0x54a   :  { %v3557_v29 = vpop.f32.mrf.mxu3  ;;  %v9961_v9 = vpop.f32.mrf.mxu0  ;;  %v6574_v45 = vor.u32 %v7954_v1, %v6573_v16  ;;  %v6541_v57 = vld [vmem:[#allocation11 + $0x218] sm:$0xf] }
 0x54b   :  { %11242 = vst [vmem:[#allocation61_spill] sm:$0xff] %v9961_v9  ;;  %v9966_v23 = vadd.f32 %v3557_v29, %v9830_v39  ;;  %3894 = vmatpush.bf16.msrb.mxu2 %v6606_v61  ;;  %v7946_v54 = vld [vmem:[#allocation11 + $0x234] sm:$0xf0] }
 0x54c   :  { %v3531_v43 = vpop.f32.mrf.mxu2  ;;  %v6542_v29 = vor.u32 %v7946_v54, %v6541_v57  ;;  %v8058_v56 = vld [vmem:[#allocation11 + $0x5b4] sm:$0xf0] }
 0x54d   :  { %v9968_v28 = vadd.f32 %v3531_v43, %v3483_v32  ;;  %3829 = vmatmul.bf16.gmra.mxu0 %v8923_v42 }
 0x54e   :  { %v9971_v50 = vpop.f32.mrf.mxu1 }
 0x54f   :  { %3755 = vmatmul.bf16.gmra.mxu3 %v11243_v27  ;;  %3895 = vmatpush.bf16.msrb.mxu2 %v6574_v45 }
 0x552   :  { %v3560_v6 = vpop.f32.mrf.mxu3  ;;  %v9974_v39 = vpop.f32.mrf.mxu0 }
 0x553   :  { %11244 = vst [vmem:[#allocation76_spill] sm:$0xff] %v9974_v39  ;;  %v9979_v48 = vadd.f32 %v3560_v6, %v9846_v30  ;;  %3896 = vmatpush.bf16.msrb.mxu2 %v6542_v29  ;;  %v3488_v30 = vadd.f32 %v9864_v55, %v9798_v51 }
 0x554   :  { %v3533_v37 = vpop.f32.mrf.mxu2 }
 0x555   :  { %v9981_v32 = vadd.f32 %v3533_v37, %v3485_v52  ;;  %v3490_v52 = vadd.f32 %v9881_v47, %v9798_v51 }
 0x556   :  { %v9983_v12 = vpop.f32.mrf.mxu1 }
 0x559   :  { %3731 = vmatmul.bf16.gmra.mxu2 %v8933_v4  ;;  %3858 = vmatmul.bf16.gmra.mxu1 %v8853_v41 }
 0x55a   :  { %v3562_v15 = vpop.f32.mrf.mxu3  ;;  %v9987_v43 = vpop.f32.mrf.mxu0 }
 0x55b   :  { %11245 = vst [vmem:[#allocation55_spill] sm:$0xff] %v9987_v43  ;;  %v9992_v44 = vadd.f32 %v3562_v15, %v9862_v58  ;;  %v3493_v15 = vadd.f32 %v9896_v0, %v9798_v51 }
 0x55c   :  { %v3536_v61 = vpop.f32.mrf.mxu2 }
 0x55d   :  { %v9994_v16 = vadd.f32 %v3536_v61, %v3488_v30  ;;  %3834 = vmatmul.bf16.gmra.mxu0 %v8937_v34 }
 0x55e   :  { %v9997_v1 = vpop.f32.mrf.mxu1 }
 0x55f   :  { %3760 = vmatmul.bf16.gmra.mxu3 %v8939_v40 }
 0x562   :  { %v3565_v45 = vpop.f32.mrf.mxu3  ;;  %v10000_v6 = vpop.f32.mrf.mxu0 }
 0x563   :  { %11246 = vst [vmem:[#allocation69_spill] sm:$0xff] %v10000_v6  ;;  %v10005_v55 = vadd.f32 %v3565_v45, %v9878_v60  ;;  %v6511_v6 = vld [vmem:[#allocation11 + $0x1f8] sm:$0xf0] }
 0x564   :  { %v3538_v58 = vpop.f32.mrf.mxu2 }
 0x565   :  { %v10007_v57 = vadd.f32 %v3538_v58, %v3490_v52  ;;  %v3495_v58 = vadd.f32 %v9913_v24, %v9798_v51  ;;  %v6479_v24 = vld [vmem:[#allocation11 + $0x1b8] sm:$0xf0] }
 0x566   :  { %v10009_v54 = vpop.f32.mrf.mxu1 }
 0x569   :  { %3736 = vmatmul.bf16.gmra.mxu2 %v8947_v17  ;;  %3863 = vmatmul.bf16.gmra.mxu1 %v8857_v53 }
 0x56a   :  { %v3567_v37 = vpop.f32.mrf.mxu3  ;;  %v10013_v29 = vpop.f32.mrf.mxu0 }
 0x56b   :  { %v10018_v47 = vadd.f32 %v3567_v37, %v9894_v18 }
 0x56c   :  { %v3541_v60 = vpop.f32.mrf.mxu2 }
 0x56d   :  { %v10020_v30 = vadd.f32 %v3541_v60, %v3493_v15  ;;  %3995 = vmatmul.bf16.vlgmr.msrb.gmra.mxu0 %v8860_v35  ;;  %v7934_v60 = vld [vmem:[#allocation11 + $0x1dc] sm:$0xf] }
 0x56e   :  { %v10023_v61 = vpop.f32.mrf.mxu1  ;;  %v6514_v43 = vor.u32 %v7934_v60, %v6511_v6  ;;  %v8066_v6 = vld [vmem:[#allocation11 + $0x5f4] sm:$0xf0] }
 0x56f   :  { %11247 = vst [vmem:[#allocation48_spill] sm:$0xff] %v10023_v61  ;;  %3765 = vmatmul.bf16.gmra.mxu3 %v11074_v10 }
 0x570   :  { %4036 = vmatpush.bf16.msrb.mxu1 %v6514_v43  ;;  %v6447_v43 = vld [vmem:[#allocation11 + $0x178] sm:$0xf0] }
 0x572   :  { %v3570_v45 = vpop.f32.mrf.mxu3  ;;  %v10026_v52 = vpop.f32.mrf.mxu0 }
 0x573   :  { %v10031_v0 = vadd.f32 %v3570_v45, %v9910_v25  ;;  %v7926_v25 = vld [vmem:[#allocation11 + $0x19c] sm:$0xf] }
 0x574   :  { %v3543_v18 = vpop.f32.mrf.mxu2 }
 0x575   :  { %v10033_v37 = vadd.f32 %v3543_v18, %v3495_v58  ;;  %v6482_v58 = vor.u32 %v7926_v25, %v6479_v24  ;;  %v7021_v18 = vld [vmem:[#allocation11 + $0x5d8] sm:$0xf] }
 0x576   :  { %v10035_v15 = vpop.f32.mrf.mxu1  ;;  %v7022_v36 = vor.u32 %v8066_v6, %v7021_v18  ;;  %v6957_v6 = vld [vmem:[#allocation11 + $0x558] sm:$0xf] }
 0x577   :  { %11248 = vst [vmem:[#allocation78_spill] sm:$0xff] %v10035_v15  ;;  %4037 = vmatpush.bf16.msrb.mxu1 %v6482_v58 }
 0x578   :  { %3938 = vmatpush.bf16.msrb.mxu3 %v7022_v36 }
 0x579   :  { %3868 = vmatmul.bf16.gmra.mxu1 %v11185_v5  ;;  %3897 = vmatmul.bf16.vlgmr.msrb.gmra.mxu2 %v11186_v49  ;;  %v6383_v5 = vld [vmem:[#allocation11 + $0xf8] sm:$0xf0] }
 0x57a   :  { %v3572_v39 = vpop.f32.mrf.mxu3  ;;  %v10039_v9 = vpop.f32.mrf.mxu0 }
 0x57b   :  { %v10042_v51 = vadd.f32 %v3572_v39, %v9926_v8  ;;  %v6450_v8 = vor.u32 %v7918_v31, %v6447_v43  ;;  %v6989_v39 = vld [vmem:[#allocation11 + $0x598] sm:$0xf]  ;;  %v7902_v43 = vld [vmem:[#allocation11 + $0xdc] sm:$0xf] }
 0x57c   :  { %v10044_v45 = vpop.f32.mrf.mxu2  ;;  %v6990_v25 = vor.u32 %v8058_v56, %v6989_v39  ;;  %v11253_v56 = vld [vmem:[#allocation25_spill] sm:$0xff]  ;;  %v8042_v39 = vld [vmem:[#allocation11 + $0x534] sm:$0xf0] }
 0x57d   :  { %11249 = vst [vmem:[#allocation40_spill] sm:$0xff] %v10042_v51  ;;  %4000 = vmatmul.bf16.gmra.mxu0 %v11188_v33  ;;  %4038 = vmatpush.bf16.msrb.mxu1 %v6450_v8  ;;  %v7910_v33 = vld [vmem:[#allocation11 + $0x11c] sm:$0xf]  ;;  %v6386_v8 = vor.u32 %v7902_v43, %v6383_v5  ;;  %v8034_v43 = vld [vmem:[#allocation11 + $0x4f4] sm:$0xf0] }
 0x57e   :  { %v10047_v60 = vpop.f32.mrf.mxu1  ;;  %3939 = vmatpush.bf16.msrb.mxu3 %v6990_v25  ;;  %v7894_v25 = vld [vmem:[#allocation11 + $0x9c] sm:$0xf] }
 0x57f   :  { %11250 = vst [vmem:[#allocation57_spill] sm:$0xff] %v10047_v60  ;;  %3770 = vmatmul.bf16.gmra.mxu3 %v11190_v13  ;;  %v6415_v60 = vld [vmem:[#allocation11 + $0x138] sm:$0xf0]  ;;  %v8050_v13 = vld [vmem:[#allocation11 + $0x574] sm:$0xf0] }
 0x580   :  { %v6418_v18 = vor.u32 %v7910_v33, %v6415_v60  ;;  %v6958_v31 = vor.u32 %v8050_v13, %v6957_v6  ;;  %v6351_v13 = vld [vmem:[#allocation11 + $0xb8] sm:$0xf0] }
 0x581   :  { %v6354_v5 = vor.u32 %v7894_v25, %v6351_v13  ;;  %v11256_v6 = vld [vmem:[#allocation27_spill] sm:$0xff] }
 0x582   :  { %v3575_v15 = vpop.f32.mrf.mxu3  ;;  %v10050_v49 = vpop.f32.mrf.mxu0  ;;  %4039 = vmatpush.bf16.msrb.mxu1 %v6418_v18  ;;  %3940 = vmatpush.bf16.msrb.mxu3 %v6958_v31  ;;  %v6893_v31 = vld [vmem:[#allocation11 + $0x4d8] sm:$0xf]  ;;  %v7878_v13 = vld [vmem:[#allocation11 + $0x1c] sm:$0xf] }
 0x583   :  { %v10053_v24 = vadd.f32 %v3575_v15, %v9942_v59  ;;  %v11254_v59 = vld [vmem:[#allocation26_spill] sm:$0xff]  ;;  %v6925_v15 = vld [vmem:[#allocation11 + $0x518] sm:$0xf] }
 0x584   :  { %v10055_v58 = vpop.f32.mrf.mxu2  ;;  %v6926_v33 = vor.u32 %v8042_v39, %v6925_v15  ;;  %v6319_v15 = vld [vmem:[#allocation11 + $0x78] sm:$0xf0]  ;;  %v8026_v39 = vld [vmem:[#allocation11 + $0x4b4] sm:$0xf0] }
 0x585   :  { %11251 = vst [vmem:[#allocation63_spill] sm:$0xff] %v10053_v24 }
 0x586   :  { %v10057_v36 = vpop.f32.mrf.mxu1  ;;  %4040 = vmatpush.bf16.msrb.mxu1 %v6386_v8  ;;  %3941 = vmatpush.bf16.msrb.mxu3 %v6926_v33  ;;  %v7886_v8 = vld [vmem:[#allocation11 + $0x5c] sm:$0xf] }
 0x587   :  { %11252 = vst [vmem:[#allocation77_spill] sm:$0xff] %v10057_v36 }
 0x589   :  { %3873 = vmatmul.bf16.gmra.mxu1 %v11253_v56  ;;  %3902 = vmatmul.bf16.gmra.mxu2 %v11254_v59  ;;  %v6894_v59 = vor.u32 %v8034_v43, %v6893_v31  ;;  %v11258_v56 = vld [vmem:[#allocation46_spill] sm:$0xff]  ;;  %v6829_v43 = vld [vmem:[#allocation11 + $0x458] sm:$0xf] }
 0x58a   :  { %v3577_v24 = vpop.f32.mrf.mxu3  ;;  %v10061_v51 = vpop.f32.mrf.mxu0  ;;  %4041 = vmatpush.bf16.msrb.mxu1 %v6354_v5 }
 0x58b   :  { %v10064_v60 = vadd.f32 %v3577_v24, %v9955_v7  ;;  %3942 = vmatpush.bf16.msrb.mxu3 %v6894_v59  ;;  %v6322_v7 = vor.u32 %v7886_v8, %v6319_v15  ;;  %v6861_v24 = vld [vmem:[#allocation11 + $0x498] sm:$0xf] }
 0x58c   :  { %v10066_v18 = vpop.f32.mrf.mxu2  ;;  %v6862_v33 = vor.u32 %v8026_v39, %v6861_v24  ;;  %v6797_v15 = vld [vmem:[#allocation11 + $0x418] sm:$0xf] }
 0x58d   :  { %11255 = vst [vmem:[#allocation72_spill] sm:$0xff] %v10064_v60  ;;  %4005 = vmatmul.bf16.gmra.mxu0 %v11256_v6  ;;  %v7151_v6 = vld [vmem:[#allocation11 + $0x6f8] sm:$0xf0] }
 0x58e   :  { %v10069_v36 = vpop.f32.mrf.mxu1  ;;  %4042 = vmatpush.bf16.msrb.mxu1 %v6322_v7 }
 0x58f   :  { %11257 = vst [vmem:[#allocation71_spill] sm:$0xff] %v10069_v36  ;;  %3775 = vmatmul.bf16.gmra.mxu3 %v11258_v56  ;;  %v6287_v36 = vld [vmem:[#allocation11 + $0x38] sm:$0xf0]  ;;  %v8018_v56 = vld [vmem:[#allocation11 + $0x474] sm:$0xf0] }
 0x590   :  { %3943 = vmatpush.bf16.msrb.mxu3 %v6862_v33  ;;  %v6290_v31 = vor.u32 %v7878_v13, %v6287_v36  ;;  %v6830_v8 = vor.u32 %v8018_v56, %v6829_v43  ;;  %v11263_v33 = vld [vmem:[#allocation49_spill] sm:$0xff] }
 0x592   :  { %v3580_v60 = vpop.f32.mrf.mxu3  ;;  %v10072_v61 = vpop.f32.mrf.mxu0  ;;  %4043 = vmatpush.bf16.msrb.mxu1 %v6290_v31 }
 0x593   :  { %v10075_v25 = vadd.f32 %v3580_v60, %v9968_v28  ;;  %v8010_v28 = vld [vmem:[#allocation11 + $0x434] sm:$0xf0] }
 0x594   :  { %v10077_v5 = vpop.f32.mrf.mxu2  ;;  %3944 = vmatpush.bf16.msrb.mxu3 %v6830_v8  ;;  %v6798_v24 = vor.u32 %v8010_v28, %v6797_v15  ;;  %v11267_v28 = vld [vmem:[#allocation32_spill] sm:$0xff] }
 0x595   :  { %11259 = vst [vmem:[#allocation66_spill] sm:$0xff] %v10075_v25  ;;  %v8102_v25 = vld [vmem:[#allocation11 + $0x71c] sm:$0xf] }
 0x596   :  { %v10079_v59 = vpop.f32.mrf.mxu1 }
 0x597   :  { %11260 = vst [vmem:[#allocation54_spill] sm:$0xff] %v10079_v59  ;;  %v7279_v59 = vld [vmem:[#allocation11 + $0x7f8] sm:$0xf0] }
 0x598   :  { %3945 = vmatpush.bf16.msrb.mxu3 %v6798_v24 }
 0x599   :  { %3878 = vmatmul.bf16.gmra.mxu1 %v11212_v19  ;;  %3907 = vmatmul.bf16.gmra.mxu2 %v11213_v2 }
 0x59a   :  { %v3582_v60 = vpop.f32.mrf.mxu3  ;;  %v10083_v7 = vpop.f32.mrf.mxu0 }
 0x59b   :  { %v10086_v39 = vadd.f32 %v3582_v60, %v9981_v32  ;;  %v11266_v32 = vld [vmem:[#allocation31_spill] sm:$0xff] }
 0x59c   :  { %v10088_v36 = vpop.f32.mrf.mxu2 }
 0x59d   :  { %11261 = vst [vmem:[#allocation58_spill] sm:$0xff] %v10086_v39  ;;  %4010 = vmatmul.bf16.gmra.mxu0 %v11215_v63 }
 0x59e   :  { %v10091_v56 = vpop.f32.mrf.mxu1 }
 0x59f   :  { %11262 = vst [vmem:[#allocation50_spill] sm:$0xff] %v10091_v56  ;;  %3780 = vmatmul.bf16.gmra.mxu3 %v11263_v33  ;;  %v8126_v33 = vld [vmem:[#allocation11 + $0x7dc] sm:$0xf] }
 0x5a2   :  { %v3585_v13 = vpop.f32.mrf.mxu3  ;;  %v10094_v31 = vpop.f32.mrf.mxu0 }
 0x5a3   :  { %v10097_v43 = vadd.f32 %v3585_v13, %v9994_v16  ;;  %v7282_v16 = vor.u32 %v8126_v33, %v7279_v59  ;;  %v11270_v13 = vld [vmem:[#allocation33_spill] sm:$0xff] }
 0x5a4   :  { %v10099_v8 = vpop.f32.mrf.mxu2 }
 0x5a5   :  { %11264 = vst [vmem:[#allocation74_spill] sm:$0xff] %v10097_v43  ;;  %4183 = vmatpush.bf16.msra.mxu0 %v7282_v16  ;;  %v7998_v16 = vld [vmem:[#allocation11 + $0x3dc] sm:$0xf] }
 0x5a6   :  { %v10101_v15 = vpop.f32.mrf.mxu1 }
 0x5a7   :  { %11265 = vst [vmem:[#allocation59_spill] sm:$0xff] %v10101_v15  ;;  %v11272_v15 = vld [vmem:[#allocation52_spill] sm:$0xff] }
 0x5a9   :  { %3883 = vmatmul.bf16.gmra.mxu1 %v11266_v32  ;;  %3912 = vmatmul.bf16.gmra.mxu2 %v11267_v28  ;;  %v8118_v32 = vld [vmem:[#allocation11 + $0x79c] sm:$0xf] }
 0x5aa   :  { %v3587_v60 = vpop.f32.mrf.mxu3  ;;  %v10105_v24 = vpop.f32.mrf.mxu0  ;;  %v7247_v28 = vld [vmem:[#allocation11 + $0x7b8] sm:$0xf0] }
 0x5ab   :  { %11268 = vst [vmem:[#allocation65_spill] sm:$0xff] %v10105_v24  ;;  %v10108_v56 = vadd.f32 %v3587_v60, %v10007_v57  ;;  %v7250_v2 = vor.u32 %v8118_v32, %v7247_v28  ;;  %v8110_v60 = vld [vmem:[#allocation11 + $0x75c] sm:$0xf] }
 0x5ac   :  { %v10110_v63 = vpop.f32.mrf.mxu2  ;;  %v7183_v32 = vld [vmem:[#allocation11 + $0x738] sm:$0xf0] }
 0x5ad   :  { %11269 = vst [vmem:[#allocation73_spill] sm:$0xff] %v10108_v56  ;;  %4015 = vmatmul.bf16.gmra.mxu0 %v11270_v13  ;;  %v7215_v56 = vld [vmem:[#allocation11 + $0x778] sm:$0xf0] }
 0x5ae   :  { %v10113_v43 = vpop.f32.mrf.mxu1  ;;  %4184 = vmatpush.bf16.msra.mxu0 %v7250_v2  ;;  %v7218_v33 = vor.u32 %v8110_v60, %v7215_v56  ;;  %v7186_v2 = vor.u32 %v8102_v25, %v7183_v32  ;;  %v7990_v60 = vld [vmem:[#allocation11 + $0x39c] sm:$0xf] }
 0x5af   :  { %11271 = vst [vmem:[#allocation60_spill] sm:$0xff] %v10113_v43  ;;  %3785 = vmatmul.bf16.gmra.mxu3 %v11272_v15  ;;  %v6767_v43 = vld [vmem:[#allocation11 + $0x3f8] sm:$0xf0] }
 0x5b0   :  { %v6770_v15 = vor.u32 %v7998_v16, %v6767_v43  ;;  %v6735_v43 = vld [vmem:[#allocation11 + $0x3b8] sm:$0xf0] }
 0x5b1   :  { %v6703_v32 = vld [vmem:[#allocation11 + $0x378] sm:$0xf0] }
 0x5b2   :  { %v3590_v19 = vpop.f32.mrf.mxu3  ;;  %v10116_v39 = vpop.f32.mrf.mxu0  ;;  %4185 = vmatpush.bf16.msra.mxu0 %v7218_v33  ;;  %4085 = vmatpush.bf16.msra.mxu2 %v6770_v15  ;;  %v8094_v33 = vld [vmem:[#allocation11 + $0x6dc] sm:$0xf] }
 0x5b3   :  { %11273 = vst [vmem:[#allocation51_spill] sm:$0xff] %v10116_v39  ;;  %v10119_v57 = vadd.f32 %v3590_v19, %v10020_v30  ;;  %v11275_v19 = vld [vmem:[#allocation56_spill] sm:$0xff] }
 0x5b4   :  { %v10121_v59 = vpop.f32.mrf.mxu2  ;;  %v10128_v30 = vperm.slane %v11275_v19, 5 }
 0x5b5   :  { %11274 = vst [vmem:[#allocation75_spill] sm:$0xff] %v10119_v57 }
 0x5b6   :  { %v10123_v13 = vpop.f32.mrf.mxu1  ;;  %4186 = vmatpush.bf16.msra.mxu0 %v7186_v2  ;;  %v3654_v15 = vadd.f32 %v9928_v11, %v10128_v30  ;;  %v11278_v2 = vld [vmem:[#allocation41_spill] sm:$0xff]  ;;  %v7974_v11 = vld [vmem:[#allocation11 + $0x31c] sm:$0xf] }
 0x5b7   :  { %v3605_v19 = vadd.f32 %v11278_v2, %v9953_v20  ;;  %v7087_v20 = vld [vmem:[#allocation11 + $0x678] sm:$0xf0] }
 0x5b9   :  { %3917 = vmatmul.bf16.gmra.mxu2 %v11236_v38  ;;  %4044 = vmatmul.bf16.vlgmr.msrb.gmra.mxu1 %v11237_v26  ;;  %v6738_v38 = vor.u32 %v7990_v60, %v6735_v43  ;;  %v7154_v26 = vor.u32 %v8094_v33, %v7151_v6  ;;  %v8086_v60 = vld [vmem:[#allocation11 + $0x69c] sm:$0xf] }
 0x5ba   :  { %v3592_v28 = vpop.f32.mrf.mxu3  ;;  %v10130_v57 = vpop.f32.mrf.mxu0  ;;  %v7119_v43 = vld [vmem:[#allocation11 + $0x6b8] sm:$0xf0] }
 0x5bb   :  { %11276 = vst [vmem:[#allocation79_spill] sm:$0xff] %v10130_v57  ;;  %v10133_v56 = vadd.f32 %v3592_v28, %v10033_v37  ;;  %4086 = vmatpush.bf16.msra.mxu2 %v6738_v38  ;;  %4187 = vmatpush.bf16.msra.mxu0 %v7154_v26  ;;  %v7982_v37 = vld [vmem:[#allocation11 + $0x35c] sm:$0xf]  ;;  %v7122_v6 = vor.u32 %v8086_v60, %v7119_v43  ;;  %v4236_v57 = vmul.f32 0.01, %v3605_v19  ;;  %v11279_v43 = vld [vmem:[#allocation38_spill] sm:$0xff] }
 0x5bc   :  { %v10135_v16 = vpop.f32.mrf.mxu2  ;;  %v6706_v28 = vor.u32 %v7982_v37, %v6703_v32  ;;  %v8078_v26 = vld [vmem:[#allocation11 + $0x65c] sm:$0xf] }
 0x5bd   :  { %11277 = vst [vmem:[#allocation67_spill] sm:$0xff] %v10133_v56  ;;  %4020 = vmatmul.bf16.gmra.mxu0 %v11239_v14  ;;  %v3703_v14 = vadd.f32 %v10044_v45, %v3654_v15  ;;  %v7090_v32 = vor.u32 %v8078_v26, %v7087_v20  ;;  %v3656_v45 = vadd.f32 %v9945_v62, %v10128_v30 }
 0x5be   :  { %v10138_v25 = vpop.f32.mrf.mxu1  ;;  %v4364_v60 = vmax.f32 %v3605_v19, %v4236_v57  ;;  %v7958_v19 = vld [vmem:[#allocation11 + $0x29c] sm:$0xf] }
 0x5bf   :  { %3946 = vmatmul.bf16.vlgmr.msrb.gmra.mxu3 %v11240_v3  ;;  %4087 = vmatpush.bf16.msra.mxu2 %v6706_v28  ;;  %v6671_v3 = vld [vmem:[#allocation11 + $0x338] sm:$0xf0] }
 0x5c0   :  { %4188 = vmatpush.bf16.msra.mxu0 %v7122_v6  ;;  %v6674_v24 = vor.u32 %v7974_v11, %v6671_v3  ;;  %v6639_v28 = vld [vmem:[#allocation11 + $0x2f8] sm:$0xf0]  ;;  %v3607_v6 = vadd.f32 %v11279_v43, %v9966_v23  ;;  %v11280_v43 = vld [vmem:[#allocation42_spill] sm:$0xff] }
 0x5c1   :  { %v8070_v3 = vld [vmem:[#allocation11 + $0x61c] sm:$0xf] }
 0x5c2   :  { %v3751_v33 = vpop.f32.mrf.mxu3  ;;  %v10146_v56 = vpop.f32.mrf.mxu0  ;;  %v7055_v11 = vld [vmem:[#allocation11 + $0x638] sm:$0xf0] }
 0x5c3   :  { %v3752_v38 = vadd.f32 %v3751_v33, %v3703_v14  ;;  %4088 = vmatpush.bf16.msra.mxu2 %v6674_v24  ;;  %v7966_v14 = vld [vmem:[#allocation11 + $0x2dc] sm:$0xf]  ;;  %v7058_v24 = vor.u32 %v8070_v3, %v7055_v11 }
 0x5c4   :  { %v10148_v39 = vpop.f32.mrf.mxu2  ;;  %4189 = vmatpush.bf16.msra.mxu0 %v7090_v32  ;;  %v6642_v33 = vor.u32 %v7966_v14, %v6639_v28  ;;  %v6607_v23 = vld [vmem:[#allocation11 + $0x2b8] sm:$0xf0]  ;;  %v4244_v28 = vmul.f32 0.01, %v3607_v6 }
 0x5c5   :  { %v3801_v37 = vadd.f32 %v10013_v29, %v3752_v38  ;;  %v3705_v29 = vadd.f32 %v10055_v58, %v3656_v45  ;;  %v6610_v14 = vor.u32 %v7958_v19, %v6607_v23 }
 0x5c6   :  { %v10151_v2 = vpop.f32.mrf.mxu1  ;;  %v4372_v11 = vmax.f32 %v3607_v6, %v4244_v28 }
 0x5c7   :  { %v4237_v15 = vmul.f32 0.01, %v3801_v37  ;;  %4089 = vmatpush.bf16.msra.mxu2 %v6642_v33  ;;  %v3610_v33 = vadd.f32 %v11280_v43, %v9979_v48 }
 0x5c8   :  { %4190 = vmatpush.bf16.msra.mxu0 %v7058_v24 }
 0x5c9   :  { %v4365_v38 = vmax.f32 %v3801_v37, %v4237_v15  ;;  %3922 = vmatmul.bf16.gmra.mxu2 %v8919_v46  ;;  %4049 = vmatmul.bf16.gmra.mxu1 %v8846_v21  ;;  %v3659_v37 = vadd.f32 %v9957_v22, %v10128_v30  ;;  %v7950_v15 = vld [vmem:[#allocation11 + $0x25c] sm:$0xf]  ;;  %v4252_v19 = vmul.f32 0.01, %v3610_v33 }
 0x5ca   :  { %v3753_v62 = vpop.f32.mrf.mxu3  ;;  %v10160_v26 = vpop.f32.mrf.mxu0  ;;  %v7942_v22 = vld [vmem:[#allocation11 + $0x21c] sm:$0xf] }
 0x5cb   :  { %v4490_v20 = vpack.c.bf16 %v4365_v38, %v4364_v60  ;;  %v3754_v57 = vadd.f32 %v3753_v62, %v3705_v29  ;;  %4090 = vmatpush.bf16.msra.mxu2 %v6610_v14  ;;  %v6575_v60 = vld [vmem:[#allocation11 + $0x278] sm:$0xf0]  ;;  %v4380_v28 = vmax.f32 %v3610_v33, %v4252_v19 }
 0x5cc   :  { %v10162_v32 = vpop.f32.mrf.mxu2  ;;  %v6578_v3 = vor.u32 %v7950_v15, %v6575_v60 }
 0x5cd   :  { %4554 = vst [vmem:[#allocation2 + $0x10] sm:$0xff] %v4490_v20  ;;  %v3803_v58 = vadd.f32 %v10026_v52, %v3754_v57  ;;  %4025 = vmatmul.bf16.gmra.mxu0 %v8923_v42  ;;  %v3708_v52 = vadd.f32 %v10066_v18, %v3659_v37  ;;  %v6543_v57 = vld [vmem:[#allocation11 + $0x238] sm:$0xf0]  ;;  %v3661_v18 = vadd.f32 %v9971_v50, %v10128_v30 }
 0x5ce   :  { %v10166_v21 = vpop.f32.mrf.mxu1  ;;  %v6546_v14 = vor.u32 %v7942_v22, %v6543_v57 }
 0x5cf   :  { %v4245_v45 = vmul.f32 0.01, %v3803_v58  ;;  %3951 = vmatmul.bf16.gmra.mxu3 %v11243_v27  ;;  %4091 = vmatpush.bf16.msra.mxu2 %v6578_v3 }
 0x5d1   :  { %v4373_v29 = vmax.f32 %v3803_v58, %v4245_v45  ;;  %v11281_v58 = vld [vmem:[#allocation44_spill] sm:$0xff]  ;;  %v3710_v45 = vadd.f32 %v10077_v5, %v3661_v18  ;;  %v3664_v5 = vadd.f32 %v9983_v12, %v10128_v30 }
 0x5d2   :  { %v3756_v38 = vpop.f32.mrf.mxu3  ;;  %v10174_v24 = vpop.f32.mrf.mxu0  ;;  %v3612_v37 = vadd.f32 %v11281_v58, %v9992_v44 }
 0x5d3   :  { %v4494_v62 = vpack.c.bf16 %v4373_v29, %v4372_v11  ;;  %v3757_v20 = vadd.f32 %v3756_v38, %v3708_v52  ;;  %4092 = vmatpush.bf16.msra.mxu2 %v6546_v14 }
 0x5d4   :  { %v10176_v23 = vpop.f32.mrf.mxu2  ;;  %v4260_v50 = vmul.f32 0.01, %v3612_v37 }
 0x5d5   :  { %4558 = vst [vmem:[#allocation2 + $0x30] sm:$0xff] %v4494_v62  ;;  %v3806_v48 = vadd.f32 %v10039_v9, %v3757_v20  ;;  %v3713_v20 = vadd.f32 %v10088_v36, %v3664_v5  ;;  %v11283_v36 = vld [vmem:[#allocation47_spill] sm:$0xff] }
 0x5d6   :  { %v10179_v15 = vpop.f32.mrf.mxu1  ;;  %v4388_v62 = vmax.f32 %v3612_v37, %v4260_v50  ;;  %v3617_v37 = vadd.f32 %v11283_v36, %v10018_v47 }
 0x5d7   :  { %v4253_v6 = vmul.f32 0.01, %v3806_v48 }
 0x5d9   :  { %v4381_v60 = vmax.f32 %v3806_v48, %v4253_v6  ;;  %3927 = vmatmul.bf16.gmra.mxu2 %v8933_v4  ;;  %4054 = vmatmul.bf16.gmra.mxu1 %v8853_v41  ;;  %v11282_v41 = vld [vmem:[#allocation45_spill] sm:$0xff] }
 0x5da   :  { %v3758_v43 = vpop.f32.mrf.mxu3  ;;  %v10188_v9 = vpop.f32.mrf.mxu0  ;;  %v3615_v38 = vadd.f32 %v11282_v41, %v10005_v55  ;;  %v3666_v55 = vadd.f32 %v9997_v1, %v10128_v30  ;;  %v4276_v1 = vmul.f32 0.01, %v3617_v37 }
 0x5db   :  { %v4498_v3 = vpack.c.bf16 %v4381_v60, %v4380_v28  ;;  %v3759_v11 = vadd.f32 %v3758_v43, %v3710_v45 }
 0x5dc   :  { %v10190_v52 = vpop.f32.mrf.mxu2  ;;  %v4268_v48 = vmul.f32 0.01, %v3615_v38  ;;  %v3715_v45 = vadd.f32 %v10099_v8, %v3666_v55  ;;  %v3669_v8 = vadd.f32 %v10009_v54, %v10128_v30 }
 0x5dd   :  { %4562 = vst [vmem:[#allocation2 + $0x50] sm:$0xff] %v4498_v3  ;;  %v3808_v33 = vadd.f32 %v10050_v49, %v3759_v11  ;;  %4030 = vmatmul.bf16.gmra.mxu0 %v8937_v34 }
 0x5de   :  { %v10194_v44 = vpop.f32.mrf.mxu1  ;;  %v4396_v58 = vmax.f32 %v3615_v38, %v4268_v48  ;;  %v3718_v38 = vadd.f32 %v10110_v63, %v3669_v8  ;;  %v11285_v48 = vld [vmem:[#allocation48_spill] sm:$0xff] }
 0x5df   :  { %v4261_v29 = vmul.f32 0.01, %v3808_v33  ;;  %3956 = vmatmul.bf16.gmra.mxu3 %v8939_v40 }
 0x5e1   :  { %v4389_v22 = vmax.f32 %v3808_v33, %v4261_v29  ;;  %v11284_v29 = vld [vmem:[#allocation62_spill] sm:$0xff] }
 0x5e2   :  { %v3761_v57 = vpop.f32.mrf.mxu3  ;;  %v10202_v19 = vpop.f32.mrf.mxu0  ;;  %v3620_v41 = vadd.f32 %v11284_v29, %v10031_v0  ;;  %v10239_v0 = vld [vmem:[#allocation12] sm:$0xff] }
 0x5e3   :  { %v4502_v49 = vpack.c.bf16 %v4389_v22, %v4388_v62  ;;  %v3762_v14 = vadd.f32 %v3761_v57, %v3713_v20  ;;  %v10242_v63 = vperm.slane %v10239_v0, 6 }
 0x5e4   :  { %v10204_v18 = vpop.f32.mrf.mxu2 }
 0x5e5   :  { %4566 = vst [vmem:[#allocation2 + $0x70] sm:$0xff] %v4502_v49  ;;  %v3811_v12 = vadd.f32 %v10061_v51, %v3762_v14  ;;  %v4284_v49 = vmul.f32 0.01, %v3620_v41 }
 0x5e6   :  { %v10207_v6 = vpop.f32.mrf.mxu1 }
 0x5e7   :  { %v4269_v28 = vmul.f32 0.01, %v3811_v12 }
 0x5e9   :  { %v4397_v60 = vmax.f32 %v3811_v12, %v4269_v28  ;;  %3932 = vmatmul.bf16.gmra.mxu2 %v8947_v17  ;;  %4059 = vmatmul.bf16.gmra.mxu1 %v8857_v53  ;;  %v4404_v53 = vmax.f32 %v3617_v37, %v4276_v1  ;;  %v3671_v12 = vadd.f32 %v11285_v48, %v10128_v30  ;;  %v11286_v28 = vld [vmem:[#allocation40_spill] sm:$0xff] }
 0x5ea   :  { %v3763_v43 = vpop.f32.mrf.mxu3  ;;  %v10216_v3 = vpop.f32.mrf.mxu0  ;;  %v8202_v37 = vld [vmem:[#allocation14 + $0x38] sm:$0xff] }
 0x5eb   :  { %v4506_v51 = vpack.c.bf16 %v4397_v60, %v4396_v58  ;;  %v3764_v11 = vadd.f32 %v3763_v43, %v3715_v45  ;;  %v11287_v58 = vld [vmem:[#allocation53_spill] sm:$0xff]  ;;  %v4412_v45 = vmax.f32 %v3620_v41, %v4284_v49  ;;  %v3720_v60 = vadd.f32 %v10121_v59, %v3671_v12  ;;  %5512 = vmatpush.bf16.msra.mxu1 %v8202_v37  ;;  %v11292_v12 = vld [vmem:[#allocation43_spill] sm:$0xff] }
 0x5ec   :  { %v10218_v50 = vpop.f32.mrf.mxu2  ;;  %v3622_v36 = vadd.f32 %v11287_v58, %v11286_v28  ;;  %v11294_v28 = vld [vmem:[#allocation70_spill] sm:$0xff] }
 0x5ed   :  { %4570 = vst [vmem:[#allocation2 + $0x90] sm:$0xff] %v4506_v51  ;;  %v3813_v33 = vadd.f32 %v10072_v61, %v3764_v11  ;;  %4191 = vmatmul.bf16.vlgmr.msra.gmra.mxu0 %v8860_v35  ;;  %v11289_v51 = vld [vmem:[#allocation21_spill] sm:$0xff] }
 0x5ee   :  { %v10222_v47 = vpop.f32.mrf.mxu1 }
 0x5ef   :  { %v4277_v5 = vmul.f32 0.01, %v3813_v33  ;;  %3961 = vmatmul.bf16.gmra.mxu3 %v11074_v10 }
 0x5f1   :  { %v4405_v62 = vmax.f32 %v3813_v33, %v4277_v5  ;;  %v3850_v33 = vadd.f32 %v10123_v13, %v10242_v63  ;;  %v11291_v13 = vld [vmem:[#allocation78_spill] sm:$0xff] }
 0x5f2   :  { %v3766_v20 = vpop.f32.mrf.mxu3  ;;  %v10230_v22 = vpop.f32.mrf.mxu0 }
 0x5f3   :  { %v4510_v61 = vpack.c.bf16 %v4405_v62, %v4404_v53  ;;  %v3767_v35 = vadd.f32 %v3766_v20, %v3718_v38  ;;  %v4292_v53 = vmul.f32 0.01, %v3622_v36  ;;  %v8201_v38 = vld [vmem:[#allocation14 + $0x30] sm:$0xff]  ;;  %v11290_v62 = vld [vmem:[#allocation22_spill] sm:$0xff] }
 0x5f4   :  { %v10232_v57 = vpop.f32.mrf.mxu2  ;;  %v8062_v20 = vld [vmem:[#allocation11 + $0x5dc] sm:$0xf]  ;;  %5513 = vmatpush.bf16.msra.mxu1 %v8201_v38 }
 0x5f5   :  { %4574 = vst [vmem:[#allocation2 + $0xb0] sm:$0xff] %v4510_v61  ;;  %v3816_v54 = vadd.f32 %v10083_v7, %v3767_v35  ;;  %v11288_v7 = vld [vmem:[#allocation23_spill] sm:$0xff]  ;;  %v4420_v37 = vmax.f32 %v3622_v36, %v4292_v53  ;;  %v11295_v36 = vld [vmem:[#allocation65_spill] sm:$0xff] }
 0x5f6   :  { %v10235_v14 = vpop.f32.mrf.mxu1  ;;  %v7023_v61 = vld [vmem:[#allocation11 + $0x5f8] sm:$0xf0] }
 0x5f7   :  { %v4285_v55 = vmul.f32 0.01, %v3816_v54  ;;  %v7026_v49 = vor.u32 %v8062_v20, %v7023_v61  ;;  %v8199_v20 = vld [vmem:[#allocation14 + $0x20] sm:$0xff]  ;;  %v6959_v61 = vld [vmem:[#allocation11 + $0x578] sm:$0xf0] }
 0x5f9   :  { %v4413_v43 = vmax.f32 %v3816_v54, %v4285_v55  ;;  %4064 = vmatmul.bf16.gmra.mxu1 %v11288_v7  ;;  %4093 = vmatmul.bf16.vlgmr.msra.gmra.mxu2 %v11289_v51  ;;  %v3674_v54 = vadd.f32 %v11291_v13, %v10128_v30  ;;  %v11293_v55 = vld [vmem:[#allocation63_spill] sm:$0xff] }
 0x5fa   :  { %v3768_v11 = vpop.f32.mrf.mxu3  ;;  %v10249_v1 = vpop.f32.mrf.mxu0  ;;  %v3625_v58 = vadd.f32 %v11294_v28, %v11293_v55  ;;  %4134 = vmatpush.bf16.msra.mxu3 %v7026_v49  ;;  %v6991_v7 = vld [vmem:[#allocation11 + $0x5b8] sm:$0xf0]  ;;  %v11297_v55 = vld [vmem:[#allocation72_spill] sm:$0xff] }
 0x5fb   :  { %v4514_v8 = vpack.c.bf16 %v4413_v43, %v4412_v45  ;;  %v3769_v5 = vadd.f32 %v3768_v11, %v3720_v60  ;;  %v3723_v45 = vadd.f32 %v10135_v16, %v3674_v54  ;;  %v8054_v43 = vld [vmem:[#allocation11 + $0x59c] sm:$0xf]  ;;  %v11296_v54 = vld [vmem:[#allocation57_spill] sm:$0xff] }
 0x5fc   :  { %v3898_v29 = vpop.f32.mrf.mxu2  ;;  %v4300_v38 = vmul.f32 0.01, %v3625_v58  ;;  %v11298_v28 = vld [vmem:[#allocation39_spill] sm:$0xff] }
 0x5fd   :  { %4578 = vst [vmem:[#allocation2 + $0xd0] sm:$0xff] %v4514_v8  ;;  %v3818_v59 = vadd.f32 %v10094_v31, %v3769_v5  ;;  %v10254_v41 = vadd.f32 %v3898_v29, %v3850_v33  ;;  %4196 = vmatmul.bf16.gmra.mxu0 %v11290_v62  ;;  %v8200_v31 = vld [vmem:[#allocation14 + $0x28] sm:$0xff]  ;;  %v6994_v33 = vor.u32 %v8054_v43, %v6991_v7  ;;  %v11299_v7 = vld [vmem:[#allocation25_spill] sm:$0xff] }
 0x5fe   :  { %v10257_v35 = vpop.f32.mrf.mxu1  ;;  %5514 = vmatpush.bf16.msra.mxu1 %v8200_v31  ;;  %v3852_v8 = vadd.f32 %v10138_v25, %v10242_v63  ;;  %v3676_v25 = vadd.f32 %v11296_v54, %v10128_v30  ;;  %v3627_v31 = vadd.f32 %v11298_v28, %v11297_v55  ;;  %v11302_v54 = vld [vmem:[#allocation27_spill] sm:$0xff] }
 0x5ff   :  { %v4293_v48 = vmul.f32 0.01, %v3818_v59  ;;  %3966 = vmatmul.bf16.gmra.mxu3 %v11292_v12 }
 0x600   :  { %4135 = vmatpush.bf16.msra.mxu3 %v6994_v33  ;;  %v8038_v33 = vld [vmem:[#allocation11 + $0x51c] sm:$0xf] }
 0x601   :  { %v4421_v60 = vmax.f32 %v3818_v59, %v4293_v48  ;;  %v8046_v59 = vld [vmem:[#allocation11 + $0x55c] sm:$0xf] }
 0x602   :  { %v3771_v51 = vpop.f32.mrf.mxu3  ;;  %v10265_v11 = vpop.f32.mrf.mxu0  ;;  %5515 = vmatpush.bf16.msra.mxu1 %v8199_v20  ;;  %v6962_v13 = vor.u32 %v8046_v59, %v6959_v61  ;;  %v3855_v20 = vadd.f32 %v10151_v2, %v10242_v63  ;;  %v11303_v2 = vld [vmem:[#allocation77_spill] sm:$0xff] }
 0x603   :  { %v4518_v5 = vpack.c.bf16 %v4421_v60, %v4420_v37  ;;  %v3772_v29 = vadd.f32 %v3771_v51, %v3723_v45  ;;  %v8198_v37 = vld [vmem:[#allocation14 + $0x18] sm:$0xff]  ;;  %v4428_v45 = vmax.f32 %v3625_v58, %v4300_v38  ;;  %v3725_v60 = vadd.f32 %v10148_v39, %v3676_v25  ;;  %v11300_v51 = vld [vmem:[#allocation26_spill] sm:$0xff]  ;;  %v8197_v39 = vld [vmem:[#allocation14 + $0x10] sm:$0xff] }
 0x604   :  { %v3900_v62 = vpop.f32.mrf.mxu2  ;;  %4136 = vmatpush.bf16.msra.mxu3 %v6962_v13  ;;  %v4308_v58 = vmul.f32 0.01, %v3627_v31  ;;  %v8030_v25 = vld [vmem:[#allocation11 + $0x4dc] sm:$0xf] }
 0x605   :  { %4582 = vst [vmem:[#allocation2 + $0xf0] sm:$0xff] %v4518_v5  ;;  %v3821_v16 = vadd.f32 %v11295_v36, %v3772_v29  ;;  %v10270_v53 = vadd.f32 %v3900_v62, %v3852_v8  ;;  %v6927_v8 = vld [vmem:[#allocation11 + $0x538] sm:$0xf0] }
 0x606   :  { %v10272_v49 = vpop.f32.mrf.mxu1  ;;  %5516 = vmatpush.bf16.msra.mxu1 %v8198_v37  ;;  %v6930_v62 = vor.u32 %v8038_v33, %v6927_v8  ;;  %v3679_v37 = vadd.f32 %v11303_v2, %v10128_v30  ;;  %v8196_v33 = vld [vmem:[#allocation14 + $0x8] sm:$0xff]  ;;  %v4436_v8 = vmax.f32 %v3627_v31, %v4308_v58  ;;  %v11307_v31 = vld [vmem:[#allocation79_spill] sm:$0xff] }
 0x607   :  { %v4301_v48 = vmul.f32 0.01, %v3821_v16 }
 0x608   :  { %4137 = vmatpush.bf16.msra.mxu3 %v6930_v62 }
 0x609   :  { %v4429_v43 = vmax.f32 %v3821_v16, %v4301_v48  ;;  %4069 = vmatmul.bf16.gmra.mxu1 %v11299_v7  ;;  %4098 = vmatmul.bf16.gmra.mxu2 %v11300_v51  ;;  %v11301_v16 = vld [vmem:[#allocation51_spill] sm:$0xff]  ;;  %v11306_v7 = vld [vmem:[#allocation68_spill] sm:$0xff] }
 0x60a   :  { %v3773_v5 = vpop.f32.mrf.mxu3  ;;  %v10281_v29 = vpop.f32.mrf.mxu0  ;;  %v6895_v48 = vld [vmem:[#allocation11 + $0x4f8] sm:$0xf0]  ;;  %5517 = vmatpush.bf16.msra.mxu1 %v8197_v39 }
 0x60b   :  { %v4522_v36 = vpack.c.bf16 %v4429_v43, %v4428_v45  ;;  %v3774_v59 = vadd.f32 %v3773_v5, %v3725_v60  ;;  %v6898_v28 = vor.u32 %v8030_v25, %v6895_v48  ;;  %v11304_v60 = vld [vmem:[#allocation46_spill] sm:$0xff]  ;;  %v3728_v5 = vadd.f32 %v10162_v32, %v3679_v37  ;;  %v6831_v37 = vld [vmem:[#allocation11 + $0x478] sm:$0xf0] }
 0x60c   :  { %v3903_v38 = vpop.f32.mrf.mxu2  ;;  %v11305_v43 = vld [vmem:[#allocation66_spill] sm:$0xff] }
 0x60d   :  { %4586 = vst [vmem:[#allocation2 + $0x110] sm:$0xff] %v4522_v36  ;;  %v3823_v61 = vadd.f32 %v11301_v16, %v3774_v59  ;;  %v10286_v13 = vadd.f32 %v3903_v38, %v3855_v20  ;;  %4201 = vmatmul.bf16.gmra.mxu0 %v11302_v54  ;;  %v3630_v51 = vadd.f32 %v11306_v7, %v11305_v43  ;;  %v8022_v20 = vld [vmem:[#allocation11 + $0x49c] sm:$0xf] }
 0x60e   :  { %v10289_v55 = vpop.f32.mrf.mxu1  ;;  %4138 = vmatpush.bf16.msra.mxu3 %v6898_v28  ;;  %v6863_v36 = vld [vmem:[#allocation11 + $0x4b8] sm:$0xf0]  ;;  %5518 = vmatpush.bf16.msra.mxu1 %v8196_v33  ;;  %v3857_v16 = vadd.f32 %v10166_v21, %v10242_v63  ;;  %v8195_v28 = vld [vmem:[#allocation14] sm:$0xff] }
 0x60f   :  { %v4309_v45 = vmul.f32 0.01, %v3823_v61  ;;  %3971 = vmatmul.bf16.gmra.mxu3 %v11304_v60  ;;  %v6866_v39 = vor.u32 %v8022_v20, %v6863_v36  ;;  %v4316_v48 = vmul.f32 0.01, %v3630_v51  ;;  %v11308_v7 = vld [vmem:[#allocation71_spill] sm:$0xff] }
 0x610   :  { %v3681_v21 = vadd.f32 %v11308_v7, %v10128_v30  ;;  %v11313_v7 = vld [vmem:[#allocation30_spill] sm:$0xff] }
 0x611   :  { %v4437_v62 = vmax.f32 %v3823_v61, %v4309_v45  ;;  %v8014_v61 = vld [vmem:[#allocation11 + $0x45c] sm:$0xf] }
 0x612   :  { %v3776_v59 = vpop.f32.mrf.mxu3  ;;  %v10297_v38 = vpop.f32.mrf.mxu0  ;;  %4139 = vmatpush.bf16.msra.mxu3 %v6866_v39  ;;  %5519 = vmatpush.bf16.msra.mxu1 %v8195_v28  ;;  %v6834_v43 = vor.u32 %v8014_v61, %v6831_v37  ;;  %v3730_v36 = vadd.f32 %v10176_v23, %v3681_v21  ;;  %v11311_v39 = vld [vmem:[#allocation28_spill] sm:$0xff] }
 0x613   :  { %v4526_v54 = vpack.c.bf16 %v4437_v62, %v4436_v8  ;;  %v3777_v25 = vadd.f32 %v3776_v59, %v3728_v5  ;;  %v4444_v8 = vmax.f32 %v3630_v51, %v4316_v48  ;;  %v11309_v5 = vld [vmem:[#allocation58_spill] sm:$0xff]  ;;  %v11310_v62 = vld [vmem:[#allocation64_spill] sm:$0xff]  ;;  %v3860_v51 = vadd.f32 %v10179_v15, %v10242_v63 }
 0x614   :  { %v3905_v2 = vpop.f32.mrf.mxu2  ;;  %v3632_v20 = vadd.f32 %v11310_v62, %v11309_v5  ;;  %v11316_v15 = vld [vmem:[#allocation74_spill] sm:$0xff] }
 0x615   :  { %4590 = vst [vmem:[#allocation2 + $0x130] sm:$0xff] %v4526_v54  ;;  %v3826_v32 = vadd.f32 %v11307_v31, %v3777_v25  ;;  %v10302_v58 = vadd.f32 %v3905_v2, %v3857_v16  ;;  %v11312_v16 = vld [vmem:[#allocation29_spill] sm:$0xff]  ;;  %v8006_v54 = vld [vmem:[#allocation11 + $0x41c] sm:$0xf] }
 0x616   :  { %v10304_v45 = vpop.f32.mrf.mxu1  ;;  %4140 = vmatpush.bf16.msra.mxu3 %v6834_v43  ;;  %v6799_v25 = vld [vmem:[#allocation11 + $0x438] sm:$0xf0]  ;;  %v4324_v43 = vmul.f32 0.01, %v3632_v20 }
 0x617   :  { %v4317_v33 = vmul.f32 0.01, %v3826_v32  ;;  %v6802_v31 = vor.u32 %v8006_v54, %v6799_v25 }
 0x619   :  { %v4445_v59 = vmax.f32 %v3826_v32, %v4317_v33  ;;  %4074 = vmatmul.bf16.gmra.mxu1 %v11311_v39  ;;  %4103 = vmatmul.bf16.gmra.mxu2 %v11312_v16  ;;  %v11314_v33 = vld [vmem:[#allocation54_spill] sm:$0xff]  ;;  %v11315_v39 = vld [vmem:[#allocation49_spill] sm:$0xff] }
 0x61a   :  { %v3778_v2 = vpop.f32.mrf.mxu3  ;;  %v10313_v28 = vpop.f32.mrf.mxu0  ;;  %4141 = vmatpush.bf16.msra.mxu3 %v6802_v31  ;;  %v3684_v5 = vadd.f32 %v11314_v33, %v10128_v30 }
 0x61b   :  { %v4530_v48 = vpack.c.bf16 %v4445_v59, %v4444_v8  ;;  %v3779_v61 = vadd.f32 %v3778_v2, %v3730_v36  ;;  %v11317_v8 = vld [vmem:[#allocation61_spill] sm:$0xff]  ;;  %v4452_v59 = vmax.f32 %v3632_v20, %v4324_v43  ;;  %v3862_v2 = vadd.f32 %v10194_v44, %v10242_v63 }
 0x61c   :  { %v3908_v37 = vpop.f32.mrf.mxu2  ;;  %v3635_v36 = vadd.f32 %v11317_v8, %v11316_v15  ;;  %v3733_v16 = vadd.f32 %v10190_v52, %v3684_v5  ;;  %v11318_v52 = vld [vmem:[#allocation50_spill] sm:$0xff]  ;;  %v11319_v5 = vld [vmem:[#allocation73_spill] sm:$0xff] }
 0x61d   :  { %4594 = vst [vmem:[#allocation2 + $0x150] sm:$0xff] %v4530_v48  ;;  %v3828_v23 = vadd.f32 %v10146_v56, %v3779_v61  ;;  %v10318_v32 = vadd.f32 %v3908_v37, %v3860_v51  ;;  %4206 = vmatmul.bf16.gmra.mxu0 %v11313_v7  ;;  %v3686_v20 = vadd.f32 %v11318_v52, %v10128_v30 }
 0x61e   :  { %v10321_v21 = vpop.f32.mrf.mxu1  ;;  %v4332_v48 = vmul.f32 0.01, %v3635_v36 }
 0x61f   :  { %v4325_v62 = vmul.f32 0.01, %v3828_v23  ;;  %3976 = vmatmul.bf16.gmra.mxu3 %v11315_v39  ;;  %v3735_v44 = vadd.f32 %v10204_v18, %v3686_v20  ;;  %v11325_v20 = vld [vmem:[#allocation59_spill] sm:$0xff] }
 0x621   :  { %v4453_v54 = vmax.f32 %v3828_v23, %v4325_v62  ;;  %v4460_v23 = vmax.f32 %v3635_v36, %v4332_v48  ;;  %v11320_v62 = vld [vmem:[#allocation76_spill] sm:$0xff] }
 0x622   :  { %v3781_v56 = vpop.f32.mrf.mxu3  ;;  %v10329_v25 = vpop.f32.mrf.mxu0  ;;  %v3637_v15 = vadd.f32 %v11320_v62, %v11319_v5  ;;  %v8226_v36 = vld [vmem:[#allocation14 + $0xf8] sm:$0xff]  ;;  %v11328_v62 = vld [vmem:[#allocation55_spill] sm:$0xff] }
 0x623   :  { %v4534_v31 = vpack.c.bf16 %v4453_v54, %v4452_v59  ;;  %v3782_v51 = vadd.f32 %v3781_v56, %v3733_v16  ;;  %v11321_v59 = vld [vmem:[#allocation31_spill] sm:$0xff]  ;;  %v11322_v16 = vld [vmem:[#allocation32_spill] sm:$0xff]  ;;  %v3865_v56 = vadd.f32 %v10207_v6, %v10242_v63  ;;  %5659 = vmatpush.bf16.msrb.mxu0 %v8226_v36 }
 0x624   :  { %v3910_v61 = vpop.f32.mrf.mxu2  ;;  %v4340_v48 = vmul.f32 0.01, %v3637_v15  ;;  %v11326_v6 = vld [vmem:[#allocation52_spill] sm:$0xff] }
 0x625   :  { %4598 = vst [vmem:[#allocation2 + $0x170] sm:$0xff] %v4534_v31  ;;  %v3831_v37 = vadd.f32 %v10160_v26, %v3782_v51  ;;  %v10334_v7 = vadd.f32 %v3910_v61, %v3862_v2 }
 0x626   :  { %v10336_v33 = vpop.f32.mrf.mxu1 }
 0x627   :  { %v4333_v43 = vmul.f32 0.01, %v3831_v37 }
 0x629   :  { %v4461_v8 = vmax.f32 %v3831_v37, %v4333_v43  ;;  %4079 = vmatmul.bf16.gmra.mxu1 %v11321_v59  ;;  %4108 = vmatmul.bf16.gmra.mxu2 %v11322_v16  ;;  %v11324_v37 = vld [vmem:[#allocation33_spill] sm:$0xff]  ;;  %v3689_v43 = vadd.f32 %v11325_v20, %v10128_v30  ;;  %v4468_v59 = vmax.f32 %v3637_v15, %v4340_v48  ;;  %v8135_v20 = vld [vmem:[#allocation2 + $0x1c] sm:$0xf0] }
 0x62a   :  { %v3783_v26 = vpop.f32.mrf.mxu3  ;;  %v10345_v54 = vpop.f32.mrf.mxu0  ;;  %v7285_v48 = vld [vmem:[#allocation2] sm:$0xf] }
 0x62b   :  { %11323 = vst [vmem:[#allocation24_spill] sm:$0xff] %v10345_v54  ;;  %v4538_v2 = vpack.c.bf16 %v4461_v8, %v4460_v23  ;;  %v3784_v31 = vadd.f32 %v3783_v26, %v3735_v44  ;;  %v11327_v23 = vld [vmem:[#allocation75_spill] sm:$0xff]  ;;  %v8224_v54 = vld [vmem:[#allocation14 + $0xe8] sm:$0xff] }
 0x62c   :  { %v3913_v51 = vpop.f32.mrf.mxu2  ;;  %v3640_v44 = vadd.f32 %v11328_v62, %v11327_v23  ;;  %v8225_v8 = vld [vmem:[#allocation14 + $0xf0] sm:$0xff] }
 0x62d   :  { %4602 = vst [vmem:[#allocation2 + $0x190] sm:$0xff] %v4538_v2  ;;  %v3833_v61 = vadd.f32 %v10174_v24, %v3784_v31  ;;  %v10350_v18 = vadd.f32 %v3913_v51, %v3865_v56  ;;  %4211 = vmatmul.bf16.gmra.mxu0 %v11324_v37  ;;  %v3738_v24 = vadd.f32 %v10218_v50, %v3689_v43 }
 0x62e   :  { %v10353_v52 = vpop.f32.mrf.mxu1  ;;  %5660 = vmatpush.bf16.msrb.mxu0 %v8225_v8  ;;  %v3867_v2 = vadd.f32 %v10222_v47, %v10242_v63  ;;  %v4348_v36 = vmul.f32 0.01, %v3640_v44  ;;  %v7286_v47 = vor.u32 %v8135_v20, %v7285_v48  ;;  %v8210_v8 = vld [vmem:[#allocation14 + $0x78] sm:$0xff]  ;;  %v8209_v20 = vld [vmem:[#allocation14 + $0x70] sm:$0xff] }
 0x62f   :  { %v4341_v5 = vmul.f32 0.01, %v3833_v61  ;;  %3981 = vmatmul.bf16.gmra.mxu3 %v11326_v6  ;;  %5561 = vmatpush.bf16.msrb.mxu2 %v8210_v8  ;;  %v8222_v48 = vld [vmem:[#allocation14 + $0xd8] sm:$0xff] }
 0x630   :  { %v4476_v62 = vmax.f32 %v3640_v44, %v4348_v36  ;;  %v11336_v8 = vld [vmem:[#allocation36_spill] sm:$0xff] }
 0x631   :  { %v4469_v16 = vmax.f32 %v3833_v61, %v4341_v5  ;;  %v11330_v61 = vld [vmem:[#allocation60_spill] sm:$0xff] }
 0x632   :  { %v3786_v26 = vpop.f32.mrf.mxu3  ;;  %v10361_v56 = vpop.f32.mrf.mxu0  ;;  %5661 = vmatpush.bf16.msrb.mxu0 %v8224_v54  ;;  %v3691_v43 = vadd.f32 %v11330_v61, %v10128_v30  ;;  %v3870_v30 = vadd.f32 %v10235_v14, %v10242_v63  ;;  %v8208_v14 = vld [vmem:[#allocation14 + $0x68] sm:$0xff] }
 0x633   :  { %11329 = vst [vmem:[#allocation37_spill] sm:$0xff] %v10361_v56  ;;  %v4542_v31 = vpack.c.bf16 %v4469_v16, %v4468_v59  ;;  %v3787_v51 = vadd.f32 %v3786_v26, %v3738_v24  ;;  %v8223_v59 = vld [vmem:[#allocation14 + $0xe0] sm:$0xff]  ;;  %v11331_v24 = vld [vmem:[#allocation67_spill] sm:$0xff]  ;;  %5562 = vmatpush.bf16.msrb.mxu2 %v8209_v20 }
 0x634   :  { %v3915_v37 = vpop.f32.mrf.mxu2  ;;  %v11332_v16 = vld [vmem:[#allocation69_spill] sm:$0xff]  ;;  %v7317_v20 = vld [vmem:[#allocation2 + $0x40] sm:$0xf] }
 0x635   :  { %4606 = vst [vmem:[#allocation2 + $0x1b0] sm:$0xff] %v4542_v31  ;;  %v3836_v23 = vadd.f32 %v10188_v9, %v3787_v51  ;;  %v10366_v15 = vadd.f32 %v3915_v37, %v3867_v2  ;;  %v3642_v26 = vadd.f32 %v11332_v16, %v11331_v24  ;;  %v3740_v31 = vadd.f32 %v10232_v57, %v3691_v43  ;;  %v11333_v2 = vld [vmem:[#allocation34_spill] sm:$0xff]  ;;  %v11335_v43 = vld [vmem:[#allocation35_spill] sm:$0xff] }
 0x636   :  { %v10368_v50 = vpop.f32.mrf.mxu1  ;;  %5662 = vmatpush.bf16.msrb.mxu0 %v8223_v59 }
 0x637   :  { %v4349_v5 = vmul.f32 0.01, %v3836_v23  ;;  %v4356_v61 = vmul.f32 0.01, %v3642_v26  ;;  %5563 = vmatpush.bf16.msrb.mxu2 %v8208_v14  ;;  %v8205_v14 = vld [vmem:[#allocation14 + $0x50] sm:$0xff] }
 0x639   :  { %v4477_v9 = vmax.f32 %v3836_v23, %v4349_v5  ;;  %4113 = vmatmul.bf16.gmra.mxu2 %v11333_v2  ;;  %5520 = vmatmul.bf16.vlgmr.msra.gmra.mxu1 %v7286_v47  ;;  %v4484_v59 = vmax.f32 %v3642_v26, %v4356_v61  ;;  %v8206_v61 = vld [vmem:[#allocation14 + $0x58] sm:$0xff] }
 0x63a   :  { %v3788_v51 = vpop.f32.mrf.mxu3  ;;  %v10376_v37 = vpop.f32.mrf.mxu0  ;;  %5663 = vmatpush.bf16.msrb.mxu0 %v8222_v48 }
 0x63b   :  { %11334 = vst [vmem:[#allocation56_spill] sm:$0xff] %v10376_v37  ;;  %v4546_v54 = vpack.c.bf16 %v4477_v9, %v4476_v62  ;;  %v3789_v44 = vadd.f32 %v3788_v51, %v3740_v31  ;;  %v8221_v62 = vld [vmem:[#allocation14 + $0xd0] sm:$0xff] }
 0x63c   :  { %v3918_v36 = vpop.f32.mrf.mxu2 }
 0x63d   :  { %4610 = vst [vmem:[#allocation2 + $0x1d0] sm:$0xff] %v4546_v54  ;;  %v3838_v57 = vadd.f32 %v10202_v19, %v3789_v44  ;;  %v10381_v23 = vadd.f32 %v3918_v36, %v3870_v30  ;;  %4216 = vmatmul.bf16.gmra.mxu0 %v11335_v43  ;;  %v3872_v19 = vadd.f32 %v10257_v35, %v10242_v63  ;;  %v8143_v30 = vld [vmem:[#allocation2 + $0x5c] sm:$0xf0]  ;;  %v8207_v54 = vld [vmem:[#allocation14 + $0x60] sm:$0xff]  ;;  %v8220_v44 = vld [vmem:[#allocation14 + $0xc8] sm:$0xff] }
 0x63e   :  { %v10384_v5 = vpop.f32.mrf.mxu1  ;;  %5664 = vmatpush.bf16.msrb.mxu0 %v8221_v62  ;;  %5564 = vmatpush.bf16.msrb.mxu2 %v8207_v54  ;;  %v7318_v48 = vor.u32 %v8143_v30, %v7317_v20  ;;  %v3875_v43 = vadd.f32 %v10272_v49, %v10242_v63  ;;  %v7349_v54 = vld [vmem:[#allocation2 + $0x80] sm:$0xf] }
 0x63f   :  { %v4357_v47 = vmul.f32 0.01, %v3838_v57  ;;  %4142 = vmatmul.bf16.vlgmr.msra.gmra.mxu3 %v11336_v8 }
 0x641   :  { %v4485_v24 = vmax.f32 %v3838_v57, %v4357_v47  ;;  %v8219_v57 = vld [vmem:[#allocation14 + $0xc0] sm:$0xff] }
 0x642   :  { %v3947_v16 = vpop.f32.mrf.mxu3  ;;  %v10387_v31 = vpop.f32.mrf.mxu0  ;;  %5665 = vmatpush.bf16.msrb.mxu0 %v8220_v44  ;;  %5565 = vmatpush.bf16.msrb.mxu2 %v8206_v61 }
 0x643   :  { %11337 = vst [vmem:[#allocation41_spill] sm:$0xff] %v10387_v31  ;;  %v4550_v9 = vpack.c.bf16 %v4485_v24, %v4484_v59  ;;  %v10392_v2 = vadd.f32 %v3947_v16, %v10254_v41  ;;  %v8212_v31 = vld [vmem:[#allocation14 + $0x88] sm:$0xff] }
 0x644   :  { %v3920_v51 = vpop.f32.mrf.mxu2 }
 0x645   :  { %4614 = vst [vmem:[#allocation2 + $0x1f0] sm:$0xff] %v4550_v9  ;;  %v10394_v36 = vadd.f32 %v3920_v51, %v3872_v19  ;;  %v8151_v9 = vld [vmem:[#allocation2 + $0x9c] sm:$0xf0]  ;;  %v8203_v51 = vld [vmem:[#allocation14 + $0x40] sm:$0xff] }
 0x646   :  { %v10396_v26 = vpop.f32.mrf.mxu1  ;;  %5666 = vmatpush.bf16.msrb.mxu0 %v8219_v57  ;;  %5566 = vmatpush.bf16.msrb.mxu2 %v8205_v14 }
 0x649   :  { %4118 = vmatmul.bf16.gmra.mxu2 %v8919_v46  ;;  %5525 = vmatmul.bf16.gmra.mxu1 %v7318_v48  ;;  %v8204_v46 = vld [vmem:[#allocation14 + $0x48] sm:$0xff] }
 0x64a   :  { %v3949_v41 = vpop.f32.mrf.mxu3  ;;  %v10399_v35 = vpop.f32.mrf.mxu0  ;;  %5567 = vmatpush.bf16.msrb.mxu2 %v8204_v46 }
 0x64b   :  { %11338 = vst [vmem:[#allocation38_spill] sm:$0xff] %v10399_v35  ;;  %v10404_v47 = vadd.f32 %v3949_v41, %v10270_v53  ;;  %v3877_v53 = vadd.f32 %v10289_v55, %v10242_v63 }
 0x64c   :  { %v3923_v8 = vpop.f32.mrf.mxu2 }
 0x64d   :  { %v10406_v62 = vadd.f32 %v3923_v8, %v3875_v43  ;;  %4221 = vmatmul.bf16.gmra.mxu0 %v8923_v42  ;;  %v3882_v43 = vadd.f32 %v10321_v21, %v10242_v63  ;;  %v8159_v8 = vld [vmem:[#allocation2 + $0xdc] sm:$0xf0] }
 0x64e   :  { %v10409_v59 = vpop.f32.mrf.mxu1  ;;  %5568 = vmatpush.bf16.msrb.mxu2 %v8203_v51 }
 0x64f   :  { %4147 = vmatmul.bf16.gmra.mxu3 %v11243_v27  ;;  %v7350_v27 = vor.u32 %v8151_v9, %v7349_v54  ;;  %v8132_v9 = vld [vmem:[#allocation2 + $0xc] sm:$0xf] }
 0x652   :  { %v3952_v24 = vpop.f32.mrf.mxu3  ;;  %v10412_v16 = vpop.f32.mrf.mxu0 }
 0x653   :  { %11339 = vst [vmem:[#allocation42_spill] sm:$0xff] %v10412_v16  ;;  %v10417_v49 = vadd.f32 %v3952_v24, %v10286_v13  ;;  %v3880_v13 = vadd.f32 %v10304_v45, %v10242_v63  ;;  %v8215_v16 = vld [vmem:[#allocation14 + $0xa0] sm:$0xff] }
 0x654   :  { %v3925_v19 = vpop.f32.mrf.mxu2 }
 0x655   :  { %v10419_v42 = vadd.f32 %v3925_v19, %v3877_v53  ;;  %v7295_v53 = vld [vmem:[#allocation2 + $0x28] sm:$0xf0] }
 0x656   :  { %v10421_v30 = vpop.f32.mrf.mxu1  ;;  %v7298_v51 = vor.u32 %v8132_v9, %v7295_v53  ;;  %v8234_v9 = vld [vmem:[#allocation14 + $0x138] sm:$0xff] }
 0x657   :  { %5708 = vmatpush.bf16.msrb.mxu1 %v8234_v9  ;;  %v8231_v9 = vld [vmem:[#allocation14 + $0x120] sm:$0xff] }
 0x659   :  { %4123 = vmatmul.bf16.gmra.mxu2 %v8933_v4  ;;  %5530 = vmatmul.bf16.gmra.mxu1 %v7350_v27 }
 0x65a   :  { %v3954_v44 = vpop.f32.mrf.mxu3  ;;  %v10424_v20 = vpop.f32.mrf.mxu0 }
 0x65b   :  { %11340 = vst [vmem:[#allocation44_spill] sm:$0xff] %v10424_v20  ;;  %v10429_v55 = vadd.f32 %v3954_v44, %v10302_v58 }
 0x65c   :  { %v3928_v48 = vpop.f32.mrf.mxu2 }
 0x65d   :  { %v10431_v61 = vadd.f32 %v3928_v48, %v3880_v13  ;;  %4226 = vmatmul.bf16.gmra.mxu0 %v8937_v34  ;;  %v7381_v34 = vld [vmem:[#allocation2 + $0xc0] sm:$0xf]  ;;  %v3887_v48 = vadd.f32 %v10353_v52, %v10242_v63 }
 0x65e   :  { %v10434_v57 = vpop.f32.mrf.mxu1  ;;  %v7382_v24 = vor.u32 %v8159_v8, %v7381_v34  ;;  %v7413_v34 = vld [vmem:[#allocation2 + $0x100] sm:$0xf] }
 0x65f   :  { %4152 = vmatmul.bf16.gmra.mxu3 %v8939_v40 }
 0x662   :  { %v3957_v4 = vpop.f32.mrf.mxu3  ;;  %v10437_v41 = vpop.f32.mrf.mxu0 }
 0x663   :  { %11341 = vst [vmem:[#allocation45_spill] sm:$0xff] %v10437_v41  ;;  %v10442_v45 = vadd.f32 %v3957_v4, %v10318_v32  ;;  %v3885_v32 = vadd.f32 %v10336_v33, %v10242_v63  ;;  %v8167_v4 = vld [vmem:[#allocation2 + $0x11c] sm:$0xf0]  ;;  %v8148_v41 = vld [vmem:[#allocation2 + $0x8c] sm:$0xf] }
 0x664   :  { %v3930_v58 = vpop.f32.mrf.mxu2  ;;  %v7414_v53 = vor.u32 %v8167_v4, %v7413_v34  ;;  %v8232_v4 = vld [vmem:[#allocation14 + $0x128] sm:$0xff] }
 0x665   :  { %v10444_v14 = vadd.f32 %v3930_v58, %v3882_v43  ;;  %v7287_v43 = vld [vmem:[#allocation2 + $0x20] sm:$0xf0] }
 0x666   :  { %v10446_v46 = vpop.f32.mrf.mxu1 }
 0x669   :  { %4128 = vmatmul.bf16.gmra.mxu2 %v8947_v17  ;;  %5535 = vmatmul.bf16.gmra.mxu1 %v7382_v24  ;;  %v8131_v24 = vld [vmem:[#allocation2 + $0x4] sm:$0xf] }
 0x66a   :  { %v3959_v40 = vpop.f32.mrf.mxu3  ;;  %v10449_v19 = vpop.f32.mrf.mxu0 }
 0x66b   :  { %v10454_v21 = vadd.f32 %v3959_v40, %v10334_v7  ;;  %v7327_v40 = vld [vmem:[#allocation2 + $0x68] sm:$0xf0] }
 0x66c   :  { %v3933_v54 = vpop.f32.mrf.mxu2 }
 0x66d   :  { %v10456_v27 = vadd.f32 %v3933_v54, %v3885_v32  ;;  %5667 = vmatmul.bf16.vlgmr.msrb.gmra.mxu0 %v7298_v51 }
 0x66e   :  { %v10458_v44 = vpop.f32.mrf.mxu1 }
 0x66f   :  { %4157 = vmatmul.bf16.gmra.mxu3 %v11074_v10  ;;  %v7290_v10 = vor.u32 %v8131_v24, %v7287_v43 }
 0x672   :  { %v3962_v17 = vpop.f32.mrf.mxu3  ;;  %v10461_v13 = vpop.f32.mrf.mxu0 }
 0x673   :  { %v10466_v33 = vadd.f32 %v3962_v17, %v10350_v18  ;;  %v8140_v18 = vld [vmem:[#allocation2 + $0x4c] sm:$0xf]  ;;  %v8233_v17 = vld [vmem:[#allocation14 + $0x130] sm:$0xff] }
 0x674   :  { %v3935_v7 = vpop.f32.mrf.mxu2  ;;  %v7330_v51 = vor.u32 %v8140_v18, %v7327_v40  ;;  %5709 = vmatpush.bf16.msrb.mxu1 %v8233_v17  ;;  %v7319_v40 = vld [vmem:[#allocation2 + $0x60] sm:$0xf0] }
 0x675   :  { %v10468_v58 = vadd.f32 %v3935_v7, %v3887_v48  ;;  %v8218_v7 = vld [vmem:[#allocation14 + $0xb8] sm:$0xff] }
 0x676   :  { %v10470_v8 = vpop.f32.mrf.mxu1  ;;  %5610 = vmatpush.bf16.msrb.mxu3 %v8218_v7  ;;  %v8139_v18 = vld [vmem:[#allocation2 + $0x44] sm:$0xf]  ;;  %v8216_v7 = vld [vmem:[#allocation14 + $0xa8] sm:$0xff] }
 0x677   :  { %v7322_v17 = vor.u32 %v8139_v18, %v7319_v40  ;;  %v8228_v18 = vld [vmem:[#allocation14 + $0x108] sm:$0xff] }
 0x678   :  { %5710 = vmatpush.bf16.msrb.mxu1 %v8232_v4  ;;  %v8230_v4 = vld [vmem:[#allocation14 + $0x118] sm:$0xff] }
 0x679   :  { %5540 = vmatmul.bf16.gmra.mxu1 %v7414_v53  ;;  %5569 = vmatmul.bf16.vlgmr.msrb.gmra.mxu2 %v7290_v10  ;;  %v8175_v10 = vld [vmem:[#allocation2 + $0x15c] sm:$0xf0] }
 0x67a   :  { %v3964_v32 = vpop.f32.mrf.mxu3  ;;  %v10472_v63 = vpop.f32.mrf.mxu0 }
 0x67b   :  { %v10475_v52 = vadd.f32 %v3964_v32, %v10366_v15  ;;  %v8217_v15 = vld [vmem:[#allocation14 + $0xb0] sm:$0xff] }
 0x67c   :  { %v10477_v54 = vpop.f32.mrf.mxu2  ;;  %5611 = vmatpush.bf16.msrb.mxu3 %v8217_v15  ;;  %5711 = vmatpush.bf16.msrb.mxu1 %v8231_v9 }
 0x67d   :  { %5672 = vmatmul.bf16.gmra.mxu0 %v7330_v51 }
 0x67e   :  { %v10479_v48 = vpop.f32.mrf.mxu1 }
 0x67f   :  { %11342 = vst [vmem:[#allocation47_spill] sm:$0xff] %v10479_v48  ;;  %4162 = vmatmul.bf16.gmra.mxu3 %v11292_v12  ;;  %v7445_v12 = vld [vmem:[#allocation2 + $0x140] sm:$0xf]  ;;  %v8180_v48 = vld [vmem:[#allocation2 + $0x18c] sm:$0xf] }
 0x680   :  { %v7446_v51 = vor.u32 %v8175_v10, %v7445_v12  ;;  %5612 = vmatpush.bf16.msrb.mxu3 %v8216_v7  ;;  %5712 = vmatpush.bf16.msrb.mxu1 %v8230_v4  ;;  %v8229_v10 = vld [vmem:[#allocation14 + $0x110] sm:$0xff]  ;;  %v8214_v12 = vld [vmem:[#allocation14 + $0x98] sm:$0xff]  ;;  %v8227_v4 = vld [vmem:[#allocation14 + $0x100] sm:$0xff] }
 0x681   :  { %v8183_v7 = vld [vmem:[#allocation2 + $0x19c] sm:$0xf0] }
 0x682   :  { %v3967_v43 = vpop.f32.mrf.mxu3  ;;  %v10485_v24 = vpop.f32.mrf.mxu0 }
 0x683   :  { %v10483_v34 = vadd.f32 %v3967_v43, %v10381_v23  ;;  %v7359_v23 = vld [vmem:[#allocation2 + $0xa8] sm:$0xf0] }
 0x684   :  { %v10487_v53 = vpop.f32.mrf.mxu2  ;;  %v7362_v15 = vor.u32 %v8148_v41, %v7359_v23  ;;  %5613 = vmatpush.bf16.msrb.mxu3 %v8215_v16  ;;  %5713 = vmatpush.bf16.msrb.mxu1 %v8229_v10  ;;  %v8213_v41 = vld [vmem:[#allocation14 + $0x90] sm:$0xff]  ;;  %v7351_v23 = vld [vmem:[#allocation2 + $0xa0] sm:$0xf0] }
 0x685   :  { %v7477_v16 = vld [vmem:[#allocation2 + $0x180] sm:$0xf] }
 0x686   :  { %v10489_v32 = vpop.f32.mrf.mxu1 }
 0x687   :  { %11343 = vst [vmem:[#allocation62_spill] sm:$0xff] %v10489_v32 }
 0x688   :  { %5614 = vmatpush.bf16.msrb.mxu3 %v8214_v12  ;;  %5714 = vmatpush.bf16.msrb.mxu1 %v8228_v18 }
 0x689   :  { %5545 = vmatmul.bf16.gmra.mxu1 %v7446_v51  ;;  %5574 = vmatmul.bf16.gmra.mxu2 %v7322_v17 }
 0x68a   :  { %v3969_v43 = vpop.f32.mrf.mxu3  ;;  %v10496_v40 = vpop.f32.mrf.mxu0 }
 0x68b   :  { %v10492_v20 = vadd.f32 %v3969_v43, %v10394_v36 }
 0x68c   :  { %v10494_v35 = vpop.f32.mrf.mxu2  ;;  %5615 = vmatpush.bf16.msrb.mxu3 %v8213_v41  ;;  %5715 = vmatpush.bf16.msrb.mxu1 %v8227_v4 }
 0x68d   :  { %11344 = vst [vmem:[#allocation48_spill] sm:$0xff] %v10492_v20  ;;  %5677 = vmatmul.bf16.gmra.mxu0 %v7362_v15  ;;  %v8147_v15 = vld [vmem:[#allocation2 + $0x84] sm:$0xf] }
 0x68e   :  { %v10498_v9 = vpop.f32.mrf.mxu1  ;;  %v7354_v10 = vor.u32 %v8147_v15, %v7351_v23 }
 0x68f   :  { %11345 = vst [vmem:[#allocation40_spill] sm:$0xff] %v10498_v9  ;;  %4167 = vmatmul.bf16.gmra.mxu3 %v11304_v60  ;;  %v7478_v60 = vor.u32 %v8183_v7, %v7477_v16  ;;  %v7383_v16 = vld [vmem:[#allocation2 + $0xe0] sm:$0xf0] }
 0x690   :  { %5616 = vmatpush.bf16.msrb.mxu3 %v8212_v31 }
 0x692   :  { %v3972_v51 = vpop.f32.mrf.mxu3  ;;  %v10508_v12 = vpop.f32.mrf.mxu0 }
 0x693   :  { %v10502_v36 = vadd.f32 %v3972_v51, %v10406_v62  ;;  %v7391_v62 = vld [vmem:[#allocation2 + $0xe8] sm:$0xf0] }
 0x694   :  { %v10504_v17 = vpop.f32.mrf.mxu2  ;;  %v8156_v51 = vld [vmem:[#allocation2 + $0xcc] sm:$0xf] }
 0x695   :  { %11346 = vst [vmem:[#allocation53_spill] sm:$0xff] %v10502_v36  ;;  %v7394_v37 = vor.u32 %v8156_v51, %v7391_v62 }
 0x696   :  { %v10506_v43 = vpop.f32.mrf.mxu1 }
 0x697   :  { %11347 = vst [vmem:[#allocation23_spill] sm:$0xff] %v10506_v43  ;;  %v8211_v43 = vld [vmem:[#allocation14 + $0x80] sm:$0xff] }
 0x698   :  { %5617 = vmatpush.bf16.msrb.mxu3 %v8211_v43  ;;  %v8164_v43 = vld [vmem:[#allocation2 + $0x10c] sm:$0xf] }
 0x699   :  { %5550 = vmatmul.bf16.gmra.mxu1 %v7478_v60  ;;  %5579 = vmatmul.bf16.gmra.mxu2 %v7354_v10  ;;  %v7509_v60 = vld [vmem:[#allocation2 + $0x1c0] sm:$0xf]  ;;  %v8155_v10 = vld [vmem:[#allocation2 + $0xc4] sm:$0xf] }
 0x69a   :  { %v3974_v18 = vpop.f32.mrf.mxu3  ;;  %v10518_v7 = vpop.f32.mrf.mxu0  ;;  %v7386_v62 = vor.u32 %v8155_v10, %v7383_v16  ;;  %v7415_v10 = vld [vmem:[#allocation2 + $0x120] sm:$0xf0] }
 0x69b   :  { %v10511_v9 = vadd.f32 %v3974_v18, %v10419_v42  ;;  %v8191_v42 = vld [vmem:[#allocation2 + $0x1dc] sm:$0xf0]  ;;  %v7423_v18 = vld [vmem:[#allocation2 + $0x128] sm:$0xf0] }
 0x69c   :  { %v10513_v36 = vpop.f32.mrf.mxu2 }
 0x69d   :  { %11348 = vst [vmem:[#allocation21_spill] sm:$0xff] %v10511_v9  ;;  %5682 = vmatmul.bf16.gmra.mxu0 %v7394_v37  ;;  %v7510_v37 = vor.u32 %v8191_v42, %v7509_v60  ;;  %v8257_v42 = vld [vmem:[#allocation14 + $0x1f0] sm:$0xff]  ;;  %v10547_v9 = vperm.slane %v10239_v0, 7  ;;  %v3997_v0 = vadd.f32 %v10216_v3, %v10392_v2  ;;  %v8252_v3 = vld [vmem:[#allocation14 + $0x1c8] sm:$0xff] }
 0x69e   :  { %v10515_v41 = vpop.f32.mrf.mxu1 }
 0x69f   :  { %11349 = vst [vmem:[#allocation22_spill] sm:$0xff] %v10515_v41  ;;  %4172 = vmatmul.bf16.gmra.mxu3 %v11315_v39 }
 0x6a2   :  { %v3977_v23 = vpop.f32.mrf.mxu3 }
 0x6a3   :  { %v10521_v4 = vadd.f32 %v3977_v23, %v10431_v61  ;;  %v7426_v61 = vor.u32 %v8164_v43, %v7423_v18  ;;  %v10530_v23 = vpop.f32.mrf.mxu0  ;;  %v8163_v43 = vld [vmem:[#allocation2 + $0x104] sm:$0xf] }
 0x6a4   :  { %v10523_v31 = vpop.f32.mrf.mxu2 }
 0x6a5   :  { %11350 = vst [vmem:[#allocation78_spill] sm:$0xff] %v10521_v4  ;;  %v8258_v4 = vld [vmem:[#allocation14 + $0x1f8] sm:$0xff] }
 0x6a6   :  { %v10525_v15 = vpop.f32.mrf.mxu1  ;;  %5855 = vmatpush.bf16.msra.mxu0 %v8258_v4  ;;  %v7455_v4 = vld [vmem:[#allocation2 + $0x168] sm:$0xf0] }
 0x6a7   :  { %11351 = vst [vmem:[#allocation43_spill] sm:$0xff] %v10525_v15 }
 0x6a9   :  { %5555 = vmatmul.bf16.gmra.mxu1 %v7510_v37  ;;  %5584 = vmatmul.bf16.gmra.mxu2 %v7386_v62  ;;  %v8137_v37 = vld [vmem:[#allocation2 + $0x2c] sm:$0xf0]  ;;  %v8256_v62 = vld [vmem:[#allocation14 + $0x1e8] sm:$0xff] }
 0x6aa   :  { %v3979_v39 = vpop.f32.mrf.mxu3  ;;  %5856 = vmatpush.bf16.msra.mxu0 %v8257_v42 }
 0x6ab   :  { %v10528_v51 = vadd.f32 %v3979_v39, %v10444_v14  ;;  %v10542_v18 = vpop.f32.mrf.mxu0 }
 0x6ac   :  { %v10532_v41 = vpop.f32.mrf.mxu2 }
 0x6ad   :  { %11352 = vst [vmem:[#allocation63_spill] sm:$0xff] %v10528_v51  ;;  %5687 = vmatmul.bf16.gmra.mxu0 %v7426_v61  ;;  %v7301_v61 = vld [vmem:[#allocation2 + $0x10] sm:$0xf]  ;;  %v8136_v51 = vld [vmem:[#allocation2 + $0x24] sm:$0xf0] }
 0x6ae   :  { %v10534_v15 = vpop.f32.mrf.mxu1  ;;  %5857 = vmatpush.bf16.msra.mxu0 %v8256_v62  ;;  %v8241_v62 = vld [vmem:[#allocation14 + $0x170] sm:$0xff] }
 0x6af   :  { %11353 = vst [vmem:[#allocation70_spill] sm:$0xff] %v10534_v15  ;;  %4177 = vmatmul.bf16.gmra.mxu3 %v11326_v6  ;;  %v7418_v15 = vor.u32 %v8163_v43, %v7415_v10  ;;  %v7302_v6 = vor.u32 %v8137_v37, %v7301_v61  ;;  %v7293_v37 = vld [vmem:[#allocation2 + $0x8] sm:$0xf] }
 0x6b0   :  { %v8254_v43 = vld [vmem:[#allocation14 + $0x1d8] sm:$0xff] }
 0x6b2   :  { %v3982_v16 = vpop.f32.mrf.mxu3 }
 0x6b3   :  { %v10538_v60 = vadd.f32 %v3982_v16, %v10456_v27  ;;  %v8242_v27 = vld [vmem:[#allocation14 + $0x178] sm:$0xff]  ;;  %v8255_v16 = vld [vmem:[#allocation14 + $0x1e0] sm:$0xff] }
 0x6b4   :  { %v10540_v14 = vpop.f32.mrf.mxu2  ;;  %5757 = vmatpush.bf16.msra.mxu2 %v8242_v27  ;;  %5858 = vmatpush.bf16.msra.mxu0 %v8255_v16  ;;  %v4238_v16 = vmul.f32 0.01, %v3997_v0 }
 0x6b5   :  { %11354 = vst [vmem:[#allocation65_spill] sm:$0xff] %v10538_v60  ;;  %v8172_v60 = vld [vmem:[#allocation2 + $0x14c] sm:$0xf] }
 0x6b6   :  { %v10544_v39 = vpop.f32.mrf.mxu1  ;;  %v7458_v56 = vor.u32 %v8172_v60, %v7455_v4  ;;  %v8240_v4 = vld [vmem:[#allocation14 + $0x168] sm:$0xff] }
 0x6b8   :  { %5758 = vmatpush.bf16.msra.mxu2 %v8241_v62  ;;  %5859 = vmatpush.bf16.msra.mxu0 %v8254_v43  ;;  %v8239_v62 = vld [vmem:[#allocation14 + $0x160] sm:$0xff]  ;;  %v8171_v43 = vld [vmem:[#allocation2 + $0x144] sm:$0xf] }
 0x6b9   :  { %5589 = vmatmul.bf16.gmra.mxu2 %v7418_v15  ;;  %5716 = vmatmul.bf16.vlgmr.msrb.gmra.mxu1 %v7302_v6  ;;  %v7294_v15 = vor.u32 %v8136_v51, %v7293_v37  ;;  %v4046_v6 = vadd.f32 %v10368_v50, %v10547_v9  ;;  %v7447_v37 = vld [vmem:[#allocation2 + $0x160] sm:$0xf0]  ;;  %v8145_v50 = vld [vmem:[#allocation2 + $0x6c] sm:$0xf0] }
 0x6ba   :  { %v3984_v42 = vpop.f32.mrf.mxu3 }
 0x6bb   :  { %v10550_v32 = vadd.f32 %v3984_v42, %v10468_v58  ;;  %v10560_v58 = vpop.f32.mrf.mxu0  ;;  %v4095_v60 = vadd.f32 %v10477_v54, %v4046_v6  ;;  %v4048_v54 = vadd.f32 %v10384_v5, %v10547_v9 }
 0x6bc   :  { %v10552_v10 = vpop.f32.mrf.mxu2  ;;  %11356 = vst [vmem:[#allocation72_spill] sm:$0xff] %v10560_v58  ;;  %5759 = vmatpush.bf16.msra.mxu2 %v8240_v4  ;;  %v7487_v58 = vld [vmem:[#allocation2 + $0x1a8] sm:$0xf0] }
 0x6bd   :  { %11355 = vst [vmem:[#allocation57_spill] sm:$0xff] %v10550_v32  ;;  %5692 = vmatmul.bf16.gmra.mxu0 %v7458_v56  ;;  %v8253_v56 = vld [vmem:[#allocation14 + $0x1d0] sm:$0xff]  ;;  %v7333_v32 = vld [vmem:[#allocation2 + $0x50] sm:$0xf] }
 0x6be   :  { %v10554_v61 = vpop.f32.mrf.mxu1  ;;  %5860 = vmatpush.bf16.msra.mxu0 %v8253_v56  ;;  %v7334_v4 = vor.u32 %v8145_v50, %v7333_v32  ;;  %v3999_v56 = vadd.f32 %v10230_v22, %v10404_v47 }
 0x6bf   :  { %5618 = vmatmul.bf16.vlgmr.msrb.gmra.mxu3 %v7294_v15 }
 0x6c0   :  { %5760 = vmatpush.bf16.msra.mxu2 %v8239_v62  ;;  %v7325_v62 = vld [vmem:[#allocation2 + $0x48] sm:$0xf]  ;;  %v4246_v22 = vmul.f32 0.01, %v3999_v56 }
 0x6c2   :  { %v4143_v51 = vpop.f32.mrf.mxu3  ;;  %5861 = vmatpush.bf16.msra.mxu0 %v8252_v3 }
 0x6c3   :  { %v4144_v27 = vadd.f32 %v4143_v51, %v4095_v60  ;;  %v7450_v60 = vor.u32 %v8171_v43, %v7447_v37  ;;  %v4366_v51 = vmax.f32 %v3997_v0, %v4238_v16  ;;  %v10573_v20 = vpop.f32.mrf.mxu0  ;;  %v8144_v37 = vld [vmem:[#allocation2 + $0x64] sm:$0xf0]  ;;  %v7490_v0 = vor.u32 %v8180_v48, %v7487_v58 }
 0x6c4   :  { %v10563_v42 = vpop.f32.mrf.mxu2  ;;  %v4051_v43 = vadd.f32 %v10396_v26, %v10547_v9  ;;  %v4002_v48 = vadd.f32 %v10249_v1, %v10417_v49  ;;  %v4374_v58 = vmax.f32 %v3999_v56, %v4246_v22  ;;  %v7479_v26 = vld [vmem:[#allocation2 + $0x1a0] sm:$0xf0]  ;;  %v8235_v1 = vld [vmem:[#allocation14 + $0x140] sm:$0xff] }
 0x6c5   :  { %11357 = vst [vmem:[#allocation39_spill] sm:$0xff] %v10563_v42  ;;  %v4193_v15 = vadd.f32 %v10449_v19, %v4144_v27  ;;  %v4097_v19 = vadd.f32 %v10487_v53, %v4048_v54  ;;  %v8251_v42 = vld [vmem:[#allocation14 + $0x1c0] sm:$0xff]  ;;  %v7326_v53 = vor.u32 %v8144_v37, %v7325_v62 }
 0x6c6   :  { %v10566_v2 = vpop.f32.mrf.mxu1  ;;  %5862 = vmatpush.bf16.msra.mxu0 %v8251_v42  ;;  %v4100_v42 = vadd.f32 %v10494_v35, %v4051_v43  ;;  %v8179_v35 = vld [vmem:[#allocation2 + $0x184] sm:$0xf]  ;;  %v7365_v56 = vld [vmem:[#allocation2 + $0x90] sm:$0xf] }
 0x6c7   :  { %11358 = vst [vmem:[#allocation25_spill] sm:$0xff] %v10566_v2  ;;  %v4239_v6 = vmul.f32 0.01, %v4193_v15  ;;  %v8238_v2 = vld [vmem:[#allocation14 + $0x158] sm:$0xff] }
 0x6c8   :  { %5761 = vmatpush.bf16.msra.mxu2 %v8238_v2 }
 0x6c9   :  { %v4367_v27 = vmax.f32 %v4193_v15, %v4239_v6  ;;  %5594 = vmatmul.bf16.gmra.mxu2 %v7450_v60  ;;  %5721 = vmatmul.bf16.gmra.mxu1 %v7334_v4  ;;  %v8237_v15 = vld [vmem:[#allocation14 + $0x150] sm:$0xff]  ;;  %v8236_v6 = vld [vmem:[#allocation14 + $0x148] sm:$0xff] }
 0x6ca   :  { %v4145_v5 = vpop.f32.mrf.mxu3 }
 0x6cb   :  { %v4491_v32 = vpack.c.bf16 %v4367_v27, %v4366_v51  ;;  %v4146_v50 = vadd.f32 %v4145_v5, %v4097_v19  ;;  %v4254_v51 = vmul.f32 0.01, %v4002_v48  ;;  %v10585_v19 = vpop.f32.mrf.mxu0  ;;  %v8153_v5 = vld [vmem:[#allocation2 + $0xac] sm:$0xf0] }
 0x6cc   :  { %v10575_v16 = vpop.f32.mrf.mxu2  ;;  %5762 = vmatpush.bf16.msra.mxu2 %v8237_v15  ;;  %v7366_v62 = vor.u32 %v8153_v5, %v7365_v56 }
 0x6cd   :  { %4555 = vst [vmem:[#allocation2 + $0x18] sm:$0xff] %v4491_v32  ;;  %v4195_v47 = vadd.f32 %v10461_v13, %v4146_v50  ;;  %5697 = vmatmul.bf16.gmra.mxu0 %v7490_v0  ;;  %v4053_v32 = vadd.f32 %v10409_v59, %v10547_v9  ;;  %v7482_v0 = vor.u32 %v8179_v35, %v7479_v26 }
 0x6ce   :  { %v10578_v3 = vpop.f32.mrf.mxu1  ;;  %v4382_v22 = vmax.f32 %v4002_v48, %v4254_v51  ;;  %v4007_v26 = vadd.f32 %v10281_v29, %v10442_v45  ;;  %v4058_v29 = vadd.f32 %v10434_v57, %v10547_v9 }
 0x6cf   :  { %v4247_v54 = vmul.f32 0.01, %v4195_v47  ;;  %5623 = vmatmul.bf16.gmra.mxu3 %v7326_v53  ;;  %v4004_v53 = vadd.f32 %v10265_v11, %v10429_v55  ;;  %v4102_v15 = vadd.f32 %v10504_v17, %v4053_v32 }
 0x6d0   :  { %5763 = vmatpush.bf16.msra.mxu2 %v8236_v6  ;;  %v4270_v32 = vmul.f32 0.01, %v4007_v26 }
 0x6d1   :  { %v4375_v2 = vmax.f32 %v4195_v47, %v4247_v54  ;;  %v7519_v47 = vld [vmem:[#allocation2 + $0x1e8] sm:$0xf0] }
 0x6d2   :  { %v4148_v13 = vpop.f32.mrf.mxu3  ;;  %v8188_v54 = vld [vmem:[#allocation2 + $0x1cc] sm:$0xf] }
 0x6d3   :  { %v4495_v60 = vpack.c.bf16 %v4375_v2, %v4374_v58  ;;  %v4149_v4 = vadd.f32 %v4148_v13, %v4100_v42  ;;  %v8152_v58 = vld [vmem:[#allocation2 + $0xa4] sm:$0xf0]  ;;  %v7522_v59 = vor.u32 %v8188_v54, %v7519_v47  ;;  %v10600_v55 = vpop.f32.mrf.mxu0  ;;  %v8187_v47 = vld [vmem:[#allocation2 + $0x1c4] sm:$0xf] }
 0x6d4   :  { %v10587_v27 = vpop.f32.mrf.mxu2  ;;  %5764 = vmatpush.bf16.msra.mxu2 %v8235_v1  ;;  %v7357_v13 = vld [vmem:[#allocation2 + $0x88] sm:$0xf] }
 0x6d5   :  { %4559 = vst [vmem:[#allocation2 + $0x38] sm:$0xff] %v4495_v60  ;;  %v4198_v37 = vadd.f32 %v10472_v63, %v4149_v4  ;;  %v4262_v60 = vmul.f32 0.01, %v4004_v53  ;;  %v7358_v11 = vor.u32 %v8152_v58, %v7357_v13  ;;  %v4056_v4 = vadd.f32 %v10421_v30, %v10547_v9  ;;  %v8160_v13 = vld [vmem:[#allocation2 + $0xe4] sm:$0xf0] }
 0x6d6   :  { %v10590_v49 = vpop.f32.mrf.mxu1  ;;  %v4009_v58 = vadd.f32 %v10297_v38, %v10454_v21 }
 0x6d7   :  { %v4255_v50 = vmul.f32 0.01, %v4198_v37  ;;  %v4390_v5 = vmax.f32 %v4004_v53, %v4262_v60 }
 0x6d9   :  { %v4383_v63 = vmax.f32 %v4198_v37, %v4255_v50  ;;  %5599 = vmatmul.bf16.gmra.mxu2 %v7482_v0  ;;  %5726 = vmatmul.bf16.gmra.mxu1 %v7366_v62  ;;  %v4105_v37 = vadd.f32 %v10513_v36, %v4056_v4  ;;  %v7511_v0 = vld [vmem:[#allocation2 + $0x1e0] sm:$0xf0]  ;;  %v8161_v62 = vld [vmem:[#allocation2 + $0xec] sm:$0xf0]  ;;  %v7389_v4 = vld [vmem:[#allocation2 + $0xc8] sm:$0xf] }
 0x6da   :  { %v4150_v43 = vpop.f32.mrf.mxu3  ;;  %v7514_v36 = vor.u32 %v8187_v47, %v7511_v0  ;;  %v7390_v38 = vor.u32 %v8160_v13, %v7389_v4  ;;  %v8169_v47 = vld [vmem:[#allocation2 + $0x12c] sm:$0xf0]  ;;  %v7421_v4 = vld [vmem:[#allocation2 + $0x108] sm:$0xf] }
 0x6db   :  { %v4499_v42 = vpack.c.bf16 %v4383_v63, %v4382_v22  ;;  %v4151_v2 = vadd.f32 %v4150_v43, %v4102_v15  ;;  %v7397_v15 = vld [vmem:[#allocation2 + $0xd0] sm:$0xf]  ;;  %v4398_v63 = vmax.f32 %v4007_v26, %v4270_v32  ;;  %v10616_v43 = vpop.f32.mrf.mxu0 }
 0x6dc   :  { %v10597_v6 = vpop.f32.mrf.mxu2  ;;  %v7398_v53 = vor.u32 %v8161_v62, %v7397_v15  ;;  %v7311_v54 = vld [vmem:[#allocation2 + $0x38] sm:$0xf0]  ;;  %v7303_v15 = vld [vmem:[#allocation2 + $0x30] sm:$0xf0] }
 0x6dd   :  { %4563 = vst [vmem:[#allocation2 + $0x58] sm:$0xff] %v4499_v42  ;;  %v4200_v48 = vadd.f32 %v10485_v24, %v4151_v2  ;;  %5702 = vmatmul.bf16.gmra.mxu0 %v7522_v59  ;;  %v4107_v42 = vadd.f32 %v10523_v31, %v4058_v29  ;;  %v8134_v59 = vld [vmem:[#allocation2 + $0x1c] sm:$0xf]  ;;  %v4061_v31 = vadd.f32 %v10446_v46, %v10547_v9 }
 0x6de   :  { %v10602_v17 = vpop.f32.mrf.mxu1 }
 0x6df   :  { %v4263_v51 = vmul.f32 0.01, %v4200_v48  ;;  %5628 = vmatmul.bf16.gmra.mxu3 %v7358_v11 }
 0x6e1   :  { %v4391_v1 = vmax.f32 %v4200_v48, %v4263_v51  ;;  %v7314_v48 = vor.u32 %v8134_v59, %v7311_v54  ;;  %v4278_v51 = vmul.f32 0.01, %v4009_v58  ;;  %v8168_v59 = vld [vmem:[#allocation2 + $0x124] sm:$0xf0] }
 0x6e2   :  { %v4153_v35 = vpop.f32.mrf.mxu3 }
 0x6e3   :  { %v4503_v24 = vpack.c.bf16 %v4391_v1, %v4390_v5  ;;  %v4154_v56 = vadd.f32 %v4153_v35, %v4105_v37  ;;  %v4012_v37 = vadd.f32 %v10313_v28, %v10466_v33  ;;  %v4406_v1 = vmax.f32 %v4009_v58, %v4278_v51  ;;  %v7429_v28 = vld [vmem:[#allocation2 + $0x110] sm:$0xf]  ;;  %v8133_v33 = vld [vmem:[#allocation2 + $0x14] sm:$0xf] }
 0x6e4   :  { %v10609_v50 = vpop.f32.mrf.mxu2  ;;  %v4110_v35 = vadd.f32 %v10532_v41, %v4061_v31  ;;  %v4063_v41 = vadd.f32 %v10458_v44, %v10547_v9  ;;  %v4014_v58 = vadd.f32 %v10329_v25, %v10475_v52  ;;  %v7422_v52 = vor.u32 %v8168_v59, %v7421_v4 }
 0x6e5   :  { %4567 = vst [vmem:[#allocation2 + $0x78] sm:$0xff] %v4503_v24  ;;  %v4203_v30 = vadd.f32 %v10496_v40, %v4154_v56  ;;  %v10631_v56 = vpop.f32.mrf.mxu0  ;;  %v4286_v62 = vmul.f32 0.01, %v4012_v37 }
 0x6e6   :  { %v10612_v22 = vpop.f32.mrf.mxu1  ;;  %v4294_v51 = vmul.f32 0.01, %v4014_v58 }
 0x6e7   :  { %v4271_v45 = vmul.f32 0.01, %v4203_v30 }
 0x6e9   :  { %v4399_v40 = vmax.f32 %v4203_v30, %v4271_v45  ;;  %5604 = vmatmul.bf16.gmra.mxu2 %v7514_v36  ;;  %5731 = vmatmul.bf16.gmra.mxu1 %v7398_v53  ;;  %v7430_v36 = vor.u32 %v8169_v47, %v7429_v28  ;;  %v7306_v53 = vor.u32 %v8133_v33, %v7303_v15  ;;  %v8177_v15 = vld [vmem:[#allocation2 + $0x16c] sm:$0xf0] }
 0x6ea   :  { %v4155_v2 = vpop.f32.mrf.mxu3  ;;  %v7461_v33 = vld [vmem:[#allocation2 + $0x150] sm:$0xf] }
 0x6eb   :  { %v4507_v60 = vpack.c.bf16 %v4399_v40, %v4398_v63  ;;  %v4156_v57 = vadd.f32 %v4155_v2, %v4107_v42  ;;  %v4414_v63 = vmax.f32 %v4012_v37, %v4286_v62  ;;  %v4112_v42 = vadd.f32 %v10540_v14, %v4063_v41  ;;  %v8142_v2 = vld [vmem:[#allocation2 + $0x5c] sm:$0xf]  ;;  %v11359_v37 = vld [vmem:[#allocation24_spill] sm:$0xff]  ;;  %v8141_v41 = vld [vmem:[#allocation2 + $0x54] sm:$0xf] }
 0x6ec   :  { %v10621_v11 = vpop.f32.mrf.mxu2  ;;  %v7343_v54 = vld [vmem:[#allocation2 + $0x78] sm:$0xf0] }
 0x6ed   :  { %4571 = vst [vmem:[#allocation2 + $0x98] sm:$0xff] %v4507_v60  ;;  %v4205_v26 = vadd.f32 %v10508_v12, %v4156_v57  ;;  %5863 = vmatmul.bf16.vlgmr.msra.gmra.mxu0 %v7314_v48  ;;  %v7346_v57 = vor.u32 %v8142_v2, %v7343_v54  ;;  %v10643_v44 = vpop.f32.mrf.mxu0  ;;  %v11363_v2 = vld [vmem:[#allocation39_spill] sm:$0xff] }
 0x6ee   :  { %v10624_v21 = vpop.f32.mrf.mxu1 }
 0x6ef   :  { %v4279_v5 = vmul.f32 0.01, %v4205_v26  ;;  %5633 = vmatmul.bf16.gmra.mxu3 %v7390_v38  ;;  %v4066_v38 = vadd.f32 %v10470_v8, %v10547_v9 }
 0x6f1   :  { %v4407_v24 = vmax.f32 %v4205_v26, %v4279_v5  ;;  %v8250_v5 = vld [vmem:[#allocation14 + $0x1b8] sm:$0xff] }
 0x6f2   :  { %v4158_v32 = vpop.f32.mrf.mxu3  ;;  %5806 = vmatpush.bf16.msra.mxu3 %v8250_v5 }
 0x6f3   :  { %v4511_v12 = vpack.c.bf16 %v4407_v24, %v4406_v1  ;;  %v4159_v0 = vadd.f32 %v4158_v32, %v4110_v35  ;;  %v4017_v1 = vadd.f32 %v11359_v37, %v10483_v34  ;;  %v4422_v35 = vmax.f32 %v4014_v58, %v4294_v51  ;;  %v8248_v58 = vld [vmem:[#allocation14 + $0x1a8] sm:$0xff]  ;;  %v11364_v37 = vld [vmem:[#allocation72_spill] sm:$0xff] }
 0x6f4   :  { %v10633_v30 = vpop.f32.mrf.mxu2  ;;  %v4115_v24 = vadd.f32 %v10552_v10, %v4066_v38 }
 0x6f5   :  { %4575 = vst [vmem:[#allocation2 + $0xb8] sm:$0xff] %v4511_v12  ;;  %v4208_v46 = vadd.f32 %v10518_v7, %v4159_v0  ;;  %v8249_v0 = vld [vmem:[#allocation14 + $0x1b0] sm:$0xff]  ;;  %v4302_v62 = vmul.f32 0.01, %v4017_v1  ;;  %v10660_v34 = vpop.f32.mrf.mxu0 }
 0x6f6   :  { %v10636_v29 = vpop.f32.mrf.mxu1  ;;  %5807 = vmatpush.bf16.msra.mxu3 %v8249_v0 }
 0x6f7   :  { %v4287_v45 = vmul.f32 0.01, %v4208_v46 }
 0x6f9   :  { %v4415_v40 = vmax.f32 %v4208_v46, %v4287_v45  ;;  %5736 = vmatmul.bf16.gmra.mxu1 %v7430_v36  ;;  %5765 = vmatmul.bf16.vlgmr.msra.gmra.mxu2 %v7306_v53  ;;  %v7335_v46 = vld [vmem:[#allocation2 + $0x70] sm:$0xf0]  ;;  %v11360_v45 = vld [vmem:[#allocation47_spill] sm:$0xff] }
 0x6fa   :  { %v4160_v7 = vpop.f32.mrf.mxu3  ;;  %v4068_v36 = vadd.f32 %v11360_v45, %v10547_v9  ;;  %v7338_v54 = vor.u32 %v8141_v41, %v7335_v46  ;;  %5808 = vmatpush.bf16.msra.mxu3 %v8248_v58 }
 0x6fb   :  { %v4515_v13 = vpack.c.bf16 %v4415_v40, %v4414_v63  ;;  %v4161_v60 = vadd.f32 %v4160_v7, %v4112_v42  ;;  %v7462_v63 = vor.u32 %v8177_v15, %v7461_v33  ;;  %v4430_v42 = vmax.f32 %v4017_v1, %v4302_v62  ;;  %v11362_v7 = vld [vmem:[#allocation37_spill] sm:$0xff]  ;;  %v8246_v62 = vld [vmem:[#allocation14 + $0x198] sm:$0xff] }
 0x6fc   :  { %v5570_v48 = vpop.f32.mrf.mxu2  ;;  %v7375_v40 = vld [vmem:[#allocation2 + $0xb8] sm:$0xf0]  ;;  %v4117_v59 = vadd.f32 %v11363_v2, %v4068_v36  ;;  %v11368_v15 = vld [vmem:[#allocation56_spill] sm:$0xff] }
 0x6fd   :  { %4579 = vst [vmem:[#allocation2 + $0xd8] sm:$0xff] %v4515_v13  ;;  %v4210_v26 = vadd.f32 %v10530_v23, %v4161_v60  ;;  %v10647_v25 = vadd.f32 %v5570_v48, %v10544_v39  ;;  %5868 = vmatmul.bf16.gmra.mxu0 %v7346_v57  ;;  %v8150_v57 = vld [vmem:[#allocation2 + $0x9c] sm:$0xf]  ;;  %v8176_v48 = vld [vmem:[#allocation2 + $0x164] sm:$0xf0] }
 0x6fe   :  { %v10649_v14 = vpop.f32.mrf.mxu1 }
 0x6ff   :  { %v4295_v31 = vmul.f32 0.01, %v4210_v26  ;;  %5638 = vmatmul.bf16.gmra.mxu3 %v7422_v52  ;;  %v8247_v52 = vld [vmem:[#allocation14 + $0x1a0] sm:$0xff] }
 0x700   :  { %5809 = vmatpush.bf16.msra.mxu3 %v8247_v52 }
 0x701   :  { %v4423_v23 = vmax.f32 %v4210_v26, %v4295_v31  ;;  %v7378_v26 = vor.u32 %v8150_v57, %v7375_v40  ;;  %v7453_v31 = vld [vmem:[#allocation2 + $0x148] sm:$0xf]  ;;  %v8185_v40 = vld [vmem:[#allocation2 + $0x1ac] sm:$0xf0] }
 0x702   :  { %v4163_v39 = vpop.f32.mrf.mxu3 }
 0x703   :  { %v4519_v32 = vpack.c.bf16 %v4423_v23, %v4422_v35  ;;  %v4164_v12 = vadd.f32 %v4163_v39, %v4115_v24  ;;  %v11365_v35 = vld [vmem:[#allocation25_spill] sm:$0xff]  ;;  %v7454_v23 = vor.u32 %v8176_v48, %v7453_v31 }
 0x704   :  { %v5572_v47 = vpop.f32.mrf.mxu2  ;;  %5810 = vmatpush.bf16.msra.mxu3 %v8246_v62  ;;  %v11371_v31 = vld [vmem:[#allocation41_spill] sm:$0xff] }
 0x705   :  { %4583 = vst [vmem:[#allocation2 + $0xf8] sm:$0xff] %v4519_v32  ;;  %v4213_v8 = vadd.f32 %v10542_v18, %v4164_v12  ;;  %v10658_v28 = vadd.f32 %v5572_v47, %v10554_v61  ;;  %v11361_v18 = vld [vmem:[#allocation48_spill] sm:$0xff]  ;;  %v11366_v32 = vld [vmem:[#allocation62_spill] sm:$0xff]  ;;  %v11367_v47 = vld [vmem:[#allocation53_spill] sm:$0xff] }
 0x706   :  { %v10662_v10 = vpop.f32.mrf.mxu1  ;;  %v4019_v61 = vadd.f32 %v11362_v7, %v11361_v18  ;;  %v4071_v12 = vadd.f32 %v11366_v32, %v10547_v9  ;;  %v4022_v46 = vadd.f32 %v11368_v15, %v11367_v47  ;;  %v7367_v18 = vld [vmem:[#allocation2 + $0xb0] sm:$0xf0]  ;;  %v8243_v62 = vld [vmem:[#allocation14 + $0x180] sm:$0xff]  ;;  %v7485_v15 = vld [vmem:[#allocation2 + $0x188] sm:$0xf] }
 0x707   :  { %v4303_v53 = vmul.f32 0.01, %v4213_v8 }
 0x708   :  { %v4310_v5 = vmul.f32 0.01, %v4019_v61  ;;  %v4120_v41 = vadd.f32 %v10575_v16, %v4071_v12  ;;  %v4318_v58 = vmul.f32 0.01, %v4022_v46  ;;  %v8149_v16 = vld [vmem:[#allocation2 + $0x94] sm:$0xf] }
 0x709   :  { %v4431_v13 = vmax.f32 %v4213_v8, %v4303_v53  ;;  %5741 = vmatmul.bf16.gmra.mxu1 %v7462_v63  ;;  %5770 = vmatmul.bf16.gmra.mxu2 %v7338_v54  ;;  %v10679_v8 = vpop.f32.mrf.mxu0  ;;  %v8245_v54 = vld [vmem:[#allocation14 + $0x190] sm:$0xff] }
 0x70a   :  { %v4165_v60 = vpop.f32.mrf.mxu3  ;;  %v4438_v33 = vmax.f32 %v4019_v61, %v4310_v5  ;;  %v7493_v61 = vld [vmem:[#allocation2 + $0x190] sm:$0xf]  ;;  %5811 = vmatpush.bf16.msra.mxu3 %v8245_v54  ;;  %v11373_v54 = vld [vmem:[#allocation78_spill] sm:$0xff] }
 0x70b   :  { %v4523_v4 = vpack.c.bf16 %v4431_v13, %v4430_v42  ;;  %v4166_v51 = vadd.f32 %v4165_v60, %v4117_v59  ;;  %v11369_v13 = vld [vmem:[#allocation40_spill] sm:$0xff]  ;;  %v7494_v48 = vor.u32 %v8185_v40, %v7493_v61 }
 0x70c   :  { %v5575_v38 = vpop.f32.mrf.mxu2  ;;  %v4073_v60 = vadd.f32 %v11369_v13, %v10547_v9  ;;  %v7407_v52 = vld [vmem:[#allocation2 + $0xf8] sm:$0xf0] }
 0x70d   :  { %4587 = vst [vmem:[#allocation2 + $0x118] sm:$0xff] %v4523_v4  ;;  %v4215_v1 = vadd.f32 %v11364_v37, %v4166_v51  ;;  %v10671_v24 = vadd.f32 %v5575_v38, %v11365_v35  ;;  %5873 = vmatmul.bf16.gmra.mxu0 %v7378_v26  ;;  %v7370_v4 = vor.u32 %v8149_v16, %v7367_v18  ;;  %v8244_v51 = vld [vmem:[#allocation14 + $0x188] sm:$0xff]  ;;  %v11370_v38 = vld [vmem:[#allocation21_spill] sm:$0xff]  ;;  %v8158_v35 = vld [vmem:[#allocation2 + $0xdc] sm:$0xf] }
 0x70e   :  { %v10673_v39 = vpop.f32.mrf.mxu1  ;;  %v4446_v26 = vmax.f32 %v4022_v46, %v4318_v58  ;;  %5812 = vmatpush.bf16.msra.mxu3 %v8244_v51  ;;  %v11374_v58 = vld [vmem:[#allocation38_spill] sm:$0xff] }
 0x70f   :  { %v4311_v0 = vmul.f32 0.01, %v4215_v1  ;;  %5643 = vmatmul.bf16.gmra.mxu3 %v7454_v23  ;;  %v8184_v23 = vld [vmem:[#allocation2 + $0x1a4] sm:$0xf0] }
 0x711   :  { %v4439_v45 = vmax.f32 %v4215_v1, %v4311_v0  ;;  %v10693_v37 = vpop.f32.mrf.mxu0  ;;  %v7410_v0 = vor.u32 %v8158_v35, %v7407_v52  ;;  %v7525_v52 = vld [vmem:[#allocation2 + $0x1d0] sm:$0xf] }
 0x712   :  { %v4168_v36 = vpop.f32.mrf.mxu3  ;;  %5813 = vmatpush.bf16.msra.mxu3 %v8243_v62 }
 0x713   :  { %v4527_v53 = vpack.c.bf16 %v4439_v45, %v4438_v33  ;;  %v4169_v63 = vadd.f32 %v4168_v36, %v4120_v41  ;;  %v7486_v41 = vor.u32 %v8184_v23, %v7485_v15  ;;  %v11372_v36 = vld [vmem:[#allocation23_spill] sm:$0xff] }
 0x714   :  { %v5577_v42 = vpop.f32.mrf.mxu2  ;;  %v11376_v23 = vld [vmem:[#allocation63_spill] sm:$0xff] }
 0x715   :  { %4591 = vst [vmem:[#allocation2 + $0x138] sm:$0xff] %v4527_v53  ;;  %v4218_v7 = vadd.f32 %v10573_v20, %v4169_v63  ;;  %v10684_v2 = vadd.f32 %v5577_v42, %v10578_v3  ;;  %v4024_v20 = vadd.f32 %v11371_v31, %v11370_v38  ;;  %v4122_v3 = vadd.f32 %v10587_v27, %v4073_v60  ;;  %v11375_v38 = vld [vmem:[#allocation22_spill] sm:$0xff]  ;;  %v8166_v62 = vld [vmem:[#allocation2 + $0x11c] sm:$0xf] }
 0x716   :  { %v10686_v59 = vpop.f32.mrf.mxu1  ;;  %v4076_v53 = vadd.f32 %v11372_v36, %v10547_v9  ;;  %v4027_v42 = vadd.f32 %v11374_v58, %v11373_v54  ;;  %v4078_v31 = vadd.f32 %v11375_v38, %v10547_v9  ;;  %v7517_v36 = vld [vmem:[#allocation2 + $0x1c8] sm:$0xf] }
 0x717   :  { %v4319_v57 = vmul.f32 0.01, %v4218_v7  ;;  %v4326_v46 = vmul.f32 0.01, %v4024_v20 }
 0x718   :  { %v4125_v18 = vadd.f32 %v10597_v6, %v4076_v53  ;;  %v4334_v16 = vmul.f32 0.01, %v4027_v42  ;;  %v8157_v6 = vld [vmem:[#allocation2 + $0xd4] sm:$0xf] }
 0x719   :  { %v4447_v5 = vmax.f32 %v4218_v7, %v4319_v57  ;;  %5746 = vmatmul.bf16.gmra.mxu1 %v7494_v48  ;;  %5775 = vmatmul.bf16.gmra.mxu2 %v7370_v4  ;;  %v4454_v40 = vmax.f32 %v4024_v20, %v4326_v46  ;;  %v10706_v13 = vpop.f32.mrf.mxu0  ;;  %v8193_v57 = vld [vmem:[#allocation2 + $0x1ec] sm:$0xf0]  ;;  %v7399_v48 = vld [vmem:[#allocation2 + $0xf0] sm:$0xf0] }
 0x71a   :  { %v4170_v1 = vpop.f32.mrf.mxu3 }
 0x71b   :  { %v4531_v32 = vpack.c.bf16 %v4447_v5, %v4446_v26  ;;  %v4171_v12 = vadd.f32 %v4170_v1, %v4122_v3  ;;  %v7526_v3 = vor.u32 %v8193_v57, %v7525_v52  ;;  %v7402_v5 = vor.u32 %v8157_v6, %v7399_v48  ;;  %v7431_v52 = vld [vmem:[#allocation2 + $0x130] sm:$0xf0] }
 0x71c   :  { %v5580_v47 = vpop.f32.mrf.mxu2  ;;  %v4462_v1 = vmax.f32 %v4027_v42, %v4334_v16  ;;  %v7439_v35 = vld [vmem:[#allocation2 + $0x138] sm:$0xf0] }
 0x71d   :  { %4595 = vst [vmem:[#allocation2 + $0x158] sm:$0xff] %v4531_v32  ;;  %v4220_v33 = vadd.f32 %v10585_v19, %v4171_v12  ;;  %v10697_v27 = vadd.f32 %v5580_v47, %v10590_v49  ;;  %5878 = vmatmul.bf16.gmra.mxu0 %v7410_v0  ;;  %v11377_v32 = vld [vmem:[#allocation42_spill] sm:$0xff]  ;;  %v8192_v47 = vld [vmem:[#allocation2 + $0x1e4] sm:$0xf0] }
 0x71e   :  { %v10699_v45 = vpop.f32.mrf.mxu1  ;;  %v4029_v12 = vadd.f32 %v11377_v32, %v11376_v23 }
 0x71f   :  { %v4327_v63 = vmul.f32 0.01, %v4220_v33  ;;  %5648 = vmatmul.bf16.gmra.mxu3 %v7486_v41 }
 0x720   :  { %v4342_v53 = vmul.f32 0.01, %v4029_v12 }
 0x721   :  { %v4455_v19 = vmax.f32 %v4220_v33, %v4327_v63  ;;  %v7442_v33 = vor.u32 %v8166_v62, %v7439_v35  ;;  %v10723_v58 = vpop.f32.mrf.mxu0 }
 0x722   :  { %v4173_v7 = vpop.f32.mrf.mxu3 }
 0x723   :  { %v4535_v49 = vpack.c.bf16 %v4455_v19, %v4454_v40  ;;  %v4174_v61 = vadd.f32 %v4173_v7, %v4125_v18  ;;  %v11378_v40 = vld [vmem:[#allocation43_spill] sm:$0xff]  ;;  %v4470_v7 = vmax.f32 %v4029_v12, %v4342_v53 }
 0x724   :  { %v5582_v60 = vpop.f32.mrf.mxu2  ;;  %v4081_v18 = vadd.f32 %v11378_v40, %v10547_v9 }
 0x725   :  { %4599 = vst [vmem:[#allocation2 + $0x178] sm:$0xff] %v4535_v49  ;;  %v4223_v4 = vadd.f32 %v10600_v55, %v4174_v61  ;;  %v10710_v51 = vadd.f32 %v5582_v60, %v10602_v17  ;;  %v4127_v55 = vadd.f32 %v10609_v50, %v4078_v31  ;;  %v7518_v50 = vor.u32 %v8192_v47, %v7517_v36  ;;  %v11379_v49 = vld [vmem:[#allocation65_spill] sm:$0xff]  ;;  %v11380_v61 = vld [vmem:[#allocation44_spill] sm:$0xff]  ;;  %v8174_v47 = vld [vmem:[#allocation2 + $0x15c] sm:$0xf] }
 0x726   :  { %v10712_v26 = vpop.f32.mrf.mxu1  ;;  %v4032_v16 = vadd.f32 %v11380_v61, %v11379_v49  ;;  %v7309_v36 = vld [vmem:[#allocation2 + $0x18] sm:$0xf] }
 0x727   :  { %v4335_v20 = vmul.f32 0.01, %v4223_v4 }
 0x728   :  { %v4350_v6 = vmul.f32 0.01, %v4032_v16 }
 0x729   :  { %v4463_v0 = vmax.f32 %v4223_v4, %v4335_v20  ;;  %5751 = vmatmul.bf16.gmra.mxu1 %v7526_v3  ;;  %5780 = vmatmul.bf16.gmra.mxu2 %v7402_v5  ;;  %v8165_v3 = vld [vmem:[#allocation2 + $0x114] sm:$0xf]  ;;  %v10738_v23 = vpop.f32.mrf.mxu0 }
 0x72a   :  { %v4175_v17 = vpop.f32.mrf.mxu3  ;;  %v11381_v5 = vld [vmem:[#allocation70_spill] sm:$0xff]  ;;  %v4478_v12 = vmax.f32 %v4032_v16, %v4350_v6 }
 0x72b   :  { %v4539_v15 = vpack.c.bf16 %v4463_v0, %v4462_v1  ;;  %v4176_v46 = vadd.f32 %v4175_v17, %v4127_v55  ;;  %v4083_v1 = vadd.f32 %v11381_v5, %v10547_v9  ;;  %v11382_v55 = vld [vmem:[#allocation57_spill] sm:$0xff] }
 0x72c   :  { %v5585_v41 = vpop.f32.mrf.mxu2  ;;  %v7471_v32 = vld [vmem:[#allocation2 + $0x178] sm:$0xf0]  ;;  %v11383_v0 = vld [vmem:[#allocation45_spill] sm:$0xff] }
 0x72d   :  { %4603 = vst [vmem:[#allocation2 + $0x198] sm:$0xff] %v4539_v15  ;;  %v4225_v63 = vadd.f32 %v10616_v43, %v4176_v46  ;;  %v10721_v54 = vadd.f32 %v5585_v41, %v10612_v22  ;;  %5883 = vmatmul.bf16.gmra.mxu0 %v7442_v33  ;;  %v4130_v43 = vadd.f32 %v10621_v11, %v4081_v18  ;;  %v8138_v15 = vld [vmem:[#allocation2 + $0x34] sm:$0xf0] }
 0x72e   :  { %v10725_v42 = vpop.f32.mrf.mxu1  ;;  %v7434_v11 = vor.u32 %v8165_v3, %v7431_v52  ;;  %v4034_v17 = vadd.f32 %v11383_v0, %v11382_v55  ;;  %v4132_v62 = vadd.f32 %v10633_v30, %v4083_v1  ;;  %v7474_v41 = vor.u32 %v8174_v47, %v7471_v32  ;;  %v8146_v3 = vld [vmem:[#allocation2 + $0x74] sm:$0xf0] }
 0x72f   :  { %v4343_v19 = vmul.f32 0.01, %v4225_v63  ;;  %5653 = vmatmul.bf16.gmra.mxu3 %v7518_v50  ;;  %v7310_v40 = vor.u32 %v8138_v15, %v7309_v36  ;;  %v7373_v36 = vld [vmem:[#allocation2 + $0x98] sm:$0xf] }
 0x730   :  { %v4358_v53 = vmul.f32 0.01, %v4034_v17 }
 0x731   :  { %v4471_v60 = vmax.f32 %v4225_v63, %v4343_v19  ;;  %v10749_v49 = vpop.f32.mrf.mxu0 }
 0x732   :  { %v4178_v22 = vpop.f32.mrf.mxu3  ;;  %v4486_v19 = vmax.f32 %v4034_v17, %v4358_v53 }
 0x733   :  { %v4543_v57 = vpack.c.bf16 %v4471_v60, %v4470_v7  ;;  %v4179_v48 = vadd.f32 %v4178_v22, %v4130_v43  ;;  %v8173_v22 = vld [vmem:[#allocation2 + $0x154] sm:$0xf] }
 0x734   :  { %v5587_v4 = vpop.f32.mrf.mxu2 }
 0x735   :  { %4607 = vst [vmem:[#allocation2 + $0x1b8] sm:$0xff] %v4543_v57  ;;  %v4228_v38 = vadd.f32 %v10631_v56, %v4179_v48  ;;  %v10734_v31 = vadd.f32 %v5587_v4, %v10624_v21 }
 0x736   :  { %v5717_v20 = vpop.f32.mrf.mxu1 }
 0x737   :  { %v4351_v35 = vmul.f32 0.01, %v4228_v38 }
 0x739   :  { %v4479_v56 = vmax.f32 %v4228_v38, %v4351_v35  ;;  %5785 = vmatmul.bf16.gmra.mxu2 %v7434_v11  ;;  %v8182_v38 = vld [vmem:[#allocation2 + $0x19c] sm:$0xf]  ;;  %v10760_v1 = vpop.f32.mrf.mxu0  ;;  %v7341_v11 = vld [vmem:[#allocation2 + $0x58] sm:$0xf] }
 0x73a   :  { %v4180_v21 = vpop.f32.mrf.mxu3 }
 0x73b   :  { %v4547_v46 = vpack.c.bf16 %v4479_v56, %v4478_v12  ;;  %v4181_v33 = vadd.f32 %v4180_v21, %v4132_v62  ;;  %v8181_v56 = vld [vmem:[#allocation2 + $0x194] sm:$0xf] }
 0x73c   :  { %v5590_v9 = vpop.f32.mrf.mxu2  ;;  %v7503_v4 = vld [vmem:[#allocation2 + $0x1b8] sm:$0xf0] }
 0x73d   :  { %4611 = vst [vmem:[#allocation2 + $0x1d8] sm:$0xff] %v4547_v46  ;;  %v4230_v63 = vadd.f32 %v10643_v44, %v4181_v33  ;;  %v10745_v50 = vadd.f32 %v5590_v9, %v10636_v29  ;;  %5888 = vmatmul.bf16.gmra.mxu0 %v7474_v41  ;;  %v7463_v44 = vld [vmem:[#allocation2 + $0x170] sm:$0xf0]  ;;  %v8154_v33 = vld [vmem:[#allocation2 + $0xb4] sm:$0xf0] }
 0x73e   :  { %v10747_v18 = vpop.f32.mrf.mxu1  ;;  %v7466_v57 = vor.u32 %v8173_v22, %v7463_v44 }
 0x73f   :  { %v4359_v30 = vmul.f32 0.01, %v4230_v63  ;;  %5814 = vmatmul.bf16.vlgmr.msra.gmra.mxu3 %v7310_v40 }
 0x741   :  { %v4487_v7 = vmax.f32 %v4230_v63, %v4359_v30  ;;  %v5688_v62 = vpop.f32.mrf.mxu0 }
 0x742   :  { %v5619_v61 = vpop.f32.mrf.mxu3 }
 0x743   :  { %v4551_v16 = vpack.c.bf16 %v4487_v7, %v4486_v19  ;;  %v5620_v43 = vadd.f32 %v5619_v61, %v10647_v25  ;;  %v7506_v25 = vor.u32 %v8182_v38, %v7503_v4  ;;  %v7527_v61 = vld [vmem:[#allocation2 + $0x1f0] sm:$0xf0] }
 0x744   :  { %v10752_v60 = vpop.f32.mrf.mxu2  ;;  %v8190_v46 = vld [vmem:[#allocation2 + $0x1dc] sm:$0xf] }
 0x745   :  { %4615 = vst [vmem:[#allocation2 + $0x1f8] sm:$0xff] %v4551_v16  ;;  %v5669_v29 = vadd.f32 %v10660_v34, %v5620_v43  ;;  %v8189_v16 = vld [vmem:[#allocation2 + $0x1d4] sm:$0xf] }
 0x746   :  { %v5722_v52 = vpop.f32.mrf.mxu1  ;;  %v7530_v43 = vor.u32 %v8189_v16, %v7527_v61  ;;  %v7469_v61 = vld [vmem:[#allocation2 + $0x158] sm:$0xf] }
 0x747   :  { %v10755_v48 = vadd.f32 %v5717_v20, %v5669_v29  ;;  %v7342_v20 = vor.u32 %v8146_v3, %v7341_v11 }
 0x749   :  { %5790 = vmatmul.bf16.gmra.mxu2 %v7466_v57  ;;  %v10779_v40 = vpop.f32.mrf.mxu0  ;;  %v8162_v57 = vld [vmem:[#allocation2 + $0xf4] sm:$0xf0] }
 0x74a   :  { %v5621_v6 = vpop.f32.mrf.mxu3 }
 0x74b   :  { %v10758_v5 = vadd.f32 %v5621_v6, %v10658_v28  ;;  %v7495_v28 = vld [vmem:[#allocation2 + $0x1b0] sm:$0xf0]  ;;  %v7405_v6 = vld [vmem:[#allocation2 + $0xd8] sm:$0xf] }
 0x74c   :  { %v5595_v35 = vpop.f32.mrf.mxu2  ;;  %v7498_v21 = vor.u32 %v8181_v56, %v7495_v28  ;;  %v7406_v38 = vor.u32 %v8162_v57, %v7405_v6  ;;  %v7437_v56 = vld [vmem:[#allocation2 + $0x118] sm:$0xf] }
 0x74d   :  { %v10763_v34 = vadd.f32 %v5595_v35, %v10662_v10  ;;  %5893 = vmatmul.bf16.gmra.mxu0 %v7506_v25  ;;  %v7535_v10 = vld [vmem:[#allocation2 + $0x1f8] sm:$0xf0] }
 0x74e   :  { %v10766_v55 = vpop.f32.mrf.mxu1 }
 0x74f   :  { %5819 = vmatmul.bf16.gmra.mxu3 %v7342_v20 }
 0x752   :  { %v5624_v32 = vpop.f32.mrf.mxu3 }
 0x753   :  { %v5625_v12 = vadd.f32 %v5624_v32, %v10671_v24  ;;  %v7538_v24 = vor.u32 %v8190_v46, %v7535_v10 }
 0x754   :  { %v10768_v0 = vpop.f32.mrf.mxu2 }
 0x755   :  { %v5674_v17 = vadd.f32 %v10693_v37, %v5625_v12  ;;  %v7374_v37 = vor.u32 %v8154_v33, %v7373_v36  ;;  %v5598_v57 = vadd.f32 %v10768_v0, %v10673_v39 }
 0x756   :  { %v5727_v63 = vpop.f32.mrf.mxu1 }
 0x757   :  { %v10771_v47 = vadd.f32 %v5722_v52, %v5674_v17 }
 0x759   :  { %5795 = vmatmul.bf16.gmra.mxu2 %v7498_v21 }
 0x75a   :  { %v5626_v15 = vpop.f32.mrf.mxu3 }
 0x75b   :  { %v10774_v41 = vadd.f32 %v5626_v15, %v10684_v2  ;;  %v5671_v15 = vadd.f32 %v10679_v8, %v10758_v5 }
 0x75c   :  { %v5600_v9 = vpop.f32.mrf.mxu2 }
 0x75d   :  { %v10777_v53 = vadd.f32 %v5600_v9, %v10686_v59  ;;  %5898 = vmatmul.bf16.gmra.mxu0 %v7538_v24  ;;  %v10787_v59 = vpop.f32.mrf.mxu0  ;;  %v5720_v33 = vadd.f32 %v10747_v18, %v5671_v15  ;;  %v7533_v15 = vld [vmem:[#allocation2 + $0x1d8] sm:$0xf] }
 0x75e   :  { %v10785_v29 = vpop.f32.mrf.mxu1 }
 0x75f   :  { %5824 = vmatmul.bf16.gmra.mxu3 %v7374_v37 }
 0x762   :  { %v5629_v30 = vpop.f32.mrf.mxu3 }
 0x763   :  { %v5630_v19 = vadd.f32 %v5629_v30, %v10697_v27 }
 0x764   :  { %v10782_v7 = vpop.f32.mrf.mxu2 }
 0x765   :  { %v5679_v2 = vadd.f32 %v10723_v58, %v5630_v19  ;;  %v10794_v35 = vpop.f32.mrf.mxu0  ;;  %v8178_v19 = vld [vmem:[#allocation2 + $0x174] sm:$0xf0] }
 0x766   :  { %v5732_v58 = vpop.f32.mrf.mxu1  ;;  %v7470_v18 = vor.u32 %v8178_v19, %v7469_v61 }
 0x767   :  { %v5728_v44 = vadd.f32 %v5727_v63, %v5679_v2  ;;  %v5593_v63 = vadd.f32 %v10752_v60, %v10649_v14 }
 0x769   :  { %5800 = vmatmul.bf16.gmra.mxu2 %v7530_v43 }
 0x76a   :  { %v5631_v22 = vpop.f32.mrf.mxu3 }
 0x76b   :  { %v5632_v4 = vadd.f32 %v5631_v22, %v10710_v51  ;;  %v8170_v51 = vld [vmem:[#allocation2 + $0x134] sm:$0xf0] }
 0x76c   :  { %v5605_v52 = vpop.f32.mrf.mxu2  ;;  %v7438_v10 = vor.u32 %v8170_v51, %v7437_v56  ;;  %v5603_v51 = vadd.f32 %v10782_v7, %v10699_v45  ;;  %v8194_v56 = vld [vmem:[#allocation2 + $0x1f4] sm:$0xf0] }
 0x76d   :  { %v10791_v27 = vadd.f32 %v5605_v52, %v10712_v26 }
 0x76e   :  { %v10800_v17 = vpop.f32.mrf.mxu1 }
 0x76f   :  { %5829 = vmatmul.bf16.gmra.mxu3 %v7406_v38 }
 0x772   :  { %v5634_v3 = vpop.f32.mrf.mxu3 }
 0x773   :  { %v5635_v25 = vadd.f32 %v5634_v3, %v10721_v54  ;;  %v10805_v54 = vpop.f32.mrf.mxu0 }
 0x774   :  { %v10796_v11 = vpop.f32.mrf.mxu2 }
 0x775   :  { %v5684_v20 = vadd.f32 %v10749_v49, %v5635_v25  ;;  %v5608_v7 = vadd.f32 %v10796_v11, %v10725_v42 }
 0x776   :  { %v5737_v36 = vpop.f32.mrf.mxu1 }
 0x777   :  { %v5733_v32 = vadd.f32 %v5732_v58, %v5684_v20 }
 0x77a   :  { %v5636_v12 = vpop.f32.mrf.mxu3 }
 0x77b   :  { %v5637_v28 = vadd.f32 %v5636_v12, %v10734_v31 }
 0x77c   :  { %v5766_v26 = vpop.f32.mrf.mxu2 }
 0x77d   :  { %v10803_v21 = vadd.f32 %v5766_v26, %v10755_v48  ;;  %v10813_v48 = vpop.f32.mrf.mxu0 }
 0x77f   :  { %5834 = vmatmul.bf16.gmra.mxu3 %v7438_v10 }
 0x782   :  { %v5639_v49 = vpop.f32.mrf.mxu3 }
 0x783   :  { %v5640_v46 = vadd.f32 %v5639_v49, %v10745_v50  ;;  %v5686_v49 = vadd.f32 %v10760_v1, %v5637_v28 }
 0x784   :  { %v5768_v31 = vpop.f32.mrf.mxu2 }
 0x785   :  { %v5689_v24 = vadd.f32 %v5688_v62, %v5640_v46  ;;  %v10811_v9 = vadd.f32 %v5768_v31, %v5720_v33  ;;  %v5676_v62 = vadd.f32 %v10706_v13, %v10774_v41  ;;  %v10822_v2 = vpop.f32.mrf.mxu0  ;;  %v7501_v41 = vld [vmem:[#allocation2 + $0x198] sm:$0xf]  ;;  %v5735_v33 = vadd.f32 %v10800_v17, %v5686_v49 }
 0x787   :  { %v5738_v37 = vadd.f32 %v5737_v36, %v5689_v24  ;;  %v5725_v14 = vadd.f32 %v10766_v55, %v5676_v62 }
 0x78a   :  { %v5641_v30 = vpop.f32.mrf.mxu3 }
 0x78b   :  { %v10817_v8 = vadd.f32 %v5641_v30, %v5593_v63 }
 0x78c   :  { %v5771_v5 = vpop.f32.mrf.mxu2 }
 0x78d   :  { %v5772_v50 = vadd.f32 %v5771_v5, %v10771_v47  ;;  %v8186_v47 = vld [vmem:[#allocation2 + $0x1b4] sm:$0xf0]  ;;  %v10832_v38 = vpop.f32.mrf.mxu0 }
 0x78e   :  { %v7502_v3 = vor.u32 %v8186_v47, %v7501_v41 }
 0x78f   :  { %5839 = vmatmul.bf16.gmra.mxu3 %v7470_v18 }
 0x792   :  { %v5644_v16 = vpop.f32.mrf.mxu3 }
 0x793   :  { %v10825_v43 = vadd.f32 %v5644_v16, %v10763_v34  ;;  %v5681_v34 = vadd.f32 %v10738_v23, %v5632_v4  ;;  %v7534_v4 = vor.u32 %v8194_v56, %v7533_v15 }
 0x794   :  { %v5773_v60 = vpop.f32.mrf.mxu2 }
 0x795   :  { %v5774_v22 = vadd.f32 %v5773_v60, %v5725_v14  ;;  %v5730_v20 = vadd.f32 %v10785_v29, %v5681_v34  ;;  %v5864_v12 = vpop.f32.mrf.mxu0 }
 0x79a   :  { %v5646_v52 = vpop.f32.mrf.mxu3 }
 0x79b   :  { %v10830_v6 = vadd.f32 %v5646_v52, %v5598_v57 }
 0x79c   :  { %v5776_v13 = vpop.f32.mrf.mxu2 }
 0x79d   :  { %v5777_v58 = vadd.f32 %v5776_v13, %v5728_v44 }
 0x79f   :  { %5844 = vmatmul.bf16.gmra.mxu3 %v7502_v3 }
 0x7a2   :  { %v5649_v25 = vpop.f32.mrf.mxu3 }
 0x7a3   :  { %v10836_v55 = vadd.f32 %v5649_v25, %v10777_v53  ;;  %v5866_v53 = vpop.f32.mrf.mxu0 }
 0x7a4   :  { %v5778_v39 = vpop.f32.mrf.mxu2 }
 0x7a5   :  { %v5779_v0 = vadd.f32 %v5778_v39, %v5730_v20 }
 0x7aa   :  { %v5651_v26 = vpop.f32.mrf.mxu3 }
 0x7ab   :  { %v10841_v10 = vadd.f32 %v5651_v26, %v5603_v51  ;;  %v5869_v24 = vpop.f32.mrf.mxu0 }
 0x7ac   :  { %v5781_v44 = vpop.f32.mrf.mxu2 }
 0x7ad   :  { %v5782_v23 = vadd.f32 %v5781_v44, %v5733_v32 }
 0x7af   :  { %5849 = vmatmul.bf16.gmra.mxu3 %v7534_v4 }
 0x7b2   :  { %v5654_v46 = vpop.f32.mrf.mxu3 }
 0x7b3   :  { %v10845_v29 = vadd.f32 %v5654_v46, %v10791_v27  ;;  %v5871_v19 = vpop.f32.mrf.mxu0 }
 0x7b4   :  { %v5783_v31 = vpop.f32.mrf.mxu2 }
 0x7b5   :  { %v5784_v45 = vadd.f32 %v5783_v31, %v5735_v33 }
 0x7ba   :  { %v5656_v36 = vpop.f32.mrf.mxu3 }
 0x7bb   :  { %v10850_v63 = vadd.f32 %v5656_v36, %v5608_v7  ;;  %v5874_v18 = vpop.f32.mrf.mxu0 }
 0x7bc   :  { %v5786_v32 = vpop.f32.mrf.mxu2 }
 0x7bd   :  { %v5787_v30 = vadd.f32 %v5786_v32, %v5738_v37 }
 0x7c2   :  { %v5815_v1 = vpop.f32.mrf.mxu3 }
 0x7c3   :  { %v5816_v28 = vadd.f32 %v5815_v1, %v10803_v21  ;;  %v5876_v16 = vpop.f32.mrf.mxu0 }
 0x7c4   :  { %v5788_v51 = vpop.f32.mrf.mxu2 }
 0x7c5   :  { %v10854_v61 = vadd.f32 %v5864_v12, %v5816_v28  ;;  %v5739_v12 = vpop.f32.mrf.mxu1 }
 0x7ca   :  { %v5817_v5 = vpop.f32.mrf.mxu3 }
 0x7cb   :  { %v5818_v27 = vadd.f32 %v5817_v5, %v10811_v9  ;;  %v5879_v57 = vpop.f32.mrf.mxu0  ;;  %v5694_v5 = vadd.f32 %v10787_v59, %v10825_v43  ;;  %v5699_v59 = vadd.f32 %v10805_v54, %v10836_v55  ;;  %v5704_v54 = vadd.f32 %v10822_v2, %v10845_v29  ;;  %v8259_v2 = vld [vmem:[#allocation3] sm:$0xff]  ;;  %v8261_v29 = vld [vmem:[#allocation3 + $0x10] sm:$0xff] }
 0x7cd   :  { %v10856_v17 = vadd.f32 %v5866_v53, %v5818_v27  ;;  %v5742_v49 = vpop.f32.mrf.mxu1  ;;  %v5691_v53 = vadd.f32 %v10779_v40, %v10817_v8  ;;  %v5696_v40 = vadd.f32 %v10794_v35, %v10830_v6  ;;  %v5701_v6 = vadd.f32 %v10813_v48, %v10841_v10 }
 0x7ce   :  { %v5706_v48 = vadd.f32 %v10832_v38, %v10850_v63  ;;  %v8260_v38 = vld [vmem:[#allocation3 + $0x8] sm:$0xff]  ;;  %v8262_v63 = vld [vmem:[#allocation3 + $0x18] sm:$0xff] }
 0x7cf   :  { %v5920_v42 = vpack.c.bf16 %v10856_v17, %v10854_v61  ;;  %v5740_v31 = vadd.f32 %v5739_v12, %v5691_v53  ;;  %v8299_v61 = vld [vmem:[%s10920_s7] ss:$0 sm:$0xff]  ;;  %s8526_s7 = smov [#allocation15]  }
 0x7d0   :  { %s6049_s13 = sshll.u32 %s8526_s7, 4  ;;  %s6050_s13 = int_to_ptr.vmem [resolvable:$true] %s6049_s13 }
 0x7d1   :  { %v5789_v7 = vadd.f32 %v5788_v51, %v5740_v31 }
 0x7d2   :  { %v5820_v11 = vpop.f32.mrf.mxu3 }
 0x7d3   :  { %v5821_v62 = vadd.f32 %v5820_v11, %v5772_v50  ;;  %v5881_v3 = vpop.f32.mrf.mxu0 }
 0x7d5   :  { %v10860_v60 = vadd.f32 %v5869_v24, %v5821_v62  ;;  %v5744_v32 = vpop.f32.mrf.mxu1 }
 0x7d6   :  { %v5745_v62 = vadd.f32 %v5744_v32, %v5696_v40 }
 0x7da   :  { %v5822_v14 = vpop.f32.mrf.mxu3 }
 0x7db   :  { %v5823_v37 = vadd.f32 %v5822_v14, %v5774_v22  ;;  %v5884_v39 = vpop.f32.mrf.mxu0 }
 0x7dd   :  { %v10862_v21 = vadd.f32 %v5871_v19, %v5823_v37 }
 0x7df   :  { %v5921_v9 = vpack.c.bf16 %v10862_v21, %v10860_v60  ;;  %v8266_v60 = vld [vmem:[#allocation3 + $0x38] sm:$0xff] }
 0x7e2   :  { %v5825_v52 = vpop.f32.mrf.mxu3 }
 0x7e3   :  { %v5826_v47 = vadd.f32 %v5825_v52, %v5777_v58  ;;  %v5886_v15 = vpop.f32.mrf.mxu0 }
 0x7e5   :  { %v10866_v34 = vadd.f32 %v5874_v18, %v5826_v47  ;;  %v5747_v18 = vpop.f32.mrf.mxu1 }
 0x7ea   :  { %v5827_v13 = vpop.f32.mrf.mxu3 }
 0x7eb   :  { %v5828_v41 = vadd.f32 %v5827_v13, %v5779_v0 }
 0x7ed   :  { %v10868_v25 = vadd.f32 %v5876_v16, %v5828_v41 }
 0x7ef   :  { %v5922_v50 = vpack.c.bf16 %v10868_v25, %v10866_v34  ;;  %v8264_v34 = vld [vmem:[#allocation3 + $0x28] sm:$0xff]  ;;  %v8265_v25 = vld [vmem:[#allocation3 + $0x30] sm:$0xff] }
 0x7f2   :  { %v5830_v22 = vpop.f32.mrf.mxu3 }
 0x7f3   :  { %v5831_v20 = vadd.f32 %v5830_v22, %v5782_v23  ;;  %v5791_v23 = vpop.f32.mrf.mxu2  ;;  %v5749_v22 = vpop.f32.mrf.mxu1 }
 0x7f4   :  { %v5750_v12 = vadd.f32 %v5749_v22, %v5701_v6 }
 0x7f5   :  { %v10872_v44 = vadd.f32 %v5879_v57, %v5831_v20  ;;  %v5748_v20 = vadd.f32 %v5747_v18, %v5699_v59 }
 0x7fa   :  { %v5832_v26 = vpop.f32.mrf.mxu3 }
 0x7fb   :  { %v5833_v56 = vadd.f32 %v5832_v26, %v5784_v45  ;;  %v5889_v45 = vpop.f32.mrf.mxu0  ;;  %v5793_v28 = vpop.f32.mrf.mxu2 }
 0x7fc   :  { %v5794_v14 = vadd.f32 %v5793_v28, %v5745_v62 }
 0x7fd   :  { %v10874_v58 = vadd.f32 %v5881_v3, %v5833_v56 }
 0x7ff   :  { %v5923_v0 = vpack.c.bf16 %v10874_v58, %v10872_v44  ;;  %v8263_v44 = vld [vmem:[#allocation3 + $0x20] sm:$0xff] }
 0x802   :  { %v5835_v4 = vpop.f32.mrf.mxu3 }
 0x803   :  { %v5836_v46 = vadd.f32 %v5835_v4, %v5787_v30  ;;  %v5891_v8 = vpop.f32.mrf.mxu0  ;;  %v5743_v30 = vadd.f32 %v5742_v49, %v5694_v5  ;;  %v5796_v16 = vpop.f32.mrf.mxu2 }
 0x804   :  { %v5752_v49 = vpop.f32.mrf.mxu1 }
 0x805   :  { %v10880_v33 = vadd.f32 %v5884_v39, %v5836_v46  ;;  %v5792_v11 = vadd.f32 %v5791_v23, %v5743_v30  ;;  %v5797_v39 = vadd.f32 %v5796_v16, %v5748_v20  ;;  %v5753_v10 = vadd.f32 %v5752_v49, %v5704_v54 }
 0x80a   :  { %v5837_v24 = vpop.f32.mrf.mxu3 }
 0x80b   :  { %v5838_v36 = vadd.f32 %v5837_v24, %v5789_v7  ;;  %v5894_v41 = vpop.f32.mrf.mxu0  ;;  %v5798_v43 = vpop.f32.mrf.mxu2 }
 0x80c   :  { %v5799_v26 = vadd.f32 %v5798_v43, %v5750_v12  ;;  %v5754_v7 = vpop.f32.mrf.mxu1 }
 0x80d   :  { %v5887_v1 = vadd.f32 %v5886_v15, %v5838_v36  ;;  %v5755_v36 = vadd.f32 %v5754_v7, %v5706_v48 }
 0x80f   :  { %v5924_v19 = vpack.c.bf16 %v5887_v1, %v10880_v33 }
 0x812   :  { %v5840_v27 = vpop.f32.mrf.mxu3 }
 0x813   :  { %v5841_v37 = vadd.f32 %v5840_v27, %v5792_v11  ;;  %v5896_v51 = vpop.f32.mrf.mxu0  ;;  %v5801_v53 = vpop.f32.mrf.mxu2 }
 0x814   :  { %v5802_v24 = vadd.f32 %v5801_v53, %v5753_v10 }
 0x815   :  { %v5890_v47 = vadd.f32 %v5889_v45, %v5841_v37 }
 0x81a   :  { %v5842_v57 = vpop.f32.mrf.mxu3 }
 0x81b   :  { %v5843_v52 = vadd.f32 %v5842_v57, %v5794_v14  ;;  %v5899_v55 = vpop.f32.mrf.mxu0  ;;  %v5803_v45 = vpop.f32.mrf.mxu2 }
 0x81c   :  { %v5804_v32 = vadd.f32 %v5803_v45, %v5755_v36 }
 0x81d   :  { %v5892_v13 = vadd.f32 %v5891_v8, %v5843_v52 }
 0x81f   :  { %v5925_v3 = vpack.c.bf16 %v5892_v13, %v5890_v47 }
 0x822   :  { %v5845_v35 = vpop.f32.mrf.mxu3 }
 0x823   :  { %v5846_v56 = vadd.f32 %v5845_v35, %v5797_v39  ;;  %v5901_v27 = vpop.f32.mrf.mxu0 }
 0x825   :  { %v5895_v46 = vadd.f32 %v5894_v41, %v5846_v56 }
 0x82a   :  { %v5847_v15 = vpop.f32.mrf.mxu3 }
 0x82b   :  { %v5848_v4 = vadd.f32 %v5847_v15, %v5799_v26 }
 0x82d   :  { %v5897_v23 = vadd.f32 %v5896_v51, %v5848_v4 }
 0x82f   :  { %v5926_v33 = vpack.c.bf16 %v5897_v23, %v5895_v46 }
 0x832   :  { %v5850_v31 = vpop.f32.mrf.mxu3 }
 0x833   :  { %v5851_v1 = vadd.f32 %v5850_v31, %v5802_v24 }
 0x835   :  { %v5900_v40 = vadd.f32 %v5899_v55, %v5851_v1 }
 0x83a   :  { %v5852_v28 = vpop.f32.mrf.mxu3 }
 0x83b   :  { %v5853_v5 = vadd.f32 %v5852_v28, %v5804_v32 }
 0x83d   :  { %v5902_v8 = vadd.f32 %v5901_v27, %v5853_v5 }
 0x83f   :  { %v5927_v30 = vpack.c.bf16 %v5902_v8, %v5900_v40 }
 0x841   :  { %5980 = vmatpush.bf16.msra.mxu1 %v5927_v30 }
 0x845   :  { %5981 = vmatpush.bf16.msra.mxu1 %v5926_v33 }
 0x849   :  { %5982 = vmatpush.bf16.msra.mxu1 %v5925_v3 }
 0x84d   :  { %5983 = vmatpush.bf16.msra.mxu1 %v5924_v19 }
 0x851   :  { %5984 = vmatpush.bf16.msra.mxu1 %v5923_v0 }
 0x855   :  { %5985 = vmatpush.bf16.msra.mxu1 %v5922_v50 }
 0x859   :  { %5986 = vmatpush.bf16.msra.mxu1 %v5921_v9 }
 0x85d   :  { %5987 = vmatpush.bf16.msra.mxu1 %v5920_v42 }
 0x860   :  { %5988 = vmatmul.bf16.vlgmr.msra.gmra.mxu1 %v8259_v2 }
 0x870   :  { %5993 = vmatmul.bf16.gmra.mxu1 %v8260_v38 }
 0x880   :  { %5998 = vmatmul.bf16.gmra.mxu1 %v8261_v29 }
 0x890   :  { %6003 = vmatmul.bf16.gmra.mxu1 %v8262_v63 }
 0x8a0   :  { %6008 = vmatmul.bf16.gmra.mxu1 %v8263_v44 }
 0x8b0   :  { %6013 = vmatmul.bf16.gmra.mxu1 %v8264_v34 }
 0x8c0   :  { %6018 = vmatmul.bf16.gmra.mxu1 %v8265_v25 }
 0x8d0   :  { %6023 = vmatmul.bf16.gmra.mxu1 %v8266_v60 }
 0x8dd   :  { %v5989_v17 = vpop.f32.mrf.mxu1 }
 0x8de   :  { %v5990_v42 = vadd.f32 %v8299_v61, %v5989_v17 }
 0x8e0   :  { %6029 = vst [vmem:[#allocation15] sm:$0xff] %v5990_v42 }
 0x8e5   :  { %v5991_v21 = vpop.f32.mrf.mxu1 }
 0x8e6   :  { %v5992_v9 = vadd.f32 %v8299_v61, %v5991_v21 }
 0x8e8   :  { %6030 = vst [vmem:[#allocation15 + $0x8] sm:$0xff] %v5992_v9 }
 0x8ed   :  { %v5994_v50 = vpop.f32.mrf.mxu1 }
 0x8ee   :  { %v5995_v58 = vadd.f32 %v8299_v61, %v5994_v50 }
 0x8f0   :  { %6031 = vst [vmem:[#allocation15 + $0x10] sm:$0xff] %v5995_v58 }
 0x8f5   :  { %v5996_v0 = vpop.f32.mrf.mxu1 }
 0x8f6   :  { %v5997_v19 = vadd.f32 %v8299_v61, %v5996_v0 }
 0x8f8   :  { %6032 = vst [vmem:[#allocation15 + $0x18] sm:$0xff] %v5997_v19 }
 0x8fd   :  { %v5999_v18 = vpop.f32.mrf.mxu1 }
 0x8fe   :  { %v6000_v11 = vadd.f32 %v8299_v61, %v5999_v18 }
 0x900   :  { %6033 = vst [vmem:[#allocation15 + $0x20] sm:$0xff] %v6000_v11 }
 0x905   :  { %v6001_v62 = vpop.f32.mrf.mxu1 }
 0x906   :  { %v6002_v16 = vadd.f32 %v8299_v61, %v6001_v62 }
 0x908   :  { %6034 = vst [vmem:[#allocation15 + $0x28] sm:$0xff] %v6002_v16 }
 0x90d   :  { %v6004_v14 = vpop.f32.mrf.mxu1 }
 0x90e   :  { %v6005_v37 = vadd.f32 %v8299_v61, %v6004_v14 }
 0x910   :  { %6035 = vst [vmem:[#allocation15 + $0x30] sm:$0xff] %v6005_v37 }
 0x915   :  { %v6006_v57 = vpop.f32.mrf.mxu1 }
 0x916   :  { %v6007_v52 = vadd.f32 %v8299_v61, %v6006_v57 }
 0x918   :  { %6036 = vst [vmem:[#allocation15 + $0x38] sm:$0xff] %v6007_v52 }
 0x91d   :  { %v6009_v47 = vpop.f32.mrf.mxu1 }
 0x91e   :  { %v6010_v13 = vadd.f32 %v8299_v61, %v6009_v47 }
 0x920   :  { %6037 = vst [vmem:[#allocation15 + $0x40] sm:$0xff] %v6010_v13 }
 0x925   :  { %v6011_v41 = vpop.f32.mrf.mxu1 }
 0x926   :  { %v6012_v3 = vadd.f32 %v8299_v61, %v6011_v41 }
 0x928   :  { %6038 = vst [vmem:[#allocation15 + $0x48] sm:$0xff] %v6012_v3 }
 0x92d   :  { %v6014_v22 = vpop.f32.mrf.mxu1 }
 0x92e   :  { %v6015_v59 = vadd.f32 %v8299_v61, %v6014_v22 }
 0x930   :  { %6039 = vst [vmem:[#allocation15 + $0x50] sm:$0xff] %v6015_v59 }
 0x935   :  { %v6016_v43 = vpop.f32.mrf.mxu1 }
 0x936   :  { %v6017_v35 = vadd.f32 %v8299_v61, %v6016_v43 }
 0x938   :  { %6040 = vst [vmem:[#allocation15 + $0x58] sm:$0xff] %v6017_v35 }
 0x93d   :  { %v6019_v6 = vpop.f32.mrf.mxu1 }
 0x93e   :  { %v6020_v20 = vadd.f32 %v8299_v61, %v6019_v6 }
 0x940   :  { %6041 = vst [vmem:[#allocation15 + $0x60] sm:$0xff] %v6020_v20 }
 0x945   :  { %v6021_v39 = vpop.f32.mrf.mxu1 }
 0x946   :  { %v6022_v12 = vadd.f32 %v8299_v61, %v6021_v39 }
 0x948   :  { %6042 = vst [vmem:[#allocation15 + $0x68] sm:$0xff] %v6022_v12 }
 0x94d   :  { %v6024_v51 = vpop.f32.mrf.mxu1 }
 0x94e   :  { %v6025_v26 = vadd.f32 %v8299_v61, %v6024_v51 }
 0x950   :  { %6043 = vst [vmem:[#allocation15 + $0x70] sm:$0xff] %v6025_v26 }
 0x955   :  { %v6026_v56 = vpop.f32.mrf.mxu1 }
 0x956   :  { %v6027_v15 = vadd.f32 %v8299_v61, %v6026_v56 }
 0x958   :  { %6044 = vst [vmem:[#allocation15 + $0x78] sm:$0xff] %v6027_v15 }
 0x959   :  { %6057 = dma.vmem_to_hbm [thread:$0]  %s6050_s13, 2048, %s6052_s3, [#allocation5], %s8527_s21, %s8527_s21, %s8528_s22  }
 0x95a   :  { %8511 = dma.done.wait [#allocation5], 2048  }
 0x95b   :  { %8512 = vsyncadd [#allocation5], 4294965248 }
 0x95c   :  { %6062 = vsyncpa [#allocation4], 1 }
 0x95d   :  { %6063 = vsyncpa [#allocation7], 1 }
 0x95e   :  { %6064 = vsyncpa [#allocation10], 1 }
 0x95f   :  { %6065 = vsyncpa [#allocation13], 1 }
 0x960   :  { %6066 = vsyncpa [#allocation5], 1 }

</bundles_post_ra>
